<compile_context>
chip_gen: v6e
topology: v6e:2x2x1
jax: 0.10.0
libtpu: 0.0.40
codegen_flags: <defaults>
</compile_context>

<pallas_src>
import math
import numpy as np
import jax
import jax.numpy as jnp
from jax.experimental import pallas as pl
from jax.experimental.pallas import tpu as pltpu

EPS_SIM = 1e-8
EPS_LN = 1e-5


def _layer_norm_f(z, g, b):
    """LayerNorm over the feature axis (axis 0) of an (F, TB) tile; g, b: (F, 1)."""
    mu = jnp.mean(z, axis=0, keepdims=True)
    var = jnp.mean((z - mu) ** 2, axis=0, keepdims=True)
    return (z - mu) * jax.lax.rsqrt(var + EPS_LN) * g + b


def uflann_kernel(
    x_ref,                               # (D, TB)   features(sublanes) x batch(lanes)
    attn_w_ref, attn_b_ref,              # (D, 3H)   columns ordered [q, k, v] per head
    an_g_ref, an_b_ref,                  # (D, 1)    attn LayerNorm
    w1_ref, b1_ref, n1_g_ref, n1_b_ref,  # (H1, D), (H1, 1) x3
    w2_ref, b2_ref, n2_g_ref, n2_b_ref,  # (H2, H1), (H2, 1) x3
    wo_ref, bo_ref,                      # (O, H2), (O, 1)
    out_ref,                             # (O, TB)
):
    x = x_ref[...].astype(jnp.float32)                       # (D, TB)
    d = x.shape[0]
    attn_w = attn_w_ref[...]
    attn_b = attn_b_ref[...]
    num_heads = attn_w.shape[1] // 3
    scale = 1.0 / math.sqrt(float(d))

    # ---- UFLAttention: per-feature affine -> 1/|diff| -> softmax -> matvec ----
    acc = jnp.zeros_like(x)
    for h in range(num_heads):                               # small static count -> unrolled
        wq = attn_w[:, 3 * h + 0:3 * h + 1]                  # (D, 1) static slices,
        wk = attn_w[:, 3 * h + 1:3 * h + 2]                  # no in-kernel relayout
        wv = attn_w[:, 3 * h + 2:3 * h + 3]
        bq = attn_b[:, 3 * h + 0:3 * h + 1]
        bk = attn_b[:, 3 * h + 1:3 * h + 2]
        bv = attn_b[:, 3 * h + 2:3 * h + 3]
        q = x * wq + bq                                      # (D, TB)
        k = x * wk + bk
        v = x * wv + bv
        # diff[j, i, b] = |q[j, b] - k[i, b]|  (matches torch unsqueeze(1)/(2)).
        # Softmax axis j is the LEADING axis -> reductions are pure VPU accumulates.
        diff = jnp.abs(q[:, None, :] - k[None, :, :]) + EPS_SIM    # (D_j, D_i, TB)
        sim = 1.0 / diff
        m = jnp.max(sim, axis=0)                                   # (D_i, TB)
        e = jnp.exp(sim - m[None, :, :])                           # (D_j, D_i, TB), <= 1
        num = jnp.sum(e * v[:, None, :], axis=0)                   # (D_i, TB)
        den = jnp.sum(e, axis=0)                                   # (D_i, TB)
        # Normalisation + 1/sqrt(D) on the (D, TB) result, not the D^2 tensor.
        # approx=False: sim reaches 1/EPS_SIM; keep exact math for the 1e-3 check.
        acc = acc + num * pl.reciprocal(den, approx=False)
    y = x + scale * acc

    # ---- activation + attn LayerNorm ----
    y = jnp.maximum(y, 0.0)
    y = _layer_norm_f(y, an_g_ref[...], an_b_ref[...])

    # ---- hidden layer 1: Linear -> ReLU -> LayerNorm ----
    y = jnp.dot(w1_ref[...], y, preferred_element_type=jnp.float32) + b1_ref[...]
    y = jnp.maximum(y, 0.0)
    y = _layer_norm_f(y, n1_g_ref[...], n1_b_ref[...])

    # ---- hidden layer 2: Linear -> ReLU -> LayerNorm ----
    y = jnp.dot(w2_ref[...], y, preferred_element_type=jnp.float32) + b2_ref[...]
    y = jnp.maximum(y, 0.0)
    y = _layer_norm_f(y, n2_g_ref[...], n2_b_ref[...])

    # ---- output projection (lane-dense (O, TB) store) ----
    y = jnp.dot(wo_ref[...], y, preferred_element_type=jnp.float32) + bo_ref[...]
    out_ref[...] = y.astype(out_ref.dtype)


def _choose_tile_batch(batch, dim):
    """Lane-axis batch tile: multiple of 128, VMEM-budgeted for the (D,D,tb)
    attention temporaries, and >= 2 grid steps when possible (megacore)."""
    lane = 128
    b_pad = pl.cdiv(batch, lane) * lane
    budget = 16 * 1024 * 1024                 # conservative temp budget (fits v7x VMEM)
    per_lane = 8 * dim * dim * 4              # ~8 live f32 (D, D, tb) temporaries
    tb = max(lane, (budget // per_lane) // lane * lane)
    tb = min(tb, 1024)
    if b_pad >= 2 * lane:                     # keep >= 2 grid steps for megacore
        tb = min(tb, max(lane, (b_pad // 2) // lane * lane))
    return min(tb, b_pad)


def uflann_forward(x, params, *, tb=None):
    B, D = x.shape
    O = params["wo"].shape[1]

    if tb is None:
        tb = _choose_tile_batch(B, D)
    assert tb % 128 == 0

    # ---- layout plumbing (host side only) ----
    b_pad = pl.cdiv(B, tb) * tb
    xt = jnp.pad(x.T, ((0, 0), (0, b_pad - B)))              # (D, b_pad), zero-pad lanes

    ordered = [
        params["attn_w"].T, params["attn_b"].T,              # (D, 3H)
        params["an_g"].T, params["an_b"].T,                  # (D, 1)
        params["w1"].T, params["b1"].T,                      # (H1, D), (H1, 1)
        params["n1_g"].T, params["n1_b"].T,
        params["w2"].T, params["b2"].T,                      # (H2, H1), (H2, 1)
        params["n2_g"].T, params["n2_b"].T,
        params["wo"].T, params["bo"].T,                      # (O, H2), (O, 1)
    ]

    grid = (b_pad // tb,)
    # All parameters are 2-D full-array blocks (resident across the grid).
    in_specs = [pl.BlockSpec((D, tb), lambda i: (0, i))] + [
        pl.BlockSpec(a.shape, lambda i: (0, 0)) for a in ordered
    ]
    out_specs = pl.BlockSpec((O, tb), lambda i: (0, i))

    # Explicit scoped-VMEM limit: >= 32 MiB (raises v5e's 16 MiB default),
    # capped below v7x's 64 MiB physical VMEM.
    attn_bytes = 8 * D * D * tb * 4
    io_bytes = 4 * (D + O) * tb * 4
    vmem_limit = max(32 * 1024 * 1024,
                     min(48 * 1024 * 1024, attn_bytes + io_bytes + 8 * 1024 * 1024))

    out_t = pl.pallas_call(
        uflann_kernel,
        out_shape=jax.ShapeDtypeStruct((O, b_pad), x.dtype),
        grid_spec=pltpu.PrefetchScalarGridSpec(
            num_scalar_prefetch=0,
            grid=grid,
            in_specs=in_specs,
            out_specs=out_specs,
        ),
        compiler_params=pltpu.CompilerParams(
            dimension_semantics=("parallel",),
            vmem_limit_bytes=int(vmem_limit),
        ),
    )(xt, *ordered)

    return out_t[:, :B].T                                    # (B, O)


# ---------------- pure-JAX reference (mirrors the PyTorch forward) ----------
def uflann_ref(x, p):
    D = x.shape[1]
    H = p["attn_w"].shape[0] // 3
    acc = jnp.zeros_like(x)
    for h in range(H):
        wq, wk, wv = p["attn_w"][3 * h], p["attn_w"][3 * h + 1], p["attn_w"][3 * h + 2]
        bq, bk, bv = p["attn_b"][3 * h], p["attn_b"][3 * h + 1], p["attn_b"][3 * h + 2]
        q = x * wq + bq
        k = x * wk + bk
        v = x * wv + bv
        diff = jnp.abs(q[:, None, :] - k[:, :, None]) + EPS_SIM
        sim = jax.nn.softmax(1.0 / diff, axis=-1) / jnp.sqrt(jnp.float32(D))
        acc = acc + jnp.einsum("bij,bj->bi", sim, v)
    y = x + acc
    y = jax.nn.relu(y)

    def ln(z, g, b):
        mu = z.mean(-1, keepdims=True)
        var = ((z - mu) ** 2).mean(-1, keepdims=True)
        return (z - mu) / jnp.sqrt(var + EPS_LN) * g + b

    y = ln(y, p["an_g"][0], p["an_b"][0])
    y = ln(jax.nn.relu(y @ p["w1"] + p["b1"][0]), p["n1_g"][0], p["n1_b"][0])
    y = ln(jax.nn.relu(y @ p["w2"] + p["b2"][0]), p["n2_g"][0], p["n2_b"][0])
    return y @ p["wo"] + p["bo"][0]


def make_params(key, input_dim, attn_heads, hidden_dims, output_dim=1):
    ks = jax.random.split(key, 8)
    H1, H2 = hidden_dims
    # UFLAttention: weights ~ U(0,1), biases = 0 (matches reset_parameters)
    attn_w = jax.random.uniform(ks[0], (3 * attn_heads, input_dim), jnp.float32)
    attn_b = jnp.zeros((3 * attn_heads, input_dim), jnp.float32)

    def linear(k, fan_in, fan_out):
        bound = 1.0 / math.sqrt(fan_in)
        kw, kb = jax.random.split(k)
        w = jax.random.uniform(kw, (fan_in, fan_out), jnp.float32, -bound, bound)
        b = jax.random.uniform(kb, (1, fan_out), jnp.float32, -bound, bound)
        return w, b

    w1, b1 = linear(ks[1], input_dim, H1)
    w2, b2 = linear(ks[2], H1, H2)
    wo, bo = linear(ks[3], H2, output_dim)
    return {
        "attn_w": attn_w, "attn_b": attn_b,
        "an_g": jnp.ones((1, input_dim), jnp.float32),
        "an_b": jnp.zeros((1, input_dim), jnp.float32),
        "w1": w1, "b1": b1,
        "n1_g": jnp.ones((1, H1), jnp.float32), "n1_b": jnp.zeros((1, H1), jnp.float32),
        "w2": w2, "b2": b2,
        "n2_g": jnp.ones((1, H2), jnp.float32), "n2_b": jnp.zeros((1, H2), jnp.float32),
        "wo": wo, "bo": bo,
    }


if __name__ == "__main__":
    B, D = 240, 32            # B deliberately not a multiple of the 128-lane tile
    attn_heads = 2
    hidden_dims = (32, 16)
    output_dim = 1

    key = jax.random.PRNGKey(0)
    kx, kp = jax.random.split(key)
    x = jax.random.normal(kx, (B, D), jnp.float32)
    params = make_params(kp, D, attn_heads, hidden_dims, output_dim)

    out = jax.block_until_ready(uflann_forward(x, params))
    ref = jax.block_until_ready(uflann_ref(x, params))
    np.testing.assert_allclose(np.asarray(out), np.asarray(ref), rtol=1e-3, atol=1e-3)

    print("KERNEL_OK")
</pallas_src>

<mosaic_0001>
module attributes {stable_mosaic.version = 11 : i64} {
  func.func @uflann_kernel(%arg0: i32, %arg1: memref<32x128xf32, #tpu.memory_space<vmem>>, %arg2: memref<32x6xf32, #tpu.memory_space<vmem>>, %arg3: memref<32x6xf32, #tpu.memory_space<vmem>>, %arg4: memref<32x1xf32, #tpu.memory_space<vmem>>, %arg5: memref<32x1xf32, #tpu.memory_space<vmem>>, %arg6: memref<32x32xf32, #tpu.memory_space<vmem>>, %arg7: memref<32x1xf32, #tpu.memory_space<vmem>>, %arg8: memref<32x1xf32, #tpu.memory_space<vmem>>, %arg9: memref<32x1xf32, #tpu.memory_space<vmem>>, %arg10: memref<16x32xf32, #tpu.memory_space<vmem>>, %arg11: memref<16x1xf32, #tpu.memory_space<vmem>>, %arg12: memref<16x1xf32, #tpu.memory_space<vmem>>, %arg13: memref<16x1xf32, #tpu.memory_space<vmem>>, %arg14: memref<1x16xf32, #tpu.memory_space<vmem>>, %arg15: memref<1x1xf32, #tpu.memory_space<vmem>>, %arg16: memref<1x128xf32, #tpu.memory_space<vmem>>) attributes {dimension_semantics = [#tpu.dimension_semantics<parallel>], iteration_bounds = array<i64: 2>, scalar_prefetch = 0 : i64, scratch_operands = 0 : i64, tpu.core_type = #tpu.core_type<tc>, window_params = [{transform_indices = @transform_0, window_bounds = array<i64: 32, 128>}, {pipeline_mode = #tpu.pipeline_mode<synchronous>, transform_indices = @transform_1, window_bounds = array<i64: 32, 6>}, {pipeline_mode = #tpu.pipeline_mode<synchronous>, transform_indices = @transform_2, window_bounds = array<i64: 32, 6>}, {pipeline_mode = #tpu.pipeline_mode<synchronous>, transform_indices = @transform_3, window_bounds = array<i64: 32, 1>}, {pipeline_mode = #tpu.pipeline_mode<synchronous>, transform_indices = @transform_4, window_bounds = array<i64: 32, 1>}, {pipeline_mode = #tpu.pipeline_mode<synchronous>, transform_indices = @transform_5, window_bounds = array<i64: 32, 32>}, {pipeline_mode = #tpu.pipeline_mode<synchronous>, transform_indices = @transform_6, window_bounds = array<i64: 32, 1>}, {pipeline_mode = #tpu.pipeline_mode<synchronous>, transform_indices = @transform_7, window_bounds = array<i64: 32, 1>}, {pipeline_mode = #tpu.pipeline_mode<synchronous>, transform_indices = @transform_8, window_bounds = array<i64: 32, 1>}, {pipeline_mode = #tpu.pipeline_mode<synchronous>, transform_indices = @transform_9, window_bounds = array<i64: 16, 32>}, {pipeline_mode = #tpu.pipeline_mode<synchronous>, transform_indices = @transform_10, window_bounds = array<i64: 16, 1>}, {pipeline_mode = #tpu.pipeline_mode<synchronous>, transform_indices = @transform_11, window_bounds = array<i64: 16, 1>}, {pipeline_mode = #tpu.pipeline_mode<synchronous>, transform_indices = @transform_12, window_bounds = array<i64: 16, 1>}, {pipeline_mode = #tpu.pipeline_mode<synchronous>, transform_indices = @transform_13, window_bounds = array<i64: 1, 16>}, {pipeline_mode = #tpu.pipeline_mode<synchronous>, transform_indices = @transform_14, window_bounds = array<i64: 1, 1>}, {transform_indices = @transform_15, window_bounds = array<i64: 1, 128>}]} {
    %c0 = arith.constant 0 : index
    %c0_0 = arith.constant 0 : index
    %0 = vector.load %arg1[%c0, %c0_0] : memref<32x128xf32, #tpu.memory_space<vmem>>, vector<32x128xf32>
    %c0_1 = arith.constant 0 : index
    %c0_2 = arith.constant 0 : index
    %1 = vector.load %arg2[%c0_1, %c0_2] : memref<32x6xf32, #tpu.memory_space<vmem>>, vector<32x6xf32>
    %c0_3 = arith.constant 0 : index
    %c0_4 = arith.constant 0 : index
    %2 = vector.load %arg3[%c0_3, %c0_4] : memref<32x6xf32, #tpu.memory_space<vmem>>, vector<32x6xf32>
    %cst = arith.constant 0.000000e+00 : f32
    %3 = vector.broadcast %cst : f32 to vector<32x128xf32>
    %4 = vector.extract_strided_slice %1 {offsets = [0, 0], sizes = [32, 1], strides = [1, 1]} : vector<32x6xf32> to vector<32x1xf32>
    %5 = vector.extract_strided_slice %1 {offsets = [0, 1], sizes = [32, 1], strides = [1, 1]} : vector<32x6xf32> to vector<32x1xf32>
    %6 = vector.extract_strided_slice %1 {offsets = [0, 2], sizes = [32, 1], strides = [1, 1]} : vector<32x6xf32> to vector<32x1xf32>
    %7 = vector.extract_strided_slice %2 {offsets = [0, 0], sizes = [32, 1], strides = [1, 1]} : vector<32x6xf32> to vector<32x1xf32>
    %8 = vector.extract_strided_slice %2 {offsets = [0, 1], sizes = [32, 1], strides = [1, 1]} : vector<32x6xf32> to vector<32x1xf32>
    %9 = vector.extract_strided_slice %2 {offsets = [0, 2], sizes = [32, 1], strides = [1, 1]} : vector<32x6xf32> to vector<32x1xf32>
    %10 = vector.broadcast %4 : vector<32x1xf32> to vector<32x128xf32>
    %11 = arith.mulf %0, %10 : vector<32x128xf32>
    %12 = vector.broadcast %7 : vector<32x1xf32> to vector<32x128xf32>
    %13 = arith.addf %11, %12 : vector<32x128xf32>
    %14 = vector.broadcast %5 : vector<32x1xf32> to vector<32x128xf32>
    %15 = arith.mulf %0, %14 : vector<32x128xf32>
    %16 = vector.broadcast %8 : vector<32x1xf32> to vector<32x128xf32>
    %17 = arith.addf %15, %16 : vector<32x128xf32>
    %18 = vector.broadcast %6 : vector<32x1xf32> to vector<32x128xf32>
    %19 = arith.mulf %0, %18 : vector<32x128xf32>
    %20 = vector.broadcast %9 : vector<32x1xf32> to vector<32x128xf32>
    %21 = arith.addf %19, %20 : vector<32x128xf32>
    %22 = vector.shape_cast %13 : vector<32x128xf32> to vector<32x1x128xf32>
    %23 = vector.shape_cast %17 : vector<32x128xf32> to vector<1x32x128xf32>
    %24 = vector.broadcast %22 : vector<32x1x128xf32> to vector<32x32x128xf32>
    %25 = vector.broadcast %23 : vector<1x32x128xf32> to vector<32x32x128xf32>
    %26 = arith.subf %24, %25 : vector<32x32x128xf32>
    %27 = math.absf %26 : vector<32x32x128xf32>
    %cst_5 = arith.constant 9.99999993E-9 : f32
    %28 = vector.broadcast %cst_5 : f32 to vector<32x32x128xf32>
    %29 = arith.addf %27, %28 : vector<32x32x128xf32>
    %cst_6 = arith.constant 1.000000e+00 : f32
    %30 = vector.broadcast %cst_6 : f32 to vector<32x32x128xf32>
    %31 = arith.divf %30, %29 : vector<32x32x128xf32>
    %cst_7 = arith.constant dense<0xFF800000> : vector<32x128xf32>
    %32 = vector.multi_reduction <maximumf>, %31, %cst_7 [0] : vector<32x32x128xf32> to vector<32x128xf32>
    %33 = vector.shape_cast %32 : vector<32x128xf32> to vector<1x32x128xf32>
    %34 = vector.broadcast %33 : vector<1x32x128xf32> to vector<32x32x128xf32>
    %35 = arith.subf %31, %34 : vector<32x32x128xf32>
    %36 = math.exp %35 : vector<32x32x128xf32>
    %37 = vector.shape_cast %21 : vector<32x128xf32> to vector<32x1x128xf32>
    %38 = vector.broadcast %37 : vector<32x1x128xf32> to vector<32x32x128xf32>
    %39 = arith.mulf %36, %38 : vector<32x32x128xf32>
    %cst_8 = arith.constant dense<0.000000e+00> : vector<32x128xf32>
    %40 = vector.multi_reduction <add>, %39, %cst_8 [0] : vector<32x32x128xf32> to vector<32x128xf32>
    %cst_9 = arith.constant dense<0.000000e+00> : vector<32x128xf32>
    %41 = vector.multi_reduction <add>, %36, %cst_9 [0] : vector<32x32x128xf32> to vector<32x128xf32>
    %42 = tpu.reciprocal %41 : vector<32x128xf32> -> vector<32x128xf32>
    %43 = arith.mulf %40, %42 : vector<32x128xf32>
    %44 = arith.addf %3, %43 : vector<32x128xf32>
    %45 = vector.extract_strided_slice %1 {offsets = [0, 3], sizes = [32, 1], strides = [1, 1]} : vector<32x6xf32> to vector<32x1xf32>
    %46 = vector.extract_strided_slice %1 {offsets = [0, 4], sizes = [32, 1], strides = [1, 1]} : vector<32x6xf32> to vector<32x1xf32>
    %47 = vector.extract_strided_slice %1 {offsets = [0, 5], sizes = [32, 1], strides = [1, 1]} : vector<32x6xf32> to vector<32x1xf32>
    %48 = vector.extract_strided_slice %2 {offsets = [0, 3], sizes = [32, 1], strides = [1, 1]} : vector<32x6xf32> to vector<32x1xf32>
    %49 = vector.extract_strided_slice %2 {offsets = [0, 4], sizes = [32, 1], strides = [1, 1]} : vector<32x6xf32> to vector<32x1xf32>
    %50 = vector.extract_strided_slice %2 {offsets = [0, 5], sizes = [32, 1], strides = [1, 1]} : vector<32x6xf32> to vector<32x1xf32>
    %51 = vector.broadcast %45 : vector<32x1xf32> to vector<32x128xf32>
    %52 = arith.mulf %0, %51 : vector<32x128xf32>
    %53 = vector.broadcast %48 : vector<32x1xf32> to vector<32x128xf32>
    %54 = arith.addf %52, %53 : vector<32x128xf32>
    %55 = vector.broadcast %46 : vector<32x1xf32> to vector<32x128xf32>
    %56 = arith.mulf %0, %55 : vector<32x128xf32>
    %57 = vector.broadcast %49 : vector<32x1xf32> to vector<32x128xf32>
    %58 = arith.addf %56, %57 : vector<32x128xf32>
    %59 = vector.broadcast %47 : vector<32x1xf32> to vector<32x128xf32>
    %60 = arith.mulf %0, %59 : vector<32x128xf32>
    %61 = vector.broadcast %50 : vector<32x1xf32> to vector<32x128xf32>
    %62 = arith.addf %60, %61 : vector<32x128xf32>
    %63 = vector.shape_cast %54 : vector<32x128xf32> to vector<32x1x128xf32>
    %64 = vector.shape_cast %58 : vector<32x128xf32> to vector<1x32x128xf32>
    %65 = vector.broadcast %63 : vector<32x1x128xf32> to vector<32x32x128xf32>
    %66 = vector.broadcast %64 : vector<1x32x128xf32> to vector<32x32x128xf32>
    %67 = arith.subf %65, %66 : vector<32x32x128xf32>
    %68 = math.absf %67 : vector<32x32x128xf32>
    %cst_10 = arith.constant 9.99999993E-9 : f32
    %69 = vector.broadcast %cst_10 : f32 to vector<32x32x128xf32>
    %70 = arith.addf %68, %69 : vector<32x32x128xf32>
    %cst_11 = arith.constant 1.000000e+00 : f32
    %71 = vector.broadcast %cst_11 : f32 to vector<32x32x128xf32>
    %72 = arith.divf %71, %70 : vector<32x32x128xf32>
    %cst_12 = arith.constant dense<0xFF800000> : vector<32x128xf32>
    %73 = vector.multi_reduction <maximumf>, %72, %cst_12 [0] : vector<32x32x128xf32> to vector<32x128xf32>
    %74 = vector.shape_cast %73 : vector<32x128xf32> to vector<1x32x128xf32>
    %75 = vector.broadcast %74 : vector<1x32x128xf32> to vector<32x32x128xf32>
    %76 = arith.subf %72, %75 : vector<32x32x128xf32>
    %77 = math.exp %76 : vector<32x32x128xf32>
    %78 = vector.shape_cast %62 : vector<32x128xf32> to vector<32x1x128xf32>
    %79 = vector.broadcast %78 : vector<32x1x128xf32> to vector<32x32x128xf32>
    %80 = arith.mulf %77, %79 : vector<32x32x128xf32>
    %cst_13 = arith.constant dense<0.000000e+00> : vector<32x128xf32>
    %81 = vector.multi_reduction <add>, %80, %cst_13 [0] : vector<32x32x128xf32> to vector<32x128xf32>
    %cst_14 = arith.constant dense<0.000000e+00> : vector<32x128xf32>
    %82 = vector.multi_reduction <add>, %77, %cst_14 [0] : vector<32x32x128xf32> to vector<32x128xf32>
    %83 = tpu.reciprocal %82 : vector<32x128xf32> -> vector<32x128xf32>
    %84 = arith.mulf %81, %83 : vector<32x128xf32>
    %85 = arith.addf %44, %84 : vector<32x128xf32>
    %cst_15 = arith.constant 0.176776692 : f32
    %86 = vector.broadcast %cst_15 : f32 to vector<32x128xf32>
    %87 = arith.mulf %86, %85 : vector<32x128xf32>
    %88 = arith.addf %0, %87 : vector<32x128xf32>
    %cst_16 = arith.constant 0.000000e+00 : f32
    %89 = vector.broadcast %cst_16 : f32 to vector<32x128xf32>
    %90 = arith.maximumf %88, %89 : vector<32x128xf32>
    %c0_17 = arith.constant 0 : index
    %c0_18 = arith.constant 0 : index
    %91 = vector.load %arg4[%c0_17, %c0_18] : memref<32x1xf32, #tpu.memory_space<vmem>>, vector<32x1xf32>
    %c0_19 = arith.constant 0 : index
    %c0_20 = arith.constant 0 : index
    %92 = vector.load %arg5[%c0_19, %c0_20] : memref<32x1xf32, #tpu.memory_space<vmem>>, vector<32x1xf32>
    %cst_21 = arith.constant dense<0.000000e+00> : vector<128xf32>
    %93 = vector.multi_reduction <add>, %90, %cst_21 [0] : vector<32x128xf32> to vector<128xf32>
    %94 = vector.shape_cast %93 : vector<128xf32> to vector<1x128xf32>
    %cst_22 = arith.constant 3.200000e+01 : f32
    %95 = vector.broadcast %cst_22 : f32 to vector<1x128xf32>
    %96 = arith.divf %94, %95 : vector<1x128xf32>
    %97 = vector.broadcast %96 : vector<1x128xf32> to vector<32x128xf32>
    %98 = arith.subf %90, %97 : vector<32x128xf32>
    %99 = arith.mulf %98, %98 : vector<32x128xf32>
    %cst_23 = arith.constant dense<0.000000e+00> : vector<128xf32>
    %100 = vector.multi_reduction <add>, %99, %cst_23 [0] : vector<32x128xf32> to vector<128xf32>
    %101 = vector.shape_cast %100 : vector<128xf32> to vector<1x128xf32>
    %cst_24 = arith.constant 3.200000e+01 : f32
    %102 = vector.broadcast %cst_24 : f32 to vector<1x128xf32>
    %103 = arith.divf %101, %102 : vector<1x128xf32>
    %104 = vector.broadcast %96 : vector<1x128xf32> to vector<32x128xf32>
    %105 = arith.subf %90, %104 : vector<32x128xf32>
    %cst_25 = arith.constant 9.99999974E-6 : f32
    %106 = vector.broadcast %cst_25 : f32 to vector<1x128xf32>
    %107 = arith.addf %103, %106 : vector<1x128xf32>
    %108 = math.rsqrt %107 : vector<1x128xf32>
    %109 = vector.broadcast %108 : vector<1x128xf32> to vector<32x128xf32>
    %110 = arith.mulf %105, %109 : vector<32x128xf32>
    %111 = vector.broadcast %91 : vector<32x1xf32> to vector<32x128xf32>
    %112 = arith.mulf %110, %111 : vector<32x128xf32>
    %113 = vector.broadcast %92 : vector<32x1xf32> to vector<32x128xf32>
    %114 = arith.addf %112, %113 : vector<32x128xf32>
    %c0_26 = arith.constant 0 : index
    %c0_27 = arith.constant 0 : index
    %115 = vector.load %arg6[%c0_26, %c0_27] : memref<32x32xf32, #tpu.memory_space<vmem>>, vector<32x32xf32>
    %cst_28 = arith.constant dense<0.000000e+00> : vector<32x128xf32>
    %116 = tpu.matmul %115, %114, %cst_28 {dimension_numbers = #tpu.dot_dimension_numbers<[1], [0], [0], [1], [0, 0, 1, 1], [], []>} : vector<32x32xf32>, vector<32x128xf32>, vector<32x128xf32> -> vector<32x128xf32>
    %c0_29 = arith.constant 0 : index
    %c0_30 = arith.constant 0 : index
    %117 = vector.load %arg7[%c0_29, %c0_30] : memref<32x1xf32, #tpu.memory_space<vmem>>, vector<32x1xf32>
    %118 = vector.broadcast %117 : vector<32x1xf32> to vector<32x128xf32>
    %119 = arith.addf %116, %118 : vector<32x128xf32>
    %cst_31 = arith.constant 0.000000e+00 : f32
    %120 = vector.broadcast %cst_31 : f32 to vector<32x128xf32>
    %121 = arith.maximumf %119, %120 : vector<32x128xf32>
    %c0_32 = arith.constant 0 : index
    %c0_33 = arith.constant 0 : index
    %122 = vector.load %arg8[%c0_32, %c0_33] : memref<32x1xf32, #tpu.memory_space<vmem>>, vector<32x1xf32>
    %c0_34 = arith.constant 0 : index
    %c0_35 = arith.constant 0 : index
    %123 = vector.load %arg9[%c0_34, %c0_35] : memref<32x1xf32, #tpu.memory_space<vmem>>, vector<32x1xf32>
    %cst_36 = arith.constant dense<0.000000e+00> : vector<128xf32>
    %124 = vector.multi_reduction <add>, %121, %cst_36 [0] : vector<32x128xf32> to vector<128xf32>
    %125 = vector.shape_cast %124 : vector<128xf32> to vector<1x128xf32>
    %cst_37 = arith.constant 3.200000e+01 : f32
    %126 = vector.broadcast %cst_37 : f32 to vector<1x128xf32>
    %127 = arith.divf %125, %126 : vector<1x128xf32>
    %128 = vector.broadcast %127 : vector<1x128xf32> to vector<32x128xf32>
    %129 = arith.subf %121, %128 : vector<32x128xf32>
    %130 = arith.mulf %129, %129 : vector<32x128xf32>
    %cst_38 = arith.constant dense<0.000000e+00> : vector<128xf32>
    %131 = vector.multi_reduction <add>, %130, %cst_38 [0] : vector<32x128xf32> to vector<128xf32>
    %132 = vector.shape_cast %131 : vector<128xf32> to vector<1x128xf32>
    %cst_39 = arith.constant 3.200000e+01 : f32
    %133 = vector.broadcast %cst_39 : f32 to vector<1x128xf32>
    %134 = arith.divf %132, %133 : vector<1x128xf32>
    %135 = vector.broadcast %127 : vector<1x128xf32> to vector<32x128xf32>
    %136 = arith.subf %121, %135 : vector<32x128xf32>
    %cst_40 = arith.constant 9.99999974E-6 : f32
    %137 = vector.broadcast %cst_40 : f32 to vector<1x128xf32>
    %138 = arith.addf %134, %137 : vector<1x128xf32>
    %139 = math.rsqrt %138 : vector<1x128xf32>
    %140 = vector.broadcast %139 : vector<1x128xf32> to vector<32x128xf32>
    %141 = arith.mulf %136, %140 : vector<32x128xf32>
    %142 = vector.broadcast %122 : vector<32x1xf32> to vector<32x128xf32>
    %143 = arith.mulf %141, %142 : vector<32x128xf32>
    %144 = vector.broadcast %123 : vector<32x1xf32> to vector<32x128xf32>
    %145 = arith.addf %143, %144 : vector<32x128xf32>
    %c0_41 = arith.constant 0 : index
    %c0_42 = arith.constant 0 : index
    %146 = vector.load %arg10[%c0_41, %c0_42] : memref<16x32xf32, #tpu.memory_space<vmem>>, vector<16x32xf32>
    %cst_43 = arith.constant dense<0.000000e+00> : vector<16x128xf32>
    %147 = tpu.matmul %146, %145, %cst_43 {dimension_numbers = #tpu.dot_dimension_numbers<[1], [0], [0], [1], [0, 0, 1, 1], [], []>} : vector<16x32xf32>, vector<32x128xf32>, vector<16x128xf32> -> vector<16x128xf32>
    %c0_44 = arith.constant 0 : index
    %c0_45 = arith.constant 0 : index
    %148 = vector.load %arg11[%c0_44, %c0_45] : memref<16x1xf32, #tpu.memory_space<vmem>>, vector<16x1xf32>
    %149 = vector.broadcast %148 : vector<16x1xf32> to vector<16x128xf32>
    %150 = arith.addf %147, %149 : vector<16x128xf32>
    %cst_46 = arith.constant 0.000000e+00 : f32
    %151 = vector.broadcast %cst_46 : f32 to vector<16x128xf32>
    %152 = arith.maximumf %150, %151 : vector<16x128xf32>
    %c0_47 = arith.constant 0 : index
    %c0_48 = arith.constant 0 : index
    %153 = vector.load %arg12[%c0_47, %c0_48] : memref<16x1xf32, #tpu.memory_space<vmem>>, vector<16x1xf32>
    %c0_49 = arith.constant 0 : index
    %c0_50 = arith.constant 0 : index
    %154 = vector.load %arg13[%c0_49, %c0_50] : memref<16x1xf32, #tpu.memory_space<vmem>>, vector<16x1xf32>
    %cst_51 = arith.constant dense<0.000000e+00> : vector<128xf32>
    %155 = vector.multi_reduction <add>, %152, %cst_51 [0] : vector<16x128xf32> to vector<128xf32>
    %156 = vector.shape_cast %155 : vector<128xf32> to vector<1x128xf32>
    %cst_52 = arith.constant 1.600000e+01 : f32
    %157 = vector.broadcast %cst_52 : f32 to vector<1x128xf32>
    %158 = arith.divf %156, %157 : vector<1x128xf32>
    %159 = vector.broadcast %158 : vector<1x128xf32> to vector<16x128xf32>
    %160 = arith.subf %152, %159 : vector<16x128xf32>
    %161 = arith.mulf %160, %160 : vector<16x128xf32>
    %cst_53 = arith.constant dense<0.000000e+00> : vector<128xf32>
    %162 = vector.multi_reduction <add>, %161, %cst_53 [0] : vector<16x128xf32> to vector<128xf32>
    %163 = vector.shape_cast %162 : vector<128xf32> to vector<1x128xf32>
    %cst_54 = arith.constant 1.600000e+01 : f32
    %164 = vector.broadcast %cst_54 : f32 to vector<1x128xf32>
    %165 = arith.divf %163, %164 : vector<1x128xf32>
    %166 = vector.broadcast %158 : vector<1x128xf32> to vector<16x128xf32>
    %167 = arith.subf %152, %166 : vector<16x128xf32>
    %cst_55 = arith.constant 9.99999974E-6 : f32
    %168 = vector.broadcast %cst_55 : f32 to vector<1x128xf32>
    %169 = arith.addf %165, %168 : vector<1x128xf32>
    %170 = math.rsqrt %169 : vector<1x128xf32>
    %171 = vector.broadcast %170 : vector<1x128xf32> to vector<16x128xf32>
    %172 = arith.mulf %167, %171 : vector<16x128xf32>
    %173 = vector.broadcast %153 : vector<16x1xf32> to vector<16x128xf32>
    %174 = arith.mulf %172, %173 : vector<16x128xf32>
    %175 = vector.broadcast %154 : vector<16x1xf32> to vector<16x128xf32>
    %176 = arith.addf %174, %175 : vector<16x128xf32>
    %c0_56 = arith.constant 0 : index
    %c0_57 = arith.constant 0 : index
    %177 = vector.load %arg14[%c0_56, %c0_57] : memref<1x16xf32, #tpu.memory_space<vmem>>, vector<1x16xf32>
    %cst_58 = arith.constant dense<0.000000e+00> : vector<1x128xf32>
    %178 = tpu.matmul %177, %176, %cst_58 {dimension_numbers = #tpu.dot_dimension_numbers<[1], [0], [0], [1], [0, 0, 1, 1], [], []>} : vector<1x16xf32>, vector<16x128xf32>, vector<1x128xf32> -> vector<1x128xf32>
    %c0_59 = arith.constant 0 : index
    %c0_60 = arith.constant 0 : index
    %179 = vector.load %arg15[%c0_59, %c0_60] : memref<1x1xf32, #tpu.memory_space<vmem>>, vector<1x1xf32>
    %180 = vector.broadcast %179 : vector<1x1xf32> to vector<1x128xf32>
    %181 = arith.addf %178, %180 : vector<1x128xf32>
    %c0_61 = arith.constant 0 : index
    %c0_62 = arith.constant 0 : index
    %182 = vector.load %arg16[%c0_61, %c0_62] : memref<1x128xf32, #tpu.memory_space<vmem>>, vector<1x128xf32>
    tpu.vector_store %arg16[%c0_61, %c0_62], %181 {strides = array<i32>} : memref<1x128xf32, #tpu.memory_space<vmem>>, vector<1x128xf32>,
    return
  }
  func.func @transform_0(%arg0: i32) -> (i32, i32) {
    %c0_i32 = arith.constant 0 : i32
    %c0_i32_0 = arith.constant 0 : i32
    return %c0_i32, %arg0 : i32, i32
  }
  func.func @transform_1(%arg0: i32) -> (i32, i32) {
    %c0_i32 = arith.constant 0 : i32
    %c0_i32_0 = arith.constant 0 : i32
    %c0_i32_1 = arith.constant 0 : i32
    return %c0_i32, %c0_i32_0 : i32, i32
  }
  func.func @transform_2(%arg0: i32) -> (i32, i32) {
    %c0_i32 = arith.constant 0 : i32
    %c0_i32_0 = arith.constant 0 : i32
    %c0_i32_1 = arith.constant 0 : i32
    return %c0_i32, %c0_i32_0 : i32, i32
  }
  func.func @transform_3(%arg0: i32) -> (i32, i32) {
    %c0_i32 = arith.constant 0 : i32
    %c0_i32_0 = arith.constant 0 : i32
    %c0_i32_1 = arith.constant 0 : i32
    return %c0_i32, %c0_i32_0 : i32, i32
  }
  func.func @transform_4(%arg0: i32) -> (i32, i32) {
    %c0_i32 = arith.constant 0 : i32
    %c0_i32_0 = arith.constant 0 : i32
    %c0_i32_1 = arith.constant 0 : i32
    return %c0_i32, %c0_i32_0 : i32, i32
  }
  func.func @transform_5(%arg0: i32) -> (i32, i32) {
    %c0_i32 = arith.constant 0 : i32
    %c0_i32_0 = arith.constant 0 : i32
    %c0_i32_1 = arith.constant 0 : i32
    return %c0_i32, %c0_i32_0 : i32, i32
  }
  func.func @transform_6(%arg0: i32) -> (i32, i32) {
    %c0_i32 = arith.constant 0 : i32
    %c0_i32_0 = arith.constant 0 : i32
    %c0_i32_1 = arith.constant 0 : i32
    return %c0_i32, %c0_i32_0 : i32, i32
  }
  func.func @transform_7(%arg0: i32) -> (i32, i32) {
    %c0_i32 = arith.constant 0 : i32
    %c0_i32_0 = arith.constant 0 : i32
    %c0_i32_1 = arith.constant 0 : i32
    return %c0_i32, %c0_i32_0 : i32, i32
  }
  func.func @transform_8(%arg0: i32) -> (i32, i32) {
    %c0_i32 = arith.constant 0 : i32
    %c0_i32_0 = arith.constant 0 : i32
    %c0_i32_1 = arith.constant 0 : i32
    return %c0_i32, %c0_i32_0 : i32, i32
  }
  func.func @transform_9(%arg0: i32) -> (i32, i32) {
    %c0_i32 = arith.constant 0 : i32
    %c0_i32_0 = arith.constant 0 : i32
    %c0_i32_1 = arith.constant 0 : i32
    return %c0_i32, %c0_i32_0 : i32, i32
  }
  func.func @transform_10(%arg0: i32) -> (i32, i32) {
    %c0_i32 = arith.constant 0 : i32
    %c0_i32_0 = arith.constant 0 : i32
    %c0_i32_1 = arith.constant 0 : i32
    return %c0_i32, %c0_i32_0 : i32, i32
  }
  func.func @transform_11(%arg0: i32) -> (i32, i32) {
    %c0_i32 = arith.constant 0 : i32
    %c0_i32_0 = arith.constant 0 : i32
    %c0_i32_1 = arith.constant 0 : i32
    return %c0_i32, %c0_i32_0 : i32, i32
  }
  func.func @transform_12(%arg0: i32) -> (i32, i32) {
    %c0_i32 = arith.constant 0 : i32
    %c0_i32_0 = arith.constant 0 : i32
    %c0_i32_1 = arith.constant 0 : i32
    return %c0_i32, %c0_i32_0 : i32, i32
  }
  func.func @transform_13(%arg0: i32) -> (i32, i32) {
    %c0_i32 = arith.constant 0 : i32
    %c0_i32_0 = arith.constant 0 : i32
    %c0_i32_1 = arith.constant 0 : i32
    return %c0_i32, %c0_i32_0 : i32, i32
  }
  func.func @transform_14(%arg0: i32) -> (i32, i32) {
    %c0_i32 = arith.constant 0 : i32
    %c0_i32_0 = arith.constant 0 : i32
    %c0_i32_1 = arith.constant 0 : i32
    return %c0_i32, %c0_i32_0 : i32, i32
  }
  func.func @transform_15(%arg0: i32) -> (i32, i32) {
    %c0_i32 = arith.constant 0 : i32
    %c0_i32_0 = arith.constant 0 : i32
    return %c0_i32, %arg0 : i32, i32
  }
}

</mosaic_0001>

<bundles_post_ra>
// kernel: tpu_custom_call.1
= control target key start
LH: loop header
LB: loop body
LE: loop exit
PB: predicated region body
PF: predicated region fallthrough
CT: control target
= control target key end

     0   :  { %s12378_s0 = inlined_call_operand.vmem [shape: f32[32,256], index: 0, kind: input, shape index: {}]   ;;  %s12379_s1 = inlined_call_operand.vmem [shape: f32[32,6], index: 1, kind: input, shape index: {}]   ;;  %s12380_s2 = inlined_call_operand.vmem [shape: f32[32,6], index: 2, kind: input, shape index: {}]   ;;  %s12381_s3 = inlined_call_operand.vmem [shape: f32[32,1], index: 3, kind: input, shape index: {}]   ;;  %s12382_s4 = inlined_call_operand.vmem [shape: f32[32,1], index: 4, kind: input, shape index: {}]   ;;  %s12383_s5 = inlined_call_operand.vmem [shape: f32[32,32], index: 5, kind: input, shape index: {}]   ;;  %s12384_s6 = inlined_call_operand.vmem [shape: f32[32,1], index: 6, kind: input, shape index: {}]   ;;  %s12385_s7 = inlined_call_operand.vmem [shape: f32[32,1], index: 7, kind: input, shape index: {}]   ;;  %s12386_s8 = inlined_call_operand.vmem [shape: f32[32,1], index: 8, kind: input, shape index: {}]   ;;  %s12387_s9 = inlined_call_operand.vmem [shape: f32[16,32], index: 9, kind: input, shape index: {}]   ;;  %s12388_s10 = inlined_call_operand.vmem [shape: f32[16,1], index: 10, kind: input, shape index: {}]   ;;  %s12389_s11 = inlined_call_operand.vmem [shape: f32[16,1], index: 11, kind: input, shape index: {}]   ;;  %s12390_s12 = inlined_call_operand.vmem [shape: f32[16,1], index: 12, kind: input, shape index: {}]   ;;  %s12391_s13 = inlined_call_operand.vmem [shape: f32[1,16], index: 13, kind: input, shape index: {}]   ;;  %s12392_s14 = inlined_call_operand.<no memory space> [shape: f32[1,1], index: 14, kind: input, shape index: {}]   ;;  %s12393_s15 = inlined_call_operand.hbm [shape: f32[1,256], index: 15, kind: output, shape index: {}]  }
   0x1   :  { %12851 = sst [smem:[#allocation261_spill]] %s12378_s0  ;;  %v20_v0 = vstv %s12392_s14 }
   0x2   :  { %12852 = sst [smem:[#allocation262_spill]] %s12379_s1  ;;  %21 = vst [vmem:[#allocation2] sm:$0x1] %v20_v0 }
   0x3   :  { %12853 = sst [smem:[#allocation263_spill]] %s12380_s2 }
   0x4   :  { %12854 = sst [smem:[#allocation264_spill]] %s12381_s3 }
   0x5   :  { %22 = vsyncpa [#allocation5], 0 }
   0x6   :  { %24 = vsyncpa [#allocation5 + $0x1], 0  ;;  %s7308_s20 = smov 0   ;;  %s7310_s21 = smov 0  }
   0x7   :  { %s7312_s22 = smov 0   ;;  %s7314_s23 = smov 0  }
   0x8 LB: > { %s12850_s14 = sadd.s32 4294967295, %s7213_s23   ;;  %s5946_s24 = sadd.s32 4294967294, %s7213_s23   ;;  %s7213_s23 = sphi %s7314_s23, %s13903_s23   ;;  %s7209_s22 = sphi %s7312_s22, %s13902_s22   ;;  %s7205_s21 = sphi %s7310_s21, %s13901_s21   ;;  %s7201_s20 = sphi %s7308_s20, %s13900_s20  }
   0x9   : > { %s7331_s25 = sadd.s32 1, %s7213_s23   ;;  %s37_s26 = sadd.s32 1, %s7209_s22 }
   0xa   : > { %s34_s27 = ssub.s32 %s7213_s23, %s7331_s25  ;;  %p44_p0 = scmp.ne.s32.totalorder %s7209_s22, %s7205_s21 }
   0xb   : > { %p35_p1 = scmp.eq.s32.totalorder %s34_s27, 0  ;;  %p45_p2 = scmp.eq.s32.totalorder %s7213_s23, 0 }
   0xc   : > { %p368_p3 = scmp.eq.s32.totalorder %s12850_s14, 1  ;;  %p373_p4 = scmp.ne.s32.totalorder %s7205_s21, %s7201_s20 }
   0xd   : > { %s7344_s28 = scalar_select %p35_p1, %s7209_s22, %s37_s26  }
   0xe   : > { %p46_p5 = por %p45_p2, %p44_p0  ;;  %p7346_p6 = por %p368_p3, %p44_p0 }
   0xf   : > { %p374_p7 = scmp.eq.s32.totalorder %s5946_s24, 1  ;;  %p5948_p9 = scmp.ge.s32.totalorder %s7213_s23, 2 }
  0x11   : > { %p7350_p8 = por %p374_p7, %p373_p4  ;;  %432 = sbr.rel (%p5948_p9) target bundleno = 34 (0x22), region = 72 }
  0x16   : > { %435 = sbr.rel (!%p46_p5) target bundleno = 34 (0x22), region = 76  ;;  %s437_s16 = sand.u32 (%p46_p5), 1, %s7209_s22  }
  0x17   : > { %s5950_s17 = sshll.u32 (%p46_p5), %s7213_s23, 3  ;;  %s5949_s18 = sshll.u32 (%p46_p5), %s437_s16, 5 }
  0x18   : > { %s12857_s0 = sld [smem:[#allocation261_spill]] (%p46_p5)  ;;  %s439_s24 = scalar_lea.vmem (%p46_p5), [#allocation3], %s5949_s18 }
  0x1e   : > { %s441_s27 = scalar_lea.vmem %s12857_s0, %s5950_s17 }
  0x1f   : > { %v476_v1 = vld [vmem:[%s441_s27] sm:$0xff]  ;;  %v478_v2 = vld [vmem:[%s441_s27 + $0x10] sm:$0xff] }
  0x20   : > { %v480_v3 = vld [vmem:[%s441_s27 + $0x20] sm:$0xff]  ;;  %477 = vst [vmem:[%s439_s24] sm:$0xff] %v476_v1  ;;  %479 = vst [vmem:[%s439_s24 + $0x8] sm:$0xff] %v478_v2  ;;  %v482_v4 = vld [vmem:[%s441_s27 + $0x30] sm:$0xff] }
  0x21   : > { %481 = vst [vmem:[%s439_s24 + $0x10] sm:$0xff] %v480_v3  ;;  %483 = vst [vmem:[%s439_s24 + $0x18] sm:$0xff] %v482_v4 }
  0x22 PF: > { %p5951_p10 = scmp.ge.s32.totalorder %s7213_s23, 1  ;;  %p488_p11 = scmp.lt.s32.totalorder %s7213_s23, 3 }
  0x24   : > { %p489_p12 = pnand %p5951_p10, %p488_p11 }
  0x26   : > { %492 = sbr.rel (%p489_p12) target bundleno = 1864 (0x748), region = 114 }
  0x2b   : > { %s12858_s2 = sld [smem:[#allocation263_spill]]  ;;  %v7215_v7 = vmov 0   ;;  %v7216_v8 = vmov 3   ;;  %v7217_v9 = vmov 1   ;;  %v7218_v10 = vmov 4   ;;  %s7458_s17 = sand.u32 1, %s7205_s21  }
  0x2c   : > { %s12859_s1 = sld [smem:[#allocation262_spill]]  ;;  %6062 = vset.pattern.permute.xlu1 %v7215_v7  ;;  %6060 = vset.pattern.permute.xlu0 %v7215_v7  ;;  %v7219_v17 = vmov 2   ;;  %v7220_v18 = vmov 5   ;;  %s5952_s18 = sshll.u32 %s7458_s17, 5  ;;  %v7221_v19 = vmov 1966171168   ;;  %v689_v21 = vlaneseq }
  0x2d   : > { %v687_v20 = vunpack.c.l.s4 %v7221_v19  ;;  %s7464_s26 = scalar_lea.vmem [#allocation3], %s5952_s18  ;;  %s13137_s3 = sld [smem:[#allocation264_spill]]  ;;  %vm5444_vm0 = vcmask 261120   ;;  %vm7223_vm1 = vmmov 0   ;;  %vm5797_vm2 = vcmask 130048  }
  0x2e   : > { %v690_v23 = vshrl.u32 %v689_v21, 7  ;;  %v7467_v24 = vld [vmem:[%s7464_s26] sm:$0xff]  ;;  %s13899_s27 = sadd.s32 4294967295, %s7213_s23   ;;  %s540_s16 = scalar_lea.vmem [#allocation4], %s7458_s17 }
  0x2f   : > { %v688_v22 = vunpack.c.0.s8 %v687_v20  ;;  %s5960_s24 = sshll.u32 %s13899_s27, 4  ;;  %s5885_s19 = sshll.u32 %s540_s16, 4  ;;  %s5886_s19 = int_to_ptr.vmem [resolvable:$true] %s5885_s19 }
  0x30   : > { %v7478_v39 = vsub.s32 0, %v690_v23  ;;  %s5873_s18 = scalar_lea.sflag [#allocation5], %s7458_s17  ;;  %s7224_s27 = smov [#allocation4]  }
  0x31   : > { %v7367_v5 = vld [vmem:[%s12858_s2] sm:$0xff]  ;;  %v550_v13 = vld [vmem:[%s12858_s2 + $0x8] sm:$0xff]  ;;  %v7405_v14 = vld [vmem:[%s12858_s2 + $0x10] sm:$0xff]  ;;  %v7469_v27 = vsub.s32 %v688_v22, %v690_v23 }
  0x32   : > { %v7372_v6 = vld [vmem:[%s12859_s1] sm:$0xff]  ;;  %579 = vperm.xlu1 %6062, %v7367_v5   ;;  %v7387_v11 = vld [vmem:[%s12859_s1 + $0x8] sm:$0xff]  ;;  %v7394_v12 = vld [vmem:[%s12859_s1 + $0x10] sm:$0xff]  ;;  %12861 = vst [vmem:[#allocation8_spill] sm:$0xff] %v7478_v39 }
  0x33   : > { %555 = vperm.xlu0 %6060, %v7372_v6   ;;  %v7411_v15 = vld [vmem:[%s12858_s2 + $0x18] sm:$0xff]  ;;  %12860 = vst [vmem:[#allocation7_spill] sm:$0xff] %v7469_v27  ;;  %s7157_s2 = sshll.u32 %s7224_s27, 4  ;;  %s7158_s2 = int_to_ptr.vmem [resolvable:$false] %s7157_s2 }
  0x34   : > { %v7418_v16 = vld [vmem:[%s12859_s1 + $0x18] sm:$0xff]  ;;  %s7153_s1 = scalar_lea.vmem %s5886_s19, 16  ;;  %p7160_p2 = scmp.lt.s32.totalorder %s5886_s19, %s7158_s2 }
  0x35   : > { %p7154_p13 = scmp.ne.s32.totalorder %s5886_s19, %s7153_s1 }
  0x36   : > { %6063 = vset.pattern.permute.xlu1 %v7216_v8 }
  0x37   : > { %6061 = vset.pattern.permute.xlu0 %v7216_v8  ;;  %2958 = vperm.xlu1 %6063, %v7367_v5   ;;  %p7155_p0 = pnand %p7154_p13, %p7346_p6 }
  0x38   : > { %2938 = vperm.xlu0 %6061, %v7372_v6  }
  0x39   : > { %p7156_p1 = pneg %p7155_p0 }
  0x3b   : > { %6064 = vset.pattern.permute.xlu1 %v7217_v9 }
  0x3c   : > { %6068 = vset.pattern.permute.xlu0 %v7218_v10  ;;  %602 = vperm.xlu1 %6064, %v7372_v6  }
  0x3d   : > { %2998 = vperm.xlu0 %6068, %v7367_v5  }
  0x40   : > { %6065 = vset.pattern.permute.xlu1 %v7218_v10 }
  0x41   : > { %6069 = vset.pattern.permute.xlu0 %v7217_v9  ;;  %2978 = vperm.xlu1 %6065, %v7372_v6  }
  0x42   : > { %606 = vperm.xlu0 %6069, %v7387_v11  }
  0x45   : > { %2982 = vperm.xlu1 %6065, %v7387_v11  }
  0x46   : > { %610 = vperm.xlu0 %6069, %v7394_v12  }
  0x49   : > { %6066 = vset.pattern.permute.xlu1 %v7217_v9 }
  0x4a   : > { %626 = vperm.xlu0 %6069, %v550_v13   ;;  %622 = vperm.xlu1 %6066, %v7367_v5  }
  0x4e   : > { %630 = vperm.xlu0 %6069, %v7405_v14   ;;  %6067 = vset.pattern.permute.xlu1 %v7218_v10 }
  0x4f   : > { %2986 = vperm.xlu1 %6067, %v7394_v12  }
  0x52   : > { %634 = vperm.xlu0 %6069, %v7411_v15  }
  0x53   : > { %3002 = vperm.xlu1 %6067, %v550_v13  }
  0x56   : > { %6072 = vset.pattern.permute.xlu0 %v7215_v7 }
  0x57   : > { %560 = vperm.xlu0 %6072, %v7387_v11   ;;  %6070 = vset.pattern.permute.xlu1 %v7217_v9 }
  0x58   : > { %614 = vperm.xlu1 %6070, %v7418_v16  }
  0x5b   : > { %6075 = vset.pattern.permute.xlu0 %v7216_v8 }
  0x5c   : > { %2962 = vperm.xlu0 %6075, %v550_v13   ;;  %6071 = vset.pattern.permute.xlu1 %v7218_v10 }
  0x5d   : > { %2990 = vperm.xlu1 %6071, %v7418_v16  }
  0x60   : > { %6077 = vset.pattern.permute.xlu0 %v7215_v7 }
  0x61   : > { %589 = vperm.xlu0 %6077, %v7405_v14   ;;  %3006 = vperm.xlu1 %6071, %v7405_v14  }
  0x65   : > { %6079 = vset.pattern.permute.xlu0 %v7216_v8  ;;  %3010 = vperm.xlu1 %6071, %v7411_v15  }
  0x66   : > { %2950 = vperm.xlu0 %6079, %v7418_v16  }
  0x69   : > { %6073 = vset.pattern.permute.xlu1 %v7216_v8 }
  0x6a   : > { %6081 = vset.pattern.permute.xlu0 %v7219_v17  ;;  %2942 = vperm.xlu1 %6073, %v7387_v11  }
  0x6b   : > { %642 = vperm.xlu0 %6081, %v7372_v6  }
  0x6e   : > { %6074 = vset.pattern.permute.xlu1 %v7215_v7 }
  0x6f   : > { %6084 = vset.pattern.permute.xlu0 %v7220_v18  ;;  %584 = vperm.xlu1 %6074, %v550_v13  }
  0x70   : > { %3038 = vperm.xlu0 %6084, %v7367_v5  }
  0x73   : > { %565 = vperm.xlu1 %6074, %v7394_v12  }
  0x74   : > { %6086 = vset.pattern.permute.xlu0 %v7219_v17 }
  0x75   : > { %666 = vperm.xlu0 %6086, %v550_v13  }
  0x77   : > { %6076 = vset.pattern.permute.xlu1 %v7216_v8 }
  0x78   : > { %2946 = vperm.xlu1 %6076, %v7394_v12  }
  0x79   : > { %6088 = vset.pattern.permute.xlu0 %v7220_v18 }
  0x7a   : > { %3026 = vperm.xlu0 %6088, %v7394_v12  }
  0x7c   : > { %2966 = vperm.xlu1 %6076, %v7405_v14  }
  0x7e   : > { %6090 = vset.pattern.permute.xlu0 %v7219_v17 }
  0x7f   : > { %654 = vperm.xlu0 %6090, %v7418_v16  }
  0x80   : > { %6078 = vset.pattern.permute.xlu1 %v7215_v7 }
  0x81   : > { %570 = vperm.xlu1 %6078, %v7418_v16  }
  0x83   : > { %6092 = vset.pattern.permute.xlu0 %v7220_v18 }
  0x84   : > { %3050 = vperm.xlu0 %6092, %v7411_v15  }
  0x85   : > { %594 = vperm.xlu1 %6078, %v7411_v15  }
  0x88   : > { %6094 = vset.pattern.permute.xlu0 %v7215_v7 }
  0x89   : > { %6080 = vset.pattern.permute.xlu1 %v7216_v8 }
  0x8a   : > { %2970 = vperm.xlu1 %6080, %v7411_v15  }
  0x8e   : > { %6082 = vset.pattern.permute.xlu1 %v7220_v18 }
  0x8f   : > { %3018 = vperm.xlu1 %6082, %v7372_v6  }
  0x93   : > { %6083 = vset.pattern.permute.xlu1 %v7219_v17 }
  0x94   : > { %662 = vperm.xlu1 %6083, %v7367_v5  }
  0x98   : > { %646 = vperm.xlu1 %6083, %v7387_v11  }
  0x9c   : > { %6085 = vset.pattern.permute.xlu1 %v7220_v18 }
  0x9d   : > { %3022 = vperm.xlu1 %6085, %v7387_v11  }
  0xa1   : > { %3042 = vperm.xlu1 %6085, %v550_v13  }
  0xa5   : > { %6087 = vset.pattern.permute.xlu1 %v7219_v17 }
  0xa6   : > { %650 = vperm.xlu1 %6087, %v7394_v12  }
  0xaa   : > { %670 = vperm.xlu1 %6087, %v7405_v14  }
  0xad   : > { %v580_v25 = vpop.permute.xlu1 %579 }
  0xae   : > { %v556_v26 = vpop.permute.xlu0 %555  ;;  %6089 = vset.pattern.permute.xlu1 %v7220_v18 }
  0xaf   : > { %v573_v28 = vmul.f32 %v556_v26, %v7467_v24  ;;  %3046 = vperm.xlu1 %6089, %v7405_v14  }
  0xb1   : > { %v597_v29 = vadd.f32 %v580_v25, %v573_v28 }
  0xb2   : > { %v2959_v32 = vpop.permute.xlu1 %2958 }
  0xb3   : > { %v685_v30 = vcombine.high %v597_v29, %v597_v29  ;;  %v692_v31 = vrot.slane %v597_v29, %v7469_v27  ;;  %v2939_v33 = vpop.permute.xlu0 %2938  ;;  %3030 = vperm.xlu1 %6089, %v7418_v16  }
  0xb4   : > { %v2953_v34 = vmul.f32 %v2939_v33, %v7467_v24  ;;  %v7565_v33 = vld [vmem:[%s7464_s26 + $0x10] sm:$0xff] }
  0xb5   : > { %v699_v35 = vrot.slane %v685_v30, %v7469_v27  ;;  %v700_v36 = vcombine.high %v692_v31, %v692_v31  ;;  %v708_v37 = vrot.slane %v692_v31, %v7469_v27 }
  0xb6   : > { %v2973_v38 = vadd.f32 %v2959_v32, %v2953_v34 }
  0xb7   : > { %v701_v40 = vcombine.high %v699_v35, %v699_v35  ;;  %v715_v41 = vrot.slane %v699_v35, %v7469_v27  ;;  %v722_v42 = vrot.slane %v700_v36, %v7469_v27  ;;  %v603_v45 = vpop.permute.xlu1 %602  ;;  %6091 = vset.pattern.permute.xlu1 %v7219_v17  ;;  %v730_v48 = vcombine.high %v708_v37, %v708_v37  ;;  %v7538_v17 = vld [vmem:[%s7464_s26 + $0x8] sm:$0xff] }
  0xb8   : > { %v3061_v43 = vcombine.high %v2973_v38, %v2973_v38  ;;  %v3068_v44 = vrot.slane %v2973_v38, %v7469_v27  ;;  %v2999_v46 = vpop.permute.xlu0 %2998  ;;  %674 = vperm.xlu1 %6091, %v7411_v15   ;;  %v7488_v54 = vrot.slane %v708_v37, %v7478_v39  ;;  %12863 = vst [vmem:[#allocation10_spill] sm:$0xff] %v7538_v17 }
  0xb9   : > { %v729_v47 = vrot.slane %v701_v40, %v7469_v27  ;;  %v732_v49 = vcombine.high %v722_v42, %v722_v42  ;;  %v731_v52 = vcombine.high %v715_v41, %v715_v41  ;;  %v7494_v59 = vrot.slane %v722_v42, %v7478_v39 }
  0xba   : > { %v3075_v50 = vrot.slane %v3061_v43, %v7469_v27  ;;  %v3076_v51 = vcombine.high %v3068_v44, %v3068_v44  ;;  %v3084_v56 = vrot.slane %v3068_v44, %v7469_v27  ;;  %v7497_v60 = vrot.slane %v730_v48, %v7478_v39 }
  0xbb   : > { %v733_v53 = vcombine.high %v729_v47, %v729_v47  ;;  %v7500_v61 = vrot.slane %v732_v49, %v7478_v39  ;;  %v7503_v62 = vrot.slane %v715_v41, %v7478_v39  ;;  %v7508_v5 = vrot.slane %v729_v47, %v7478_v39 }
  0xbc   : > { %v3077_v55 = vcombine.high %v3075_v50, %v3075_v50  ;;  %v3091_v57 = vrot.slane %v3075_v50, %v7469_v27  ;;  %v3098_v58 = vrot.slane %v3076_v51, %v7469_v27  ;;  %v2979_v63 = vpop.permute.xlu1 %2978  ;;  %6093 = vset.pattern.permute.xlu1 %v7215_v7  ;;  %v3106_v2 = vcombine.high %v3084_v56, %v3084_v56 }
  0xbd   : > { %v607_v0 = vpop.permute.xlu0 %606  ;;  %v7511_v6 = vrot.slane %v731_v52, %v7478_v39  ;;  %v7514_v8 = vrot.slane %v733_v53, %v7478_v39  ;;  %v2993_v9 = vmul.f32 %v2979_v63, %v7467_v24  ;;  %v7518_v7 = vrot.slane %v3084_v56, %v7478_v39 }
  0xbe   : > { %v3105_v1 = vrot.slane %v3077_v55, %v7469_v27  ;;  %v3107_v3 = vcombine.high %v3091_v57, %v3091_v57  ;;  %v3108_v4 = vcombine.high %v3098_v58, %v3098_v58  ;;  %v7527_v13 = vrot.slane %v3098_v58, %v7478_v39 }
  0xbf   : > { %v7530_v14 = vrot.slane %v3106_v2, %v7478_v39  ;;  %v7535_v16 = vadd.f32 %v2999_v46, %v2993_v9  ;;  %v7541_v20 = vrot.slane %v3091_v57, %v7478_v39  ;;  %v617_v22 = vmul.f32 %v603_v45, %v7467_v24 }
  0xc0   : > { %v3109_v10 = vcombine.high %v3105_v1, %v3105_v1  ;;  %v7521_v11 = vrot.slane %v3108_v4, %v7478_v39  ;;  %v7524_v12 = vrot.slane %v3105_v1, %v7478_v39  ;;  %v7533_v15 = vrot.slane %v3107_v3, %v7478_v39  ;;  %v2983_v18 = vpop.permute.xlu1 %2982 }
  0xc1   : > { %12862 = vst [vmem:[#allocation9_spill] sm:$0xff] %v7535_v16  ;;  %v611_v19 = vpop.permute.xlu0 %610  ;;  %v618_v23 = vmul.f32 %v607_v0, %v7538_v17  ;;  %v3417_v25 = vsub.f32 %v7518_v7, %v7535_v16  ;;  %v3421_v26 = vsub.f32 %v7527_v13, %v7535_v16  ;;  %v3425_v28 = vsub.f32 %v7530_v14, %v7535_v16 }
  0xc2   : > { %v7544_v21 = vrot.slane %v3109_v10, %v7478_v39  ;;  %v3429_v29 = vsub.f32 %v7521_v11, %v7535_v16  ;;  %v3433_v30 = vsub.f32 %v7541_v20, %v7535_v16  ;;  %v3437_v24 = vsub.f32 %v7524_v12, %v7535_v16 }
  0xc3   : > { %v3441_v31 = vsub.f32 %v7533_v15, %v7535_v16  ;;  %v3545_v34 = vand.u32 2147483647, %v3417_v25  ;;  %v3549_v35 = vand.u32 2147483647, %v3421_v26  ;;  %v3553_v36 = vand.u32 2147483647, %v3425_v28 }
  0xc4   : > { %v3445_v32 = vsub.f32 %v7544_v21, %v7535_v16  ;;  %v7568_v37 = vmul.f32 %v2983_v18, %v7538_v17  ;;  %v3557_v40 = vand.u32 2147483647, %v3429_v29  ;;  %v3561_v41 = vand.u32 2147483647, %v3433_v30 }
  0xc5   : > { %v627_v38 = vpop.permute.xlu0 %626  ;;  %v3565_v42 = vand.u32 2147483647, %v3437_v24  ;;  %v623_v44 = vpop.permute.xlu1 %622  ;;  %v3569_v45 = vand.u32 2147483647, %v3441_v31  ;;  %v3673_v47 = vadd.f32 1e-08, %v3545_v34  ;;  %v619_v48 = vmul.f32 %v611_v19, %v7565_v33 }
  0xc6   : > { %v7570_v43 = vadd.f32 %v627_v38, %v618_v23  ;;  %v3573_v46 = vand.u32 2147483647, %v3445_v32  ;;  %v3677_v49 = vadd.f32 1e-08, %v3549_v35  ;;  %v3681_v50 = vadd.f32 1e-08, %v3553_v36 }
  0xc7   : > { %v3685_v51 = vadd.f32 1e-08, %v3557_v40  ;;  %v7573_v52 = vadd.f32 %v623_v44, %v617_v22  ;;  %v3689_v53 = vadd.f32 1e-08, %v3561_v41  ;;  %v3693_v55 = vadd.f32 1e-08, %v3565_v42 }
  0xc8   : > { %12864 = vst [vmem:[#allocation11_spill] sm:$0xff] %v7570_v43  ;;  %6095 = vrcp.f32 %v3673_v47  ;;  %v1042_v56 = vsub.f32 %v7488_v54, %v7570_v43  ;;  %v3697_v57 = vadd.f32 1e-08, %v3569_v45  ;;  %v3701_v58 = vadd.f32 1e-08, %v3573_v46 }
  0xc9   : > { %12865 = vst [vmem:[#allocation12_spill] sm:$0xff] %v7573_v52  ;;  %6097 = vrcp.f32 %v3677_v49  ;;  %v1046_v63 = vsub.f32 %v7494_v59, %v7570_v43  ;;  %v1050_v0 = vsub.f32 %v7497_v60, %v7570_v43  ;;  %v1054_v1 = vsub.f32 %v7500_v61, %v7570_v43  ;;  %v631_v28 = vpop.permute.xlu0 %630 }
  0xca   : > { %6099 = vrcp.f32 %v3681_v50  ;;  %v1058_v2 = vsub.f32 %v7503_v62, %v7570_v43  ;;  %v2987_v3 = vpop.permute.xlu1 %2986  ;;  %v1062_v4 = vsub.f32 %v7508_v5, %v7570_v43  ;;  %v1066_v9 = vsub.f32 %v7511_v6, %v7570_v43 }
  0xcb   : > { %6101 = vrcp.f32 %v3685_v51  ;;  %v1070_v10 = vsub.f32 %v7514_v8, %v7570_v43  ;;  %v1041_v18 = vsub.f32 %v7488_v54, %v7573_v52  ;;  %v1045_v19 = vsub.f32 %v7494_v59, %v7573_v52 }
  0xcc   : > { %6103 = vrcp.f32 %v3689_v53  ;;  %v1049_v22 = vsub.f32 %v7497_v60, %v7573_v52  ;;  %v1053_v23 = vsub.f32 %v7500_v61, %v7573_v52  ;;  %v1057_v25 = vsub.f32 %v7503_v62, %v7573_v52 }
  0xcd   : > { %6105 = vrcp.f32 %v3693_v55  ;;  %v1061_v26 = vsub.f32 %v7508_v5, %v7573_v52  ;;  %v1065_v29 = vsub.f32 %v7511_v6, %v7573_v52  ;;  %v1170_v30 = vand.u32 2147483647, %v1042_v56 }
  0xce   : > { %6107 = vrcp.f32 %v3697_v57  ;;  %v1174_v24 = vand.u32 2147483647, %v1046_v63  ;;  %v3003_v31 = vpop.permute.xlu1 %3002  ;;  %v1069_v32 = vsub.f32 %v7514_v8, %v7573_v52  ;;  %v1178_v34 = vand.u32 2147483647, %v1050_v0 }
  0xcf   : > { %v1182_v35 = vand.u32 2147483647, %v1054_v1  ;;  %v1186_v36 = vand.u32 2147483647, %v1058_v2  ;;  %v1190_v38 = vand.u32 2147483647, %v1062_v4  ;;  %v7607_v42 = vadd.f32 %v631_v28, %v619_v48 }
  0xd0   : > { %v1194_v40 = vand.u32 2147483647, %v1066_v9  ;;  %v1198_v41 = vand.u32 2147483647, %v1070_v10  ;;  %6109 = vrcp.f32 %v3701_v58  ;;  %v1169_v44 = vand.u32 2147483647, %v1041_v18 }
  0xd1   : > { %12866 = vst [vmem:[#allocation13_spill] sm:$0xff] %v7607_v42  ;;  %v1173_v45 = vand.u32 2147483647, %v1045_v19  ;;  %v1177_v46 = vand.u32 2147483647, %v1049_v22  ;;  %v1043_v47 = vsub.f32 %v7488_v54, %v7607_v42  ;;  %v1047_v49 = vsub.f32 %v7494_v59, %v7607_v42  ;;  %v7627_v58 = vld [vmem:[%s7464_s26 + $0x18] sm:$0xff] }
  0xd2   : > { %v1051_v50 = vsub.f32 %v7497_v60, %v7607_v42  ;;  %v7616_v51 = vmul.f32 %v2987_v3, %v7565_v33  ;;  %v1055_v48 = vsub.f32 %v7500_v61, %v7607_v42  ;;  %v1059_v53 = vsub.f32 %v7503_v62, %v7607_v42 }
  0xd3   : > { %v1063_v55 = vsub.f32 %v7508_v5, %v7607_v42  ;;  %v1067_v56 = vsub.f32 %v7511_v6, %v7607_v42  ;;  %v615_v57 = vpop.permute.xlu1 %614  ;;  %v1181_v63 = vand.u32 2147483647, %v1053_v23  ;;  %v1185_v0 = vand.u32 2147483647, %v1057_v25 }
  0xd4   : > { %v1189_v1 = vand.u32 2147483647, %v1061_v26  ;;  %v7630_v33 = vadd.f32 %v3003_v31, %v7568_v37  ;;  %v1071_v3 = vsub.f32 %v7514_v8, %v7607_v42  ;;  %v1193_v4 = vand.u32 2147483647, %v1065_v29 }
  0xd5   : > { %v7632_v2 = vpop.eup %6095  ;;  %v1197_v9 = vand.u32 2147483647, %v1069_v32  ;;  %v1298_v10 = vadd.f32 1e-08, %v1170_v30  ;;  %v1302_v19 = vadd.f32 1e-08, %v1174_v24  ;;  %v7639_v23 = vmul.f32 %v615_v57, %v7627_v58 }
  0xd6   : > { %12867 = vst [vmem:[#allocation14_spill] sm:$0xff] %v7630_v33  ;;  %12868 = vst [vmem:[#allocation15_spill] sm:$0xff] %v7632_v2  ;;  %v7636_v18 = vpop.eup %6097  ;;  %v1306_v22 = vadd.f32 1e-08, %v1178_v34  ;;  %v1310_v28 = vadd.f32 1e-08, %v1182_v35  ;;  %v3418_v29 = vsub.f32 %v7518_v7, %v7630_v33 }
  0xd7   : > { %12869 = vst [vmem:[#allocation16_spill] sm:$0xff] %v7636_v18  ;;  %v7641_v25 = vpop.eup %6099  ;;  %v4057_v37 = vmax.f32 %v7632_v2, %v7636_v18  ;;  %v1314_v26 = vadd.f32 1e-08, %v1186_v36  ;;  %v1318_v31 = vadd.f32 1e-08, %v1190_v38  ;;  %6111 = vrcp.f32 %v1298_v10 }
  0xd8   : > { %12870 = vst [vmem:[#allocation17_spill] sm:$0xff] %v7641_v25  ;;  %v7647_v32 = vpop.eup %6101  ;;  %v1322_v30 = vadd.f32 1e-08, %v1194_v40  ;;  %v1326_v42 = vadd.f32 1e-08, %v1198_v41  ;;  %6113 = vrcp.f32 %v1302_v19 }
  0xd9   : > { %12871 = vst [vmem:[#allocation18_spill] sm:$0xff] %v7647_v32  ;;  %v1171_v24 = vand.u32 2147483647, %v1043_v47  ;;  %v7649_v34 = vpop.eup %6103  ;;  %v4058_v35 = vmax.f32 %v4057_v37, %v7641_v25  ;;  %v1175_v57 = vand.u32 2147483647, %v1047_v49  ;;  %6115 = vrcp.f32 %v1306_v22 }
  0xda   : > { %12872 = vst [vmem:[#allocation19_spill] sm:$0xff] %v7649_v34  ;;  %v1179_v43 = vand.u32 2147483647, %v1051_v50  ;;  %v1183_v52 = vand.u32 2147483647, %v1055_v48  ;;  %v7652_v16 = vpop.eup %6105  ;;  %6117 = vrcp.f32 %v1310_v28 }
  0xdb   : > { %12873 = vst [vmem:[#allocation20_spill] sm:$0xff] %v7652_v16  ;;  %v1187_v36 = vand.u32 2147483647, %v1059_v53  ;;  %v1191_v38 = vand.u32 2147483647, %v1063_v55  ;;  %v7654_v2 = vpop.eup %6107  ;;  %v4059_v40 = vmax.f32 %v4058_v35, %v7647_v32  ;;  %6119 = vrcp.f32 %v1314_v26  ;;  %v635_v26 = vpop.permute.xlu0 %634 }
  0xdc   : > { %v1195_v18 = vand.u32 2147483647, %v1067_v56  ;;  %12874 = vst [vmem:[#allocation21_spill] sm:$0xff] %v7654_v2  ;;  %v1199_v41 = vand.u32 2147483647, %v1071_v3  ;;  %6121 = vrcp.f32 %v1318_v31 }
  0xdd   : > { %v1297_v47 = vadd.f32 1e-08, %v1169_v44  ;;  %v1301_v10 = vadd.f32 1e-08, %v1173_v45  ;;  %v1305_v39 = vadd.f32 1e-08, %v1177_v46  ;;  %v7658_v49 = vmax.f32 %v4059_v40, %v7649_v34  ;;  %v7660_v53 = vpop.eup %6109 }
  0xde   : > { %v1309_v27 = vadd.f32 1e-08, %v1181_v63  ;;  %v1313_v17 = vadd.f32 1e-08, %v1185_v0  ;;  %v1317_v50 = vadd.f32 1e-08, %v1189_v1  ;;  %6123 = vrcp.f32 %v1322_v30 }
  0xdf   : > { %v1321_v48 = vadd.f32 1e-08, %v1193_v4  ;;  %12875 = vst [vmem:[#allocation22_spill] sm:$0xff] %v7660_v53  ;;  %v1325_v55 = vadd.f32 1e-08, %v1197_v9  ;;  %v3422_v0 = vsub.f32 %v7527_v13, %v7630_v33  ;;  %6125 = vrcp.f32 %v1326_v42 }
  0xe0   : > { %v1299_v56 = vadd.f32 1e-08, %v1171_v24  ;;  %v1303_v19 = vadd.f32 1e-08, %v1175_v57  ;;  %v1307_v3 = vadd.f32 1e-08, %v1179_v43  ;;  %v3426_v1 = vsub.f32 %v7530_v14, %v7630_v33 }
  0xe1   : > { %v7662_v44 = vadd.f32 1e-08, %v1183_v52  ;;  %v7664_v45 = vadd.f32 1e-08, %v1187_v36  ;;  %v7666_v46 = vadd.f32 1e-08, %v1191_v38  ;;  %v3430_v4 = vsub.f32 %v7521_v11, %v7630_v33 }
  0xe2   : > { %v7668_v63 = vadd.f32 1e-08, %v1195_v18  ;;  %v3434_v43 = vsub.f32 %v7541_v20, %v7630_v33  ;;  %6127 = vrcp.f32 %v1297_v47  ;;  %v3438_v52 = vsub.f32 %v7524_v12, %v7630_v33  ;;  %v2991_v47 = vpop.permute.xlu1 %2990 }
  0xe3   : > { %v3442_v9 = vsub.f32 %v7533_v15, %v7630_v33  ;;  %v3446_v18 = vsub.f32 %v7544_v21, %v7630_v33  ;;  %6129 = vrcp.f32 %v1301_v10  ;;  %v3546_v42 = vand.u32 2147483647, %v3418_v29 }
  0xe4   : > { %v3550_v22 = vand.u32 2147483647, %v3422_v0  ;;  %v3554_v28 = vand.u32 2147483647, %v3426_v1  ;;  %v7684_v37 = vadd.f32 1e-08, %v1199_v41  ;;  %6131 = vrcp.f32 %v1305_v39  ;;  %v7686_v24 = vpop.eup %6111 }
  0xe5   : > { %v3558_v31 = vand.u32 2147483647, %v3430_v4  ;;  %v3562_v30 = vand.u32 2147483647, %v3434_v43  ;;  %12876 = vst [vmem:[#allocation23_spill] sm:$0xff] %v7686_v24  ;;  %6133 = vrcp.f32 %v1309_v27  ;;  %v7689_v36 = vadd.f32 %v635_v26, %v7639_v23  ;;  %v7693_v41 = vpop.eup %6113 }
  0xe6   : > { %v3566_v35 = vand.u32 2147483647, %v3438_v52  ;;  %v3570_v57 = vand.u32 2147483647, %v3442_v9  ;;  %6135 = vrcp.f32 %v1313_v17  ;;  %v3574_v38 = vand.u32 2147483647, %v3446_v18  ;;  %v7705_v1 = vpop.eup %6115  ;;  %v3007_v18 = vpop.permute.xlu1 %3006 }
  0xe7   : > { %12877 = vst [vmem:[#allocation24_spill] sm:$0xff] %v7689_v36  ;;  %v3674_v40 = vadd.f32 1e-08, %v3546_v42  ;;  %v7691_v29 = vadd.f32 1e-08, %v3550_v22  ;;  %12878 = vst [vmem:[#allocation25_spill] sm:$0xff] %v7693_v41  ;;  %6137 = vrcp.f32 %v1317_v50  ;;  %v1044_v39 = vsub.f32 %v7488_v54, %v7689_v36 }
  0xe8   : > { %v1048_v27 = vsub.f32 %v7494_v59, %v7689_v36  ;;  %v3682_v10 = vadd.f32 1e-08, %v3554_v28  ;;  %6139 = vrcp.f32 %v1321_v48  ;;  %v1712_v23 = vmax.f32 %v7686_v24, %v7693_v41  ;;  %12879 = vst [vmem:[#allocation26_spill] sm:$0xff] %v7705_v1  ;;  %v7713_v48 = vpop.eup %6117 }
  0xe9   : > { %v1052_v17 = vsub.f32 %v7497_v60, %v7689_v36  ;;  %v1056_v0 = vsub.f32 %v7500_v61, %v7689_v36  ;;  %6141 = vrcp.f32 %v1325_v55  ;;  %v1060_v54 = vsub.f32 %v7503_v62, %v7689_v36  ;;  %12880 = vst [vmem:[#allocation27_spill] sm:$0xff] %v7713_v48  ;;  %v7718_v43 = vpop.eup %6119 }
  0xea   : > { %v1064_v59 = vsub.f32 %v7508_v5, %v7689_v36  ;;  %v1068_v50 = vsub.f32 %v7511_v6, %v7689_v36  ;;  %6143 = vrcp.f32 %v1299_v56  ;;  %v1713_v60 = vmax.f32 %v1712_v23, %v7705_v1  ;;  %12881 = vst [vmem:[#allocation28_spill] sm:$0xff] %v7718_v43  ;;  %v7722_v5 = vpop.eup %6121 }
  0xeb   : > { %v1072_v61 = vsub.f32 %v7514_v8, %v7689_v36  ;;  %v3686_v4 = vadd.f32 1e-08, %v3558_v31  ;;  %6145 = vrcp.f32 %v1303_v19  ;;  %v3690_v55 = vadd.f32 1e-08, %v3562_v30  ;;  %12882 = vst [vmem:[#allocation29_spill] sm:$0xff] %v7722_v5  ;;  %v7727_v42 = vpop.eup %6123 }
  0xec   : > { %v3694_v62 = vadd.f32 1e-08, %v3566_v35  ;;  %v7720_v52 = vadd.f32 1e-08, %v3570_v57  ;;  %6147 = vrcp.f32 %v1307_v3  ;;  %v1714_v6 = vmax.f32 %v1713_v60, %v7713_v48  ;;  %12883 = vst [vmem:[#allocation30_spill] sm:$0xff] %v7727_v42  ;;  %v7730_v28 = vpop.eup %6125  ;;  %v3011_v60 = vpop.permute.xlu1 %3010  ;;  %v12904_v48 = vld [vmem:[#allocation10_spill] sm:$0xff] }
  0xed   : > { %v7725_v9 = vadd.f32 1e-08, %v3574_v38  ;;  %v1172_v56 = vand.u32 2147483647, %v1044_v39  ;;  %6149 = vrcp.f32 %v7662_v44  ;;  %v1176_v8 = vand.u32 2147483647, %v1048_v27 }
  0xee   : > { %v1180_v22 = vand.u32 2147483647, %v1052_v17  ;;  %v1184_v19 = vand.u32 2147483647, %v1056_v0  ;;  %12884 = vst [vmem:[#allocation31_spill] sm:$0xff] %v7730_v28  ;;  %6151 = vrcp.f32 %v7664_v45  ;;  %v2996_v35 = vmul.f32 %v2991_v47, %v7627_v58 }
  0xef   : > { %v1188_v26 = vand.u32 2147483647, %v1060_v54  ;;  %v1192_v31 = vand.u32 2147483647, %v1064_v59  ;;  %v1196_v3 = vand.u32 2147483647, %v1068_v50  ;;  %v7733_v30 = vpop.eup %6127  ;;  %6153 = vrcp.f32 %v7666_v46 }
  0xf0   : > { %12885 = vst [vmem:[#allocation32_spill] sm:$0xff] %v7733_v30  ;;  %v1200_v57 = vand.u32 2147483647, %v1072_v61  ;;  %v7738_v38 = vadd.f32 %v3007_v18, %v7616_v51  ;;  %v7740_v44 = vpop.eup %6129  ;;  %6155 = vrcp.f32 %v7668_v63  ;;  %v7744_v39 = vmax.f32 %v1714_v6, %v7718_v43  ;;  %v561_v43 = vpop.permute.xlu0 %560 }
  0xf1   : > { %12887 = vst [vmem:[#allocation34_spill] sm:$0xff] %v7740_v44  ;;  %v1300_v45 = vadd.f32 1e-08, %v1172_v56  ;;  %v1304_v27 = vadd.f32 1e-08, %v1176_v8  ;;  %v7746_v23 = vpop.eup %6131  ;;  %6157 = vrcp.f32 %v7684_v37  ;;  %v1681_v58 = vmax.f32 %v7733_v30, %v7740_v44 }
  0xf2   : > { %12886 = vst [vmem:[#allocation33_spill] sm:$0xff] %v7738_v38  ;;  %12888 = vst [vmem:[#allocation35_spill] sm:$0xff] %v7744_v39  ;;  %v1308_v46 = vadd.f32 1e-08, %v1180_v22  ;;  %v1312_v47 = vadd.f32 1e-08, %v1184_v19  ;;  %v7751_v51 = vpop.eup %6133  ;;  %6159 = vrcp.f32 %v3674_v40  ;;  %v3419_v37 = vsub.f32 %v7518_v7, %v7738_v38 }
  0xf3   : > { %12889 = vst [vmem:[#allocation36_spill] sm:$0xff] %v7746_v23  ;;  %12890 = vst [vmem:[#allocation37_spill] sm:$0xff] %v7751_v51  ;;  %v1316_v17 = vadd.f32 1e-08, %v1188_v26  ;;  %v7753_v0 = vadd.f32 1e-08, %v1192_v31  ;;  %v7757_v54 = vpop.eup %6135  ;;  %v1682_v59 = vmax.f32 %v1681_v58, %v7746_v23  ;;  %6161 = vrcp.f32 %v7691_v29 }
  0xf4   : > { %v7755_v63 = vadd.f32 1e-08, %v1196_v3  ;;  %12891 = vst [vmem:[#allocation38_spill] sm:$0xff] %v7757_v54  ;;  %v3423_v50 = vsub.f32 %v7527_v13, %v7738_v38  ;;  %v7765_v61 = vpop.eup %6137  ;;  %6163 = vrcp.f32 %v3682_v10  ;;  %v7767_v40 = vadd.f32 1e-08, %v1200_v57  ;;  %v2963_v23 = vpop.permute.xlu0 %2962 }
  0xf5   : > { %12892 = vst [vmem:[#allocation39_spill] sm:$0xff] %v7765_v61  ;;  %v3427_v6 = vsub.f32 %v7530_v14, %v7738_v38  ;;  %v3431_v56 = vsub.f32 %v7521_v11, %v7738_v38  ;;  %v7773_v18 = vpop.eup %6139  ;;  %v1683_v29 = vmax.f32 %v1682_v59, %v7751_v51  ;;  %6165 = vrcp.f32 %v3686_v4 }
  0xf6   : > { %12893 = vst [vmem:[#allocation40_spill] sm:$0xff] %v7773_v18  ;;  %v3435_v8 = vsub.f32 %v7541_v20, %v7738_v38  ;;  %v3439_v22 = vsub.f32 %v7524_v12, %v7738_v38  ;;  %v7780_v10 = vpop.eup %6141  ;;  %6167 = vrcp.f32 %v3690_v55  ;;  %v3443_v19 = vsub.f32 %v7533_v15, %v7738_v38 }
  0xf7   : > { %12894 = vst [vmem:[#allocation41_spill] sm:$0xff] %v7780_v10  ;;  %v3447_v26 = vsub.f32 %v7544_v21, %v7738_v38  ;;  %v7786_v31 = vadd.f32 %v3011_v60, %v2996_v35  ;;  %v7788_v3 = vpop.eup %6143  ;;  %6169 = vrcp.f32 %v3694_v62  ;;  %v7791_v4 = vmax.f32 %v1683_v29, %v7757_v54 }
  0xf8   : > { %12896 = vst [vmem:[#allocation43_spill] sm:$0xff] %v7788_v3  ;;  %v3547_v57 = vand.u32 2147483647, %v3419_v37  ;;  %v3551_v58 = vand.u32 2147483647, %v3423_v50  ;;  %v7793_v59 = vpop.eup %6145  ;;  %6171 = vrcp.f32 %v7720_v52 }
  0xf9   : > { %12895 = vst [vmem:[#allocation42_spill] sm:$0xff] %v7786_v31  ;;  %12897 = vst [vmem:[#allocation44_spill] sm:$0xff] %v7791_v4  ;;  %v3420_v55 = vsub.f32 %v7518_v7, %v7786_v31  ;;  %v3424_v34 = vsub.f32 %v7527_v13, %v7786_v31  ;;  %v3555_v35 = vand.u32 2147483647, %v3427_v6  ;;  %v7800_v60 = vpop.eup %6147  ;;  %v1743_v62 = vmax.f32 %v7788_v3, %v7793_v59 }
  0xfa   : > { %12898 = vst [vmem:[#allocation45_spill] sm:$0xff] %v7793_v59  ;;  %12899 = vst [vmem:[#allocation46_spill] sm:$0xff] %v7800_v60  ;;  %6173 = vrcp.f32 %v7725_v9  ;;  %v3428_v37 = vsub.f32 %v7530_v14, %v7786_v31  ;;  %v3432_v52 = vsub.f32 %v7521_v11, %v7786_v31  ;;  %v7809_v50 = vpop.eup %6149  ;;  %v3436_v7 = vsub.f32 %v7541_v20, %v7786_v31 }
  0xfb   : > { %12900 = vst [vmem:[#allocation47_spill] sm:$0xff] %v7809_v50  ;;  %6175 = vrcp.f32 %v1300_v45  ;;  %v3440_v13 = vsub.f32 %v7524_v12, %v7786_v31  ;;  %v3444_v6 = vsub.f32 %v7533_v15, %v7786_v31  ;;  %v7817_v29 = vpop.eup %6151  ;;  %v1744_v9 = vmax.f32 %v1743_v62, %v7800_v60  ;;  %v2943_v60 = vpop.permute.xlu1 %2942 }
  0xfc   : > { %12901 = vst [vmem:[#allocation48_spill] sm:$0xff] %v7817_v29  ;;  %6177 = vrcp.f32 %v1304_v27  ;;  %v3448_v11 = vsub.f32 %v7544_v21, %v7786_v31  ;;  %v3559_v14 = vand.u32 2147483647, %v3431_v56  ;;  %v7822_v32 = vpop.eup %6153  ;;  %v3563_v45 = vand.u32 2147483647, %v3435_v8 }
  0xfd   : > { %12902 = vst [vmem:[#allocation49_spill] sm:$0xff] %v7822_v32  ;;  %6179 = vrcp.f32 %v1308_v46  ;;  %v3567_v20 = vand.u32 2147483647, %v3439_v22  ;;  %v3571_v25 = vand.u32 2147483647, %v3443_v19  ;;  %v7824_v12 = vpop.eup %6155  ;;  %v1745_v15 = vmax.f32 %v1744_v9, %v7809_v50 }
  0xfe   : > { %12903 = vst [vmem:[#allocation50_spill] sm:$0xff] %v7824_v12  ;;  %6181 = vrcp.f32 %v1312_v47  ;;  %v3575_v54 = vand.u32 2147483647, %v3447_v26  ;;  %v574_v62 = vmul.f32 %v561_v43, %v12904_v48  ;;  %v7828_v27 = vpop.eup %6157  ;;  %v3548_v21 = vand.u32 2147483647, %v3420_v55 }
  0xff   : > { %12905 = vst [vmem:[#allocation10_spill] sm:$0xff] %v7828_v27  ;;  %6183 = vrcp.f32 %v1316_v17  ;;  %v3552_v56 = vand.u32 2147483647, %v3424_v34  ;;  %v3556_v51 = vand.u32 2147483647, %v3428_v37  ;;  %v7830_v46 = vpop.eup %6159  ;;  %v7834_v8 = vmax.f32 %v1745_v15, %v7817_v29 }
 0x100   : > { %12906 = vst [vmem:[#allocation51_spill] sm:$0xff] %v7830_v46  ;;  %6185 = vrcp.f32 %v7753_v0  ;;  %v3560_v22 = vand.u32 2147483647, %v3432_v52  ;;  %v3564_v19 = vand.u32 2147483647, %v3436_v7  ;;  %v7836_v47 = vpop.eup %6161  ;;  %v2954_v29 = vmul.f32 %v2943_v60, %v12904_v48 }
 0x101   : > { %12907 = vst [vmem:[#allocation52_spill] sm:$0xff] %v7834_v8  ;;  %12908 = vst [vmem:[#allocation53_spill] sm:$0xff] %v7836_v47  ;;  %6187 = vrcp.f32 %v7755_v63  ;;  %v3568_v43 = vand.u32 2147483647, %v3440_v13  ;;  %v3572_v26 = vand.u32 2147483647, %v3444_v6  ;;  %v7839_v55 = vpop.eup %6163  ;;  %v4088_v34 = vmax.f32 %v7830_v46, %v7836_v47 }
 0x102   : > { %v3576_v17 = vand.u32 2147483647, %v3448_v11  ;;  %12909 = vst [vmem:[#allocation54_spill] sm:$0xff] %v7839_v55  ;;  %v3675_v37 = vadd.f32 1e-08, %v3547_v57  ;;  %v7843_v50 = vpop.eup %6165  ;;  %6189 = vrcp.f32 %v7767_v40  ;;  %v2974_v40 = vadd.f32 %v2963_v23, %v2954_v29 }
 0x103   : > { %v3679_v9 = vadd.f32 1e-08, %v3551_v58  ;;  %v3683_v0 = vadd.f32 1e-08, %v3555_v35  ;;  %12910 = vst [vmem:[#allocation55_spill] sm:$0xff] %v7843_v50  ;;  %v7846_v1 = vpop.eup %6167  ;;  %v4089_v63 = vmax.f32 %v4088_v34, %v7839_v55 }
 0x104   : > { %v3687_v15 = vadd.f32 1e-08, %v3559_v14  ;;  %v3691_v52 = vadd.f32 1e-08, %v3563_v45  ;;  %v3695_v7 = vadd.f32 1e-08, %v3567_v20  ;;  %v7849_v59 = vpop.eup %6169  ;;  %v585_v14 = vpop.permute.xlu1 %584  ;;  %6191 = vrcp.f32 %v3675_v37 }
 0x105   : > { %12911 = vst [vmem:[#allocation56_spill] sm:$0xff] %v7846_v1  ;;  %v3699_v13 = vadd.f32 1e-08, %v3571_v25  ;;  %v3703_v6 = vadd.f32 1e-08, %v3575_v54  ;;  %12912 = vst [vmem:[#allocation57_spill] sm:$0xff] %v7849_v59  ;;  %v7858_v48 = vpop.eup %6171  ;;  %v4090_v60 = vmax.f32 %v4089_v63, %v7843_v50  ;;  %6193 = vrcp.f32 %v3679_v9 }
 0x106   : > { %v3676_v11 = vadd.f32 1e-08, %v3548_v21  ;;  %v7852_v57 = vadd.f32 1e-08, %v3552_v56  ;;  %v7854_v58 = vadd.f32 1e-08, %v3556_v51  ;;  %v4061_v51 = vmax.f32 %v7658_v49, %v7652_v16 }
 0x107   : > { %v7856_v35 = vadd.f32 1e-08, %v3560_v22  ;;  %12913 = vst [vmem:[#allocation58_spill] sm:$0xff] %v7858_v48  ;;  %v7861_v45 = vadd.f32 1e-08, %v3564_v19  ;;  %v7865_v54 = vpop.eup %6173  ;;  %6195 = vrcp.f32 %v3683_v0  ;;  %v4091_v22 = vmax.f32 %v4090_v60, %v7846_v1 }
 0x108   : > { %v7863_v25 = vadd.f32 1e-08, %v3568_v43  ;;  %12914 = vst [vmem:[#allocation59_spill] sm:$0xff] %v7865_v54  ;;  %v7867_v20 = vadd.f32 1e-08, %v3572_v26  ;;  %v7871_v21 = vpop.eup %6175  ;;  %v7876_v19 = vadd.f32 %v585_v14, %v574_v62  ;;  %6197 = vrcp.f32 %v3687_v15  ;;  %v12917_v26 = vld [vmem:[#allocation7_spill] sm:$0xff] }
 0x109   : > { %12915 = vst [vmem:[#allocation60_spill] sm:$0xff] %v7871_v21  ;;  %v7873_v56 = vadd.f32 1e-08, %v3576_v17  ;;  %v7878_v43 = vpop.eup %6177  ;;  %v3110_v34 = vcombine.high %v2974_v40, %v2974_v40  ;;  %v3117_v37 = vrot.slane %v2974_v40, %v12917_v26  ;;  %6199 = vrcp.f32 %v3691_v52 }
 0x10a   : > { %12916 = vst [vmem:[#allocation61_spill] sm:$0xff] %v7878_v43  ;;  %v7883_v29 = vpop.eup %6179  ;;  %v1774_v49 = vmax.f32 %v7871_v21, %v7878_v43  ;;  %v7888_v17 = vmax.f32 %v4061_v51, %v7654_v2  ;;  %v4092_v62 = vmax.f32 %v4091_v22, %v7849_v59  ;;  %6201 = vrcp.f32 %v3695_v7 }
 0x10b   : > { %12918 = vst [vmem:[#allocation62_spill] sm:$0xff] %v7883_v29  ;;  %v7891_v9 = vpop.eup %6181  ;;  %v3124_v0 = vrot.slane %v3110_v34, %v12917_v26  ;;  %v3125_v15 = vcombine.high %v3117_v37, %v3117_v37  ;;  %v3133_v63 = vrot.slane %v3117_v37, %v12917_v26  ;;  %6203 = vrcp.f32 %v3699_v13 }
 0x10c   : > { %12919 = vst [vmem:[#allocation63_spill] sm:$0xff] %v7888_v17  ;;  %12920 = vst [vmem:[#allocation64_spill] sm:$0xff] %v7891_v9  ;;  %v7895_v14 = vpop.eup %6183  ;;  %v7898_v60 = vmax.f32 %v1774_v49, %v7883_v29  ;;  %v7901_v52 = vmax.f32 %v4092_v62, %v7858_v48  ;;  %6205 = vrcp.f32 %v3703_v6  ;;  %v12926_v49 = vld [vmem:[#allocation8_spill] sm:$0xff] }
 0x10d   : > { %12921 = vst [vmem:[#allocation65_spill] sm:$0xff] %v7895_v14  ;;  %v7905_v51 = vpop.eup %6185  ;;  %v3126_v7 = vcombine.high %v3124_v0, %v3124_v0  ;;  %v3140_v22 = vrot.slane %v3124_v0, %v12917_v26  ;;  %v3147_v34 = vrot.slane %v3125_v15, %v12917_v26  ;;  %v3155_v23 = vcombine.high %v3133_v63, %v3133_v63  ;;  %v12927_v15 = vld [vmem:[#allocation9_spill] sm:$0xff] }
 0x10e   : > { %12922 = vst [vmem:[#allocation66_spill] sm:$0xff] %v7898_v60  ;;  %12923 = vst [vmem:[#allocation67_spill] sm:$0xff] %v7901_v52  ;;  %v7909_v37 = vpop.eup %6187  ;;  %v3292_v2 = vrot.slane %v3133_v63, %v12926_v49  ;;  %6207 = vrcp.f32 %v3676_v11 }
 0x10f   : > { %12924 = vst [vmem:[#allocation68_spill] sm:$0xff] %v7905_v51  ;;  %12925 = vst [vmem:[#allocation69_spill] sm:$0xff] %v7909_v37  ;;  %v3154_v62 = vrot.slane %v3126_v7, %v12917_v26  ;;  %v3156_v40 = vcombine.high %v3140_v22, %v3140_v22  ;;  %v3157_v48 = vcombine.high %v3147_v34, %v3147_v34  ;;  %v7932_v1 = vpop.eup %6189  ;;  %6209 = vrcp.f32 %v7854_v58 }
 0x110   : > { %v3296_v6 = vrot.slane %v3147_v34, %v12926_v49  ;;  %v7917_v59 = vrot.slane %v3155_v23, %v12926_v49  ;;  %v7920_v0 = vrot.slane %v3140_v22, %v12926_v49  ;;  %v3449_v16 = vsub.f32 %v3292_v2, %v12927_v15  ;;  %12928 = vst [vmem:[#allocation70_spill] sm:$0xff] %v7932_v1 }
 0x111   : > { %v3158_v63 = vcombine.high %v3154_v62, %v3154_v62  ;;  %v7926_v13 = vrot.slane %v3157_v48, %v12926_v49  ;;  %v7929_v7 = vrot.slane %v3154_v62, %v12926_v49  ;;  %v3450_v34 = vsub.f32 %v3292_v2, %v7630_v33  ;;  %v7940_v55 = vpop.eup %6191 }
 0x112   : > { %v7935_v23 = vrot.slane %v3156_v40, %v12926_v49  ;;  %v3451_v22 = vsub.f32 %v3292_v2, %v7738_v38  ;;  %v3452_v50 = vsub.f32 %v3292_v2, %v7786_v31  ;;  %v3453_v11 = vsub.f32 %v3296_v6, %v12927_v15  ;;  %12929 = vst [vmem:[#allocation71_spill] sm:$0xff] %v7940_v55  ;;  %v7948_v29 = vpop.eup %6193 }
 0x113   : > { %v7943_v48 = vrot.slane %v3158_v63, %v12926_v49  ;;  %v3454_v62 = vsub.f32 %v3296_v6, %v7630_v33  ;;  %v3455_v47 = vsub.f32 %v3296_v6, %v7738_v38  ;;  %v3456_v46 = vsub.f32 %v3296_v6, %v7786_v31  ;;  %12930 = vst [vmem:[#allocation72_spill] sm:$0xff] %v7948_v29 }
 0x114   : > { %v3457_v40 = vsub.f32 %v7917_v59, %v12927_v15  ;;  %v3458_v2 = vsub.f32 %v7917_v59, %v7630_v33  ;;  %v3459_v43 = vsub.f32 %v7917_v59, %v7738_v38  ;;  %v3460_v63 = vsub.f32 %v7917_v59, %v7786_v31  ;;  %v7958_v41 = vpop.eup %6195 }
 0x115   : > { %12931 = vst [vmem:[#allocation73_spill] sm:$0xff] %v7958_v41  ;;  %v3461_v44 = vsub.f32 %v7926_v13, %v12927_v15  ;;  %v3462_v6 = vsub.f32 %v7926_v13, %v7630_v33  ;;  %v3463_v21 = vsub.f32 %v7926_v13, %v7738_v38  ;;  %v3464_v3 = vsub.f32 %v7926_v13, %v7786_v31  ;;  %v7968_v24 = vpop.eup %6197 }
 0x116   : > { %12932 = vst [vmem:[#allocation74_spill] sm:$0xff] %v7968_v24  ;;  %v3465_v30 = vsub.f32 %v7920_v0, %v12927_v15  ;;  %v3466_v59 = vsub.f32 %v7920_v0, %v7630_v33  ;;  %v3467_v1 = vsub.f32 %v7920_v0, %v7738_v38  ;;  %v3468_v37 = vsub.f32 %v7920_v0, %v7786_v31  ;;  %v7978_v51 = vpop.eup %6199 }
 0x117   : > { %12933 = vst [vmem:[#allocation75_spill] sm:$0xff] %v7978_v51  ;;  %v4120_v14 = vmax.f32 %v7968_v24, %v7958_v41  ;;  %v3469_v13 = vsub.f32 %v7929_v7, %v12927_v15  ;;  %v3470_v27 = vsub.f32 %v7929_v7, %v7630_v33  ;;  %v3471_v28 = vsub.f32 %v7929_v7, %v7738_v38  ;;  %v7988_v12 = vpop.eup %6201 }
 0x118   : > { %12934 = vst [vmem:[#allocation76_spill] sm:$0xff] %v7988_v12  ;;  %v3472_v42 = vsub.f32 %v7929_v7, %v7786_v31  ;;  %v3473_v0 = vsub.f32 %v7935_v23, %v12927_v15  ;;  %v3474_v24 = vsub.f32 %v7935_v23, %v7630_v33  ;;  %v3475_v41 = vsub.f32 %v7935_v23, %v7738_v38  ;;  %v7998_v36 = vpop.eup %6203 }
 0x119   : > { %12935 = vst [vmem:[#allocation77_spill] sm:$0xff] %v7998_v36  ;;  %v4121_v49 = vmax.f32 %v4120_v14, %v7978_v51  ;;  %v3476_v10 = vsub.f32 %v7935_v23, %v7786_v31  ;;  %v3477_v54 = vsub.f32 %v7943_v48, %v12927_v15  ;;  %v3478_v7 = vsub.f32 %v7943_v48, %v7630_v33  ;;  %v8007_v52 = vpop.eup %6205 }
 0x11a   : > { %12936 = vst [vmem:[#allocation78_spill] sm:$0xff] %v8007_v52  ;;  %v3479_v53 = vsub.f32 %v7943_v48, %v7738_v38  ;;  %v3577_v17 = vand.u32 2147483647, %v3449_v16  ;;  %v3578_v8 = vand.u32 2147483647, %v3450_v34  ;;  %v3480_v15 = vsub.f32 %v7943_v48, %v7786_v31 }
 0x11b   : > { %v3579_v32 = vand.u32 2147483647, %v3451_v22  ;;  %v8011_v39 = vpop.eup %6207  ;;  %v4122_v14 = vmax.f32 %v4121_v49, %v7988_v12  ;;  %v3580_v51 = vand.u32 2147483647, %v3452_v50  ;;  %v3581_v23 = vand.u32 2147483647, %v3453_v11 }
 0x11c   : > { %12937 = vst [vmem:[#allocation79_spill] sm:$0xff] %v8011_v39  ;;  %v3582_v5 = vand.u32 2147483647, %v3454_v62  ;;  %v3583_v61 = vand.u32 2147483647, %v3455_v47  ;;  %6211 = vrcp.f32 %v7852_v57 }
 0x11d   : > { %v3584_v33 = vand.u32 2147483647, %v3456_v46  ;;  %v3585_v4 = vand.u32 2147483647, %v3457_v40  ;;  %v8017_v18 = vmax.f32 %v4122_v14, %v7998_v36  ;;  %v3586_v38 = vand.u32 2147483647, %v3458_v2 }
 0x11e   : > { %v3587_v16 = vand.u32 2147483647, %v3459_v43  ;;  %v3588_v34 = vand.u32 2147483647, %v3460_v63  ;;  %v3589_v22 = vand.u32 2147483647, %v3461_v44  ;;  %6213 = vrcp.f32 %v7856_v35 }
 0x11f   : > { %v3590_v60 = vand.u32 2147483647, %v3462_v6  ;;  %v3591_v9 = vand.u32 2147483647, %v3463_v21  ;;  %v3592_v50 = vand.u32 2147483647, %v3464_v3  ;;  %6215 = vrcp.f32 %v7861_v45 }
 0x120   : > { %v3593_v49 = vand.u32 2147483647, %v3465_v30  ;;  %v3594_v11 = vand.u32 2147483647, %v3466_v59  ;;  %v3595_v48 = vand.u32 2147483647, %v3467_v1  ;;  %6217 = vrcp.f32 %v7863_v25 }
 0x121   : > { %v3596_v47 = vand.u32 2147483647, %v3468_v37  ;;  %v3597_v46 = vand.u32 2147483647, %v3469_v13  ;;  %v3598_v43 = vand.u32 2147483647, %v3470_v27  ;;  %6219 = vrcp.f32 %v7867_v20 }
 0x122   : > { %v3599_v40 = vand.u32 2147483647, %v3471_v28  ;;  %v3600_v44 = vand.u32 2147483647, %v3472_v42  ;;  %v3601_v2 = vand.u32 2147483647, %v3473_v0  ;;  %6221 = vrcp.f32 %v7873_v56 }
 0x123   : > { %v3602_v21 = vand.u32 2147483647, %v3474_v24  ;;  %v3603_v63 = vand.u32 2147483647, %v3475_v41  ;;  %v3604_v30 = vand.u32 2147483647, %v3476_v10 }
 0x124   : > { %v3605_v3 = vand.u32 2147483647, %v3477_v54  ;;  %v3606_v58 = vand.u32 2147483647, %v3478_v7  ;;  %v3607_v1 = vand.u32 2147483647, %v3479_v53 }
 0x125   : > { %v3608_v57 = vand.u32 2147483647, %v3480_v15  ;;  %v3705_v37 = vadd.f32 1e-08, %v3577_v17  ;;  %v3706_v35 = vadd.f32 1e-08, %v3578_v8 }
 0x126   : > { %v3707_v6 = vadd.f32 1e-08, %v3579_v32  ;;  %v3708_v27 = vadd.f32 1e-08, %v3580_v51  ;;  %v3709_v42 = vadd.f32 1e-08, %v3581_v23 }
 0x127   : > { %v3710_v24 = vadd.f32 1e-08, %v3582_v5  ;;  %6223 = vrcp.f32 %v3705_v37  ;;  %v3711_v28 = vadd.f32 1e-08, %v3583_v61  ;;  %v3712_v10 = vadd.f32 1e-08, %v3584_v33  ;;  %v8032_v5 = vpop.eup %6209 }
 0x128   : > { %v3713_v45 = vadd.f32 1e-08, %v3585_v4  ;;  %6225 = vrcp.f32 %v3706_v35  ;;  %v3714_v53 = vadd.f32 1e-08, %v3586_v38  ;;  %v3715_v25 = vadd.f32 1e-08, %v3587_v16 }
 0x129   : > { %v3716_v54 = vadd.f32 1e-08, %v3588_v34  ;;  %6227 = vrcp.f32 %v3707_v6  ;;  %v3717_v20 = vadd.f32 1e-08, %v3589_v22  ;;  %v3718_v8 = vadd.f32 1e-08, %v3590_v60  ;;  %v8040_v38 = vpop.eup %6211 }
 0x12a   : > { %v3719_v32 = vadd.f32 1e-08, %v3591_v9  ;;  %6229 = vrcp.f32 %v3708_v27  ;;  %v3720_v17 = vadd.f32 1e-08, %v3592_v50  ;;  %v3721_v56 = vadd.f32 1e-08, %v3593_v49 }
 0x12b   : > { %v8030_v51 = vadd.f32 1e-08, %v3594_v11  ;;  %6231 = vrcp.f32 %v3709_v42  ;;  %12938 = vst [vmem:[#allocation80_spill] sm:$0xff] %v8032_v5  ;;  %v8034_v15 = vadd.f32 1e-08, %v3595_v48  ;;  %12939 = vst [vmem:[#allocation81_spill] sm:$0xff] %v8040_v38  ;;  %v8048_v59 = vpop.eup %6213 }
 0x12c   : > { %v8036_v33 = vadd.f32 1e-08, %v3596_v47  ;;  %v8038_v61 = vadd.f32 1e-08, %v3597_v46  ;;  %6233 = vrcp.f32 %v3710_v24  ;;  %v8042_v4 = vadd.f32 1e-08, %v3598_v43  ;;  %v8064_v22 = vpop.eup %6215 }
 0x12d   : > { %v8044_v9 = vadd.f32 1e-08, %v3599_v40  ;;  %v8046_v60 = vadd.f32 1e-08, %v3600_v44  ;;  %6235 = vrcp.f32 %v3711_v28  ;;  %12940 = vst [vmem:[#allocation82_spill] sm:$0xff] %v8048_v59  ;;  %v4151_v34 = vmax.f32 %v8048_v59, %v8032_v5  ;;  %12941 = vst [vmem:[#allocation83_spill] sm:$0xff] %v8064_v22  ;;  %v8072_v48 = vpop.eup %6217 }
 0x12e   : > { %v8050_v13 = vadd.f32 1e-08, %v3601_v2  ;;  %v8052_v0 = vadd.f32 1e-08, %v3602_v21  ;;  %v8054_v7 = vadd.f32 1e-08, %v3603_v63  ;;  %6237 = vrcp.f32 %v3712_v10  ;;  %v8081_v44 = vpop.eup %6219 }
 0x12f   : > { %v8056_v14 = vadd.f32 1e-08, %v3604_v30  ;;  %v8058_v23 = vadd.f32 1e-08, %v3605_v3  ;;  %v8060_v16 = vadd.f32 1e-08, %v3606_v58  ;;  %6239 = vrcp.f32 %v3713_v45  ;;  %v8093_v27 = vpop.eup %6221 }
 0x130   : > { %v8066_v50 = vadd.f32 1e-08, %v3607_v1  ;;  %v8068_v49 = vadd.f32 1e-08, %v3608_v57  ;;  %12942 = vst [vmem:[#allocation84_spill] sm:$0xff] %v8072_v48  ;;  %v4152_v47 = vmax.f32 %v4151_v34, %v8064_v22  ;;  %6241 = vrcp.f32 %v3714_v53  ;;  %12944 = vst [vmem:[#allocation85_spill] sm:$0xff] %v8081_v44 }
 0x131   : > { %v741_v46 = vrot.slane %v7876_v19, %v12917_v26  ;;  %v12943_v43 = vcombine.high %v7876_v19, %v7876_v19  ;;  %6243 = vrcp.f32 %v3715_v25  ;;  %v12945_v2 = vld [vmem:[#allocation64_spill] sm:$0xff]  ;;  %v12946_v21 = vld [vmem:[#allocation66_spill] sm:$0xff]  ;;  %v12949_v58 = vld [vmem:[#allocation39_spill] sm:$0xff] }
 0x132   : > { %v12947_v30 = vld [vmem:[#allocation40_spill] sm:$0xff]  ;;  %v12952_v37 = vld [vmem:[#allocation29_spill] sm:$0xff]  ;;  %v12953_v35 = vld [vmem:[#allocation35_spill] sm:$0xff]  ;;  %v4153_v19 = vmax.f32 %v4152_v47, %v8072_v48  ;;  %6245 = vrcp.f32 %v3716_v54 }
 0x133   : > { %v748_v40 = vrot.slane %v12943_v43, %v12917_v26  ;;  %v12948_v3 = vld [vmem:[#allocation44_spill] sm:$0xff]  ;;  %v749_v42 = vcombine.high %v741_v46, %v741_v46  ;;  %6247 = vrcp.f32 %v3717_v20  ;;  %v757_v10 = vrot.slane %v741_v46, %v12917_v26  ;;  %v12956_v53 = vld [vmem:[#allocation49_spill] sm:$0xff]  ;;  %v12959_v47 = vld [vmem:[#allocation63_spill] sm:$0xff] }
 0x134   : > { %v12950_v1 = vmax.f32 %v12948_v3, %v12949_v58  ;;  %12954 = vst [vmem:[#allocation44_spill] sm:$0xff] %v8093_v27  ;;  %v8096_v28 = vpop.eup %6223  ;;  %v12957_v25 = vld [vmem:[#allocation52_spill] sm:$0xff]  ;;  %v4154_v3 = vmax.f32 %v4153_v19, %v8081_v44  ;;  %6249 = vrcp.f32 %v3718_v8  ;;  %v12960_v54 = vld [vmem:[#allocation22_spill] sm:$0xff]  ;;  %v12963_v46 = vld [vmem:[#allocation67_spill] sm:$0xff] }
 0x135   : > { %v750_v24 = vcombine.high %v748_v40, %v748_v40  ;;  %12955 = vst [vmem:[#allocation35_spill] sm:$0xff] %v8096_v28  ;;  %v764_v45 = vrot.slane %v748_v40, %v12917_v26  ;;  %v8102_v43 = vpop.eup %6225  ;;  %v771_v11 = vrot.slane %v749_v42, %v12917_v26  ;;  %6251 = vrcp.f32 %v3719_v32  ;;  %v12964_v40 = vld [vmem:[#allocation59_spill] sm:$0xff]  ;;  %v12979_v36 = vld [vmem:[#allocation24_spill] sm:$0xff] }
 0x136   : > { %v8089_v57 = vmax.f32 %v12950_v1, %v12947_v30  ;;  %12958 = vst [vmem:[#allocation52_spill] sm:$0xff] %v8102_v43  ;;  %v12961_v1 = vmax.f32 %v12959_v47, %v12960_v54  ;;  %v8110_v20 = vpop.eup %6227  ;;  %v12965_v41 = vmax.f32 %v12963_v46, %v12964_v40  ;;  %v779_v62 = vcombine.high %v757_v10, %v757_v10 }
 0x137   : > { %12962 = vst [vmem:[#allocation63_spill] sm:$0xff] %v8110_v20  ;;  %v778_v6 = vrot.slane %v750_v24, %v12917_v26  ;;  %v8117_v19 = vpop.eup %6229  ;;  %v4155_v8 = vmax.f32 %v4154_v3, %v8093_v27  ;;  %v12967_v47 = vmax.f32 %v8017_v18, %v8007_v52  ;;  %6253 = vrcp.f32 %v3720_v17  ;;  %v12971_v18 = vld [vmem:[#allocation8_spill] sm:$0xff] }
 0x138   : > { %12951 = vst [vmem:[#allocation66_spill] sm:$0xff] %v8089_v57  ;;  %v4064_v63 = vmax.f32 %v12961_v1, %v8096_v28  ;;  %v4095_v34 = vmax.f32 %v12965_v41, %v8102_v43  ;;  %12966 = vst [vmem:[#allocation67_spill] sm:$0xff] %v8117_v19  ;;  %v8126_v54 = vpop.eup %6231  ;;  %6255 = vrcp.f32 %v3721_v56  ;;  %v780_v41 = vcombine.high %v764_v45, %v764_v45 }
 0x139   : > { %v4125_v42 = vmax.f32 %v12967_v47, %v8110_v20  ;;  %12969 = vst [vmem:[#allocation86_spill] sm:$0xff] %v8126_v54  ;;  %v781_v46 = vcombine.high %v771_v11, %v771_v11  ;;  %v782_v24 = vcombine.high %v778_v6, %v778_v6  ;;  %v8128_v40 = vpop.eup %6233  ;;  %v4156_v44 = vmax.f32 %v4155_v8, %v8117_v19 }
 0x13a   : > { %12970 = vst [vmem:[#allocation87_spill] sm:$0xff] %v8128_v40  ;;  %6257 = vrcp.f32 %v8030_v51  ;;  %v4065_v3 = vmax.f32 %v4064_v63, %v8126_v54  ;;  %v8134_v47 = vrot.slane %v757_v10, %v12971_v18  ;;  %v8136_v17 = vpop.eup %6235  ;;  %v4096_v56 = vmax.f32 %v4095_v34, %v8128_v40 }
 0x13b   : > { %12972 = vst [vmem:[#allocation88_spill] sm:$0xff] %v8136_v17  ;;  %6259 = vrcp.f32 %v8034_v15  ;;  %v8141_v32 = vrot.slane %v771_v11, %v12971_v18  ;;  %v8144_v27 = vrot.slane %v779_v62, %v12971_v18  ;;  %v8146_v8 = vpop.eup %6237  ;;  %v4126_v51 = vmax.f32 %v4125_v42, %v8136_v17  ;;  %v12975_v42 = vld [vmem:[#allocation12_spill] sm:$0xff] }
 0x13c   : > { %12973 = vst [vmem:[#allocation89_spill] sm:$0xff] %v8146_v8  ;;  %6261 = vrcp.f32 %v8036_v33  ;;  %v8151_v63 = vrot.slane %v781_v46, %v12971_v18  ;;  %v8154_v10 = vrot.slane %v764_v45, %v12971_v18  ;;  %v4157_v15 = vmax.f32 %v4156_v44, %v8146_v8  ;;  %v8164_v34 = vpop.eup %6239  ;;  %v12976_v46 = vld [vmem:[#allocation11_spill] sm:$0xff] }
 0x13d   : > { %6263 = vrcp.f32 %v8038_v61  ;;  %v8159_v11 = vrot.slane %v778_v6, %v12971_v18  ;;  %v8162_v62 = vrot.slane %v780_v41, %v12971_v18  ;;  %12974 = vst [vmem:[#allocation90_spill] sm:$0xff] %v8164_v34  ;;  %v8168_v33 = vrot.slane %v782_v24, %v12971_v18  ;;  %v8174_v61 = vpop.eup %6241  ;;  %v12978_v41 = vld [vmem:[#allocation13_spill] sm:$0xff] }
 0x13e   : > { %6265 = vrcp.f32 %v8042_v4  ;;  %12977 = vst [vmem:[#allocation91_spill] sm:$0xff] %v8174_v61  ;;  %v4066_v6 = vmax.f32 %v4065_v3, %v8164_v34  ;;  %v8182_v24 = vpop.eup %6243  ;;  %v4097_v45 = vmax.f32 %v4096_v56, %v8174_v61  ;;  %v1085_v12 = vsub.f32 %v8151_v63, %v12975_v42 }
 0x13f   : > { %6267 = vrcp.f32 %v8044_v9  ;;  %12980 = vst [vmem:[#allocation92_spill] sm:$0xff] %v8182_v24  ;;  %v8190_v48 = vpop.eup %6245  ;;  %v4127_v3 = vmax.f32 %v4126_v51, %v8182_v24  ;;  %v1081_v9 = vsub.f32 %v8144_v27, %v12975_v42  ;;  %v1082_v51 = vsub.f32 %v8144_v27, %v12976_v46 }
 0x140   : > { %6269 = vrcp.f32 %v8046_v60  ;;  %12981 = vst [vmem:[#allocation93_spill] sm:$0xff] %v8190_v48  ;;  %v8198_v52 = vpop.eup %6247  ;;  %v4158_v56 = vmax.f32 %v4157_v15, %v8190_v48  ;;  %v1083_v60 = vsub.f32 %v8144_v27, %v12978_v41  ;;  %v1084_v15 = vsub.f32 %v8144_v27, %v12979_v36 }
 0x141   : > { %6271 = vrcp.f32 %v8050_v13  ;;  %12982 = vst [vmem:[#allocation94_spill] sm:$0xff] %v8198_v52  ;;  %v8206_v44 = vpop.eup %6249  ;;  %v4067_v13 = vmax.f32 %v4066_v6, %v8198_v52  ;;  %v1087_v27 = vsub.f32 %v8151_v63, %v12978_v41  ;;  %v1089_v5 = vsub.f32 %v8154_v10, %v12975_v42 }
 0x142   : > { %6273 = vrcp.f32 %v8052_v0  ;;  %12983 = vst [vmem:[#allocation95_spill] sm:$0xff] %v8206_v44  ;;  %v8214_v4 = vpop.eup %6251  ;;  %v4098_v0 = vmax.f32 %v4097_v45, %v8206_v44  ;;  %v1093_v44 = vsub.f32 %v8159_v11, %v12975_v42  ;;  %v1096_v52 = vsub.f32 %v8159_v11, %v12979_v36 }
 0x143   : > { %6275 = vrcp.f32 %v8054_v7  ;;  %12984 = vst [vmem:[#allocation96_spill] sm:$0xff] %v8214_v4  ;;  %v1086_v7 = vsub.f32 %v8151_v63, %v12976_v46  ;;  %v4128_v6 = vmax.f32 %v4127_v3, %v8214_v4  ;;  %v1090_v3 = vsub.f32 %v8154_v10, %v12976_v46 }
 0x144   : > { %6277 = vrcp.f32 %v8056_v14  ;;  %v8222_v22 = vpop.eup %6253  ;;  %v1088_v14 = vsub.f32 %v8151_v63, %v12979_v36  ;;  %v1091_v63 = vsub.f32 %v8154_v10, %v12978_v41  ;;  %v1098_v48 = vsub.f32 %v8162_v62, %v12976_v46 }
 0x145   : > { %12985 = vst [vmem:[#allocation97_spill] sm:$0xff] %v8222_v22  ;;  %6279 = vrcp.f32 %v8058_v23  ;;  %v8230_v59 = vpop.eup %6255  ;;  %v4159_v45 = vmax.f32 %v4158_v56, %v8222_v22  ;;  %v1092_v56 = vsub.f32 %v8154_v10, %v12979_v36  ;;  %v1095_v10 = vsub.f32 %v8159_v11, %v12978_v41 }
 0x146   : > { %12986 = vst [vmem:[#allocation98_spill] sm:$0xff] %v8230_v59  ;;  %6281 = vrcp.f32 %v8060_v16  ;;  %v8242_v23 = vmax.f32 %v4067_v13, %v8230_v59  ;;  %v1099_v24 = vsub.f32 %v8162_v62, %v12978_v41  ;;  %v1101_v61 = vsub.f32 %v8168_v33, %v12975_v42 }
 0x147   : > { %v8238_v4 = vpop.eup %6257  ;;  %6283 = vrcp.f32 %v8066_v50  ;;  %v1094_v50 = vsub.f32 %v8159_v11, %v12976_v46  ;;  %v1104_v8 = vsub.f32 %v8168_v33, %v12979_v36  ;;  %v12994_v11 = vsub.f32 %v8134_v47, %v12976_v46 }
 0x148   : > { %12987 = vst [vmem:[#allocation99_spill] sm:$0xff] %v8238_v4  ;;  %v8248_v16 = vpop.eup %6259  ;;  %6285 = vrcp.f32 %v8068_v49  ;;  %v8252_v22 = vmax.f32 %v4098_v0, %v8238_v4  ;;  %v1097_v49 = vsub.f32 %v8162_v62, %v12975_v42  ;;  %v12995_v20 = vsub.f32 %v8134_v47, %v12978_v41 }
 0x149   : > { %12988 = vst [vmem:[#allocation100_spill] sm:$0xff] %v8248_v16  ;;  %v8258_v13 = vpop.eup %6261  ;;  %v4129_v59 = vmax.f32 %v4128_v6, %v8248_v16  ;;  %v1100_v6 = vsub.f32 %v8162_v62, %v12979_v36  ;;  %v12993_v62 = vsub.f32 %v8134_v47, %v12975_v42  ;;  %v1202_v17 = vand.u32 2147483647, %v12994_v11 }
 0x14a   : > { %12989 = vst [vmem:[#allocation101_spill] sm:$0xff] %v8258_v13  ;;  %v8267_v0 = vpop.eup %6263  ;;  %v4160_v4 = vmax.f32 %v4159_v45, %v8258_v13  ;;  %v1102_v45 = vsub.f32 %v8168_v33, %v12976_v46  ;;  %v1103_v13 = vsub.f32 %v8168_v33, %v12978_v41  ;;  %v1203_v40 = vand.u32 2147483647, %v12995_v20 }
 0x14b   : > { %12990 = vst [vmem:[#allocation102_spill] sm:$0xff] %v8267_v0  ;;  %v8276_v16 = vpop.eup %6265  ;;  %v1201_v19 = vand.u32 2147483647, %v12993_v62  ;;  %v12997_v28 = vsub.f32 %v8134_v47, %v12979_v36  ;;  %v12998_v30 = vsub.f32 %v8141_v32, %v12975_v42  ;;  %v12999_v58 = vsub.f32 %v8141_v32, %v12976_v46  ;;  %v13004_v46 = vld [vmem:[#allocation30_spill] sm:$0xff] }
 0x14c   : > { %12991 = vst [vmem:[#allocation103_spill] sm:$0xff] %v8276_v16  ;;  %v8286_v34 = vpop.eup %6267  ;;  %v13001_v18 = vsub.f32 %v8141_v32, %v12978_v41  ;;  %v13002_v47 = vsub.f32 %v8141_v32, %v12979_v36  ;;  %v1211_v42 = vand.u32 2147483647, %v1083_v60  ;;  %v1212_v57 = vand.u32 2147483647, %v1084_v15  ;;  %v13008_v0 = vld [vmem:[#allocation50_spill] sm:$0xff] }
 0x14d   : > { %12992 = vst [vmem:[#allocation104_spill] sm:$0xff] %v8286_v34  ;;  %v8299_v43 = vpop.eup %6269  ;;  %v4130_v54 = vmax.f32 %v4129_v59, %v8286_v34  ;;  %v1204_v33 = vand.u32 2147483647, %v12997_v28  ;;  %v1205_v62 = vand.u32 2147483647, %v12998_v30  ;;  %v13009_v32 = vmax.f32 %v12957_v25, %v12956_v53 }
 0x14e   : > { %12996 = vst [vmem:[#allocation105_spill] sm:$0xff] %v8299_v43  ;;  %v1206_v11 = vand.u32 2147483647, %v12999_v58  ;;  %v8311_v31 = vpop.eup %6271  ;;  %v4161_v20 = vmax.f32 %v4160_v4, %v8299_v43  ;;  %v1207_v59 = vand.u32 2147483647, %v13001_v18  ;;  %v13005_v58 = vmax.f32 %v12953_v35, %v12952_v37 }
 0x14f   : > { %13000 = vst [vmem:[#allocation106_spill] sm:$0xff] %v8311_v31  ;;  %v1208_v28 = vand.u32 2147483647, %v13002_v47  ;;  %v1209_v34 = vand.u32 2147483647, %v1081_v9  ;;  %v8320_v1 = vpop.eup %6273  ;;  %v8334_v9 = vmax.f32 %v13009_v32, %v13008_v0 }
 0x150   : > { %13003 = vst [vmem:[#allocation107_spill] sm:$0xff] %v8320_v1  ;;  %v1210_v30 = vand.u32 2147483647, %v1082_v51  ;;  %v8326_v26 = vmax.f32 %v13005_v58, %v13004_v46  ;;  %v8328_v4 = vpop.eup %6275  ;;  %v1213_v43 = vand.u32 2147483647, %v1085_v12  ;;  %v8336_v51 = vpop.permute.xlu1 %565 }
 0x151   : > { %13007 = vst [vmem:[#allocation109_spill] sm:$0xff] %v8328_v4  ;;  %v1214_v18 = vand.u32 2147483647, %v1086_v7  ;;  %v1215_v41 = vand.u32 2147483647, %v1087_v27  ;;  %v8338_v60 = vpop.eup %6277  ;;  %v4131_v15 = vmax.f32 %v4130_v54, %v8328_v4 }
 0x152   : > { %13006 = vst [vmem:[#allocation108_spill] sm:$0xff] %v8326_v26  ;;  %13010 = vst [vmem:[#allocation110_spill] sm:$0xff] %v8338_v60  ;;  %v1216_v35 = vand.u32 2147483647, %v1088_v14  ;;  %v1217_v47 = vand.u32 2147483647, %v1089_v5  ;;  %v8341_v46 = vpop.eup %6279  ;;  %v4162_v12 = vmax.f32 %v4161_v20, %v8338_v60 }
 0x153   : > { %v1218_v58 = vand.u32 2147483647, %v1090_v3  ;;  %13011 = vst [vmem:[#allocation111_spill] sm:$0xff] %v8341_v46  ;;  %v1219_v7 = vand.u32 2147483647, %v1091_v63  ;;  %v8344_v36 = vpop.eup %6281  ;;  %v13016_v60 = vld [vmem:[#allocation10_spill] sm:$0xff] }
 0x154   : > { %v1220_v27 = vand.u32 2147483647, %v1092_v56  ;;  %v1221_v37 = vand.u32 2147483647, %v1093_v44  ;;  %13012 = vst [vmem:[#allocation112_spill] sm:$0xff] %v8344_v36  ;;  %v8348_v1 = vpop.eup %6283 }
 0x155   : > { %v1222_v32 = vand.u32 2147483647, %v1094_v50  ;;  %v1223_v0 = vand.u32 2147483647, %v1095_v10  ;;  %v1224_v53 = vand.u32 2147483647, %v1096_v52  ;;  %v8352_v20 = vpop.eup %6285  ;;  %v4132_v44 = vmax.f32 %v4131_v15, %v8348_v1 }
 0x156   : > { %13013 = vst [vmem:[#allocation113_spill] sm:$0xff] %v8348_v1  ;;  %v1225_v54 = vand.u32 2147483647, %v1097_v49  ;;  %v1226_v5 = vand.u32 2147483647, %v1098_v48  ;;  %13015 = vst [vmem:[#allocation114_spill] sm:$0xff] %v8352_v20  ;;  %v4163_v50 = vmax.f32 %v4162_v12, %v8352_v20  ;;  %v2947_v49 = vpop.permute.xlu1 %2946  ;;  %v13017_v48 = vmax.f32 %v7940_v55, %v7948_v29 }
 0x157   : > { %v1227_v14 = vand.u32 2147483647, %v1099_v24  ;;  %v1228_v63 = vand.u32 2147483647, %v1100_v6  ;;  %v1229_v56 = vand.u32 2147483647, %v1101_v61  ;;  %v13019_v61 = vmax.f32 %v8011_v39, %v8040_v38 }
 0x158   : > { %v1230_v52 = vand.u32 2147483647, %v1102_v45  ;;  %v1231_v10 = vand.u32 2147483647, %v1103_v13  ;;  %v1329_v36 = vadd.f32 1e-08, %v1201_v19  ;;  %v8361_v24 = vmax.f32 %v4132_v44, %v13017_v48 }
 0x159   : > { %v1232_v4 = vand.u32 2147483647, %v1104_v8  ;;  %v1330_v3 = vadd.f32 1e-08, %v1202_v17  ;;  %v1331_v26 = vadd.f32 1e-08, %v1203_v40  ;;  %v8366_v6 = vmax.f32 %v4163_v50, %v13019_v61 }
 0x15a   : > { %13018 = vst [vmem:[#allocation115_spill] sm:$0xff] %v8361_v24  ;;  %v1332_v15 = vadd.f32 1e-08, %v1204_v33  ;;  %v1333_v25 = vadd.f32 1e-08, %v1205_v62  ;;  %6287 = vrcp.f32 %v1329_v36  ;;  %v2967_v33 = vpop.permute.xlu1 %2966  ;;  %v7142_v50 = vld [vmem:[%s7464_s26 + $0x18] sm:$0xff] }
 0x15b   : > { %13020 = vst [vmem:[#allocation116_spill] sm:$0xff] %v8366_v6  ;;  %v1334_v12 = vadd.f32 1e-08, %v1206_v11  ;;  %v1335_v45 = vadd.f32 1e-08, %v1207_v59  ;;  %6289 = vrcp.f32 %v1330_v3  ;;  %v13029_v61 = vld [vmem:[#allocation7_spill] sm:$0xff] }
 0x15c   : > { %v1336_v13 = vadd.f32 1e-08, %v1208_v28  ;;  %v1337_v19 = vadd.f32 1e-08, %v1209_v34  ;;  %v1338_v20 = vadd.f32 1e-08, %v1210_v30  ;;  %6291 = vrcp.f32 %v1331_v26  ;;  %v590_v30 = vpop.permute.xlu0 %589 }
 0x15d   : > { %v1339_v1 = vadd.f32 1e-08, %v1211_v42  ;;  %v1340_v29 = vadd.f32 1e-08, %v1212_v57  ;;  %v1341_v44 = vadd.f32 1e-08, %v1213_v43  ;;  %6293 = vrcp.f32 %v1332_v15 }
 0x15e   : > { %v1342_v8 = vadd.f32 1e-08, %v1214_v18  ;;  %v1343_v17 = vadd.f32 1e-08, %v1215_v41  ;;  %v1344_v40 = vadd.f32 1e-08, %v1216_v35  ;;  %6295 = vrcp.f32 %v1333_v25 }
 0x15f   : > { %v1345_v48 = vadd.f32 1e-08, %v1217_v47  ;;  %v8368_v38 = vadd.f32 1e-08, %v1218_v58  ;;  %v8370_v62 = vadd.f32 1e-08, %v1219_v7  ;;  %6297 = vrcp.f32 %v1334_v12 }
 0x160   : > { %v8372_v11 = vadd.f32 1e-08, %v1220_v27  ;;  %v8374_v34 = vadd.f32 1e-08, %v1221_v37  ;;  %v8376_v36 = vadd.f32 1e-08, %v1222_v32  ;;  %6299 = vrcp.f32 %v1335_v45 }
 0x161   : > { %v8378_v57 = vadd.f32 1e-08, %v1223_v0  ;;  %v8380_v43 = vadd.f32 1e-08, %v1224_v53  ;;  %v8382_v26 = vadd.f32 1e-08, %v1225_v54  ;;  %6301 = vrcp.f32 %v1336_v13 }
 0x162   : > { %v8384_v42 = vadd.f32 1e-08, %v1226_v5  ;;  %v8386_v41 = vadd.f32 1e-08, %v1227_v14  ;;  %v8388_v59 = vadd.f32 1e-08, %v1228_v63  ;;  %6303 = vrcp.f32 %v1337_v19 }
 0x163   : > { %v8390_v37 = vadd.f32 1e-08, %v1229_v56  ;;  %v8392_v28 = vadd.f32 1e-08, %v1230_v52  ;;  %v8394_v0 = vadd.f32 1e-08, %v1231_v10  ;;  %v13022_v18 = vmax.f32 %v12946_v21, %v12945_v2  ;;  %v571_v21 = vpop.permute.xlu1 %570 }
 0x164   : > { %v13021_v53 = vld [vmem:[#allocation65_spill] sm:$0xff]  ;;  %6305 = vrcp.f32 %v1338_v20  ;;  %v13023_v27 = vld [vmem:[#allocation102_spill] sm:$0xff]  ;;  %v13025_v54 = vld [vmem:[#allocation107_spill] sm:$0xff]  ;;  %v13026_v5 = vmax.f32 %v8252_v22, %v8276_v16  ;;  %v8414_v3 = vadd.f32 1e-08, %v1232_v4  ;;  %v576_v52 = vmul.f32 %v7142_v50, %v571_v21 }
 0x165   : > { %v1777_v35 = vmax.f32 %v13022_v18, %v13021_v53  ;;  %v7141_v47 = vld [vmem:[%s7464_s26 + $0x10] sm:$0xff]  ;;  %v13024_v25 = vmax.f32 %v8242_v23, %v13023_v27  ;;  %6307 = vrcp.f32 %v1339_v1  ;;  %v13033_v19 = vld [vmem:[#allocation66_spill] sm:$0xff]  ;;  %v13042_v50 = vmax.f32 %v8334_v9, %v13016_v60 }
 0x166   : > { %v575_v58 = vmul.f32 %v7141_v47, %v8336_v51  ;;  %v2955_v7 = vmul.f32 %v7141_v47, %v2947_v49  ;;  %v8412_v14 = vmax.f32 %v13026_v5, %v13025_v54  ;;  %v13027_v63 = vld [vmem:[#allocation68_spill] sm:$0xff]  ;;  %6309 = vrcp.f32 %v1340_v29  ;;  %v13028_v10 = vld [vmem:[#allocation69_spill] sm:$0xff]  ;;  %v13036_v18 = vld [vmem:[#allocation70_spill] sm:$0xff] }
 0x167   : > { %v8406_v32 = vmax.f32 %v13024_v25, %v8311_v31  ;;  %v1778_v51 = vmax.f32 %v1777_v35, %v13027_v63  ;;  %6311 = vrcp.f32 %v1341_v44  ;;  %v8424_v4 = vpop.eup %6287  ;;  %v13034_v44 = vld [vmem:[#allocation41_spill] sm:$0xff] }
 0x168   : > { %v599_v20 = vadd.f32 %v590_v30, %v575_v58  ;;  %v8417_v56 = vadd.f32 %v2967_v33, %v2955_v7  ;;  %13030 = vst [vmem:[#allocation117_spill] sm:$0xff] %v8424_v4  ;;  %6313 = vrcp.f32 %v1342_v8  ;;  %v8434_v13 = vpop.eup %6289  ;;  %v13035_v33 = vmax.f32 %v13033_v19, %v13034_v44  ;;  %v13038_v58 = vld [vmem:[#allocation108_spill] sm:$0xff]  ;;  %v13039_v7 = vld [vmem:[#allocation31_spill] sm:$0xff] }
 0x169   : > { %v1779_v22 = vmax.f32 %v1778_v51, %v13028_v10  ;;  %13032 = vst [vmem:[#allocation118_spill] sm:$0xff] %v8434_v13  ;;  %6315 = vrcp.f32 %v1343_v17  ;;  %v8442_v47 = vpop.eup %6291  ;;  %v13040_v25 = vmax.f32 %v13038_v58, %v13039_v7  ;;  %v595_v51 = vpop.permute.xlu1 %594 }
 0x16a   : > { %v783_v49 = vcombine.high %v599_v20, %v599_v20  ;;  %v790_v15 = vrot.slane %v599_v20, %v13029_v61  ;;  %v8430_v29 = vrot.slane %v8417_v56, %v13029_v61  ;;  %v1688_v30 = vmax.f32 %v13035_v33, %v8424_v4  ;;  %13037 = vst [vmem:[#allocation66_spill] sm:$0xff] %v8442_v47  ;;  %v8449_v20 = vpop.eup %6293 }
 0x16b   : > { %v1780_v8 = vmax.f32 %v1779_v22, %v13036_v18  ;;  %6317 = vrcp.f32 %v1344_v40  ;;  %v1719_v5 = vmax.f32 %v13040_v25, %v8434_v13  ;;  %13041 = vst [vmem:[#allocation108_spill] sm:$0xff] %v8449_v20  ;;  %v1750_v22 = vmax.f32 %v13042_v50, %v8442_v47  ;;  %v8456_v19 = vpop.eup %6295 }
 0x16c   : > { %v797_v35 = vrot.slane %v783_v49, %v13029_v61  ;;  %v798_v21 = vcombine.high %v790_v15, %v790_v15  ;;  %v806_v17 = vrot.slane %v790_v15, %v13029_v61  ;;  %6319 = vrcp.f32 %v1345_v48  ;;  %13043 = vst [vmem:[#allocation119_spill] sm:$0xff] %v8456_v19  ;;  %v8461_v25 = vpop.eup %6297 }
 0x16d   : > { %6321 = vrcp.f32 %v8368_v38  ;;  %v1781_v33 = vmax.f32 %v1780_v8, %v8449_v20  ;;  %13044 = vst [vmem:[#allocation120_spill] sm:$0xff] %v8461_v25  ;;  %v1689_v48 = vmax.f32 %v1688_v30, %v8456_v19  ;;  %v8466_v50 = vadd.f32 %v595_v51, %v576_v52  ;;  %v13047_v30 = vld [vmem:[#allocation8_spill] sm:$0xff] }
 0x16e   : > { %v799_v49 = vcombine.high %v797_v35, %v797_v35  ;;  %v813_v40 = vrot.slane %v797_v35, %v13029_v61  ;;  %v820_v15 = vrot.slane %v798_v21, %v13029_v61  ;;  %v828_v58 = vcombine.high %v806_v17, %v806_v17  ;;  %v8468_v35 = vpop.eup %6299 }
 0x16f   : > { %6323 = vrcp.f32 %v8370_v62  ;;  %13045 = vst [vmem:[#allocation121_spill] sm:$0xff] %v8468_v35  ;;  %v1720_v38 = vmax.f32 %v1719_v5, %v8461_v25  ;;  %v8472_v21 = vpop.eup %6301  ;;  %v1751_v62 = vmax.f32 %v1750_v22, %v8468_v35  ;;  %v8477_v1 = vrot.slane %v806_v17, %v13047_v30 }
 0x170   : > { %v827_v9 = vrot.slane %v799_v49, %v13029_v61  ;;  %6325 = vrcp.f32 %v8372_v11  ;;  %v829_v8 = vcombine.high %v813_v40, %v813_v40  ;;  %v830_v45 = vcombine.high %v820_v15, %v820_v15  ;;  %13046 = vst [vmem:[#allocation122_spill] sm:$0xff] %v8472_v21  ;;  %v8479_v52 = vpop.eup %6303 }
 0x171   : > { %6327 = vrcp.f32 %v8374_v34  ;;  %13048 = vst [vmem:[#allocation123_spill] sm:$0xff] %v8479_v52  ;;  %v1782_v11 = vmax.f32 %v1781_v33, %v8472_v21  ;;  %v8484_v5 = vrot.slane %v820_v15, %v13047_v30  ;;  %v8487_v51 = vrot.slane %v828_v58, %v13047_v30  ;;  %v8489_v49 = vpop.eup %6305 }
 0x172   : > { %v831_v23 = vcombine.high %v827_v9, %v827_v9  ;;  %6329 = vrcp.f32 %v8376_v36  ;;  %13049 = vst [vmem:[#allocation124_spill] sm:$0xff] %v8489_v49  ;;  %v1690_v34 = vmax.f32 %v1689_v48, %v8479_v52  ;;  %v8494_v17 = vrot.slane %v830_v45, %v13047_v30  ;;  %v8499_v36 = vpop.eup %6307  ;;  %v13052_v48 = vld [vmem:[#allocation12_spill] sm:$0xff] }
 0x173   : > { %6331 = vrcp.f32 %v8378_v57  ;;  %v8497_v22 = vrot.slane %v813_v40, %v13047_v30  ;;  %13050 = vst [vmem:[#allocation125_spill] sm:$0xff] %v8499_v36  ;;  %v1721_v33 = vmax.f32 %v1720_v38, %v8489_v49  ;;  %v8504_v15 = vrot.slane %v827_v9, %v13047_v30  ;;  %v8509_v57 = vpop.eup %6309  ;;  %v13054_v38 = vld [vmem:[#allocation11_spill] sm:$0xff]  ;;  %v13055_v49 = vld [vmem:[#allocation13_spill] sm:$0xff] }
 0x174   : > { %6333 = vrcp.f32 %v8380_v43  ;;  %v8507_v58 = vrot.slane %v829_v8, %v13047_v30  ;;  %13051 = vst [vmem:[#allocation126_spill] sm:$0xff] %v8509_v57  ;;  %v1752_v45 = vmax.f32 %v1751_v62, %v8499_v36  ;;  %v8514_v40 = vrot.slane %v831_v23, %v13047_v30  ;;  %v8518_v52 = vpop.eup %6311  ;;  %v13057_v62 = vld [vmem:[#allocation24_spill] sm:$0xff] }
 0x175   : > { %6335 = vrcp.f32 %v8382_v26  ;;  %13053 = vst [vmem:[#allocation127_spill] sm:$0xff] %v8518_v52  ;;  %v1783_v9 = vmax.f32 %v1782_v11, %v8509_v57  ;;  %v1106_v8 = vsub.f32 %v8477_v1, %v13054_v38  ;;  %v8526_v21 = vpop.eup %6313  ;;  %v1691_v23 = vmax.f32 %v1690_v34, %v8518_v52 }
 0x176   : > { %6337 = vrcp.f32 %v8384_v42  ;;  %13056 = vst [vmem:[#allocation128_spill] sm:$0xff] %v8526_v21  ;;  %v1108_v43 = vsub.f32 %v8477_v1, %v13057_v62  ;;  %v1109_v42 = vsub.f32 %v8484_v5, %v13052_v48  ;;  %v8534_v36 = vpop.eup %6315  ;;  %v1722_v11 = vmax.f32 %v1721_v33, %v8526_v21 }
 0x177   : > { %6339 = vrcp.f32 %v8386_v41  ;;  %13058 = vst [vmem:[#allocation129_spill] sm:$0xff] %v8534_v36  ;;  %v1110_v26 = vsub.f32 %v8484_v5, %v13054_v38  ;;  %v1111_v41 = vsub.f32 %v8484_v5, %v13055_v49  ;;  %v1753_v34 = vmax.f32 %v1752_v45, %v8534_v36 }
 0x178   : > { %6341 = vrcp.f32 %v8388_v59  ;;  %v8542_v57 = vpop.eup %6317  ;;  %v1112_v52 = vsub.f32 %v8484_v5, %v13057_v62  ;;  %v1113_v59 = vsub.f32 %v8487_v51, %v13052_v48  ;;  %v1114_v21 = vsub.f32 %v8487_v51, %v13054_v38 }
 0x179   : > { %13059 = vst [vmem:[#allocation130_spill] sm:$0xff] %v8542_v57  ;;  %6343 = vrcp.f32 %v8390_v37  ;;  %v8550_v35 = vpop.eup %6319  ;;  %v1784_v33 = vmax.f32 %v1783_v9, %v8542_v57  ;;  %v1115_v37 = vsub.f32 %v8487_v51, %v13055_v49  ;;  %v1116_v45 = vsub.f32 %v8487_v51, %v13057_v62 }
 0x17a   : > { %13060 = vst [vmem:[#allocation131_spill] sm:$0xff] %v8550_v35  ;;  %6345 = vrcp.f32 %v8392_v28  ;;  %v8558_v25 = vpop.eup %6321  ;;  %v1692_v5 = vmax.f32 %v1691_v23, %v8550_v35  ;;  %v1117_v28 = vsub.f32 %v8494_v17, %v13052_v48  ;;  %v1118_v57 = vsub.f32 %v8494_v17, %v13054_v38 }
 0x17b   : > { %13061 = vst [vmem:[#allocation132_spill] sm:$0xff] %v8558_v25  ;;  %6347 = vrcp.f32 %v8394_v0  ;;  %v1723_v9 = vmax.f32 %v1722_v11, %v8558_v25  ;;  %v1119_v0 = vsub.f32 %v8494_v17, %v13055_v49  ;;  %v1120_v51 = vsub.f32 %v8494_v17, %v13057_v62 }
 0x17c   : > { %v8566_v36 = vpop.eup %6323  ;;  %6349 = vrcp.f32 %v8414_v3  ;;  %v1121_v35 = vsub.f32 %v8497_v22, %v13052_v48  ;;  %v1122_v3 = vsub.f32 %v8497_v22, %v13054_v38  ;;  %v1123_v20 = vsub.f32 %v8497_v22, %v13055_v49 }
 0x17d   : > { %13062 = vst [vmem:[#allocation133_spill] sm:$0xff] %v8566_v36  ;;  %v8574_v19 = vpop.eup %6325  ;;  %v1754_v23 = vmax.f32 %v1753_v34, %v8566_v36  ;;  %v1124_v47 = vsub.f32 %v8497_v22, %v13057_v62  ;;  %v1125_v34 = vsub.f32 %v8504_v15, %v13052_v48  ;;  %v1126_v13 = vsub.f32 %v8504_v15, %v13054_v38 }
 0x17e   : > { %13063 = vst [vmem:[#allocation134_spill] sm:$0xff] %v8574_v19  ;;  %v8583_v11 = vpop.eup %6327  ;;  %v1785_v25 = vmax.f32 %v1784_v33, %v8574_v19  ;;  %v1127_v4 = vsub.f32 %v8504_v15, %v13055_v49  ;;  %v1128_v33 = vsub.f32 %v8504_v15, %v13057_v62  ;;  %v1129_v18 = vsub.f32 %v8507_v58, %v13052_v48 }
 0x17f   : > { %13064 = vst [vmem:[#allocation135_spill] sm:$0xff] %v8583_v11  ;;  %v8592_v17 = vpop.eup %6329  ;;  %v1693_v36 = vmax.f32 %v1692_v5, %v8583_v11  ;;  %v1130_v60 = vsub.f32 %v8507_v58, %v13054_v38  ;;  %v1131_v5 = vsub.f32 %v8507_v58, %v13055_v49  ;;  %v1132_v15 = vsub.f32 %v8507_v58, %v13057_v62 }
 0x180   : > { %13065 = vst [vmem:[#allocation136_spill] sm:$0xff] %v8592_v17  ;;  %v8601_v19 = vpop.eup %6331  ;;  %v1724_v22 = vmax.f32 %v1723_v9, %v8592_v17  ;;  %v1133_v44 = vsub.f32 %v8514_v40, %v13052_v48  ;;  %v1134_v9 = vsub.f32 %v8514_v40, %v13054_v38  ;;  %v1135_v55 = vsub.f32 %v8514_v40, %v13055_v49 }
 0x181   : > { %13066 = vst [vmem:[#allocation137_spill] sm:$0xff] %v8601_v19  ;;  %v8610_v11 = vpop.eup %6333  ;;  %v1755_v7 = vmax.f32 %v1754_v23, %v8601_v19  ;;  %v13069_v54 = vsub.f32 %v8477_v1, %v13052_v48  ;;  %v1234_v19 = vand.u32 2147483647, %v1106_v8  ;;  %v1136_v58 = vsub.f32 %v8514_v40, %v13057_v62 }
 0x182   : > { %13067 = vst [vmem:[#allocation138_spill] sm:$0xff] %v8610_v11  ;;  %v8619_v17 = vpop.eup %6335  ;;  %v1786_v39 = vmax.f32 %v1785_v25, %v8610_v11  ;;  %v13071_v16 = vsub.f32 %v8477_v1, %v13055_v49  ;;  %v1236_v10 = vand.u32 2147483647, %v1108_v43  ;;  %v1237_v63 = vand.u32 2147483647, %v1109_v42 }
 0x183   : > { %13068 = vst [vmem:[#allocation139_spill] sm:$0xff] %v8619_v17  ;;  %v1233_v23 = vand.u32 2147483647, %v13069_v54  ;;  %v8627_v31 = vpop.eup %6337  ;;  %v1238_v11 = vand.u32 2147483647, %v1110_v26  ;;  %v8637_v6 = vmax.f32 %v1693_v36, %v8619_v17 }
 0x184   : > { %13070 = vst [vmem:[#allocation140_spill] sm:$0xff] %v8627_v31  ;;  %v1235_v27 = vand.u32 2147483647, %v13071_v16  ;;  %v8634_v25 = vpop.eup %6339  ;;  %v1239_v53 = vand.u32 2147483647, %v1111_v41  ;;  %v8642_v40 = vmax.f32 %v1724_v22, %v8627_v31 }
 0x185   : > { %13072 = vst [vmem:[#allocation141_spill] sm:$0xff] %v8634_v25  ;;  %v1240_v2 = vand.u32 2147483647, %v1112_v52  ;;  %v8639_v54 = vpop.eup %6341  ;;  %v1241_v8 = vand.u32 2147483647, %v1113_v59  ;;  %v8647_v26 = vmax.f32 %v1755_v7, %v8634_v25 }
 0x186   : > { %13073 = vst [vmem:[#allocation142_spill] sm:$0xff] %v8639_v54  ;;  %v1242_v24 = vand.u32 2147483647, %v1114_v21  ;;  %v1243_v38 = vand.u32 2147483647, %v1115_v37  ;;  %v8644_v1 = vpop.eup %6343  ;;  %v8652_v59 = vmax.f32 %v1786_v39, %v8639_v54  ;;  %v3174_v54 = vcombine.high %v8430_v29, %v8430_v29 }
 0x187   : > { %13074 = vst [vmem:[#allocation143_spill] sm:$0xff] %v8644_v1  ;;  %v1244_v16 = vand.u32 2147483647, %v1116_v45  ;;  %v1245_v43 = vand.u32 2147483647, %v1117_v28  ;;  %v8649_v52 = vpop.eup %6345  ;;  %v13078_v45 = vcombine.high %v8417_v56, %v8417_v56 }
 0x188   : > { %v1246_v42 = vand.u32 2147483647, %v1118_v57  ;;  %13075 = vst [vmem:[#allocation144_spill] sm:$0xff] %v8649_v52  ;;  %v1247_v36 = vand.u32 2147483647, %v1119_v0  ;;  %v8654_v21 = vpop.eup %6347 }
 0x189   : > { %v1248_v41 = vand.u32 2147483647, %v1120_v51  ;;  %v1249_v17 = vand.u32 2147483647, %v1121_v35  ;;  %13076 = vst [vmem:[#allocation145_spill] sm:$0xff] %v8654_v21  ;;  %v8658_v57 = vpop.eup %6349  ;;  %v3173_v62 = vrot.slane %v13078_v45, %v13029_v61 }
 0x18a   : > { %v1250_v37 = vand.u32 2147483647, %v1122_v3  ;;  %v1251_v22 = vand.u32 2147483647, %v1123_v20  ;;  %v1252_v31 = vand.u32 2147483647, %v1124_v47 }
 0x18b   : > { %13077 = vst [vmem:[#allocation146_spill] sm:$0xff] %v8658_v57  ;;  %v1253_v7 = vand.u32 2147483647, %v1125_v34  ;;  %v1254_v28 = vand.u32 2147483647, %v1126_v13  ;;  %v3175_v49 = vcombine.high %v3173_v62, %v3173_v62 }
 0x18c   : > { %v1255_v25 = vand.u32 2147483647, %v1127_v4  ;;  %v1256_v35 = vand.u32 2147483647, %v1128_v33  ;;  %v1257_v51 = vand.u32 2147483647, %v1129_v18 }
 0x18d   : > { %v1258_v39 = vand.u32 2147483647, %v1130_v60  ;;  %v1259_v3 = vand.u32 2147483647, %v1131_v5  ;;  %v1260_v20 = vand.u32 2147483647, %v1132_v15 }
 0x18e   : > { %v1261_v47 = vand.u32 2147483647, %v1133_v44  ;;  %v1262_v34 = vand.u32 2147483647, %v1134_v9  ;;  %v1263_v13 = vand.u32 2147483647, %v1135_v55  ;;  %v3182_v55 = vrot.slane %v8430_v29, %v13029_v61 }
 0x18f   : > { %v1264_v4 = vand.u32 2147483647, %v1136_v58  ;;  %v1361_v33 = vadd.f32 1e-08, %v1233_v23  ;;  %v1362_v18 = vadd.f32 1e-08, %v1234_v19 }
 0x190   : > { %v1363_v60 = vadd.f32 1e-08, %v1235_v27  ;;  %v1364_v5 = vadd.f32 1e-08, %v1236_v10  ;;  %v1365_v15 = vadd.f32 1e-08, %v1237_v63 }
 0x191   : > { %v1366_v44 = vadd.f32 1e-08, %v1238_v11  ;;  %v1367_v48 = vadd.f32 1e-08, %v1239_v53  ;;  %v1368_v12 = vadd.f32 1e-08, %v1240_v2  ;;  %6351 = vrcp.f32 %v1361_v33 }
 0x192   : > { %v1369_v56 = vadd.f32 1e-08, %v1241_v8  ;;  %v1370_v9 = vadd.f32 1e-08, %v1242_v24  ;;  %v1371_v58 = vadd.f32 1e-08, %v1243_v38  ;;  %6353 = vrcp.f32 %v1362_v18 }
 0x193   : > { %v1372_v23 = vadd.f32 1e-08, %v1244_v16  ;;  %v1373_v19 = vadd.f32 1e-08, %v1245_v43  ;;  %v1374_v27 = vadd.f32 1e-08, %v1246_v42  ;;  %6355 = vrcp.f32 %v1363_v60 }
 0x194   : > { %v1375_v45 = vadd.f32 1e-08, %v1247_v36  ;;  %v1376_v0 = vadd.f32 1e-08, %v1248_v41  ;;  %v1377_v10 = vadd.f32 1e-08, %v1249_v17  ;;  %6357 = vrcp.f32 %v1364_v5 }
 0x195   : > { %v1378_v63 = vadd.f32 1e-08, %v1250_v37  ;;  %v1379_v11 = vadd.f32 1e-08, %v1251_v22  ;;  %v8674_v53 = vadd.f32 1e-08, %v1252_v31  ;;  %6359 = vrcp.f32 %v1365_v15 }
 0x196   : > { %v8676_v2 = vadd.f32 1e-08, %v1253_v7  ;;  %v8678_v29 = vadd.f32 1e-08, %v1254_v28  ;;  %v8680_v24 = vadd.f32 1e-08, %v1255_v25  ;;  %6361 = vrcp.f32 %v1366_v44 }
 0x197   : > { %v8682_v38 = vadd.f32 1e-08, %v1256_v35  ;;  %v8684_v8 = vadd.f32 1e-08, %v1257_v51  ;;  %v8686_v16 = vadd.f32 1e-08, %v1258_v39  ;;  %6363 = vrcp.f32 %v1367_v48 }
 0x198   : > { %v8688_v17 = vadd.f32 1e-08, %v1259_v3  ;;  %v8690_v43 = vadd.f32 1e-08, %v1260_v20  ;;  %v8692_v31 = vadd.f32 1e-08, %v1261_v47  ;;  %6365 = vrcp.f32 %v1368_v12 }
 0x199   : > { %v8694_v42 = vadd.f32 1e-08, %v1262_v34  ;;  %v8696_v36 = vadd.f32 1e-08, %v1263_v13  ;;  %6367 = vrcp.f32 %v1369_v56  ;;  %v3189_v25 = vrot.slane %v3173_v62, %v13029_v61  ;;  %v13082_v33 = vld [vmem:[#allocation9_spill] sm:$0xff]  ;;  %v13083_v60 = vld [vmem:[#allocation14_spill] sm:$0xff] }
 0x19a   : > { %6369 = vrcp.f32 %v1370_v9  ;;  %v3196_v41 = vrot.slane %v3174_v54, %v13029_v61  ;;  %v3203_v37 = vrot.slane %v3175_v49, %v13029_v61  ;;  %v3204_v48 = vcombine.high %v3182_v55, %v3182_v55  ;;  %v13086_v56 = vld [vmem:[#allocation33_spill] sm:$0xff] }
 0x19b   : > { %v8701_v22 = vadd.f32 1e-08, %v1264_v4  ;;  %6371 = vrcp.f32 %v1371_v58  ;;  %v3205_v7 = vcombine.high %v3189_v25, %v3189_v25  ;;  %v8704_v28 = vrot.slane %v3182_v55, %v13047_v30  ;;  %v13087_v58 = vld [vmem:[#allocation42_spill] sm:$0xff] }
 0x19c   : > { %6373 = vrcp.f32 %v1372_v23  ;;  %v3206_v12 = vcombine.high %v3196_v41, %v3196_v41  ;;  %v3207_v35 = vcombine.high %v3203_v37, %v3203_v37  ;;  %v8707_v51 = vrot.slane %v3189_v25, %v13047_v30 }
 0x19d   : > { %6375 = vrcp.f32 %v1373_v19  ;;  %v8710_v62 = vrot.slane %v3196_v41, %v13047_v30  ;;  %v8713_v49 = vrot.slane %v3204_v48, %v13047_v30  ;;  %v8716_v54 = vrot.slane %v3203_v37, %v13047_v30 }
 0x19e   : > { %v8718_v39 = vpop.eup %6351  ;;  %6377 = vrcp.f32 %v1374_v27  ;;  %v8721_v3 = vrot.slane %v3206_v12, %v13047_v30  ;;  %v8724_v20 = vrot.slane %v3205_v7, %v13047_v30  ;;  %v8727_v47 = vrot.slane %v3207_v35, %v13047_v30 }
 0x19f   : > { %13079 = vst [vmem:[#allocation147_spill] sm:$0xff] %v8718_v39  ;;  %v8729_v34 = vpop.eup %6353  ;;  %6379 = vrcp.f32 %v1375_v45  ;;  %v13081_v13 = vmax.f32 %v8637_v6, %v8644_v1  ;;  %v3481_v18 = vsub.f32 %v8704_v28, %v13082_v33  ;;  %v3482_v5 = vsub.f32 %v8704_v28, %v13083_v60 }
 0x1a0   : > { %13080 = vst [vmem:[#allocation148_spill] sm:$0xff] %v8729_v34  ;;  %v8739_v15 = vpop.eup %6355  ;;  %6381 = vrcp.f32 %v1376_v0  ;;  %v13085_v44 = vmax.f32 %v8642_v40, %v8649_v52  ;;  %v3483_v9 = vsub.f32 %v8704_v28, %v13086_v56  ;;  %v3484_v6 = vsub.f32 %v8704_v28, %v13087_v58 }
 0x1a1   : > { %v1696_v4 = vmax.f32 %v13081_v13, %v8718_v39  ;;  %13084 = vst [vmem:[#allocation149_spill] sm:$0xff] %v8739_v15  ;;  %v8749_v23 = vpop.eup %6357  ;;  %6383 = vrcp.f32 %v1377_v10  ;;  %v13089_v19 = vmax.f32 %v8647_v26, %v8654_v21  ;;  %v3485_v0 = vsub.f32 %v8710_v62, %v13082_v33 }
 0x1a2   : > { %v1727_v55 = vmax.f32 %v13085_v44, %v8729_v34  ;;  %13088 = vst [vmem:[#allocation150_spill] sm:$0xff] %v8749_v23  ;;  %v8759_v45 = vpop.eup %6359  ;;  %6385 = vrcp.f32 %v1378_v63  ;;  %v13091_v25 = vmax.f32 %v8652_v59, %v8658_v57  ;;  %v3507_v35 = vsub.f32 %v8724_v20, %v13086_v56 }
 0x1a3   : > { %v1758_v27 = vmax.f32 %v13089_v19, %v8739_v15  ;;  %13090 = vst [vmem:[#allocation151_spill] sm:$0xff] %v8759_v45  ;;  %v8769_v37 = vpop.eup %6361  ;;  %6387 = vrcp.f32 %v1379_v11  ;;  %v1697_v48 = vmax.f32 %v1696_v4, %v8759_v45  ;;  %v3509_v7 = vsub.f32 %v8727_v47, %v13082_v33 }
 0x1a4   : > { %v1789_v41 = vmax.f32 %v13091_v25, %v8749_v23  ;;  %13092 = vst [vmem:[#allocation152_spill] sm:$0xff] %v8769_v37  ;;  %v8776_v12 = vpop.eup %6363  ;;  %6389 = vrcp.f32 %v8674_v53  ;;  %v1728_v59 = vmax.f32 %v1727_v55, %v8769_v37  ;;  %v3609_v40 = vand.u32 2147483647, %v3481_v18 }
 0x1a5   : > { %13093 = vst [vmem:[#allocation153_spill] sm:$0xff] %v8776_v12  ;;  %v8784_v13 = vpop.eup %6365  ;;  %6391 = vrcp.f32 %v8676_v2  ;;  %v1759_v4 = vmax.f32 %v1758_v27, %v8776_v12  ;;  %v3613_v18 = vand.u32 2147483647, %v3485_v0  ;;  %v13109_v28 = vsub.f32 %v8710_v62, %v13087_v58 }
 0x1a6   : > { %13094 = vst [vmem:[#allocation154_spill] sm:$0xff] %v8784_v13  ;;  %v8792_v19 = vpop.eup %6367  ;;  %6393 = vrcp.f32 %v8678_v29  ;;  %v1790_v55 = vmax.f32 %v1789_v41, %v8784_v13  ;;  %v3637_v1 = vand.u32 2147483647, %v3509_v7 }
 0x1a7   : > { %13095 = vst [vmem:[#allocation155_spill] sm:$0xff] %v8792_v19  ;;  %v8800_v11 = vpop.eup %6369  ;;  %6395 = vrcp.f32 %v8680_v24  ;;  %v1698_v27 = vmax.f32 %v1697_v48, %v8792_v19  ;;  %v3503_v24 = vsub.f32 %v8716_v54, %v13086_v56 }
 0x1a8   : > { %13096 = vst [vmem:[#allocation156_spill] sm:$0xff] %v8800_v11  ;;  %v8808_v44 = vpop.eup %6371  ;;  %6397 = vrcp.f32 %v8682_v38  ;;  %v1729_v41 = vmax.f32 %v1728_v59, %v8800_v11  ;;  %v3505_v38 = vsub.f32 %v8724_v20, %v13082_v33 }
 0x1a9   : > { %13097 = vst [vmem:[#allocation157_spill] sm:$0xff] %v8808_v44  ;;  %v8816_v25 = vpop.eup %6373  ;;  %6399 = vrcp.f32 %v8684_v8  ;;  %v1760_v48 = vmax.f32 %v1759_v4, %v8808_v44  ;;  %v3504_v8 = vsub.f32 %v8716_v54, %v13087_v58  ;;  %v3631_v34 = vand.u32 2147483647, %v3503_v24 }
 0x1aa   : > { %13098 = vst [vmem:[#allocation158_spill] sm:$0xff] %v8816_v25  ;;  %v8824_v53 = vpop.eup %6375  ;;  %6401 = vrcp.f32 %v8686_v16  ;;  %v1791_v59 = vmax.f32 %v1790_v55, %v8816_v25  ;;  %v3506_v16 = vsub.f32 %v8724_v20, %v13083_v60  ;;  %v3633_v57 = vand.u32 2147483647, %v3505_v38 }
 0x1ab   : > { %13099 = vst [vmem:[#allocation159_spill] sm:$0xff] %v8824_v53  ;;  %v8832_v2 = vpop.eup %6377  ;;  %6403 = vrcp.f32 %v8688_v17  ;;  %v1699_v4 = vmax.f32 %v1698_v27, %v8824_v53  ;;  %v3508_v17 = vsub.f32 %v8724_v20, %v13087_v58  ;;  %v3511_v20 = vsub.f32 %v8727_v47, %v13086_v56 }
 0x1ac   : > { %13100 = vst [vmem:[#allocation160_spill] sm:$0xff] %v8832_v2  ;;  %v8840_v29 = vpop.eup %6379  ;;  %6405 = vrcp.f32 %v8690_v43  ;;  %v1730_v55 = vmax.f32 %v1729_v41, %v8832_v2  ;;  %v3510_v43 = vsub.f32 %v8727_v47, %v13083_v60 }
 0x1ad   : > { %13101 = vst [vmem:[#allocation161_spill] sm:$0xff] %v8840_v29  ;;  %v8848_v63 = vpop.eup %6381  ;;  %6407 = vrcp.f32 %v8692_v31  ;;  %v1761_v27 = vmax.f32 %v1760_v48, %v8840_v29  ;;  %v3512_v31 = vsub.f32 %v8727_v47, %v13087_v58  ;;  %v3611_v47 = vand.u32 2147483647, %v3483_v9 }
 0x1ae   : > { %13102 = vst [vmem:[#allocation162_spill] sm:$0xff] %v8848_v63  ;;  %v8856_v26 = vpop.eup %6383  ;;  %6409 = vrcp.f32 %v8694_v42  ;;  %v1792_v41 = vmax.f32 %v1791_v59, %v8848_v63  ;;  %v3610_v42 = vand.u32 2147483647, %v3482_v5  ;;  %v13108_v9 = vsub.f32 %v8710_v62, %v13086_v56 }
 0x1af   : > { %13103 = vst [vmem:[#allocation163_spill] sm:$0xff] %v8856_v26  ;;  %v8864_v10 = vpop.eup %6385  ;;  %6411 = vrcp.f32 %v8696_v36  ;;  %v8868_v48 = vmax.f32 %v1699_v4, %v8856_v26  ;;  %v3612_v36 = vand.u32 2147483647, %v3484_v6  ;;  %v3616_v6 = vand.u32 2147483647, %v13109_v28 }
 0x1b0   : > { %13104 = vst [vmem:[#allocation164_spill] sm:$0xff] %v8864_v10  ;;  %v8876_v59 = vpop.eup %6387  ;;  %6413 = vrcp.f32 %v8701_v22  ;;  %v8891_v5 = vmax.f32 %v1730_v55, %v8864_v10  ;;  %v13107_v22 = vsub.f32 %v8710_v62, %v13083_v60  ;;  %v3615_v63 = vand.u32 2147483647, %v13108_v9 }
 0x1b1   : > { %13105 = vst [vmem:[#allocation165_spill] sm:$0xff] %v8876_v59  ;;  %v8888_v4 = vpop.eup %6389  ;;  %v8905_v0 = vmax.f32 %v1761_v27, %v8876_v59  ;;  %v13112_v55 = vsub.f32 %v8713_v49, %v13082_v33  ;;  %v13114_v9 = vsub.f32 %v8713_v49, %v13086_v56  ;;  %v13116_v27 = vsub.f32 %v8713_v49, %v13087_v58 }
 0x1b2   : > { %13106 = vst [vmem:[#allocation166_spill] sm:$0xff] %v8888_v4  ;;  %v3614_v26 = vand.u32 2147483647, %v13107_v22  ;;  %v8902_v29 = vpop.eup %6391  ;;  %v13113_v22 = vsub.f32 %v8713_v49, %v13083_v60  ;;  %v8919_v62 = vmax.f32 %v1792_v41, %v8888_v4  ;;  %v13120_v41 = vsub.f32 %v8721_v3, %v13086_v56 }
 0x1b3   : > { %13110 = vst [vmem:[#allocation167_spill] sm:$0xff] %v8902_v29  ;;  %13111 = vst [vmem:[#allocation168_spill] sm:$0xff] %v8905_v0  ;;  %v3617_v10 = vand.u32 2147483647, %v13112_v55  ;;  %v3619_v53 = vand.u32 2147483647, %v13114_v9  ;;  %v8916_v25 = vpop.eup %6393  ;;  %v13117_v55 = vsub.f32 %v8721_v3, %v13082_v33  ;;  %v13121_v49 = vsub.f32 %v8721_v3, %v13087_v58 }
 0x1b4   : > { %v3618_v2 = vand.u32 2147483647, %v13113_v22  ;;  %13115 = vst [vmem:[#allocation169_spill] sm:$0xff] %v8916_v25  ;;  %v3620_v28 = vand.u32 2147483647, %v13116_v27  ;;  %v13118_v22 = vsub.f32 %v8721_v3, %v13083_v60  ;;  %v8930_v11 = vpop.eup %6395  ;;  %v13124_v9 = vsub.f32 %v8707_v51, %v13083_v60 }
 0x1b5   : > { %v3621_v59 = vand.u32 2147483647, %v13117_v55  ;;  %13119 = vst [vmem:[#allocation170_spill] sm:$0xff] %v8930_v11  ;;  %v3623_v4 = vand.u32 2147483647, %v13120_v41  ;;  %v13122_v55 = vsub.f32 %v8707_v51, %v13082_v33  ;;  %v8943_v13 = vpop.eup %6397  ;;  %v13125_v41 = vsub.f32 %v8707_v51, %v13086_v56 }
 0x1b6   : > { %v3622_v44 = vand.u32 2147483647, %v13118_v22  ;;  %v3624_v27 = vand.u32 2147483647, %v13121_v49  ;;  %13123 = vst [vmem:[#allocation171_spill] sm:$0xff] %v8943_v13  ;;  %v13126_v3 = vsub.f32 %v8707_v51, %v13087_v58  ;;  %v8956_v45 = vpop.eup %6399  ;;  %v13128_v22 = vsub.f32 %v8716_v54, %v13082_v33 }
 0x1b7   : > { %v3625_v19 = vand.u32 2147483647, %v13122_v55  ;;  %v3626_v12 = vand.u32 2147483647, %v13124_v9  ;;  %v3627_v37 = vand.u32 2147483647, %v13125_v41  ;;  %v13129_v9 = vsub.f32 %v8716_v54, %v13083_v60  ;;  %v8966_v39 = vpop.eup %6401 }
 0x1b8   : > { %v3628_v49 = vand.u32 2147483647, %v13126_v3  ;;  %13127 = vst [vmem:[#allocation172_spill] sm:$0xff] %v8956_v45  ;;  %v3629_v23 = vand.u32 2147483647, %v13128_v22  ;;  %13130 = vst [vmem:[#allocation173_spill] sm:$0xff] %v8966_v39  ;;  %v832_v3 = vcombine.high %v8466_v50, %v8466_v50  ;;  %v8970_v21 = vpop.eup %6403  ;;  %v839_v22 = vrot.slane %v8466_v50, %v13029_v61 }
 0x1b9   : > { %v3630_v15 = vand.u32 2147483647, %v13129_v9  ;;  %v3632_v41 = vand.u32 2147483647, %v3504_v8  ;;  %v3634_v51 = vand.u32 2147483647, %v3506_v16  ;;  %v8974_v58 = vpop.eup %6405 }
 0x1ba   : > { %13131 = vst [vmem:[#allocation174_spill] sm:$0xff] %v8970_v21  ;;  %v3635_v55 = vand.u32 2147483647, %v3507_v35  ;;  %v3636_v52 = vand.u32 2147483647, %v3508_v17  ;;  %13132 = vst [vmem:[#allocation175_spill] sm:$0xff] %v8974_v58  ;;  %v846_v8 = vrot.slane %v832_v3, %v13029_v61  ;;  %v8977_v38 = vpop.eup %6407  ;;  %v847_v11 = vcombine.high %v839_v22, %v839_v22 }
 0x1bb   : > { %v3638_v54 = vand.u32 2147483647, %v3510_v43  ;;  %v3639_v24 = vand.u32 2147483647, %v3511_v20  ;;  %v3640_v9 = vand.u32 2147483647, %v3512_v31  ;;  %v8981_v17 = vpop.eup %6409 }
 0x1bc   : > { %13133 = vst [vmem:[#allocation176_spill] sm:$0xff] %v8977_v38  ;;  %v3737_v56 = vadd.f32 1e-08, %v3609_v40  ;;  %v3738_v60 = vadd.f32 1e-08, %v3610_v42  ;;  %13134 = vst [vmem:[#allocation177_spill] sm:$0xff] %v8981_v17  ;;  %v8983_v58 = vpop.eup %6411  ;;  %v848_v31 = vcombine.high %v846_v8, %v846_v8 }
 0x1bd   : > { %v3739_v35 = vadd.f32 1e-08, %v3611_v47  ;;  %v3740_v7 = vadd.f32 1e-08, %v3612_v36  ;;  %v3741_v33 = vadd.f32 1e-08, %v3613_v18  ;;  %v8985_v3 = vpop.eup %6413 }
 0x1be   : > { %v3742_v50 = vadd.f32 1e-08, %v3614_v26  ;;  %13135 = vst [vmem:[#allocation178_spill] sm:$0xff] %v8983_v58  ;;  %v3743_v43 = vadd.f32 1e-08, %v3615_v63  ;;  %6415 = vrcp.f32 %v3737_v56  ;;  %13136 = vst [vmem:[#allocation179_spill] sm:$0xff] %v8985_v3 }
 0x1bf   : > { %v3744_v20 = vadd.f32 1e-08, %v3616_v6  ;;  %v3745_v0 = vadd.f32 1e-08, %v3617_v10  ;;  %v3746_v21 = vadd.f32 1e-08, %v3618_v2  ;;  %6417 = vrcp.f32 %v3738_v60 }
 0x1c0   : > { %v3747_v16 = vadd.f32 1e-08, %v3619_v53  ;;  %v3748_v40 = vadd.f32 1e-08, %v3620_v28  ;;  %v3749_v42 = vadd.f32 1e-08, %v3621_v59  ;;  %6419 = vrcp.f32 %v3739_v35 }
 0x1c1   : > { %v3750_v47 = vadd.f32 1e-08, %v3622_v44  ;;  %v3751_v36 = vadd.f32 1e-08, %v3623_v4  ;;  %v3752_v18 = vadd.f32 1e-08, %v3624_v27  ;;  %6421 = vrcp.f32 %v3740_v7 }
 0x1c2   : > { %v3753_v26 = vadd.f32 1e-08, %v3625_v19  ;;  %v3754_v13 = vadd.f32 1e-08, %v3626_v12  ;;  %v8987_v58 = vadd.f32 1e-08, %v3627_v37  ;;  %6423 = vrcp.f32 %v3741_v33 }
 0x1c3   : > { %v8989_v63 = vadd.f32 1e-08, %v3628_v49  ;;  %v8991_v56 = vadd.f32 1e-08, %v3629_v23  ;;  %v8993_v10 = vadd.f32 1e-08, %v3630_v15  ;;  %6425 = vrcp.f32 %v3742_v50 }
 0x1c4   : > { %v8995_v53 = vadd.f32 1e-08, %v3631_v34  ;;  %v8997_v60 = vadd.f32 1e-08, %v3632_v41  ;;  %v8999_v44 = vadd.f32 1e-08, %v3633_v57  ;;  %6427 = vrcp.f32 %v3743_v43 }
 0x1c5   : > { %v9001_v2 = vadd.f32 1e-08, %v3634_v51  ;;  %v9003_v12 = vadd.f32 1e-08, %v3635_v55  ;;  %v9005_v37 = vadd.f32 1e-08, %v3636_v52  ;;  %6429 = vrcp.f32 %v3744_v20 }
 0x1c6   : > { %v9007_v19 = vadd.f32 1e-08, %v3637_v1  ;;  %v9009_v33 = vadd.f32 1e-08, %v3638_v54  ;;  %v9011_v15 = vadd.f32 1e-08, %v3639_v24  ;;  %6431 = vrcp.f32 %v3745_v0 }
 0x1c7   : > { %v855_v34 = vrot.slane %v839_v22, %v13029_v61  ;;  %v5328_v57 = vld [vmem:[%s13137_s3 + $0x18] sm:$0xff]  ;;  %6433 = vrcp.f32 %v3746_v21  ;;  %v862_v23 = vrot.slane %v846_v8, %v13029_v61  ;;  %v869_v52 = vrot.slane %v847_v11, %v13029_v61  ;;  %v5327_v0 = vld [vmem:[%s13137_s3 + $0x10] sm:$0xff] }
 0x1c8   : > { %v876_v1 = vrot.slane %v848_v31, %v13029_v61  ;;  %5385 = vperm.xlu1 %6093, %v5328_v57   ;;  %v9020_v59 = vadd.f32 1e-08, %v3640_v9  ;;  %6435 = vrcp.f32 %v3747_v16  ;;  %v13138_v55 = vmax.f32 %v8868_v48, %v8902_v29  ;;  %v13143_v50 = vld [vmem:[#allocation112_spill] sm:$0xff]  ;;  %v13149_v57 = vld [vmem:[#allocation13_spill] sm:$0xff] }
 0x1c9   : > { %v877_v4 = vcombine.high %v855_v34, %v855_v34  ;;  %v9023_v6 = vrot.slane %v855_v34, %v13047_v30  ;;  %6437 = vrcp.f32 %v3748_v40  ;;  %v878_v21 = vcombine.high %v862_v23, %v862_v23  ;;  %v13145_v31 = vld [vmem:[#allocation12_spill] sm:$0xff] }
 0x1ca   : > { %v879_v28 = vcombine.high %v869_v52, %v869_v52  ;;  %v880_v27 = vcombine.high %v876_v1, %v876_v1  ;;  %6439 = vrcp.f32 %v3749_v42  ;;  %v9029_v11 = vrot.slane %v869_v52, %v13047_v30  ;;  %v13146_v42 = vld [vmem:[#allocation11_spill] sm:$0xff] }
 0x1cb   : > { %v9032_v49 = vrot.slane %v877_v4, %v13047_v30  ;;  %v9038_v41 = vmax.f32 %v13138_v55, %v8956_v45  ;;  %v9040_v51 = vpop.eup %6415  ;;  %6441 = vrcp.f32 %v3750_v47  ;;  %v9046_v54 = vrot.slane %v862_v23, %v13047_v30  ;;  %v13150_v23 = vld [vmem:[#allocation24_spill] sm:$0xff] }
 0x1cc   : > { %13139 = vst [vmem:[#allocation180_spill] sm:$0xff] %v9040_v51  ;;  %v9043_v22 = vrot.slane %v879_v28, %v13047_v30  ;;  %v9049_v24 = vrot.slane %v876_v1, %v13047_v30  ;;  %5380 = vperm.xlu1 %6093, %v5327_v0   ;;  %v9051_v9 = vpop.eup %6417  ;;  %6443 = vrcp.f32 %v3751_v36  ;;  %v13141_v48 = vmax.f32 %v8406_v32, %v8341_v46  ;;  %v13148_v36 = vld [vmem:[#allocation115_spill] sm:$0xff]  ;;  %v13152_v1 = vld [vmem:[#allocation116_spill] sm:$0xff] }
 0x1cd   : > { %13140 = vst [vmem:[#allocation181_spill] sm:$0xff] %v9051_v9  ;;  %v9058_v16 = vrot.slane %v878_v21, %v13047_v30  ;;  %v9061_v35 = vrot.slane %v880_v27, %v13047_v30  ;;  %v9063_v7 = vpop.eup %6419  ;;  %6445 = vrcp.f32 %v3752_v18  ;;  %v13144_v43 = vmax.f32 %v8412_v14, %v13143_v50  ;;  %v9185_v18 = vpop.permute.xlu1 %2970 }
 0x1ce   : > { %v4072_v8 = vmax.f32 %v13141_v48, %v9040_v51  ;;  %13142 = vst [vmem:[#allocation182_spill] sm:$0xff] %v9063_v7  ;;  %v1137_v40 = vsub.f32 %v9023_v6, %v13145_v31  ;;  %v9073_v47 = vpop.eup %6421  ;;  %v4134_v34 = vmax.f32 %v13148_v36, %v9063_v7  ;;  %6447 = vrcp.f32 %v3753_v26 }
 0x1cf   : > { %v4103_v20 = vmax.f32 %v13144_v43, %v9051_v9  ;;  %13147 = vst [vmem:[#allocation12_spill] sm:$0xff] %v9073_v47  ;;  %v9081_v14 = vpop.eup %6423  ;;  %v4165_v4 = vmax.f32 %v13152_v1, %v9073_v47  ;;  %6449 = vrcp.f32 %v3754_v13  ;;  %v1163_v21 = vsub.f32 %v9058_v16, %v13149_v57 }
 0x1d0   : > { %13151 = vst [vmem:[#allocation11_spill] sm:$0xff] %v9081_v14  ;;  %v9089_v28 = vpop.eup %6425  ;;  %6451 = vrcp.f32 %v8987_v58  ;;  %v4073_v26 = vmax.f32 %v4072_v8, %v9081_v14  ;;  %v1165_v52 = vsub.f32 %v9061_v35, %v13145_v31  ;;  %v13188_v51 = vsub.f32 %v9046_v54, %v13145_v31 }
 0x1d1   : > { %13153 = vst [vmem:[#allocation115_spill] sm:$0xff] %v9089_v28  ;;  %v9097_v48 = vpop.eup %6427  ;;  %6453 = vrcp.f32 %v8989_v63  ;;  %v4104_v13 = vmax.f32 %v4103_v20, %v9089_v28  ;;  %v13189_v50 = vsub.f32 %v9046_v54, %v13146_v42  ;;  %v13191_v45 = vsub.f32 %v9046_v54, %v13149_v57 }
 0x1d2   : > { %13154 = vst [vmem:[#allocation13_spill] sm:$0xff] %v9097_v48  ;;  %v9105_v36 = vpop.eup %6429  ;;  %v4135_v8 = vmax.f32 %v4134_v34, %v9097_v48  ;;  %6455 = vrcp.f32 %v8991_v56  ;;  %v1291_v61 = vand.u32 2147483647, %v1163_v21 }
 0x1d3   : > { %13155 = vst [vmem:[#allocation24_spill] sm:$0xff] %v9105_v36  ;;  %v9113_v55 = vpop.eup %6431  ;;  %v4166_v20 = vmax.f32 %v4165_v4, %v9105_v36  ;;  %6457 = vrcp.f32 %v8993_v10  ;;  %v9233_v36 = vpop.permute.xlu1 %3018 }
 0x1d4   : > { %13156 = vst [vmem:[#allocation116_spill] sm:$0xff] %v9113_v55  ;;  %v9121_v43 = vpop.eup %6433  ;;  %6459 = vrcp.f32 %v8995_v53  ;;  %v4074_v56 = vmax.f32 %v4073_v26, %v9113_v55  ;;  %v1157_v53 = vsub.f32 %v9049_v24, %v13145_v31  ;;  %v13174_v55 = vsub.f32 %v9029_v11, %v13149_v57  ;;  %13177 = vst [vmem:[#allocation195_spill] sm:$0xff] %v9233_v36 }
 0x1d5   : > { %13157 = vst [vmem:[#allocation183_spill] sm:$0xff] %v9121_v43  ;;  %v9129_v1 = vpop.eup %6435  ;;  %6461 = vrcp.f32 %v8997_v60  ;;  %v4105_v10 = vmax.f32 %v4104_v13, %v9121_v43  ;;  %v1159_v60 = vsub.f32 %v9049_v24, %v13149_v57 }
 0x1d6   : > { %13158 = vst [vmem:[#allocation184_spill] sm:$0xff] %v9129_v1  ;;  %v9137_v58 = vpop.eup %6437  ;;  %v4136_v26 = vmax.f32 %v4135_v8, %v9129_v1  ;;  %6463 = vrcp.f32 %v8999_v44  ;;  %v1161_v8 = vsub.f32 %v9058_v16, %v13145_v31  ;;  %v13172_v1 = vsub.f32 %v9029_v11, %v13146_v42 }
 0x1d7   : > { %13159 = vst [vmem:[#allocation185_spill] sm:$0xff] %v9137_v58  ;;  %v9145_v63 = vpop.eup %6439  ;;  %v4167_v13 = vmax.f32 %v4166_v20, %v9137_v58  ;;  %6465 = vrcp.f32 %v9001_v2  ;;  %v1160_v20 = vsub.f32 %v9049_v24, %v13150_v23  ;;  %v13171_v58 = vsub.f32 %v9029_v11, %v13145_v31 }
 0x1d8   : > { %13160 = vst [vmem:[#allocation186_spill] sm:$0xff] %v9145_v63  ;;  %v9153_v34 = vpop.eup %6441  ;;  %6467 = vrcp.f32 %v9003_v12  ;;  %v4075_v44 = vmax.f32 %v4074_v56, %v9145_v63  ;;  %v1162_v12 = vsub.f32 %v9058_v16, %v13146_v42  ;;  %v13170_v63 = vsub.f32 %v9023_v6, %v13150_v23 }
 0x1d9   : > { %13161 = vst [vmem:[#allocation187_spill] sm:$0xff] %v9153_v34  ;;  %v9161_v4 = vpop.eup %6443  ;;  %6469 = vrcp.f32 %v9005_v37  ;;  %v4106_v2 = vmax.f32 %v4105_v10, %v9153_v34  ;;  %v1164_v37 = vsub.f32 %v9058_v16, %v13150_v23  ;;  %v1287_v30 = vand.u32 2147483647, %v1159_v60 }
 0x1da   : > { %13162 = vst [vmem:[#allocation188_spill] sm:$0xff] %v9161_v4  ;;  %v9169_v27 = vpop.eup %6445  ;;  %v4137_v56 = vmax.f32 %v4136_v26, %v9161_v4  ;;  %6471 = vrcp.f32 %v9007_v19  ;;  %v1166_v26 = vsub.f32 %v9061_v35, %v13146_v42  ;;  %v1293_v60 = vand.u32 2147483647, %v1165_v52 }
 0x1db   : > { %13163 = vst [vmem:[#allocation189_spill] sm:$0xff] %v9169_v27  ;;  %v9177_v0 = vpop.eup %6447  ;;  %v4168_v10 = vmax.f32 %v4167_v13, %v9169_v27  ;;  %6473 = vrcp.f32 %v9009_v33  ;;  %v1167_v13 = vsub.f32 %v9061_v35, %v13149_v57  ;;  %v1168_v33 = vsub.f32 %v9061_v35, %v13150_v23 }
 0x1dc   : > { %13164 = vst [vmem:[#allocation190_spill] sm:$0xff] %v9177_v0  ;;  %v9187_v19 = vpop.eup %6449  ;;  %6475 = vrcp.f32 %v9011_v15  ;;  %v9191_v16 = vmax.f32 %v4075_v44, %v9177_v0  ;;  %v1265_v27 = vand.u32 2147483647, %v1137_v40  ;;  %v13167_v15 = vsub.f32 %v9023_v6, %v13146_v42 }
 0x1dd   : > { %13165 = vst [vmem:[#allocation191_spill] sm:$0xff] %v9187_v19  ;;  %v9197_v32 = vpop.eup %6451  ;;  %6477 = vrcp.f32 %v9020_v59  ;;  %v13168_v44 = vsub.f32 %v9023_v6, %v13149_v57  ;;  %v1268_v59 = vand.u32 2147483647, %v13170_v63  ;;  %v1269_v40 = vand.u32 2147483647, %v13171_v58 }
 0x1de   : > { %13166 = vst [vmem:[#allocation192_spill] sm:$0xff] %v9197_v32  ;;  %v1266_v4 = vand.u32 2147483647, %v13167_v15  ;;  %v9209_v34 = vpop.eup %6453  ;;  %v4138_v35 = vmax.f32 %v4137_v56, %v9197_v32  ;;  %v1270_v15 = vand.u32 2147483647, %v13172_v1  ;;  %v13175_v6 = vsub.f32 %v9029_v11, %v13150_v23 }
 0x1df   : > { %v1267_v0 = vand.u32 2147483647, %v13168_v44  ;;  %13169 = vst [vmem:[#allocation193_spill] sm:$0xff] %v9209_v34  ;;  %v9221_v43 = vpop.eup %6455  ;;  %v4169_v44 = vmax.f32 %v4168_v10, %v9209_v34  ;;  %v1271_v56 = vand.u32 2147483647, %v13174_v55  ;;  %v13176_v32 = vsub.f32 %v9032_v49, %v13145_v31 }
 0x1e0   : > { %13173 = vst [vmem:[#allocation194_spill] sm:$0xff] %v9221_v43  ;;  %v1272_v63 = vand.u32 2147483647, %v13175_v6  ;;  %v9235_v48 = vpop.eup %6457  ;;  %v9238_v1 = vmax.f32 %v4106_v2, %v9187_v19  ;;  %v13179_v10 = vsub.f32 %v9032_v49, %v13146_v42  ;;  %v13180_v55 = vsub.f32 %v9032_v49, %v13149_v57 }
 0x1e1   : > { %v1273_v58 = vand.u32 2147483647, %v13176_v32  ;;  %13178 = vst [vmem:[#allocation196_spill] sm:$0xff] %v9235_v48  ;;  %v13181_v6 = vsub.f32 %v9032_v49, %v13150_v23  ;;  %v9249_v32 = vpop.eup %6459  ;;  %v13183_v2 = vsub.f32 %v9043_v22, %v13145_v31  ;;  %v1295_v21 = vand.u32 2147483647, %v1167_v13 }
 0x1e2   : > { %v1274_v34 = vand.u32 2147483647, %v13179_v10  ;;  %v1275_v11 = vand.u32 2147483647, %v13180_v55  ;;  %13182 = vst [vmem:[#allocation197_spill] sm:$0xff] %v9249_v32  ;;  %v13184_v10 = vsub.f32 %v9043_v22, %v13146_v42  ;;  %v13185_v55 = vsub.f32 %v9043_v22, %v13149_v57  ;;  %v9262_v9 = vpop.eup %6461 }
 0x1e3   : > { %v1276_v28 = vand.u32 2147483647, %v13181_v6  ;;  %v1277_v19 = vand.u32 2147483647, %v13183_v2  ;;  %13186 = vst [vmem:[#allocation198_spill] sm:$0xff] %v9262_v9  ;;  %v4139_v49 = vmax.f32 %v4138_v35, %v9249_v32  ;;  %v13187_v6 = vsub.f32 %v9043_v22, %v13150_v23  ;;  %v9274_v46 = vpop.eup %6463 }
 0x1e4   : > { %v1278_v47 = vand.u32 2147483647, %v13184_v10  ;;  %v1279_v7 = vand.u32 2147483647, %v13185_v55  ;;  %v1281_v2 = vand.u32 2147483647, %v13188_v51  ;;  %v4170_v55 = vmax.f32 %v4169_v44, %v9262_v9  ;;  %v9283_v29 = vpop.eup %6465 }
 0x1e5   : > { %v1280_v14 = vand.u32 2147483647, %v13187_v6  ;;  %v1282_v10 = vand.u32 2147483647, %v13189_v50  ;;  %13190 = vst [vmem:[#allocation199_spill] sm:$0xff] %v9274_v46  ;;  %v13192_v22 = vsub.f32 %v9046_v54, %v13150_v23  ;;  %13193 = vst [vmem:[#allocation200_spill] sm:$0xff] %v9283_v29  ;;  %v13194_v50 = vsub.f32 %v9049_v24, %v13146_v42  ;;  %v9290_v9 = vpop.eup %6467 }
 0x1e6   : > { %v1283_v35 = vand.u32 2147483647, %v13191_v45  ;;  %v1285_v32 = vand.u32 2147483647, %v1157_v53  ;;  %v1288_v44 = vand.u32 2147483647, %v1160_v20  ;;  %v13196_v54 = vmax.f32 %v8891_v5, %v8916_v25  ;;  %v9298_v53 = vpop.permute.xlu1 %662 }
 0x1e7   : > { %v1284_v6 = vand.u32 2147483647, %v13192_v22  ;;  %v1286_v31 = vand.u32 2147483647, %v13194_v50  ;;  %13195 = vst [vmem:[#allocation201_spill] sm:$0xff] %v9290_v9  ;;  %13197 = vst [vmem:[#allocation202_spill] sm:$0xff] %v9298_v53  ;;  %v9300_v22 = vpop.eup %6469  ;;  %v4140_v24 = vmax.f32 %v4139_v49, %v9290_v9 }
 0x1e8   : > { %v1289_v57 = vand.u32 2147483647, %v1161_v8  ;;  %v1290_v45 = vand.u32 2147483647, %v1162_v12  ;;  %v9296_v23 = vmax.f32 %v13196_v54, %v8966_v39  ;;  %13198 = vst [vmem:[#allocation203_spill] sm:$0xff] %v9300_v22  ;;  %v9303_v50 = vpop.eup %6471  ;;  %v4171_v8 = vmax.f32 %v4170_v55, %v9300_v22 }
 0x1e9   : > { %v1292_v42 = vand.u32 2147483647, %v1164_v37  ;;  %v1294_v20 = vand.u32 2147483647, %v1166_v26  ;;  %13199 = vst [vmem:[#allocation204_spill] sm:$0xff] %v9303_v50  ;;  %v9306_v36 = vpop.eup %6473 }
 0x1ea   : > { %v1296_v12 = vand.u32 2147483647, %v1168_v33  ;;  %v1393_v51 = vadd.f32 1e-08, %v1265_v27  ;;  %13200 = vst [vmem:[#allocation205_spill] sm:$0xff] %v9306_v36  ;;  %v9310_v53 = vpop.eup %6475 }
 0x1eb   : > { %v1394_v5 = vadd.f32 1e-08, %v1266_v4  ;;  %v1395_v54 = vadd.f32 1e-08, %v1267_v0  ;;  %v1396_v39 = vadd.f32 1e-08, %v1268_v59  ;;  %v9314_v55 = vpop.eup %6477  ;;  %v9317_v27 = vmax.f32 %v4140_v24, %v9310_v53 }
 0x1ec   : > { %13201 = vst [vmem:[#allocation206_spill] sm:$0xff] %v9310_v53  ;;  %v1397_v37 = vadd.f32 1e-08, %v1269_v40  ;;  %v1398_v52 = vadd.f32 1e-08, %v1270_v15  ;;  %13202 = vst [vmem:[#allocation207_spill] sm:$0xff] %v9314_v55  ;;  %6479 = vrcp.f32 %v1393_v51  ;;  %v9320_v0 = vmax.f32 %v4171_v8, %v9314_v55  ;;  %v647_v40 = vpop.permute.xlu1 %646 }
 0x1ed   : > { %v1399_v26 = vadd.f32 1e-08, %v1271_v56  ;;  %v1400_v13 = vadd.f32 1e-08, %v1272_v63  ;;  %v1401_v4 = vadd.f32 1e-08, %v1273_v58  ;;  %6481 = vrcp.f32 %v1394_v5 }
 0x1ee   : > { %v1402_v33 = vadd.f32 1e-08, %v1274_v34  ;;  %v1403_v59 = vadd.f32 1e-08, %v1275_v11  ;;  %v1404_v25 = vadd.f32 1e-08, %v1276_v28  ;;  %6483 = vrcp.f32 %v1395_v54  ;;  %v2951_v11 = vpop.permute.xlu0 %2950 }
 0x1ef   : > { %v1405_v15 = vadd.f32 1e-08, %v1277_v19  ;;  %v1406_v56 = vadd.f32 1e-08, %v1278_v47  ;;  %v1407_v22 = vadd.f32 1e-08, %v1279_v7  ;;  %6485 = vrcp.f32 %v1396_v39 }
 0x1f0   : > { %v9322_v49 = vadd.f32 1e-08, %v1280_v14  ;;  %v9324_v9 = vadd.f32 1e-08, %v1281_v2  ;;  %v9326_v24 = vadd.f32 1e-08, %v1282_v10  ;;  %6487 = vrcp.f32 %v1397_v37 }
 0x1f1   : > { %v9328_v63 = vadd.f32 1e-08, %v1283_v35  ;;  %v9330_v58 = vadd.f32 1e-08, %v1284_v6  ;;  %v9332_v51 = vadd.f32 1e-08, %v1285_v32  ;;  %6489 = vrcp.f32 %v1398_v52 }
 0x1f2   : > { %v9334_v28 = vadd.f32 1e-08, %v1286_v31  ;;  %v9336_v34 = vadd.f32 1e-08, %v1287_v30  ;;  %v9338_v7 = vadd.f32 1e-08, %v1288_v44  ;;  %6491 = vrcp.f32 %v1399_v26  ;;  %v3023_v30 = vpop.permute.xlu1 %3022 }
 0x1f3   : > { %v9340_v47 = vadd.f32 1e-08, %v1289_v57  ;;  %v9342_v14 = vadd.f32 1e-08, %v1290_v45  ;;  %v9344_v19 = vadd.f32 1e-08, %v1291_v61  ;;  %6493 = vrcp.f32 %v1400_v13 }
 0x1f4   : > { %v9346_v2 = vadd.f32 1e-08, %v1292_v42  ;;  %v9348_v32 = vadd.f32 1e-08, %v1293_v60  ;;  %v9350_v39 = vadd.f32 1e-08, %v1294_v20  ;;  %6495 = vrcp.f32 %v1401_v4 }
 0x1f5   : > { %v9352_v10 = vadd.f32 1e-08, %v1295_v21  ;;  %v13203_v35 = vld [vmem:[#allocation174_spill] sm:$0xff]  ;;  %v13204_v6 = vld [vmem:[#allocation168_spill] sm:$0xff]  ;;  %v13207_v61 = vld [vmem:[#allocation175_spill] sm:$0xff]  ;;  %v13210_v5 = vmax.f32 %v9191_v16, %v9221_v43  ;;  %6497 = vrcp.f32 %v1402_v33 }
 0x1f6   : > { %v13205_v31 = vld [vmem:[#allocation170_spill] sm:$0xff]  ;;  %v13208_v45 = vld [vmem:[#allocation171_spill] sm:$0xff]  ;;  %v9378_v52 = vadd.f32 1e-08, %v1296_v12  ;;  %6499 = vrcp.f32 %v1403_v59 }
 0x1f7   : > { %v13206_v44 = vmax.f32 %v13204_v6, %v13205_v31  ;;  %v13209_v8 = vmax.f32 %v8919_v62, %v13208_v45  ;;  %v5326_v60 = vld [vmem:[%s13137_s3 + $0x8] sm:$0xff]  ;;  %v7143_v20 = vld [vmem:[%s7464_s26 + $0x18] sm:$0xff]  ;;  %v9370_v54 = vmax.f32 %v13210_v5, %v9274_v46  ;;  %v13211_v62 = vmax.f32 %v9238_v1, %v9235_v48  ;;  %v643_v1 = vpop.permute.xlu0 %642  ;;  %v3043_v5 = vpop.permute.xlu1 %3042 }
 0x1f8   : > { %v2956_v21 = vmul.f32 %v7143_v20, %v2951_v11  ;;  %5375 = vperm.xlu1 %6093, %v5326_v60   ;;  %v13212_v26 = vld [vmem:[#allocation178_spill] sm:$0xff]  ;;  %6501 = vrcp.f32 %v1404_v25  ;;  %v7145_v33 = vld [vmem:[%s7464_s26 + $0x8] sm:$0xff]  ;;  %v13218_v25 = vmax.f32 %v9038_v41, %v8977_v38  ;;  %v13223_v41 = vmax.f32 %v9296_v23, %v8981_v17 }
 0x1f9   : > { %v1764_v57 = vmax.f32 %v13206_v44, %v13203_v35  ;;  %v1795_v42 = vmax.f32 %v13209_v8, %v13207_v61  ;;  %v9376_v37 = vmax.f32 %v13211_v62, %v9283_v29  ;;  %v7144_v6 = vld [vmem:[%s7464_s26] sm:$0xff]  ;;  %v3034_v60 = vmul.f32 %v7145_v33, %v3023_v30  ;;  %v9392_v20 = vpop.eup %6479 }
 0x1fa   : > { %v2976_v16 = vadd.f32 %v9185_v18, %v2956_v21  ;;  %v13213_v44 = vld [vmem:[#allocation195_spill] sm:$0xff]  ;;  %6503 = vrcp.f32 %v1405_v15  ;;  %v9395_v21 = vmul.f32 %v7145_v33, %v647_v40  ;;  %v1704_v62 = vmax.f32 %v13218_v25, %v9392_v20 }
 0x1fb   : > { %v1765_v13 = vmax.f32 %v1764_v57, %v13212_v26  ;;  %v1796_v4 = vmax.f32 %v1795_v42, %v8985_v3  ;;  %v9387_v8 = vmul.f32 %v7144_v6, %v13213_v44  ;;  %v657_v57 = vmul.f32 %v7144_v6, %v643_v1  ;;  %13215 = vst [vmem:[#allocation195_spill] sm:$0xff] %v9392_v20  ;;  %v13216_v18 = vld [vmem:[#allocation7_spill] sm:$0xff]  ;;  %v13219_v44 = vld [vmem:[#allocation202_spill] sm:$0xff]  ;;  %v9406_v6 = vpop.eup %6481 }
 0x1fc   : > { %v3208_v59 = vcombine.high %v2976_v16, %v2976_v16  ;;  %v3215_v42 = vrot.slane %v2976_v16, %v13216_v18  ;;  %13217 = vst [vmem:[#allocation208_spill] sm:$0xff] %v9395_v21  ;;  %6505 = vrcp.f32 %v1406_v56  ;;  %v9404_v30 = vadd.f32 %v3043_v5, %v3034_v60  ;;  %13221 = vst [vmem:[#allocation209_spill] sm:$0xff] %v9406_v6  ;;  %v9410_v1 = vpop.eup %6483 }
 0x1fd   : > { %13214 = vst [vmem:[#allocation168_spill] sm:$0xff] %v9387_v8  ;;  %v9402_v12 = vadd.f32 %v13219_v44, %v657_v57  ;;  %6507 = vrcp.f32 %v1407_v22  ;;  %13222 = vst [vmem:[#allocation210_spill] sm:$0xff] %v9410_v1  ;;  %v1735_v56 = vmax.f32 %v13223_v41, %v9406_v6  ;;  %v9423_v60 = vpop.eup %6485  ;;  %v1766_v57 = vmax.f32 %v1765_v13, %v9410_v1 }
 0x1fe   : > { %13220 = vst [vmem:[#allocation202_spill] sm:$0xff] %v9404_v30  ;;  %v3222_v15 = vrot.slane %v3208_v59, %v13216_v18  ;;  %v3223_v16 = vcombine.high %v3215_v42, %v3215_v42  ;;  %v3231_v40 = vrot.slane %v3215_v42, %v13216_v18  ;;  %6509 = vrcp.f32 %v9322_v49  ;;  %13224 = vst [vmem:[#allocation211_spill] sm:$0xff] %v9423_v60  ;;  %v9428_v42 = vpop.eup %6487 }
 0x1ff   : > { %v9421_v22 = vrot.slane %v9402_v12, %v13216_v18  ;;  %6511 = vrcp.f32 %v9324_v9  ;;  %13225 = vst [vmem:[#allocation212_spill] sm:$0xff] %v9428_v42  ;;  %v1797_v23 = vmax.f32 %v1796_v4, %v9423_v60  ;;  %v9433_v44 = vpop.eup %6489  ;;  %v1705_v9 = vmax.f32 %v1704_v62, %v9428_v42  ;;  %v13228_v4 = vld [vmem:[#allocation8_spill] sm:$0xff] }
 0x200   : > { %v3224_v59 = vcombine.high %v3222_v15, %v3222_v15  ;;  %v3238_v49 = vrot.slane %v3222_v15, %v13216_v18  ;;  %6513 = vrcp.f32 %v9326_v24  ;;  %v3245_v5 = vrot.slane %v3223_v16, %v13216_v18  ;;  %13226 = vst [vmem:[#allocation213_spill] sm:$0xff] %v9433_v44  ;;  %v9438_v33 = vpop.eup %6491 }
 0x201   : > { %v3253_v25 = vcombine.high %v3231_v40, %v3231_v40  ;;  %6515 = vrcp.f32 %v9328_v63  ;;  %13227 = vst [vmem:[#allocation214_spill] sm:$0xff] %v9438_v33  ;;  %v1736_v24 = vmax.f32 %v1735_v56, %v9433_v44  ;;  %v9443_v11 = vrot.slane %v3231_v40, %v13228_v4  ;;  %v9445_v16 = vpop.eup %6493 }
 0x202   : > { %v3252_v13 = vrot.slane %v3224_v59, %v13216_v18  ;;  %v3254_v41 = vcombine.high %v3238_v49, %v3238_v49  ;;  %6517 = vrcp.f32 %v9330_v58  ;;  %v3255_v15 = vcombine.high %v3245_v5, %v3245_v5  ;;  %13229 = vst [vmem:[#allocation215_spill] sm:$0xff] %v9445_v16  ;;  %v9452_v42 = vpop.eup %6495 }
 0x203   : > { %6519 = vrcp.f32 %v9332_v51  ;;  %v1767_v63 = vmax.f32 %v1766_v57, %v9438_v33  ;;  %v9450_v59 = vrot.slane %v3245_v5, %v13228_v4  ;;  %13230 = vst [vmem:[#allocation216_spill] sm:$0xff] %v9452_v42  ;;  %v1798_v58 = vmax.f32 %v1797_v23, %v9445_v16  ;;  %v9462_v44 = vpop.eup %6497 }
 0x204   : > { %v3256_v62 = vcombine.high %v3252_v13, %v3252_v13  ;;  %6521 = vrcp.f32 %v9334_v28  ;;  %v9457_v56 = vrot.slane %v3253_v25, %v13228_v4  ;;  %v9460_v40 = vrot.slane %v3255_v15, %v13228_v4  ;;  %13231 = vst [vmem:[#allocation217_spill] sm:$0xff] %v9462_v44  ;;  %v9472_v28 = vpop.eup %6499 }
 0x205   : > { %6523 = vrcp.f32 %v9336_v34  ;;  %v1706_v51 = vmax.f32 %v1705_v9, %v9452_v42  ;;  %v9467_v57 = vrot.slane %v3238_v49, %v13228_v4  ;;  %v9470_v5 = vrot.slane %v3252_v13, %v13228_v4  ;;  %13232 = vst [vmem:[#allocation218_spill] sm:$0xff] %v9472_v28  ;;  %v9482_v34 = vpop.eup %6501  ;;  %v13234_v9 = vld [vmem:[#allocation9_spill] sm:$0xff]  ;;  %v13235_v42 = vld [vmem:[#allocation14_spill] sm:$0xff] }
 0x206   : > { %6525 = vrcp.f32 %v9338_v7  ;;  %v1737_v23 = vmax.f32 %v1736_v24, %v9462_v44  ;;  %v9477_v25 = vrot.slane %v3254_v41, %v13228_v4  ;;  %v9480_v15 = vrot.slane %v3256_v62, %v13228_v4  ;;  %13233 = vst [vmem:[#allocation219_spill] sm:$0xff] %v9482_v34  ;;  %v13237_v24 = vld [vmem:[#allocation33_spill] sm:$0xff]  ;;  %v13238_v44 = vld [vmem:[#allocation42_spill] sm:$0xff] }
 0x207   : > { %6527 = vrcp.f32 %v9340_v47  ;;  %v1768_v49 = vmax.f32 %v1767_v63, %v9472_v28  ;;  %v9490_v16 = vpop.eup %6503  ;;  %v1799_v41 = vmax.f32 %v1798_v58, %v9482_v34  ;;  %v3517_v7 = vsub.f32 %v9450_v59, %v13234_v9 }
 0x208   : > { %13236 = vst [vmem:[#allocation9_spill] sm:$0xff] %v9490_v16  ;;  %6529 = vrcp.f32 %v9342_v14  ;;  %v1707_v63 = vmax.f32 %v1706_v51, %v9490_v16  ;;  %v3519_v47 = vsub.f32 %v9450_v59, %v13237_v24  ;;  %v3521_v14 = vsub.f32 %v9457_v56, %v13234_v9 }
 0x209   : > { %v9498_v33 = vpop.eup %6505  ;;  %6531 = vrcp.f32 %v9344_v19  ;;  %v3520_v19 = vsub.f32 %v9450_v59, %v13238_v44  ;;  %v3530_v60 = vsub.f32 %v9467_v57, %v13235_v42  ;;  %v3533_v1 = vsub.f32 %v9470_v5, %v13234_v9 }
 0x20a   : > { %13239 = vst [vmem:[#allocation14_spill] sm:$0xff] %v9498_v33  ;;  %v9506_v13 = vpop.eup %6507  ;;  %6533 = vrcp.f32 %v9346_v2  ;;  %v1738_v58 = vmax.f32 %v1737_v23, %v9498_v33  ;;  %v3522_v2 = vsub.f32 %v9457_v56, %v13235_v42  ;;  %v3523_v33 = vsub.f32 %v9457_v56, %v13237_v24 }
 0x20b   : > { %13240 = vst [vmem:[#allocation33_spill] sm:$0xff] %v9506_v13  ;;  %v9514_v62 = vpop.eup %6509  ;;  %6535 = vrcp.f32 %v9348_v32  ;;  %v1769_v51 = vmax.f32 %v1768_v49, %v9506_v13  ;;  %v3524_v32 = vsub.f32 %v9457_v56, %v13238_v44  ;;  %v3525_v13 = vsub.f32 %v9460_v40, %v13234_v9 }
 0x20c   : > { %13241 = vst [vmem:[#allocation42_spill] sm:$0xff] %v9514_v62  ;;  %v9522_v16 = vpop.eup %6511  ;;  %6537 = vrcp.f32 %v9350_v39  ;;  %v1800_v23 = vmax.f32 %v1799_v41, %v9514_v62  ;;  %v3526_v39 = vsub.f32 %v9460_v40, %v13235_v42  ;;  %v3527_v56 = vsub.f32 %v9460_v40, %v13237_v24 }
 0x20d   : > { %13242 = vst [vmem:[#allocation220_spill] sm:$0xff] %v9522_v16  ;;  %v9530_v34 = vpop.eup %6513  ;;  %6539 = vrcp.f32 %v9352_v10  ;;  %v1708_v49 = vmax.f32 %v1707_v63, %v9522_v16  ;;  %v3528_v10 = vsub.f32 %v9460_v40, %v13238_v44  ;;  %v3529_v16 = vsub.f32 %v9467_v57, %v13234_v9 }
 0x20e   : > { %13243 = vst [vmem:[#allocation221_spill] sm:$0xff] %v9530_v34  ;;  %v9538_v28 = vpop.eup %6515  ;;  %6541 = vrcp.f32 %v9378_v52  ;;  %v1739_v41 = vmax.f32 %v1738_v58, %v9530_v34  ;;  %v3531_v52 = vsub.f32 %v9467_v57, %v13237_v24  ;;  %v3532_v40 = vsub.f32 %v9467_v57, %v13238_v44 }
 0x20f   : > { %13244 = vst [vmem:[#allocation222_spill] sm:$0xff] %v9538_v28  ;;  %v9546_v62 = vpop.eup %6517  ;;  %v1770_v63 = vmax.f32 %v1769_v51, %v9538_v28  ;;  %v3534_v51 = vsub.f32 %v9470_v5, %v13235_v42  ;;  %v3535_v20 = vsub.f32 %v9470_v5, %v13237_v24  ;;  %v3536_v3 = vsub.f32 %v9470_v5, %v13238_v44 }
 0x210   : > { %13245 = vst [vmem:[#allocation223_spill] sm:$0xff] %v9546_v62  ;;  %v9555_v58 = vpop.eup %6519  ;;  %v1801_v34 = vmax.f32 %v1800_v23, %v9546_v62  ;;  %v3537_v23 = vsub.f32 %v9477_v25, %v13234_v9  ;;  %v3538_v26 = vsub.f32 %v9477_v25, %v13235_v42  ;;  %v3539_v17 = vsub.f32 %v9477_v25, %v13237_v24 }
 0x211   : > { %13246 = vst [vmem:[#allocation224_spill] sm:$0xff] %v9555_v58  ;;  %v9564_v28 = vpop.eup %6521  ;;  %v1709_v6 = vmax.f32 %v1708_v49, %v9555_v58  ;;  %v3540_v49 = vsub.f32 %v9477_v25, %v13238_v44  ;;  %v3541_v38 = vsub.f32 %v9480_v15, %v13234_v9  ;;  %v3542_v55 = vsub.f32 %v9480_v15, %v13235_v42 }
 0x212   : > { %13247 = vst [vmem:[#allocation225_spill] sm:$0xff] %v9564_v28  ;;  %v9573_v57 = vpop.eup %6523  ;;  %v1740_v62 = vmax.f32 %v1739_v41, %v9564_v28  ;;  %v3543_v41 = vsub.f32 %v9480_v15, %v13237_v24  ;;  %v3544_v25 = vsub.f32 %v9480_v15, %v13238_v44  ;;  %v13251_v29 = vsub.f32 %v9443_v11, %v13234_v9 }
 0x213   : > { %13248 = vst [vmem:[#allocation226_spill] sm:$0xff] %v9573_v57  ;;  %v9582_v58 = vpop.eup %6525  ;;  %v1771_v5 = vmax.f32 %v1770_v63, %v9573_v57  ;;  %v13252_v57 = vsub.f32 %v9443_v11, %v13235_v42  ;;  %v13254_v61 = vsub.f32 %v9443_v11, %v13237_v24  ;;  %v13257_v9 = vsub.f32 %v9450_v59, %v13235_v42 }
 0x214   : > { %13249 = vst [vmem:[#allocation227_spill] sm:$0xff] %v9582_v58  ;;  %v9591_v28 = vpop.eup %6527  ;;  %v1802_v53 = vmax.f32 %v1801_v34, %v9582_v58  ;;  %v3641_v63 = vand.u32 2147483647, %v13251_v29  ;;  %v13255_v34 = vsub.f32 %v9443_v11, %v13238_v44  ;;  %v3645_v58 = vand.u32 2147483647, %v3517_v7 }
 0x215   : > { %13250 = vst [vmem:[#allocation228_spill] sm:$0xff] %v9591_v28  ;;  %v3642_v46 = vand.u32 2147483647, %v13252_v57  ;;  %v9602_v48 = vpop.eup %6529  ;;  %v1710_v43 = vmax.f32 %v1709_v6, %v9591_v28  ;;  %v3643_v35 = vand.u32 2147483647, %v13254_v61 }
 0x216   : > { %13253 = vst [vmem:[#allocation229_spill] sm:$0xff] %v9602_v48  ;;  %v3644_v15 = vand.u32 2147483647, %v13255_v34  ;;  %v9611_v45 = vpop.eup %6531  ;;  %v1741_v29 = vmax.f32 %v1740_v62, %v9602_v48  ;;  %v3646_v57 = vand.u32 2147483647, %v13257_v9 }
 0x217   : > { %13256 = vst [vmem:[#allocation230_spill] sm:$0xff] %v9611_v45  ;;  %v3647_v31 = vand.u32 2147483647, %v3519_v47  ;;  %v3648_v21 = vand.u32 2147483647, %v3520_v19  ;;  %v9617_v6 = vpop.eup %6533  ;;  %v1772_v24 = vmax.f32 %v1771_v5, %v9611_v45 }
 0x218   : > { %13258 = vst [vmem:[#allocation231_spill] sm:$0xff] %v9617_v6  ;;  %v3649_v61 = vand.u32 2147483647, %v3521_v14  ;;  %v3650_v28 = vand.u32 2147483647, %v3522_v2  ;;  %v9620_v11 = vpop.eup %6535  ;;  %v1803_v44 = vmax.f32 %v1802_v53, %v9617_v6 }
 0x219   : > { %v3651_v8 = vand.u32 2147483647, %v3523_v33  ;;  %13259 = vst [vmem:[#allocation232_spill] sm:$0xff] %v9620_v11  ;;  %v3652_v7 = vand.u32 2147483647, %v3524_v32  ;;  %v9623_v48 = vpop.eup %6537  ;;  %v9626_v42 = vmax.f32 %v1710_v43, %v9620_v11 }
 0x21a   : > { %v3653_v34 = vand.u32 2147483647, %v3525_v13  ;;  %v3654_v62 = vand.u32 2147483647, %v3526_v39  ;;  %13260 = vst [vmem:[#allocation233_spill] sm:$0xff] %v9623_v48  ;;  %v9628_v9 = vpop.eup %6539  ;;  %v9631_v14 = vmax.f32 %v1741_v29, %v9623_v48 }
 0x21b   : > { %13261 = vst [vmem:[#allocation234_spill] sm:$0xff] %v9626_v42  ;;  %v3655_v59 = vand.u32 2147483647, %v3527_v56  ;;  %v3656_v47 = vand.u32 2147483647, %v3528_v10  ;;  %13262 = vst [vmem:[#allocation235_spill] sm:$0xff] %v9628_v9  ;;  %v9633_v53 = vpop.eup %6541  ;;  %v9636_v13 = vmax.f32 %v1772_v24, %v9628_v9 }
 0x21c   : > { %v3657_v19 = vand.u32 2147483647, %v3529_v16  ;;  %13263 = vst [vmem:[#allocation236_spill] sm:$0xff] %v9631_v14  ;;  %v3658_v33 = vand.u32 2147483647, %v3530_v60  ;;  %13264 = vst [vmem:[#allocation237_spill] sm:$0xff] %v9633_v53  ;;  %v9639_v56 = vmax.f32 %v1803_v44, %v9633_v53 }
 0x21d   : > { %v3659_v2 = vand.u32 2147483647, %v3531_v52  ;;  %v3660_v5 = vand.u32 2147483647, %v3532_v40  ;;  %13265 = vst [vmem:[#allocation238_spill] sm:$0xff] %v9636_v13  ;;  %v13267_v60 = vld [vmem:[#allocation32_spill] sm:$0xff] }
 0x21e   : > { %v3661_v32 = vand.u32 2147483647, %v3533_v1  ;;  %v3662_v39 = vand.u32 2147483647, %v3534_v51  ;;  %v3663_v43 = vand.u32 2147483647, %v3535_v20 }
 0x21f   : > { %13266 = vst [vmem:[#allocation239_spill] sm:$0xff] %v9639_v56  ;;  %v3664_v16 = vand.u32 2147483647, %v3536_v3  ;;  %v3665_v10 = vand.u32 2147483647, %v3537_v23  ;;  %v13268_v24 = vld [vmem:[#allocation23_spill] sm:$0xff] }
 0x220   : > { %v3666_v11 = vand.u32 2147483647, %v3538_v26  ;;  %v3667_v6 = vand.u32 2147483647, %v3539_v17  ;;  %v3668_v29 = vand.u32 2147483647, %v3540_v49 }
 0x221   : > { %v3669_v48 = vand.u32 2147483647, %v3541_v38  ;;  %v3670_v40 = vand.u32 2147483647, %v3542_v55  ;;  %v3671_v45 = vand.u32 2147483647, %v3543_v41 }
 0x222   : > { %v3672_v4 = vand.u32 2147483647, %v3544_v25  ;;  %v3769_v51 = vadd.f32 1e-08, %v3641_v63  ;;  %v3770_v20 = vadd.f32 1e-08, %v3642_v46 }
 0x223   : > { %v3771_v9 = vadd.f32 1e-08, %v3643_v35  ;;  %v13269_v44 = vld [vmem:[#allocation43_spill] sm:$0xff]  ;;  %v3772_v23 = vadd.f32 1e-08, %v3644_v15  ;;  %v13270_v38 = vld [vmem:[#allocation60_spill] sm:$0xff] }
 0x224   : > { %v3773_v26 = vadd.f32 1e-08, %v3645_v58  ;;  %v3774_v17 = vadd.f32 1e-08, %v3646_v57  ;;  %v3775_v53 = vadd.f32 1e-08, %v3647_v31  ;;  %6543 = vrcp.f32 %v3769_v51 }
 0x225   : > { %v3776_v52 = vadd.f32 1e-08, %v3648_v21  ;;  %v3777_v55 = vadd.f32 1e-08, %v3649_v61  ;;  %v3778_v41 = vadd.f32 1e-08, %v3650_v28  ;;  %6545 = vrcp.f32 %v3770_v20 }
 0x226   : > { %v3779_v25 = vadd.f32 1e-08, %v3651_v8  ;;  %v3780_v30 = vadd.f32 1e-08, %v3652_v7  ;;  %v3781_v63 = vadd.f32 1e-08, %v3653_v34  ;;  %6547 = vrcp.f32 %v3771_v9 }
 0x227   : > { %v3782_v46 = vadd.f32 1e-08, %v3654_v62  ;;  %v3783_v35 = vadd.f32 1e-08, %v3655_v59  ;;  %v3784_v1 = vadd.f32 1e-08, %v3656_v47  ;;  %6549 = vrcp.f32 %v3772_v23 }
 0x228   : > { %v3785_v3 = vadd.f32 1e-08, %v3657_v19  ;;  %v3786_v15 = vadd.f32 1e-08, %v3658_v33  ;;  %v9649_v58 = vadd.f32 1e-08, %v3659_v2  ;;  %6551 = vrcp.f32 %v3773_v26 }
 0x229   : > { %v9651_v57 = vadd.f32 1e-08, %v3660_v5  ;;  %v9653_v31 = vadd.f32 1e-08, %v3661_v32  ;;  %v9655_v21 = vadd.f32 1e-08, %v3662_v39  ;;  %6553 = vrcp.f32 %v3774_v17 }
 0x22a   : > { %v9657_v8 = vadd.f32 1e-08, %v3663_v43  ;;  %v9659_v28 = vadd.f32 1e-08, %v3664_v16  ;;  %v9661_v61 = vadd.f32 1e-08, %v3665_v10  ;;  %6555 = vrcp.f32 %v3775_v53 }
 0x22b   : > { %v9663_v7 = vadd.f32 1e-08, %v3666_v11  ;;  %v9665_v34 = vadd.f32 1e-08, %v3667_v6  ;;  %v9667_v62 = vadd.f32 1e-08, %v3668_v29  ;;  %6557 = vrcp.f32 %v3776_v52 }
 0x22c   : > { %v9669_v59 = vadd.f32 1e-08, %v3669_v48  ;;  %v9671_v47 = vadd.f32 1e-08, %v3670_v40  ;;  %v9673_v19 = vadd.f32 1e-08, %v3671_v45  ;;  %6559 = vrcp.f32 %v3777_v55 }
 0x22d   : > { %v9675_v9 = vadd.f32 1e-08, %v3672_v4  ;;  %v13271_v33 = vld [vmem:[#allocation34_spill] sm:$0xff]  ;;  %v5331_v6 = vld [vmem:[%s12382_s4 + $0x10] sm:$0xff]  ;;  %6561 = vrcp.f32 %v3778_v41  ;;  %v13280_v23 = vld [vmem:[#allocation27_spill] sm:$0xff] }
 0x22e   : > { %v1809_v2 = vsub.f32 %v13271_v33, %v9626_v42  ;;  %v13272_v11 = vld [vmem:[#allocation25_spill] sm:$0xff]  ;;  %5404 = vperm.xlu1 %6093, %v5331_v6   ;;  %6563 = vrcp.f32 %v3779_v25  ;;  %v13275_v4 = vld [vmem:[#allocation36_spill] sm:$0xff]  ;;  %v13276_v43 = vld [vmem:[#allocation26_spill] sm:$0xff] }
 0x22f   : > { %v1810_v48 = vsub.f32 %v13272_v11, %v9631_v14  ;;  %v13273_v5 = vld [vmem:[#allocation45_spill] sm:$0xff]  ;;  %v1813_v39 = vsub.f32 %v13275_v4, %v9626_v42  ;;  %v1814_v16 = vsub.f32 %v13276_v43, %v9631_v14  ;;  %v13277_v10 = vld [vmem:[#allocation46_spill] sm:$0xff]  ;;  %6565 = vrcp.f32 %v3780_v30  ;;  %v13281_v17 = vld [vmem:[#allocation47_spill] sm:$0xff] }
 0x230   : > { %v1811_v53 = vsub.f32 %v13273_v5, %v9636_v13  ;;  %v13274_v45 = vld [vmem:[#allocation61_spill] sm:$0xff]  ;;  %v1815_v29 = vsub.f32 %v13277_v10, %v9636_v13  ;;  %v13278_v52 = vld [vmem:[#allocation62_spill] sm:$0xff]  ;;  %6567 = vrcp.f32 %v3781_v63  ;;  %v13282_v41 = vld [vmem:[#allocation64_spill] sm:$0xff]  ;;  %v13293_v43 = vmax.f32 %v9376_v37, %v9306_v36 }
 0x231   : > { %v1812_v32 = vsub.f32 %v13274_v45, %v9639_v56  ;;  %v1816_v40 = vsub.f32 %v13278_v52, %v9639_v56  ;;  %v13279_v51 = vld [vmem:[#allocation37_spill] sm:$0xff]  ;;  %v13283_v33 = vld [vmem:[#allocation38_spill] sm:$0xff]  ;;  %v9706_v30 = vpop.eup %6543  ;;  %6569 = vrcp.f32 %v3782_v46  ;;  %v13285_v11 = vld [vmem:[#allocation28_spill] sm:$0xff]  ;;  %v13289_v52 = vmax.f32 %v9370_v54, %v9303_v50 }
 0x232   : > { %13284 = vst [vmem:[#allocation32_spill] sm:$0xff] %v9706_v30  ;;  %v13286_v45 = vld [vmem:[#allocation48_spill] sm:$0xff]  ;;  %v13287_v63 = vld [vmem:[#allocation65_spill] sm:$0xff]  ;;  %v9714_v10 = vpop.eup %6545  ;;  %6571 = vrcp.f32 %v3783_v35  ;;  %v13290_v25 = vld [vmem:[#allocation39_spill] sm:$0xff]  ;;  %v13303_v50 = vsub.f32 %v13267_v60, %v9626_v42 }
 0x233   : > { %13288 = vst [vmem:[#allocation23_spill] sm:$0xff] %v9714_v10  ;;  %v4080_v6 = vmax.f32 %v13289_v52, %v9706_v30  ;;  %v13291_v55 = vld [vmem:[#allocation29_spill] sm:$0xff]  ;;  %v9724_v26 = vpop.eup %6547  ;;  %6573 = vrcp.f32 %v3784_v1  ;;  %v4111_v4 = vmax.f32 %v13293_v43, %v9714_v10  ;;  %v13295_v54 = vld [vmem:[#allocation68_spill] sm:$0xff]  ;;  %v13298_v30 = vld [vmem:[#allocation30_spill] sm:$0xff] }
 0x234   : > { %13292 = vst [vmem:[#allocation43_spill] sm:$0xff] %v9724_v26  ;;  %v13294_v35 = vld [vmem:[#allocation49_spill] sm:$0xff]  ;;  %v9734_v49 = vpop.eup %6549  ;;  %v4142_v46 = vmax.f32 %v9317_v27, %v9724_v26  ;;  %6575 = vrcp.f32 %v3785_v3  ;;  %v13297_v5 = vld [vmem:[#allocation40_spill] sm:$0xff]  ;;  %v13300_v52 = vld [vmem:[#allocation50_spill] sm:$0xff]  ;;  %v9757_v1 = vmul.f32 1.442695, %v13303_v50  ;;  %v13307_v50 = vsub.f32 %v13270_v38, %v9639_v56 }
 0x235   : > { %13296 = vst [vmem:[#allocation60_spill] sm:$0xff] %v9734_v49  ;;  %v9742_v37 = vpop.eup %6551  ;;  %v4173_v43 = vmax.f32 %v9320_v0, %v9734_v49  ;;  %6577 = vrcp.f32 %v3786_v15  ;;  %v13301_v10 = vld [vmem:[#allocation69_spill] sm:$0xff]  ;;  %v13304_v0 = vsub.f32 %v13268_v24, %v9631_v14  ;;  %v9792_v38 = vmul.f32 1.442695, %v1812_v32 }
 0x236   : > { %13299 = vst [vmem:[#allocation34_spill] sm:$0xff] %v9742_v37  ;;  %v9750_v27 = vpop.eup %6553  ;;  %6579 = vrcp.f32 %v9649_v58  ;;  %v4081_v3 = vmax.f32 %v4080_v6, %v9742_v37  ;;  %v13306_v58 = vsub.f32 %v13269_v44, %v9636_v13  ;;  %v9776_v60 = vmul.f32 1.442695, %v13307_v50 }
 0x237   : > { %13302 = vst [vmem:[#allocation25_spill] sm:$0xff] %v9750_v27  ;;  %v9762_v15 = vmul.f32 1.442695, %v13304_v0  ;;  %v9764_v20 = vpop.eup %6555  ;;  %6581 = vrcp.f32 %v9651_v57  ;;  %v4112_v36 = vmax.f32 %v4111_v4, %v9750_v27  ;;  %v9782_v0 = vmul.f32 1.442695, %v1809_v2 }
 0x238   : > { %13305 = vst [vmem:[#allocation45_spill] sm:$0xff] %v9764_v20  ;;  %v9771_v6 = vmul.f32 1.442695, %v13306_v58  ;;  %v9778_v37 = vpop.eup %6557  ;;  %v4143_v24 = vmax.f32 %v4142_v46, %v9764_v20  ;;  %6583 = vrcp.f32 %v9653_v31  ;;  %v9784_v57 = vmul.f32 1.442695, %v1810_v48 }
 0x239   : > { %13308 = vst [vmem:[#allocation61_spill] sm:$0xff] %v9778_v37  ;;  %v9786_v4 = vpop.eup %6559  ;;  %v4174_v44 = vmax.f32 %v4173_v43, %v9778_v37  ;;  %6585 = vrcp.f32 %v9655_v21  ;;  %v9790_v58 = vmul.f32 1.442695, %v1811_v53  ;;  %v9798_v2 = vmul.f32 1.442695, %v1813_v39 }
 0x23a   : > { %13309 = vst [vmem:[#allocation36_spill] sm:$0xff] %v9786_v4  ;;  %v9794_v50 = vpop.eup %6561  ;;  %6587 = vrcp.f32 %v9657_v8  ;;  %v4082_v31 = vmax.f32 %v4081_v3, %v9786_v4  ;;  %v9800_v48 = vmul.f32 1.442695, %v1814_v16  ;;  %v9806_v53 = vmul.f32 1.442695, %v1815_v29  ;;  %v13370_v4 = vld [vmem:[#allocation93_spill] sm:$0xff] }
 0x23b   : > { %13310 = vst [vmem:[#allocation26_spill] sm:$0xff] %v9794_v50  ;;  %v9802_v46 = vpop.eup %6563  ;;  %6589 = vrcp.f32 %v9659_v28  ;;  %v4113_v21 = vmax.f32 %v4112_v36, %v9794_v50  ;;  %v9808_v32 = vmul.f32 1.442695, %v1816_v40  ;;  %v13313_v39 = vsub.f32 %v13279_v51, %v9626_v42  ;;  %v13369_v50 = vld [vmem:[#allocation92_spill] sm:$0xff] }
 0x23c   : > { %13311 = vst [vmem:[#allocation46_spill] sm:$0xff] %v9802_v46  ;;  %v9810_v43 = vpop.eup %6565  ;;  %v4144_v8 = vmax.f32 %v4143_v24, %v9802_v46  ;;  %6591 = vrcp.f32 %v9661_v61  ;;  %v13314_v28 = vsub.f32 %v13280_v23, %v9631_v14  ;;  %v13316_v40 = vsub.f32 %v13281_v17, %v9636_v13 }
 0x23d   : > { %13312 = vst [vmem:[#allocation62_spill] sm:$0xff] %v9810_v43  ;;  %v9817_v16 = vmul.f32 1.442695, %v13313_v39  ;;  %v9824_v36 = vpop.eup %6567  ;;  %v4175_v29 = vmax.f32 %v4174_v44, %v9810_v43  ;;  %6593 = vrcp.f32 %v9663_v7  ;;  %v13317_v51 = vsub.f32 %v13282_v41, %v9639_v56  ;;  %v13368_v43 = vld [vmem:[#allocation91_spill] sm:$0xff] }
 0x23e   : > { %v9822_v3 = vmul.f32 1.442695, %v13314_v28  ;;  %13315 = vst [vmem:[#allocation37_spill] sm:$0xff] %v9824_v36  ;;  %v9831_v61 = vmul.f32 1.442695, %v13316_v40  ;;  %v9838_v39 = vpop.eup %6569  ;;  %6595 = vrcp.f32 %v9665_v34  ;;  %v4083_v23 = vmax.f32 %v4082_v31, %v9824_v36  ;;  %v13367_v36 = vld [vmem:[#allocation90_spill] sm:$0xff] }
 0x23f   : > { %v9836_v24 = vmul.f32 1.442695, %v13317_v51  ;;  %13318 = vst [vmem:[#allocation27_spill] sm:$0xff] %v9838_v39  ;;  %v13319_v44 = vsub.f32 %v13283_v33, %v9626_v42  ;;  %v13320_v17 = vsub.f32 %v13285_v11, %v9631_v14  ;;  %v9852_v40 = vpop.eup %6571  ;;  %6597 = vrcp.f32 %v9667_v62 }
 0x240   : > { %13321 = vst [vmem:[#allocation47_spill] sm:$0xff] %v9852_v40  ;;  %v4114_v41 = vmax.f32 %v4113_v21, %v9838_v39  ;;  %v13322_v34 = vsub.f32 %v13286_v45, %v9636_v13  ;;  %v13323_v33 = vsub.f32 %v13287_v63, %v9639_v56  ;;  %v4145_v11 = vmax.f32 %v4144_v8, %v9852_v40  ;;  %v13366_v40 = vld [vmem:[#allocation89_spill] sm:$0xff] }
 0x241   : > { %v9845_v7 = vmul.f32 1.442695, %v13319_v44  ;;  %v9850_v28 = vmul.f32 1.442695, %v13320_v17  ;;  %v9866_v44 = vpop.eup %6573  ;;  %6599 = vrcp.f32 %v9669_v59  ;;  %v13325_v62 = vsub.f32 %v13290_v25, %v9626_v42 }
 0x242   : > { %v9859_v31 = vmul.f32 1.442695, %v13322_v34  ;;  %v9864_v51 = vmul.f32 1.442695, %v13323_v33  ;;  %13324 = vst [vmem:[#allocation64_spill] sm:$0xff] %v9866_v44  ;;  %v13326_v45 = vsub.f32 %v13291_v55, %v9631_v14  ;;  %v9880_v34 = vpop.eup %6575  ;;  %v4176_v63 = vmax.f32 %v4175_v29, %v9866_v44 }
 0x243   : > { %v9873_v21 = vmul.f32 1.442695, %v13325_v62  ;;  %13327 = vst [vmem:[#allocation38_spill] sm:$0xff] %v9880_v34  ;;  %6601 = vrcp.f32 %v9671_v47  ;;  %v13328_v8 = vsub.f32 %v13294_v35, %v9636_v13  ;;  %v13329_v25 = vsub.f32 %v13295_v54, %v9639_v56  ;;  %v9894_v62 = vpop.eup %6577 }
 0x244   : > { %v9878_v17 = vmul.f32 1.442695, %v13326_v45  ;;  %13330 = vst [vmem:[#allocation28_spill] sm:$0xff] %v9894_v62  ;;  %6603 = vrcp.f32 %v9673_v19  ;;  %v4084_v55 = vmax.f32 %v4083_v23, %v9880_v34  ;;  %v13331_v29 = vsub.f32 %v13297_v5, %v9626_v42 }
 0x245   : > { %v9887_v59 = vmul.f32 1.442695, %v13328_v8  ;;  %v9892_v33 = vmul.f32 1.442695, %v13329_v25  ;;  %v13332_v35 = vsub.f32 %v13298_v30, %v9631_v14  ;;  %v9908_v8 = vpop.eup %6579  ;;  %6605 = vrcp.f32 %v9675_v9 }
 0x246   : > { %v9901_v47 = vmul.f32 1.442695, %v13331_v29  ;;  %13333 = vst [vmem:[#allocation48_spill] sm:$0xff] %v9908_v8  ;;  %v4115_v54 = vmax.f32 %v4114_v41, %v9894_v62  ;;  %v13334_v19 = vsub.f32 %v13300_v52, %v9636_v13  ;;  %v13335_v5 = vsub.f32 %v13301_v10, %v9639_v56  ;;  %v9922_v29 = vpop.eup %6581 }
 0x247   : > { %v9906_v45 = vmul.f32 1.442695, %v13332_v35  ;;  %13336 = vst [vmem:[#allocation65_spill] sm:$0xff] %v9922_v29  ;;  %v4146_v30 = vmax.f32 %v4145_v11, %v9908_v8  ;;  %6607 = vpow2.f32 %v9757_v1  ;;  %v13337_v9 = vcombine.high %v9402_v12, %v9402_v12  ;;  %v9932_v35 = vpop.eup %6583  ;;  %v13339_v11 = vld [vmem:[#allocation202_spill] sm:$0xff] }
 0x248   : > { %v9915_v23 = vmul.f32 1.442695, %v13334_v19  ;;  %v9920_v25 = vmul.f32 1.442695, %v13335_v5  ;;  %v2208_v52 = vcombine.high %v9421_v22, %v9421_v22  ;;  %13338 = vst [vmem:[#allocation39_spill] sm:$0xff] %v9932_v35  ;;  %v4177_v10 = vmax.f32 %v4176_v63, %v9922_v29  ;;  %v9940_v5 = vpop.eup %6585 }
 0x249   : > { %v2207_v41 = vrot.slane %v13337_v9, %v13216_v18  ;;  %6609 = vpow2.f32 %v9762_v15  ;;  %v2216_v19 = vrot.slane %v9421_v22, %v13216_v18  ;;  %v4618_v1 = vcombine.high %v13339_v11, %v13339_v11  ;;  %13340 = vst [vmem:[#allocation29_spill] sm:$0xff] %v9940_v5  ;;  %v9945_v62 = vpop.eup %6587 }
 0x24a   : > { %v4085_v12 = vmax.f32 %v4084_v55, %v9932_v35  ;;  %6611 = vpow2.f32 %v9771_v6  ;;  %13341 = vst [vmem:[#allocation49_spill] sm:$0xff] %v9945_v62  ;;  %v4116_v63 = vmax.f32 %v4115_v54, %v9940_v5  ;;  %v2230_v22 = vrot.slane %v2208_v52, %v13216_v18  ;;  %v9950_v29 = vpop.eup %6589 }
 0x24b   : > { %v2209_v9 = vcombine.high %v2207_v41, %v2207_v41  ;;  %v2223_v8 = vrot.slane %v2207_v41, %v13216_v18  ;;  %6613 = vpow2.f32 %v9776_v60  ;;  %v2238_v15 = vcombine.high %v2216_v19, %v2216_v19  ;;  %13342 = vst [vmem:[#allocation68_spill] sm:$0xff] %v9950_v29  ;;  %v9955_v35 = vpop.eup %6591  ;;  %v13344_v60 = vld [vmem:[#allocation8_spill] sm:$0xff] }
 0x24c   : > { %v4147_v34 = vmax.f32 %v4146_v30, %v9945_v62  ;;  %6615 = vpow2.f32 %v9782_v0  ;;  %13343 = vst [vmem:[#allocation40_spill] sm:$0xff] %v9955_v35  ;;  %v4178_v41 = vmax.f32 %v4177_v10, %v9950_v29  ;;  %v2240_v54 = vcombine.high %v2230_v22, %v2230_v22  ;;  %v9960_v52 = vpop.eup %6593 }
 0x24d   : > { %v2237_v6 = vrot.slane %v2209_v9, %v13216_v18  ;;  %v2239_v55 = vcombine.high %v2223_v8, %v2223_v8  ;;  %6617 = vpow2.f32 %v9784_v57  ;;  %v2392_v5 = vrot.slane %v2216_v19, %v13344_v60  ;;  %13345 = vst [vmem:[#allocation30_spill] sm:$0xff] %v9960_v52  ;;  %v9967_v9 = vpop.eup %6595 }
 0x24e   : > { %v4086_v44 = vmax.f32 %v4085_v12, %v9955_v35  ;;  %6619 = vpow2.f32 %v9790_v58  ;;  %v9965_v0 = vrot.slane %v2230_v22, %v13344_v60  ;;  %13346 = vst [vmem:[#allocation50_spill] sm:$0xff] %v9967_v9  ;;  %v4117_v62 = vmax.f32 %v4116_v63, %v9960_v52  ;;  %v9977_v19 = vpop.eup %6597  ;;  %v13363_v52 = vld [vmem:[#allocation63_spill] sm:$0xff]  ;;  %v13371_v35 = vld [vmem:[#allocation94_spill] sm:$0xff] }
 0x24f   : > { %v2241_v30 = vcombine.high %v2237_v6, %v2237_v6  ;;  %6621 = vpow2.f32 %v9792_v38  ;;  %v9972_v57 = vrot.slane %v2238_v15, %v13344_v60  ;;  %v9975_v10 = vrot.slane %v2240_v54, %v13344_v60  ;;  %13347 = vst [vmem:[#allocation69_spill] sm:$0xff] %v9977_v19  ;;  %v9987_v63 = vpop.eup %6599 }
 0x250   : > { %v4148_v58 = vmax.f32 %v4147_v34, %v9967_v9  ;;  %6623 = vpow2.f32 %v9798_v2  ;;  %v9982_v12 = vrot.slane %v2223_v8, %v13344_v60  ;;  %v9985_v22 = vrot.slane %v2237_v6, %v13344_v60  ;;  %13348 = vst [vmem:[#allocation202_spill] sm:$0xff] %v9987_v63  ;;  %v9997_v2 = vpop.eup %6601  ;;  %v13358_v9 = vld [vmem:[#allocation35_spill] sm:$0xff] }
 0x251   : > { %v4179_v38 = vmax.f32 %v4178_v41, %v9977_v19  ;;  %6625 = vpow2.f32 %v9800_v48  ;;  %v9992_v15 = vrot.slane %v2239_v55, %v13344_v60  ;;  %v9995_v34 = vrot.slane %v2241_v30, %v13344_v60  ;;  %13350 = vst [vmem:[#allocation241_spill] sm:$0xff] %v9997_v2  ;;  %v3039_v48 = vpop.permute.xlu0 %3038  ;;  %v651_v55 = vpop.permute.xlu1 %650 }
 0x252   : > { %v10000_v8 = vmax.f32 %v4086_v44, %v9987_v63  ;;  %6627 = vpow2.f32 %v9806_v53  ;;  %v10005_v6 = vrot.slane %v13339_v11, %v13216_v18  ;;  %v10008_v41 = vrot.slane %v4618_v1, %v13216_v18  ;;  %v10010_v54 = vpop.eup %6603  ;;  %v13354_v44 = vld [vmem:[#allocation168_spill] sm:$0xff] }
 0x253   : > { %13349 = vst [vmem:[#allocation240_spill] sm:$0xff] %v9995_v34  ;;  %13352 = vst [vmem:[#allocation243_spill] sm:$0xff] %v10010_v54  ;;  %v10013_v30 = vmax.f32 %v4117_v62, %v9997_v2  ;;  %6629 = vpow2.f32 %v9808_v32  ;;  %v10017_v63 = vadd.f32 %v3039_v48, %v13354_v44  ;;  %v7146_v53 = vld [vmem:[%s7464_s26 + $0x10] sm:$0xff]  ;;  %v10022_v11 = vpop.eup %6605  ;;  %v10025_v1 = vmax.f32 %v4148_v58, %v10010_v54  ;;  %v13359_v62 = vld [vmem:[#allocation86_spill] sm:$0xff] }
 0x254   : > { %13351 = vst [vmem:[#allocation242_spill] sm:$0xff] %v10000_v8  ;;  %v10020_v19 = vmul.f32 %v7146_v53, %v651_v55  ;;  %13356 = vst [vmem:[#allocation245_spill] sm:$0xff] %v10022_v11  ;;  %6631 = vpow2.f32 %v9817_v16  ;;  %v6608_v32 = vpop.eup %6607  ;;  %v10033_v48 = vmax.f32 %v4179_v38, %v10022_v11  ;;  %v13361_v55 = vld [vmem:[#allocation52_spill] sm:$0xff]  ;;  %v13362_v58 = vld [vmem:[#allocation87_spill] sm:$0xff] }
 0x255   : > { %13353 = vst [vmem:[#allocation244_spill] sm:$0xff] %v10013_v30  ;;  %13357 = vst [vmem:[#allocation246_spill] sm:$0xff] %v10025_v1  ;;  %6633 = vpow2.f32 %v9822_v3  ;;  %v2549_v16 = vmul.f32 %v6608_v32, %v2392_v5  ;;  %v13364_v2 = vld [vmem:[#allocation88_spill] sm:$0xff]  ;;  %v13365_v11 = vld [vmem:[#allocation67_spill] sm:$0xff] }
 0x256   : > { %13355 = vst [vmem:[#allocation168_spill] sm:$0xff] %v10020_v19  ;;  %13360 = vst [vmem:[#allocation35_spill] sm:$0xff] %v10033_v48  ;;  %v6610_v54 = vpop.eup %6609  ;;  %6635 = vpow2.f32 %v9831_v61  ;;  %v13372_v44 = vld [vmem:[#allocation95_spill] sm:$0xff] }
 0x257   : > { %v6612_v38 = vpop.eup %6611  ;;  %6637 = vpow2.f32 %v9836_v24  ;;  %v2550_v3 = vmul.f32 %v6610_v54, %v2392_v5 }
 0x258   : > { %v6614_v39 = vpop.eup %6613  ;;  %6639 = vpow2.f32 %v9845_v7  ;;  %v2551_v61 = vmul.f32 %v6612_v38, %v2392_v5 }
 0x259   : > { %v6616_v46 = vpop.eup %6615  ;;  %6641 = vpow2.f32 %v9850_v28  ;;  %v2552_v24 = vmul.f32 %v6614_v39, %v2392_v5 }
 0x25a   : > { %v6618_v37 = vpop.eup %6617  ;;  %6643 = vpow2.f32 %v9859_v31  ;;  %v2553_v7 = vmul.f32 %v6616_v46, %v9965_v0  ;;  %v2801_v20 = vadd.f32 %v6616_v46, %v6608_v32 }
 0x25b   : > { %v6620_v29 = vpop.eup %6619  ;;  %6645 = vpow2.f32 %v9864_v51  ;;  %v2554_v28 = vmul.f32 %v6618_v37, %v9965_v0  ;;  %v2832_v5 = vadd.f32 %v6618_v37, %v6610_v54 }
 0x25c   : > { %v6622_v26 = vpop.eup %6621  ;;  %6647 = vpow2.f32 %v9873_v21  ;;  %v2555_v31 = vmul.f32 %v6620_v29, %v9965_v0  ;;  %v2677_v53 = vadd.f32 %v2553_v7, %v2549_v16  ;;  %v2863_v19 = vadd.f32 %v6620_v29, %v6612_v38 }
 0x25d   : > { %v6624_v46 = vpop.eup %6623  ;;  %6649 = vpow2.f32 %v9878_v17  ;;  %v2556_v32 = vmul.f32 %v6622_v26, %v9965_v0  ;;  %v2708_v27 = vadd.f32 %v2554_v28, %v2550_v3  ;;  %v2894_v51 = vadd.f32 %v6622_v26, %v6614_v39  ;;  %v13373_v28 = vld [vmem:[#allocation96_spill] sm:$0xff] }
 0x25e   : > { %v6626_v34 = vpop.eup %6625  ;;  %6651 = vpow2.f32 %v9887_v59  ;;  %v2557_v37 = vmul.f32 %v6624_v46, %v9972_v57  ;;  %v2739_v54 = vadd.f32 %v2555_v31, %v2551_v61  ;;  %v2802_v49 = vadd.f32 %v6624_v46, %v2801_v20 }
 0x25f   : > { %v6628_v56 = vpop.eup %6627  ;;  %6653 = vpow2.f32 %v9892_v33  ;;  %v2558_v21 = vmul.f32 %v6626_v34, %v9972_v57  ;;  %v2770_v29 = vadd.f32 %v2556_v32, %v2552_v24  ;;  %v2833_v16 = vadd.f32 %v6626_v34, %v2832_v5  ;;  %v13374_v32 = vld [vmem:[#allocation97_spill] sm:$0xff] }
 0x260   : > { %v6630_v38 = vpop.eup %6629  ;;  %6655 = vpow2.f32 %v9901_v47  ;;  %v2559_v17 = vmul.f32 %v6628_v56, %v9972_v57  ;;  %v2678_v26 = vadd.f32 %v2677_v53, %v2557_v37  ;;  %v2864_v39 = vadd.f32 %v6628_v56, %v2863_v19 }
 0x261   : > { %v6632_v0 = vpop.eup %6631  ;;  %6657 = vpow2.f32 %v9906_v45  ;;  %v2560_v59 = vmul.f32 %v6630_v38, %v9972_v57  ;;  %v2709_v20 = vadd.f32 %v2708_v27, %v2558_v21  ;;  %v2895_v3 = vadd.f32 %v6630_v38, %v2894_v51 }
 0x262   : > { %v6634_v61 = vpop.eup %6633  ;;  %6659 = vpow2.f32 %v9915_v23  ;;  %v2561_v33 = vmul.f32 %v6632_v0, %v9975_v10  ;;  %v2740_v34 = vadd.f32 %v2739_v54, %v2559_v17  ;;  %v2803_v24 = vadd.f32 %v6632_v0, %v2802_v49 }
 0x263   : > { %v6636_v7 = vpop.eup %6635  ;;  %6661 = vpow2.f32 %v9920_v25  ;;  %v2562_v47 = vmul.f32 %v6634_v61, %v9975_v10  ;;  %v2771_v56 = vadd.f32 %v2770_v29, %v2560_v59  ;;  %v2834_v19 = vadd.f32 %v6634_v61, %v2833_v16  ;;  %v13376_v29 = vld [vmem:[#allocation98_spill] sm:$0xff] }
 0x264   : > { %v6638_v53 = vpop.eup %6637  ;;  %v2563_v45 = vmul.f32 %v6636_v7, %v9975_v10  ;;  %v2679_v57 = vadd.f32 %v2678_v26, %v2561_v33  ;;  %v2865_v27 = vadd.f32 %v6636_v7, %v2864_v39  ;;  %v4229_v16 = vsub.f32 %v13376_v29, %v10000_v8  ;;  %v13381_v33 = vld [vmem:[#allocation100_spill] sm:$0xff] }
 0x265   : > { %v6640_v23 = vpop.eup %6639  ;;  %v2564_v31 = vmul.f32 %v6638_v53, %v9975_v10  ;;  %v2710_v46 = vadd.f32 %v2709_v20, %v2562_v47  ;;  %v2896_v49 = vadd.f32 %v6638_v53, %v2895_v3  ;;  %v13378_v10 = vld [vmem:[#allocation99_spill] sm:$0xff]  ;;  %v13394_v29 = vld [vmem:[#allocation104_spill] sm:$0xff]  ;;  %v13404_v5 = vsub.f32 %v13358_v9, %v10000_v8 }
 0x266   : > { %v6642_v51 = vpop.eup %6641  ;;  %v2565_v37 = vmul.f32 %v6640_v23, %v9982_v12  ;;  %v2741_v54 = vadd.f32 %v2740_v34, %v2563_v45  ;;  %v10091_v21 = vadd.f32 %v6640_v23, %v2803_v24  ;;  %v4230_v0 = vsub.f32 %v13378_v10, %v10013_v30  ;;  %v13389_v23 = vld [vmem:[#allocation102_spill] sm:$0xff] }
 0x267   : > { %v6644_v38 = vpop.eup %6643  ;;  %v2566_v17 = vmul.f32 %v6642_v51, %v9982_v12  ;;  %v2772_v26 = vadd.f32 %v2771_v56, %v2564_v31  ;;  %v10096_v39 = vadd.f32 %v6642_v51, %v2834_v19  ;;  %v4231_v34 = vsub.f32 %v13381_v33, %v10025_v1  ;;  %v13385_v19 = vld [vmem:[#allocation101_spill] sm:$0xff] }
 0x268   : > { %13375 = vst [vmem:[#allocation86_spill] sm:$0xff] %v10091_v21  ;;  %v6646_v59 = vpop.eup %6645  ;;  %v2567_v20 = vmul.f32 %v6644_v38, %v9982_v12  ;;  %v10101_v3 = vadd.f32 %v2679_v57, %v2565_v37  ;;  %v10103_v61 = vadd.f32 %v6644_v38, %v2865_v27  ;;  %v4232_v53 = vsub.f32 %v13385_v19, %v10033_v48  ;;  %v13399_v19 = vld [vmem:[#allocation107_spill] sm:$0xff]  ;;  %v13449_v21 = vld [vmem:[#allocation18_spill] sm:$0xff] }
 0x269   : > { %13377 = vst [vmem:[#allocation52_spill] sm:$0xff] %v10096_v39  ;;  %v10107_v24 = vpop.eup %6647  ;;  %v2568_v7 = vmul.f32 %v6646_v59, %v9982_v12  ;;  %v10110_v47 = vadd.f32 %v2710_v46, %v2566_v17  ;;  %v10112_v56 = vadd.f32 %v6646_v59, %v2896_v49  ;;  %v4233_v31 = vsub.f32 %v13389_v23, %v10000_v8  ;;  %v13390_v12 = vld [vmem:[#allocation103_spill] sm:$0xff] }
 0x26a   : > { %13379 = vst [vmem:[#allocation87_spill] sm:$0xff] %v10101_v3  ;;  %13380 = vst [vmem:[#allocation63_spill] sm:$0xff] %v10103_v61  ;;  %v10116_v45 = vpop.eup %6649  ;;  %v10120_v57 = vmul.f32 %v10107_v24, %v9985_v22  ;;  %v10122_v27 = vadd.f32 %v2741_v54, %v2567_v20  ;;  %v4234_v46 = vsub.f32 %v13390_v12, %v10013_v30  ;;  %v13395_v54 = vld [vmem:[#allocation105_spill] sm:$0xff]  ;;  %v13398_v20 = vld [vmem:[#allocation106_spill] sm:$0xff] }
 0x26b   : > { %13382 = vst [vmem:[#allocation88_spill] sm:$0xff] %v10107_v24  ;;  %13383 = vst [vmem:[#allocation67_spill] sm:$0xff] %v10110_v47  ;;  %v10128_v51 = vpop.eup %6651  ;;  %v10132_v49 = vmul.f32 %v10116_v45, %v9985_v22  ;;  %v10134_v37 = vadd.f32 %v2772_v26, %v2568_v7  ;;  %v4235_v38 = vsub.f32 %v13394_v29, %v10025_v1  ;;  %v13400_v26 = vld [vmem:[#allocation109_spill] sm:$0xff]  ;;  %v13469_v3 = vld [vmem:[#allocation76_spill] sm:$0xff] }
 0x26c   : > { %13384 = vst [vmem:[#allocation89_spill] sm:$0xff] %v10112_v56  ;;  %13386 = vst [vmem:[#allocation90_spill] sm:$0xff] %v10116_v45  ;;  %v4236_v17 = vsub.f32 %v13395_v54, %v10033_v48  ;;  %v10140_v10 = vpop.eup %6653  ;;  %v10144_v59 = vmul.f32 %v10128_v51, %v9985_v22  ;;  %v4237_v33 = vsub.f32 %v13398_v20, %v10000_v8  ;;  %v13403_v54 = vld [vmem:[#allocation110_spill] sm:$0xff]  ;;  %v4373_v56 = vmul.f32 1.442695, %v13404_v5 }
 0x26d   : > { %13387 = vst [vmem:[#allocation91_spill] sm:$0xff] %v10120_v57  ;;  %13388 = vst [vmem:[#allocation92_spill] sm:$0xff] %v10122_v27  ;;  %v4238_v23 = vsub.f32 %v13399_v19, %v10013_v30  ;;  %v4239_v7 = vsub.f32 %v13400_v26, %v10025_v1  ;;  %v10152_v12 = vpop.eup %6655  ;;  %v10156_v29 = vmul.f32 %v10140_v10, %v9985_v22  ;;  %v13482_v57 = vld [vmem:[#allocation59_spill] sm:$0xff] }
 0x26e   : > { %13391 = vst [vmem:[#allocation93_spill] sm:$0xff] %v10128_v51  ;;  %13392 = vst [vmem:[#allocation94_spill] sm:$0xff] %v10132_v49  ;;  %v4240_v25 = vsub.f32 %v13403_v54, %v10033_v48  ;;  %v13405_v20 = vsub.f32 %v13361_v55, %v10013_v30  ;;  %v10166_v51 = vpop.eup %6657  ;;  %v10170_v26 = vmul.f32 %v10152_v12, %v9992_v15  ;;  %6663 = vpow2.f32 %v4373_v56 }
 0x26f   : > { %13393 = vst [vmem:[#allocation95_spill] sm:$0xff] %v10134_v37  ;;  %13396 = vst [vmem:[#allocation96_spill] sm:$0xff] %v10140_v10  ;;  %v13408_v22 = vsub.f32 %v13363_v52, %v10025_v1  ;;  %v13409_v54 = vsub.f32 %v13365_v11, %v10033_v48  ;;  %v13410_v9 = vsub.f32 %v13359_v62, %v10000_v8  ;;  %v10181_v55 = vpop.eup %6659 }
 0x270   : > { %13397 = vst [vmem:[#allocation97_spill] sm:$0xff] %v10144_v59  ;;  %13401 = vst [vmem:[#allocation98_spill] sm:$0xff] %v10152_v12  ;;  %v4375_v19 = vmul.f32 1.442695, %v13405_v20  ;;  %v10185_v20 = vmul.f32 %v10166_v51, %v9992_v15  ;;  %v13413_v45 = vsub.f32 %v13362_v58, %v10013_v30  ;;  %v10197_v62 = vmul.f32 %v10181_v55, %v9992_v15  ;;  %v13445_v12 = vld [vmem:[#allocation73_spill] sm:$0xff] }
 0x271   : > { %13402 = vst [vmem:[#allocation99_spill] sm:$0xff] %v10156_v29  ;;  %13406 = vst [vmem:[#allocation100_spill] sm:$0xff] %v10166_v51  ;;  %v4377_v10 = vmul.f32 1.442695, %v13408_v22  ;;  %v4379_v61 = vmul.f32 1.442695, %v13409_v54  ;;  %v13414_v22 = vsub.f32 %v13364_v2, %v10025_v1  ;;  %v10193_v54 = vpop.eup %6661  ;;  %v13418_v56 = vsub.f32 %v13367_v36, %v10000_v8 }
 0x272   : > { %13407 = vst [vmem:[#allocation101_spill] sm:$0xff] %v10170_v26  ;;  %v4381_v5 = vmul.f32 1.442695, %v13410_v9  ;;  %13411 = vst [vmem:[#allocation102_spill] sm:$0xff] %v10181_v55  ;;  %v4383_v52 = vmul.f32 1.442695, %v13413_v45  ;;  %6665 = vpow2.f32 %v4375_v19  ;;  %v13417_v9 = vsub.f32 %v13366_v40, %v10033_v48 }
 0x273   : > { %13412 = vst [vmem:[#allocation103_spill] sm:$0xff] %v10185_v20  ;;  %v4385_v11 = vmul.f32 1.442695, %v13414_v22  ;;  %13415 = vst [vmem:[#allocation104_spill] sm:$0xff] %v10193_v54  ;;  %v4389_v58 = vmul.f32 1.442695, %v13418_v56  ;;  %v10207_v45 = vmul.f32 %v10193_v54, %v9992_v15  ;;  %6667 = vpow2.f32 %v4377_v10 }
 0x274   : > { %13416 = vst [vmem:[#allocation105_spill] sm:$0xff] %v10197_v62  ;;  %v4387_v51 = vmul.f32 1.442695, %v13417_v9  ;;  %v13420_v2 = vsub.f32 %v13368_v43, %v10013_v30  ;;  %v13421_v19 = vsub.f32 %v13369_v50, %v10025_v1  ;;  %6669 = vpow2.f32 %v4379_v61  ;;  %v13453_v20 = vld [vmem:[#allocation74_spill] sm:$0xff]  ;;  %v13457_v29 = vld [vmem:[#allocation19_spill] sm:$0xff] }
 0x275   : > { %13419 = vst [vmem:[#allocation106_spill] sm:$0xff] %v10207_v45  ;;  %v13422_v40 = vsub.f32 %v13370_v4, %v10033_v48  ;;  %v13423_v36 = vsub.f32 %v13371_v35, %v10000_v8  ;;  %v13424_v15 = vsub.f32 %v13372_v44, %v10013_v30  ;;  %6671 = vpow2.f32 %v4381_v5 }
 0x276   : > { %v4391_v22 = vmul.f32 1.442695, %v13420_v2  ;;  %v4393_v55 = vmul.f32 1.442695, %v13421_v19  ;;  %v13425_v43 = vsub.f32 %v13373_v28, %v10025_v1  ;;  %v13426_v50 = vsub.f32 %v13374_v32, %v10033_v48 }
 0x277   : > { %v4395_v9 = vmul.f32 1.442695, %v13422_v40  ;;  %v4397_v56 = vmul.f32 1.442695, %v13423_v36  ;;  %v4399_v10 = vmul.f32 1.442695, %v13424_v15  ;;  %6673 = vpow2.f32 %v4383_v52 }
 0x278   : > { %v4401_v2 = vmul.f32 1.442695, %v13425_v43  ;;  %v4403_v61 = vmul.f32 1.442695, %v13426_v50  ;;  %v4405_v19 = vmul.f32 1.442695, %v4229_v16  ;;  %6675 = vpow2.f32 %v4385_v11 }
 0x279   : > { %v4407_v4 = vmul.f32 1.442695, %v4230_v0  ;;  %v4409_v40 = vmul.f32 1.442695, %v4231_v34  ;;  %v4411_v54 = vmul.f32 1.442695, %v4232_v53  ;;  %6677 = vpow2.f32 %v4387_v51 }
 0x27a   : > { %v4413_v35 = vmul.f32 1.442695, %v4233_v31  ;;  %v10230_v36 = vmul.f32 1.442695, %v4234_v46  ;;  %v10232_v44 = vmul.f32 1.442695, %v4235_v38  ;;  %6679 = vpow2.f32 %v4389_v58 }
 0x27b   : > { %v10234_v5 = vmul.f32 1.442695, %v4236_v17  ;;  %v10236_v28 = vmul.f32 1.442695, %v4237_v33  ;;  %v10238_v15 = vmul.f32 1.442695, %v4238_v23  ;;  %v4633_v0 = vcombine.high %v10005_v6, %v10005_v6 }
 0x27c   : > { %v10240_v32 = vmul.f32 1.442695, %v4239_v7  ;;  %v10242_v16 = vmul.f32 1.442695, %v4240_v25  ;;  %6681 = vpow2.f32 %v4391_v22  ;;  %v4634_v34 = vcombine.high %v10008_v41, %v10008_v41  ;;  %v13427_v51 = vld [vmem:[#allocation15_spill] sm:$0xff]  ;;  %v13441_v25 = vld [vmem:[#allocation17_spill] sm:$0xff] }
 0x27d   : > { %v4641_v53 = vrot.slane %v10005_v6, %v13216_v18  ;;  %v4648_v31 = vrot.slane %v10008_v41, %v13216_v18  ;;  %6683 = vpow2.f32 %v4393_v55  ;;  %v4655_v46 = vrot.slane %v4633_v0, %v13216_v18  ;;  %v13428_v38 = vld [vmem:[#allocation51_spill] sm:$0xff]  ;;  %v10260_v55 = vpop.eup %6663 }
 0x27e   : > { %6685 = vpow2.f32 %v4395_v9  ;;  %v4662_v33 = vrot.slane %v4634_v34, %v13216_v18 }
 0x27f   : > { %v4663_v23 = vcombine.high %v4641_v53, %v4641_v53  ;;  %v4664_v7 = vcombine.high %v4648_v31, %v4648_v31  ;;  %6687 = vpow2.f32 %v4397_v56  ;;  %v4665_v52 = vcombine.high %v4655_v46, %v4655_v46  ;;  %v10266_v9 = vpop.eup %6665 }
 0x280   : > { %v4800_v6 = vrot.slane %v4641_v53, %v13344_v60  ;;  %v4804_v41 = vrot.slane %v4655_v46, %v13344_v60  ;;  %6689 = vpow2.f32 %v4399_v10  ;;  %v4666_v11 = vcombine.high %v4662_v33, %v4662_v33  ;;  %v10277_v0 = vpop.eup %6667  ;;  %v13431_v46 = vld [vmem:[#allocation71_spill] sm:$0xff] }
 0x281   : > { %v4808_v58 = vrot.slane %v4663_v23, %v13344_v60  ;;  %v10264_v22 = vrot.slane %v4648_v31, %v13344_v60  ;;  %6691 = vpow2.f32 %v4401_v2  ;;  %v10269_v43 = vrot.slane %v4665_v52, %v13344_v60  ;;  %v10288_v53 = vpop.eup %6669  ;;  %v13437_v23 = vld [vmem:[#allocation72_spill] sm:$0xff] }
 0x282   : > { %v10272_v56 = vrot.slane %v4662_v33, %v13344_v60  ;;  %v10275_v50 = vrot.slane %v4664_v7, %v13344_v60  ;;  %6693 = vpow2.f32 %v4403_v61  ;;  %v10280_v10 = vrot.slane %v4666_v11, %v13344_v60  ;;  %v13432_v61 = vld [vmem:[#allocation79_spill] sm:$0xff]  ;;  %v10297_v7 = vpop.eup %6671  ;;  %v13434_v11 = vld [vmem:[#allocation16_spill] sm:$0xff] }
 0x283   : > { %v10283_v34 = vmul.f32 %v10260_v55, %v4800_v6  ;;  %v10286_v2 = vmul.f32 %v10266_v9, %v4800_v6  ;;  %6695 = vpow2.f32 %v4405_v19  ;;  %v10291_v31 = vmul.f32 %v10277_v0, %v4800_v6  ;;  %v13435_v19 = vld [vmem:[#allocation53_spill] sm:$0xff] }
 0x284   : > { %13429 = vst [vmem:[#allocation107_spill] sm:$0xff] %v10280_v10  ;;  %6697 = vpow2.f32 %v4407_v4  ;;  %v10300_v52 = vmul.f32 %v10288_v53, %v4800_v6  ;;  %v10306_v10 = vpop.eup %6673  ;;  %v10309_v33 = vmul.f32 %v10297_v7, %v4804_v41  ;;  %v13438_v4 = vld [vmem:[#allocation81_spill] sm:$0xff] }
 0x285   : > { %13430 = vst [vmem:[#allocation109_spill] sm:$0xff] %v10291_v31  ;;  %13436 = vst [vmem:[#allocation15_spill] sm:$0xff] %v10306_v10  ;;  %6699 = vpow2.f32 %v4409_v40  ;;  %v10315_v6 = vpop.eup %6675  ;;  %v10318_v17 = vmul.f32 %v10306_v10, %v4804_v41  ;;  %v13442_v40 = vld [vmem:[#allocation54_spill] sm:$0xff] }
 0x286   : > { %13433 = vst [vmem:[#allocation110_spill] sm:$0xff] %v10300_v52  ;;  %13439 = vst [vmem:[#allocation51_spill] sm:$0xff] %v10315_v6  ;;  %6701 = vpow2.f32 %v4411_v54  ;;  %v10324_v45 = vpop.eup %6677  ;;  %v10327_v39 = vmul.f32 %v10315_v6, %v4804_v41  ;;  %v13446_v54 = vld [vmem:[#allocation80_spill] sm:$0xff] }
 0x287   : > { %13440 = vst [vmem:[#allocation71_spill] sm:$0xff] %v10318_v17  ;;  %13443 = vst [vmem:[#allocation79_spill] sm:$0xff] %v10324_v45  ;;  %6703 = vpow2.f32 %v4413_v35  ;;  %v10333_v26 = vpop.eup %6679  ;;  %v10337_v24 = vmul.f32 %v10324_v45, %v4804_v41  ;;  %v13450_v35 = vld [vmem:[#allocation55_spill] sm:$0xff]  ;;  %v13487_v45 = vsub.f32 %v13427_v51, %v10000_v8 }
 0x288   : > { %13444 = vst [vmem:[#allocation16_spill] sm:$0xff] %v10327_v39  ;;  %13447 = vst [vmem:[#allocation53_spill] sm:$0xff] %v10333_v26  ;;  %6705 = vpow2.f32 %v10230_v36  ;;  %v10347_v62 = vmul.f32 %v10333_v26, %v4808_v58  ;;  %v13454_v36 = vld [vmem:[#allocation82_spill] sm:$0xff]  ;;  %v13461_v41 = vld [vmem:[#allocation75_spill] sm:$0xff] }
 0x289   : > { %13448 = vst [vmem:[#allocation72_spill] sm:$0xff] %v10337_v24  ;;  %v10343_v27 = vpop.eup %6681  ;;  %6707 = vpow2.f32 %v10232_v44  ;;  %v13458_v44 = vld [vmem:[#allocation56_spill] sm:$0xff] }
 0x28a   : > { %13451 = vst [vmem:[#allocation81_spill] sm:$0xff] %v10343_v27  ;;  %13452 = vst [vmem:[#allocation17_spill] sm:$0xff] %v10347_v62  ;;  %v10353_v47 = vpop.eup %6683  ;;  %6709 = vpow2.f32 %v10234_v5  ;;  %v10357_v37 = vmul.f32 %v10343_v27, %v4808_v58  ;;  %v13462_v5 = vld [vmem:[#allocation83_spill] sm:$0xff]  ;;  %v13465_v26 = vld [vmem:[#allocation20_spill] sm:$0xff] }
 0x28b   : > { %13455 = vst [vmem:[#allocation54_spill] sm:$0xff] %v10353_v47  ;;  %v10363_v62 = vpop.eup %6685  ;;  %6711 = vpow2.f32 %v10236_v28  ;;  %v10367_v59 = vmul.f32 %v10353_v47, %v4808_v58  ;;  %v13466_v28 = vld [vmem:[#allocation57_spill] sm:$0xff]  ;;  %v13484_v39 = vld [vmem:[#allocation44_spill] sm:$0xff] }
 0x28c   : > { %13456 = vst [vmem:[#allocation73_spill] sm:$0xff] %v10357_v37  ;;  %13459 = vst [vmem:[#allocation80_spill] sm:$0xff] %v10363_v62  ;;  %v10373_v37 = vpop.eup %6687  ;;  %6713 = vpow2.f32 %v10238_v15  ;;  %v10377_v49 = vmul.f32 %v10363_v62, %v4808_v58  ;;  %v13470_v58 = vld [vmem:[#allocation84_spill] sm:$0xff]  ;;  %v13477_v62 = vld [vmem:[#allocation77_spill] sm:$0xff] }
 0x28d   : > { %13460 = vst [vmem:[#allocation18_spill] sm:$0xff] %v10367_v59  ;;  %13463 = vst [vmem:[#allocation55_spill] sm:$0xff] %v10373_v37  ;;  %v10383_v59 = vpop.eup %6689  ;;  %6715 = vpow2.f32 %v10240_v32  ;;  %v10388_v27 = vmul.f32 %v10373_v37, %v10269_v43  ;;  %v13473_v32 = vld [vmem:[#allocation21_spill] sm:$0xff]  ;;  %v13474_v37 = vld [vmem:[#allocation58_spill] sm:$0xff] }
 0x28e   : > { %13464 = vst [vmem:[#allocation74_spill] sm:$0xff] %v10377_v49  ;;  %13467 = vst [vmem:[#allocation82_spill] sm:$0xff] %v10383_v59  ;;  %v10394_v49 = vpop.eup %6691  ;;  %6717 = vpow2.f32 %v10242_v16  ;;  %v10399_v47 = vmul.f32 %v10383_v59, %v10269_v43  ;;  %v13478_v16 = vld [vmem:[#allocation85_spill] sm:$0xff]  ;;  %v13479_v59 = vld [vmem:[#allocation22_spill] sm:$0xff] }
 0x28f   : > { %13468 = vst [vmem:[#allocation19_spill] sm:$0xff] %v10388_v27  ;;  %13471 = vst [vmem:[#allocation56_spill] sm:$0xff] %v10394_v49  ;;  %v10405_v24 = vpop.eup %6693  ;;  %v10409_v15 = vmul.f32 %v10394_v49, %v10269_v43  ;;  %v13483_v49 = vld [vmem:[#allocation78_spill] sm:$0xff] }
 0x290   : > { %13472 = vst [vmem:[#allocation75_spill] sm:$0xff] %v10399_v47  ;;  %13475 = vst [vmem:[#allocation83_spill] sm:$0xff] %v10405_v24  ;;  %v10417_v52 = vpop.eup %6695  ;;  %v10421_v27 = vmul.f32 %v10405_v24, %v10269_v43  ;;  %v4309_v43 = vmul.f32 1.442695, %v13487_v45  ;;  %v13488_v24 = vsub.f32 %v13428_v38, %v10013_v30  ;;  %v13493_v45 = vsub.f32 %v13434_v11, %v10000_v8 }
 0x291   : > { %13476 = vst [vmem:[#allocation20_spill] sm:$0xff] %v10409_v15  ;;  %13480 = vst [vmem:[#allocation57_spill] sm:$0xff] %v10417_v52  ;;  %v10429_v10 = vpop.eup %6697  ;;  %v10433_v47 = vmul.f32 %v10417_v52, %v10264_v22  ;;  %v13489_v15 = vsub.f32 %v13431_v46, %v10025_v1  ;;  %v13492_v52 = vsub.f32 %v13432_v61, %v10033_v48 }
 0x292   : > { %13481 = vst [vmem:[#allocation76_spill] sm:$0xff] %v10421_v27  ;;  %13485 = vst [vmem:[#allocation84_spill] sm:$0xff] %v10429_v10  ;;  %v4311_v17 = vmul.f32 1.442695, %v13488_v24  ;;  %v10444_v31 = vpop.eup %6699  ;;  %v10448_v6 = vmul.f32 %v10429_v10, %v10264_v22  ;;  %v4317_v51 = vmul.f32 1.442695, %v13493_v45  ;;  %v13494_v24 = vsub.f32 %v13435_v19, %v10013_v30 }
 0x293   : > { %13486 = vst [vmem:[#allocation21_spill] sm:$0xff] %v10433_v47  ;;  %v4313_v27 = vmul.f32 1.442695, %v13489_v15  ;;  %13490 = vst [vmem:[#allocation58_spill] sm:$0xff] %v10444_v31  ;;  %v4315_v47 = vmul.f32 1.442695, %v13492_v52  ;;  %v10459_v46 = vpop.eup %6701  ;;  %v10463_v15 = vmul.f32 %v10444_v31, %v10264_v22  ;;  %6719 = vpow2.f32 %v4309_v43 }
 0x294   : > { %13491 = vst [vmem:[#allocation77_spill] sm:$0xff] %v10448_v6  ;;  %v4319_v38 = vmul.f32 1.442695, %v13494_v24  ;;  %13495 = vst [vmem:[#allocation85_spill] sm:$0xff] %v10459_v46  ;;  %v13497_v10 = vsub.f32 %v13437_v23, %v10025_v1  ;;  %v13498_v52 = vsub.f32 %v13438_v4, %v10033_v48  ;;  %v10471_v45 = vpop.eup %6703  ;;  %v10475_v19 = vmul.f32 %v10459_v46, %v10264_v22 }
 0x295   : > { %13496 = vst [vmem:[#allocation22_spill] sm:$0xff] %v10463_v15  ;;  %13499 = vst [vmem:[#allocation59_spill] sm:$0xff] %v10471_v45  ;;  %6721 = vpow2.f32 %v4311_v17  ;;  %v13501_v24 = vsub.f32 %v13441_v25, %v10000_v8  ;;  %v13502_v43 = vsub.f32 %v13442_v40, %v10013_v30  ;;  %v10487_v4 = vmul.f32 %v10471_v45, %v10272_v56 }
 0x296   : > { %v4321_v61 = vmul.f32 1.442695, %v13497_v10  ;;  %v4323_v11 = vmul.f32 1.442695, %v13498_v52  ;;  %13500 = vst [vmem:[#allocation78_spill] sm:$0xff] %v10475_v19  ;;  %v10483_v10 = vpop.eup %6705  ;;  %6723 = vpow2.f32 %v4313_v27  ;;  %v13505_v22 = vsub.f32 %v13445_v12, %v10025_v1 }
 0x297   : > { %v4325_v31 = vmul.f32 1.442695, %v13501_v24  ;;  %v4327_v23 = vmul.f32 1.442695, %v13502_v43  ;;  %13503 = vst [vmem:[#allocation44_spill] sm:$0xff] %v10483_v10  ;;  %13504 = vst [vmem:[#allocation247_spill] sm:$0xff] %v10487_v4  ;;  %v13506_v17 = vsub.f32 %v13446_v54, %v10033_v48  ;;  %v10495_v24 = vpop.eup %6707  ;;  %v10499_v40 = vmul.f32 %v10483_v10, %v10272_v56 }
 0x298   : > { %v4329_v52 = vmul.f32 1.442695, %v13505_v22  ;;  %13507 = vst [vmem:[#allocation248_spill] sm:$0xff] %v10495_v24  ;;  %6725 = vpow2.f32 %v4315_v47  ;;  %v13509_v43 = vsub.f32 %v13449_v21, %v10000_v8  ;;  %v13510_v27 = vsub.f32 %v13450_v35, %v10013_v30  ;;  %v10507_v22 = vpop.eup %6709  ;;  %v5330_v35 = vld [vmem:[%s12382_s4 + $0x8] sm:$0xff] }
 0x299   : > { %v4331_v25 = vmul.f32 1.442695, %v13506_v17  ;;  %13508 = vst [vmem:[#allocation249_spill] sm:$0xff] %v10499_v40  ;;  %13511 = vst [vmem:[#allocation250_spill] sm:$0xff] %v10507_v22  ;;  %v10511_v54 = vmul.f32 %v10495_v24, %v10272_v56  ;;  %6727 = vpow2.f32 %v4317_v51  ;;  %v13513_v17 = vsub.f32 %v13453_v20, %v10025_v1  ;;  %5399 = vperm.xlu1 %6093, %v5330_v35  }
 0x29a   : > { %v4333_v46 = vmul.f32 1.442695, %v13509_v43  ;;  %v4335_v12 = vmul.f32 1.442695, %v13510_v27  ;;  %v13514_v47 = vsub.f32 %v13454_v36, %v10033_v48  ;;  %v10522_v43 = vpop.eup %6711  ;;  %v10526_v27 = vmul.f32 %v10507_v22, %v10272_v56 }
 0x29b   : > { %13512 = vst [vmem:[#allocation251_spill] sm:$0xff] %v10511_v54  ;;  %v4337_v10 = vmul.f32 1.442695, %v13513_v17  ;;  %13515 = vst [vmem:[#allocation252_spill] sm:$0xff] %v10522_v43  ;;  %6729 = vpow2.f32 %v4319_v38  ;;  %v13517_v51 = vsub.f32 %v13457_v29, %v10000_v8  ;;  %v13518_v17 = vsub.f32 %v13458_v44, %v10013_v30 }
 0x29c   : > { %v4339_v21 = vmul.f32 1.442695, %v13514_v47  ;;  %13516 = vst [vmem:[#allocation253_spill] sm:$0xff] %v10526_v27  ;;  %v10534_v47 = vpop.eup %6713  ;;  %v10538_v24 = vmul.f32 %v10522_v43, %v10275_v50  ;;  %6731 = vpow2.f32 %v4321_v61  ;;  %v13521_v56 = vsub.f32 %v13461_v41, %v10025_v1 }
 0x29d   : > { %v4341_v20 = vmul.f32 1.442695, %v13517_v51  ;;  %v4343_v36 = vmul.f32 1.442695, %v13518_v17  ;;  %13519 = vst [vmem:[#allocation254_spill] sm:$0xff] %v10534_v47  ;;  %v13522_v29 = vsub.f32 %v13462_v5, %v10033_v48  ;;  %v10546_v22 = vpop.eup %6715  ;;  %v10550_v44 = vmul.f32 %v10534_v47, %v10275_v50 }
 0x29e   : > { %13520 = vst [vmem:[#allocation255_spill] sm:$0xff] %v10538_v24  ;;  %v4345_v38 = vmul.f32 1.442695, %v13521_v56  ;;  %13523 = vst [vmem:[#allocation256_spill] sm:$0xff] %v10546_v22  ;;  %6733 = vpow2.f32 %v4323_v11  ;;  %v13525_v35 = vsub.f32 %v13465_v26, %v10000_v8  ;;  %v13526_v61 = vsub.f32 %v13466_v28, %v10013_v30  ;;  %v10560_v56 = vpop.eup %6717 }
 0x29f   : > { %v4347_v51 = vmul.f32 1.442695, %v13522_v29  ;;  %13524 = vst [vmem:[#allocation257_spill] sm:$0xff] %v10550_v44  ;;  %13527 = vst [vmem:[#allocation258_spill] sm:$0xff] %v10560_v56  ;;  %v10564_v5 = vmul.f32 %v10546_v22, %v10275_v50  ;;  %6735 = vpow2.f32 %v4325_v31  ;;  %v13529_v29 = vsub.f32 %v13469_v3, %v10025_v1 }
 0x2a0   : > { %v4349_v17 = vmul.f32 1.442695, %v13525_v35  ;;  %v10558_v41 = vmul.f32 1.442695, %v13526_v61  ;;  %v13530_v26 = vsub.f32 %v13470_v58, %v10033_v48  ;;  %v10578_v28 = vmul.f32 %v10560_v56, %v10275_v50 }
 0x2a1   : > { %13528 = vst [vmem:[#allocation259_spill] sm:$0xff] %v10564_v5  ;;  %v10569_v11 = vmul.f32 1.442695, %v13529_v29  ;;  %6737 = vpow2.f32 %v4327_v23  ;;  %v13532_v61 = vsub.f32 %v13473_v32, %v10000_v8  ;;  %v13533_v3 = vsub.f32 %v13474_v37, %v10013_v30 }
 0x2a2   : > { %v10574_v35 = vmul.f32 1.442695, %v13530_v26  ;;  %13531 = vst [vmem:[#allocation260_spill] sm:$0xff] %v10578_v28  ;;  %6739 = vpow2.f32 %v4329_v52  ;;  %v13534_v58 = vsub.f32 %v13477_v62, %v10025_v1  ;;  %v13535_v50 = vsub.f32 %v13478_v16, %v10033_v48 }
 0x2a3   : > { %v10583_v22 = vmul.f32 1.442695, %v13532_v61  ;;  %v10588_v31 = vmul.f32 1.442695, %v13533_v3  ;;  %v13536_v32 = vsub.f32 %v13479_v59, %v10000_v8  ;;  %6741 = vpow2.f32 %v4331_v25  ;;  %v13540_v25 = vld [vmem:[#allocation208_spill] sm:$0xff] }
 0x2a4   : > { %v10593_v29 = vmul.f32 1.442695, %v13534_v58  ;;  %v10598_v23 = vmul.f32 1.442695, %v13535_v50  ;;  %v13537_v37 = vsub.f32 %v13482_v57, %v10013_v30  ;;  %v13538_v62 = vsub.f32 %v13483_v49, %v10025_v1  ;;  %v667_v58 = vpop.permute.xlu0 %666  ;;  %v13542_v49 = vld [vmem:[#allocation41_spill] sm:$0xff] }
 0x2a5   : > { %v10603_v26 = vmul.f32 1.442695, %v13536_v32  ;;  %v13539_v16 = vsub.f32 %v13484_v39, %v10033_v48  ;;  %6743 = vpow2.f32 %v4333_v46  ;;  %v4569_v59 = vcombine.high %v10017_v63, %v10017_v63  ;;  %v10627_v32 = vpop.eup %6719  ;;  %v13543_v39 = vld [vmem:[#allocation31_spill] sm:$0xff] }
 0x2a6   : > { %v10608_v52 = vmul.f32 1.442695, %v13537_v37  ;;  %v10613_v61 = vmul.f32 1.442695, %v13538_v62  ;;  %v4576_v57 = vrot.slane %v10017_v63, %v13216_v18  ;;  %v10625_v50 = vadd.f32 %v667_v58, %v13540_v25  ;;  %v10635_v56 = vpop.eup %6721 }
 0x2a7   : > { %v10618_v3 = vmul.f32 1.442695, %v13539_v16  ;;  %6745 = vpow2.f32 %v4335_v12  ;;  %v4583_v63 = vrot.slane %v4569_v59, %v13216_v18  ;;  %v10639_v25 = vpop.eup %6723  ;;  %v13545_v12 = vld [vmem:[#allocation239_spill] sm:$0xff] }
 0x2a8   : > { %13541 = vst [vmem:[#allocation208_spill] sm:$0xff] %v10625_v50  ;;  %6747 = vpow2.f32 %v4337_v10  ;;  %v4584_v47 = vcombine.high %v4576_v57, %v4576_v57  ;;  %v4592_v58 = vrot.slane %v4576_v57, %v13216_v18  ;;  %v10647_v27 = vpop.eup %6725 }
 0x2a9   : > { %6749 = vpow2.f32 %v4339_v21  ;;  %v4585_v10 = vcombine.high %v4583_v63, %v4583_v63  ;;  %v4599_v59 = vrot.slane %v4583_v63, %v13216_v18  ;;  %v10651_v5 = vpop.eup %6727 }
 0x2aa   : > { %6751 = vpow2.f32 %v4341_v20  ;;  %v4606_v57 = vrot.slane %v4584_v47, %v13216_v18  ;;  %v4614_v21 = vcombine.high %v4592_v58, %v4592_v58  ;;  %v4768_v37 = vrot.slane %v4592_v58, %v13344_v60  ;;  %v10656_v54 = vpop.eup %6729 }
 0x2ab   : > { %6753 = vpow2.f32 %v4343_v36  ;;  %v4613_v16 = vrot.slane %v4585_v10, %v13216_v18  ;;  %v4615_v20 = vcombine.high %v4599_v59, %v4599_v59  ;;  %v10659_v24 = vpop.eup %6731  ;;  %v10664_v63 = vrot.slane %v4599_v59, %v13344_v60 }
 0x2ac   : > { %6755 = vpow2.f32 %v4345_v38  ;;  %v4616_v44 = vcombine.high %v4606_v57, %v4606_v57  ;;  %v4772_v47 = vrot.slane %v4606_v57, %v13344_v60  ;;  %v4776_v36 = vrot.slane %v4614_v21, %v13344_v60  ;;  %v10666_v58 = vpop.eup %6733 }
 0x2ad   : > { %6757 = vpow2.f32 %v4347_v51  ;;  %v4617_v62 = vcombine.high %v4613_v16, %v4613_v16  ;;  %v10670_v10 = vrot.slane %v4613_v16, %v13344_v60  ;;  %v10672_v15 = vpop.eup %6735  ;;  %v10676_v51 = vrot.slane %v4615_v20, %v13344_v60 }
 0x2ae   : > { %6759 = vpow2.f32 %v4349_v17  ;;  %v4780_v38 = vrot.slane %v4616_v44, %v13344_v60  ;;  %v4925_v57 = vmul.f32 %v10627_v32, %v4768_v37  ;;  %v4926_v59 = vmul.f32 %v10635_v56, %v4768_v37  ;;  %v10680_v21 = vpop.eup %6737 }
 0x2af   : > { %6761 = vpow2.f32 %v10558_v41  ;;  %v10684_v44 = vrot.slane %v4617_v62, %v13344_v60  ;;  %v4927_v17 = vmul.f32 %v10639_v25, %v4768_v37  ;;  %v4928_v16 = vmul.f32 %v10647_v27, %v4768_v37  ;;  %v6740_v40 = vpop.eup %6739 }
 0x2b0   : > { %6763 = vpow2.f32 %v10569_v11  ;;  %v4929_v41 = vmul.f32 %v10651_v5, %v4772_v47  ;;  %v4930_v20 = vmul.f32 %v10656_v54, %v4772_v47  ;;  %v4931_v4 = vmul.f32 %v10659_v24, %v4772_v47  ;;  %v6742_v6 = vpop.eup %6741 }
 0x2b1   : > { %6765 = vpow2.f32 %v10574_v35  ;;  %v4932_v11 = vmul.f32 %v10666_v58, %v4772_v47  ;;  %v4933_v62 = vmul.f32 %v10672_v15, %v4776_v36  ;;  %v4934_v48 = vmul.f32 %v10680_v21, %v4776_v36 }
 0x2b2   : > { %6767 = vpow2.f32 %v10583_v22  ;;  %v6744_v1 = vpop.eup %6743  ;;  %v4935_v37 = vmul.f32 %v6740_v40, %v4776_v36  ;;  %v4936_v35 = vmul.f32 %v6742_v6, %v4776_v36  ;;  %v5053_v30 = vadd.f32 %v4929_v41, %v4925_v57 }
 0x2b3   : > { %6769 = vpow2.f32 %v10588_v31  ;;  %v4937_v60 = vmul.f32 %v6744_v1, %v4780_v38  ;;  %v5084_v18 = vadd.f32 %v4930_v20, %v4926_v59  ;;  %v5115_v19 = vadd.f32 %v4931_v4, %v4927_v17 }
 0x2b4   : > { %v6746_v8 = vpop.eup %6745  ;;  %6771 = vpow2.f32 %v10593_v29  ;;  %v5054_v47 = vadd.f32 %v5053_v30, %v4933_v62  ;;  %v5146_v50 = vadd.f32 %v4932_v11, %v4928_v16  ;;  %v5270_v16 = vadd.f32 %v10666_v58, %v10647_v27 }
 0x2b5   : > { %v6748_v28 = vpop.eup %6747  ;;  %6773 = vpow2.f32 %v10598_v23  ;;  %v4938_v22 = vmul.f32 %v6746_v8, %v4780_v38  ;;  %v5085_v31 = vadd.f32 %v5084_v18, %v4934_v48  ;;  %v5116_v46 = vadd.f32 %v5115_v19, %v4935_v37 }
 0x2b6   : > { %v6750_v45 = vpop.eup %6749  ;;  %6775 = vpow2.f32 %v10603_v26  ;;  %v4939_v43 = vmul.f32 %v6748_v28, %v4780_v38  ;;  %v5055_v29 = vadd.f32 %v5054_v47, %v4937_v60  ;;  %v5147_v41 = vadd.f32 %v5146_v50, %v4936_v35 }
 0x2b7   : > { %v6752_v36 = vpop.eup %6751  ;;  %6777 = vpow2.f32 %v10608_v52  ;;  %v4940_v57 = vmul.f32 %v6750_v45, %v4780_v38  ;;  %v5086_v23 = vadd.f32 %v5085_v31, %v4938_v22  ;;  %v5177_v48 = vadd.f32 %v10651_v5, %v10627_v32 }
 0x2b8   : > { %v6754_v59 = vpop.eup %6753  ;;  %6779 = vpow2.f32 %v10613_v61  ;;  %v4941_v4 = vmul.f32 %v6752_v36, %v10664_v63  ;;  %v5117_v30 = vadd.f32 %v5116_v46, %v4939_v43  ;;  %v5208_v61 = vadd.f32 %v10656_v54, %v10635_v56 }
 0x2b9   : > { %v6756_v17 = vpop.eup %6755  ;;  %6781 = vpow2.f32 %v10618_v3  ;;  %v4942_v26 = vmul.f32 %v6754_v59, %v10664_v63  ;;  %v5148_v18 = vadd.f32 %v5147_v41, %v4940_v57  ;;  %v5239_v50 = vadd.f32 %v10659_v24, %v10639_v25 }
 0x2ba   : > { %v6758_v19 = vpop.eup %6757  ;;  %v4943_v60 = vmul.f32 %v6756_v17, %v10664_v63  ;;  %v5056_v52 = vadd.f32 %v5055_v29, %v4941_v4  ;;  %v5178_v38 = vadd.f32 %v10672_v15, %v5177_v48  ;;  %v5209_v11 = vadd.f32 %v10680_v21, %v5208_v61 }
 0x2bb   : > { %v6760_v43 = vpop.eup %6759  ;;  %v4944_v46 = vmul.f32 %v6758_v19, %v10664_v63  ;;  %v5087_v3 = vadd.f32 %v5086_v23, %v4942_v26  ;;  %v5240_v62 = vadd.f32 %v6740_v40, %v5239_v50  ;;  %v5271_v37 = vadd.f32 %v6742_v6, %v5270_v16 }
 0x2bc   : > { %v6762_v5 = vpop.eup %6761  ;;  %v4945_v32 = vmul.f32 %v6760_v43, %v10670_v10  ;;  %v5118_v20 = vadd.f32 %v5117_v30, %v4943_v60  ;;  %v5179_v25 = vadd.f32 %v6744_v1, %v5178_v38  ;;  %v5210_v22 = vadd.f32 %v6746_v8, %v5209_v11 }
 0x2bd   : > { %v6764_v54 = vpop.eup %6763  ;;  %v4946_v56 = vmul.f32 %v6762_v5, %v10670_v10  ;;  %v5149_v24 = vadd.f32 %v5148_v18, %v4944_v46  ;;  %v5241_v47 = vadd.f32 %v6748_v28, %v5240_v62  ;;  %v5272_v29 = vadd.f32 %v6750_v45, %v5271_v37 }
 0x2be   : > { %v6766_v63 = vpop.eup %6765  ;;  %v4947_v35 = vmul.f32 %v6764_v54, %v10670_v10  ;;  %v5057_v15 = vadd.f32 %v5056_v52, %v4945_v32  ;;  %v5180_v57 = vadd.f32 %v6752_v36, %v5179_v25  ;;  %v5211_v4 = vadd.f32 %v6754_v59, %v5210_v22 }
 0x2bf   : > { %v6768_v27 = vpop.eup %6767  ;;  %v4948_v58 = vmul.f32 %v6766_v63, %v10670_v10  ;;  %v5088_v31 = vadd.f32 %v5087_v3, %v4946_v56  ;;  %v5242_v23 = vadd.f32 %v6756_v17, %v5241_v47  ;;  %v5273_v18 = vadd.f32 %v6758_v19, %v5272_v29  ;;  %v13553_v29 = vld [vmem:[#allocation15_spill] sm:$0xff] }
 0x2c0   : > { %v6770_v21 = vpop.eup %6769  ;;  %v4949_v40 = vmul.f32 %v6768_v27, %v10676_v51  ;;  %v5119_v41 = vadd.f32 %v5118_v20, %v4947_v35  ;;  %v5181_v26 = vadd.f32 %v6760_v43, %v5180_v57  ;;  %v5212_v10 = vadd.f32 %v6762_v5, %v5211_v4 }
 0x2c1   : > { %v6772_v1 = vpop.eup %6771  ;;  %v4950_v6 = vmul.f32 %v6770_v21, %v10676_v51  ;;  %v5150_v30 = vadd.f32 %v5149_v24, %v4948_v58  ;;  %v5243_v60 = vadd.f32 %v6764_v54, %v5242_v23  ;;  %v5274_v50 = vadd.f32 %v6766_v63, %v5273_v18  ;;  %v13563_v23 = vld [vmem:[#allocation16_spill] sm:$0xff] }
 0x2c2   : > { %v6774_v8 = vpop.eup %6773  ;;  %v4951_v28 = vmul.f32 %v6772_v1, %v10676_v51  ;;  %v5058_v48 = vadd.f32 %v5057_v15, %v4949_v40  ;;  %v5182_v61 = vadd.f32 %v6768_v27, %v5181_v26  ;;  %v5213_v3 = vadd.f32 %v6770_v21, %v5212_v10  ;;  %v13555_v21 = vld [vmem:[#allocation51_spill] sm:$0xff]  ;;  %v13566_v26 = vld [vmem:[#allocation120_spill] sm:$0xff] }
 0x2c3   : > { %v6776_v36 = vpop.eup %6775  ;;  %v4952_v45 = vmul.f32 %v6774_v8, %v10676_v51  ;;  %v5089_v52 = vadd.f32 %v5088_v31, %v4950_v6  ;;  %v5244_v38 = vadd.f32 %v6772_v1, %v5243_v60  ;;  %v5275_v20 = vadd.f32 %v6774_v8, %v5274_v50  ;;  %v13565_v6 = vld [vmem:[#allocation119_spill] sm:$0xff]  ;;  %v13567_v8 = vld [vmem:[#allocation121_spill] sm:$0xff]  ;;  %v13570_v60 = vld [vmem:[#allocation122_spill] sm:$0xff] }
 0x2c4   : > { %v6778_v59 = vpop.eup %6777  ;;  %v4953_v17 = vmul.f32 %v6776_v36, %v10684_v44  ;;  %v5120_v46 = vadd.f32 %v5119_v41, %v4951_v28  ;;  %v5183_v32 = vadd.f32 %v6776_v36, %v5182_v61  ;;  %v1842_v18 = vsub.f32 %v13566_v26, %v9631_v14  ;;  %v13572_v61 = vld [vmem:[#allocation124_spill] sm:$0xff] }
 0x2c5   : > { %v6780_v43 = vpop.eup %6779  ;;  %v4954_v19 = vmul.f32 %v6778_v59, %v10684_v44  ;;  %v5151_v16 = vadd.f32 %v5150_v30, %v4952_v45  ;;  %v5214_v51 = vadd.f32 %v6778_v59, %v5213_v3  ;;  %v1841_v30 = vsub.f32 %v13565_v6, %v9626_v42  ;;  %v13571_v45 = vld [vmem:[#allocation123_spill] sm:$0xff]  ;;  %v13573_v59 = vld [vmem:[#allocation125_spill] sm:$0xff] }
 0x2c6   : > { %v6782_v5 = vpop.eup %6781  ;;  %v4955_v11 = vmul.f32 %v6780_v43, %v10684_v44  ;;  %v5059_v62 = vadd.f32 %v5058_v48, %v4953_v17  ;;  %v5245_v54 = vadd.f32 %v6780_v43, %v5244_v38  ;;  %v5184_v25 = vadd.f32 %v10260_v55, %v5183_v32  ;;  %v13552_v55 = vld [vmem:[#allocation109_spill] sm:$0xff]  ;;  %v13568_v48 = vld [vmem:[#allocation72_spill] sm:$0xff]  ;;  %v13575_v38 = vld [vmem:[#allocation127_spill] sm:$0xff] }
 0x2c7   : > { %v4956_v56 = vmul.f32 %v6782_v5, %v10684_v44  ;;  %v5090_v24 = vadd.f32 %v5089_v52, %v4954_v19  ;;  %v5276_v37 = vadd.f32 %v6782_v5, %v5275_v20  ;;  %v5215_v15 = vadd.f32 %v10266_v9, %v5214_v51  ;;  %v13576_v19 = vld [vmem:[#allocation128_spill] sm:$0xff]  ;;  %v13577_v32 = vld [vmem:[#allocation129_spill] sm:$0xff]  ;;  %v13578_v5 = vld [vmem:[#allocation130_spill] sm:$0xff] }
 0x2c8   : > { %v5060_v63 = vadd.f32 %v5059_v62, %v10283_v34  ;;  %v5121_v35 = vadd.f32 %v5120_v46, %v4955_v11  ;;  %v5246_v22 = vadd.f32 %v10277_v0, %v5245_v54  ;;  %v10735_v58 = vadd.f32 %v10297_v7, %v5184_v25  ;;  %v13557_v0 = vld [vmem:[#allocation71_spill] sm:$0xff]  ;;  %v13574_v46 = vld [vmem:[#allocation126_spill] sm:$0xff]  ;;  %v13580_v54 = vld [vmem:[#allocation132_spill] sm:$0xff] }
 0x2c9   : > { %v5091_v47 = vadd.f32 %v5090_v24, %v10286_v2  ;;  %v5152_v27 = vadd.f32 %v5151_v16, %v4956_v56  ;;  %v5277_v31 = vadd.f32 %v10288_v53, %v5276_v37  ;;  %v10743_v34 = vadd.f32 %v13553_v29, %v5215_v15  ;;  %v13559_v2 = vld [vmem:[#allocation110_spill] sm:$0xff]  ;;  %v13560_v7 = vld [vmem:[#allocation79_spill] sm:$0xff]  ;;  %v13562_v53 = vld [vmem:[#allocation108_spill] sm:$0xff] }
 0x2ca   : > { %13550 = vst [vmem:[#allocation41_spill] sm:$0xff] %v10735_v58  ;;  %v10739_v44 = vadd.f32 %v5060_v63, %v10309_v33  ;;  %v5122_v57 = vadd.f32 %v5121_v35, %v13552_v55  ;;  %v10746_v9 = vadd.f32 %v13555_v21, %v5246_v22  ;;  %v1840_v33 = vsub.f32 %v13562_v53, %v13545_v12  ;;  %v13579_v62 = vld [vmem:[#allocation131_spill] sm:$0xff]  ;;  %v13581_v24 = vld [vmem:[#allocation133_spill] sm:$0xff]  ;;  %v13582_v37 = vld [vmem:[#allocation134_spill] sm:$0xff] }
 0x2cb   : > { %13554 = vst [vmem:[#allocation109_spill] sm:$0xff] %v10743_v34  ;;  %v10749_v40 = vadd.f32 %v5091_v47, %v13557_v0  ;;  %v5153_v41 = vadd.f32 %v5152_v27, %v13559_v2  ;;  %v10753_v4 = vadd.f32 %v13560_v7, %v5277_v31  ;;  %v1843_v28 = vsub.f32 %v13567_v8, %v9636_v13  ;;  %v13583_v35 = vld [vmem:[#allocation135_spill] sm:$0xff]  ;;  %v13584_v22 = vld [vmem:[#allocation136_spill] sm:$0xff]  ;;  %v13585_v27 = vld [vmem:[#allocation137_spill] sm:$0xff] }
 0x2cc   : > { %13551 = vst [vmem:[#allocation31_spill] sm:$0xff] %v10739_v44  ;;  %13556 = vst [vmem:[#allocation15_spill] sm:$0xff] %v10746_v9  ;;  %v10758_v1 = vadd.f32 %v5122_v57, %v13563_v23  ;;  %v1844_v36 = vsub.f32 %v13570_v60, %v13545_v12  ;;  %v1845_v52 = vsub.f32 %v13571_v45, %v9626_v42  ;;  %v13586_v55 = vld [vmem:[#allocation138_spill] sm:$0xff]  ;;  %v13587_v29 = vld [vmem:[#allocation139_spill] sm:$0xff] }
 0x2cd   : > { %13558 = vst [vmem:[#allocation51_spill] sm:$0xff] %v10749_v40  ;;  %13561 = vst [vmem:[#allocation71_spill] sm:$0xff] %v10753_v4  ;;  %v10767_v10 = vadd.f32 %v5153_v41, %v13568_v48  ;;  %v1846_v50 = vsub.f32 %v13572_v61, %v9631_v14  ;;  %v1847_v17 = vsub.f32 %v13573_v59, %v9636_v13  ;;  %v13588_v0 = vld [vmem:[#allocation140_spill] sm:$0xff]  ;;  %v13589_v41 = vld [vmem:[#allocation141_spill] sm:$0xff] }
 0x2ce   : > { %13564 = vst [vmem:[#allocation110_spill] sm:$0xff] %v10758_v1  ;;  %v1848_v3 = vsub.f32 %v13574_v46, %v13545_v12  ;;  %v1849_v43 = vsub.f32 %v13575_v38, %v9626_v42  ;;  %v1850_v16 = vsub.f32 %v13576_v19, %v9631_v14  ;;  %v1851_v20 = vsub.f32 %v13577_v32, %v9636_v13  ;;  %v13590_v53 = vld [vmem:[#allocation142_spill] sm:$0xff]  ;;  %v13597_v19 = vld [vmem:[#allocation117_spill] sm:$0xff] }
 0x2cf   : > { %13569 = vst [vmem:[#allocation79_spill] sm:$0xff] %v10767_v10  ;;  %v1852_v11 = vsub.f32 %v13578_v5, %v13545_v12  ;;  %v1853_v51 = vsub.f32 %v13579_v62, %v9626_v42  ;;  %v1854_v56 = vsub.f32 %v13580_v54, %v9631_v14  ;;  %v1855_v25 = vsub.f32 %v13581_v24, %v9636_v13  ;;  %v13593_v60 = vld [vmem:[#allocation10_spill] sm:$0xff]  ;;  %v13599_v62 = vld [vmem:[#allocation208_spill] sm:$0xff] }
 0x2d0   : > { %v1856_v63 = vsub.f32 %v13582_v37, %v13545_v12  ;;  %v1857_v15 = vsub.f32 %v13583_v35, %v9626_v42  ;;  %v1858_v47 = vsub.f32 %v13584_v22, %v9631_v14  ;;  %v1859_v31 = vsub.f32 %v13585_v27, %v9636_v13  ;;  %v13595_v59 = vld [vmem:[#allocation70_spill] sm:$0xff] }
 0x2d1   : > { %v1860_v57 = vsub.f32 %v13586_v55, %v13545_v12  ;;  %v1861_v21 = vsub.f32 %v13587_v29, %v9626_v42  ;;  %v1862_v2 = vsub.f32 %v13588_v0, %v9631_v14  ;;  %v1863_v7 = vsub.f32 %v13589_v41, %v9636_v13  ;;  %v13600_v54 = vld [vmem:[#allocation118_spill] sm:$0xff] }
 0x2d2   : > { %v1864_v23 = vsub.f32 %v13590_v53, %v13545_v12  ;;  %v13591_v6 = vsub.f32 %v13542_v49, %v9626_v42  ;;  %v13592_v8 = vsub.f32 %v13543_v39, %v9631_v14  ;;  %v13594_v45 = vsub.f32 %v13593_v60, %v9636_v13  ;;  %v13602_v37 = vld [vmem:[#allocation66_spill] sm:$0xff] }
 0x2d3   : > { %v13596_v46 = vsub.f32 %v13595_v59, %v13545_v12  ;;  %v13598_v32 = vsub.f32 %v13597_v19, %v9626_v42  ;;  %v2242_v49 = vcombine.high %v13599_v62, %v13599_v62  ;;  %v13601_v39 = vsub.f32 %v13600_v54, %v9631_v14 }
 0x2d4   : > { %v1989_v26 = vmul.f32 1.442695, %v13591_v6  ;;  %v1991_v48 = vmul.f32 1.442695, %v13592_v8  ;;  %v1993_v61 = vmul.f32 1.442695, %v13594_v45  ;;  %v13603_v35 = vsub.f32 %v13602_v37, %v9636_v13 }
 0x2d5   : > { %v1995_v38 = vmul.f32 1.442695, %v13596_v46  ;;  %v1997_v5 = vmul.f32 1.442695, %v13598_v32  ;;  %v1999_v24 = vmul.f32 1.442695, %v13601_v39 }
 0x2d6   : > { %6783 = vpow2.f32 %v1989_v26  ;;  %v2001_v22 = vmul.f32 1.442695, %v13603_v35  ;;  %v2003_v27 = vmul.f32 1.442695, %v1840_v33  ;;  %v2005_v55 = vmul.f32 1.442695, %v1841_v30 }
 0x2d7   : > { %6785 = vpow2.f32 %v1991_v48  ;;  %v2007_v29 = vmul.f32 1.442695, %v1842_v18  ;;  %v2009_v0 = vmul.f32 1.442695, %v1843_v28  ;;  %v2011_v41 = vmul.f32 1.442695, %v1844_v36 }
 0x2d8   : > { %6787 = vpow2.f32 %v1993_v61  ;;  %v2013_v53 = vmul.f32 1.442695, %v1845_v52  ;;  %v2015_v6 = vmul.f32 1.442695, %v1846_v50  ;;  %v2017_v8 = vmul.f32 1.442695, %v1847_v17 }
 0x2d9   : > { %6789 = vpow2.f32 %v1995_v38  ;;  %v2019_v26 = vmul.f32 1.442695, %v1848_v3  ;;  %v2021_v60 = vmul.f32 1.442695, %v1849_v43  ;;  %v2023_v45 = vmul.f32 1.442695, %v1850_v16 }
 0x2da   : > { %6791 = vpow2.f32 %v1997_v5  ;;  %v2025_v59 = vmul.f32 1.442695, %v1851_v20  ;;  %v10834_v46 = vmul.f32 1.442695, %v1852_v11  ;;  %v10836_v19 = vmul.f32 1.442695, %v1853_v51 }
 0x2db   : > { %6793 = vpow2.f32 %v1999_v24  ;;  %v10838_v33 = vmul.f32 1.442695, %v1854_v56  ;;  %v10840_v30 = vmul.f32 1.442695, %v1855_v25  ;;  %v10842_v18 = vmul.f32 1.442695, %v1856_v63 }
 0x2dc   : > { %6795 = vpow2.f32 %v2001_v22  ;;  %v10844_v28 = vmul.f32 1.442695, %v1857_v15  ;;  %v10846_v36 = vmul.f32 1.442695, %v1858_v47  ;;  %v10848_v52 = vmul.f32 1.442695, %v1859_v31 }
 0x2dd   : > { %6797 = vpow2.f32 %v2003_v27  ;;  %v10850_v50 = vmul.f32 1.442695, %v1860_v57  ;;  %v10852_v17 = vmul.f32 1.442695, %v1861_v21  ;;  %v10854_v3 = vmul.f32 1.442695, %v1862_v2 }
 0x2de   : > { %6799 = vpow2.f32 %v2005_v55  ;;  %v10856_v43 = vmul.f32 1.442695, %v1863_v7  ;;  %v10858_v16 = vmul.f32 1.442695, %v1864_v23  ;;  %v13604_v20 = vld [vmem:[#allocation7_spill] sm:$0xff]  ;;  %v13607_v47 = vld [vmem:[#allocation94_spill] sm:$0xff] }
 0x2df   : > { %6801 = vpow2.f32 %v2007_v29  ;;  %v2249_v11 = vrot.slane %v13599_v62, %v13604_v20  ;;  %v2256_v51 = vrot.slane %v2242_v49, %v13604_v20  ;;  %v13605_v56 = vld [vmem:[#allocation91_spill] sm:$0xff]  ;;  %v13609_v21 = vld [vmem:[#allocation97_spill] sm:$0xff]  ;;  %v13610_v2 = vld [vmem:[#allocation92_spill] sm:$0xff] }
 0x2e0   : > { %v13606_v25 = vld [vmem:[#allocation87_spill] sm:$0xff]  ;;  %6803 = vpow2.f32 %v2009_v0  ;;  %v2743_v7 = vadd.f32 %v13610_v2, %v13609_v21  ;;  %v13613_v49 = vld [vmem:[#allocation101_spill] sm:$0xff]  ;;  %v13615_v0 = vld [vmem:[#allocation8_spill] sm:$0xff] }
 0x2e1   : > { %v2681_v63 = vadd.f32 %v13606_v25, %v13605_v56  ;;  %v5420_v15 = vld [vmem:[%s12384_s6] sm:$0xff]  ;;  %6805 = vpow2.f32 %v2011_v41  ;;  %v2257_v38 = vcombine.high %v2249_v11, %v2249_v11  ;;  %v2258_v32 = vcombine.high %v2256_v51, %v2256_v51 }
 0x2e2   : > { %v13608_v31 = vld [vmem:[#allocation67_spill] sm:$0xff]  ;;  %5426 = vperm.xlu1 %6093, %v5420_v15   ;;  %v2265_v5 = vrot.slane %v2249_v11, %v13604_v20  ;;  %6807 = vpow2.f32 %v2013_v53  ;;  %v2272_v62 = vrot.slane %v2256_v51, %v13604_v20 }
 0x2e3   : > { %v2712_v57 = vadd.f32 %v13608_v31, %v13607_v47  ;;  %v13611_v23 = vld [vmem:[#allocation99_spill] sm:$0xff]  ;;  %v2682_v54 = vadd.f32 %v2681_v63, %v13613_v49  ;;  %v10878_v37 = vpop.eup %6783  ;;  %6809 = vpow2.f32 %v2015_v6  ;;  %v2279_v35 = vrot.slane %v2257_v38, %v13604_v20 }
 0x2e4   : > { %v13612_v48 = vld [vmem:[#allocation95_spill] sm:$0xff]  ;;  %v2286_v22 = vrot.slane %v2258_v32, %v13604_v20  ;;  %v2287_v27 = vcombine.high %v2265_v5, %v2265_v5  ;;  %v10882_v55 = vpop.eup %6785  ;;  %6811 = vpow2.f32 %v2017_v8  ;;  %v2288_v29 = vcombine.high %v2272_v62, %v2272_v62 }
 0x2e5   : > { %v2774_v61 = vadd.f32 %v13612_v48, %v13611_v23  ;;  %v13614_v39 = vld [vmem:[#allocation103_spill] sm:$0xff]  ;;  %v2424_v41 = vrot.slane %v2265_v5, %v13615_v0  ;;  %v10886_v53 = vrot.slane %v2272_v62, %v13615_v0  ;;  %v10888_v11 = vpop.eup %6787  ;;  %6813 = vpow2.f32 %v2019_v26 }
 0x2e6   : > { %v2713_v24 = vadd.f32 %v2712_v57, %v13614_v39  ;;  %v2289_v51 = vcombine.high %v2279_v35, %v2279_v35  ;;  %v2290_v56 = vcombine.high %v2286_v22, %v2286_v22  ;;  %v2428_v6 = vrot.slane %v2279_v35, %v13615_v0  ;;  %v10891_v25 = vpop.eup %6789  ;;  %v13616_v57 = vld [vmem:[#allocation240_spill] sm:$0xff]  ;;  %v13617_v39 = vld [vmem:[#allocation105_spill] sm:$0xff] }
 0x2e7   : > { %6815 = vpow2.f32 %v2021_v60  ;;  %v10894_v63 = vrot.slane %v2287_v27, %v13615_v0  ;;  %v10897_v8 = vrot.slane %v2286_v22, %v13615_v0  ;;  %v10900_v15 = vrot.slane %v2288_v29, %v13615_v0  ;;  %v10902_v47 = vpop.eup %6791  ;;  %v13618_v29 = vld [vmem:[#allocation106_spill] sm:$0xff] }
 0x2e8   : > { %6817 = vpow2.f32 %v2023_v45  ;;  %v10905_v26 = vrot.slane %v2289_v51, %v13615_v0  ;;  %v10908_v31 = vrot.slane %v2290_v56, %v13615_v0  ;;  %v2577_v60 = vmul.f32 %v10878_v37, %v13616_v57  ;;  %v10912_v21 = vpop.eup %6793 }
 0x2e9   : > { %6819 = vpow2.f32 %v2025_v59  ;;  %v2578_v2 = vmul.f32 %v10882_v55, %v13616_v57  ;;  %v2579_v23 = vmul.f32 %v10888_v11, %v13616_v57  ;;  %v2580_v45 = vmul.f32 %v10891_v25, %v13616_v57  ;;  %v10920_v48 = vpop.eup %6795 }
 0x2ea   : > { %6821 = vpow2.f32 %v10834_v46  ;;  %v2581_v38 = vmul.f32 %v10902_v47, %v2424_v41  ;;  %v2582_v32 = vmul.f32 %v10912_v21, %v2424_v41  ;;  %v2683_v5 = vadd.f32 %v2682_v54, %v2577_v60  ;;  %v10925_v62 = vpop.eup %6797 }
 0x2eb   : > { %6823 = vpow2.f32 %v10836_v19  ;;  %v2583_v59 = vmul.f32 %v10920_v48, %v2424_v41  ;;  %v2714_v49 = vadd.f32 %v2713_v24, %v2578_v2  ;;  %v2744_v35 = vadd.f32 %v2743_v7, %v13617_v39  ;;  %v6800_v22 = vpop.eup %6799  ;;  %v13620_v2 = vld [vmem:[#allocation88_spill] sm:$0xff] }
 0x2ec   : > { %6825 = vpow2.f32 %v10838_v33  ;;  %v2584_v27 = vmul.f32 %v10925_v62, %v2424_v41  ;;  %v2684_v46 = vadd.f32 %v2683_v5, %v2581_v38  ;;  %v2775_v51 = vadd.f32 %v2774_v61, %v13618_v29  ;;  %v10933_v56 = vpop.eup %6801  ;;  %v13619_v33 = vld [vmem:[#allocation86_spill] sm:$0xff]  ;;  %v5422_v29 = vld [vmem:[%s12384_s6 + $0x10] sm:$0xff] }
 0x2ed   : > { %6827 = vpow2.f32 %v10840_v30  ;;  %v2585_v54 = vmul.f32 %v6800_v22, %v2428_v6  ;;  %v2715_v57 = vadd.f32 %v2714_v49, %v2582_v32  ;;  %v2745_v19 = vadd.f32 %v2744_v35, %v2579_v23  ;;  %v10936_v60 = vpop.eup %6803  ;;  %v5332_v23 = vld [vmem:[%s12382_s4 + $0x18] sm:$0xff]  ;;  %5436 = vperm.xlu1 %6093, %v5422_v29  }
 0x2ee   : > { %6829 = vpow2.f32 %v10842_v18  ;;  %v2586_v7 = vmul.f32 %v10933_v56, %v2428_v6  ;;  %v2776_v24 = vadd.f32 %v2775_v51, %v2580_v45  ;;  %v2805_v41 = vadd.f32 %v13620_v2, %v13619_v33  ;;  %v10942_v38 = vpop.eup %6805  ;;  %5409 = vperm.xlu0 %6094, %v5332_v23  }
 0x2ef   : > { %6831 = vpow2.f32 %v10844_v28  ;;  %v2587_v61 = vmul.f32 %v10936_v60, %v2428_v6  ;;  %v2685_v30 = vadd.f32 %v2684_v46, %v2585_v54  ;;  %v2746_v5 = vadd.f32 %v2745_v19, %v2583_v59  ;;  %v6808_v32 = vpop.eup %6807  ;;  %v13621_v46 = vld [vmem:[#allocation98_spill] sm:$0xff] }
 0x2f0   : > { %6833 = vpow2.f32 %v10846_v36  ;;  %v2588_v18 = vmul.f32 %v10942_v38, %v2428_v6  ;;  %v2716_v45 = vadd.f32 %v2715_v57, %v2586_v7  ;;  %v2777_v49 = vadd.f32 %v2776_v24, %v2584_v27  ;;  %v6810_v39 = vpop.eup %6809  ;;  %v13622_v27 = vld [vmem:[#allocation52_spill] sm:$0xff]  ;;  %v13623_v54 = vld [vmem:[#allocation90_spill] sm:$0xff] }
 0x2f1   : > { %6835 = vpow2.f32 %v10848_v52  ;;  %v2589_v28 = vmul.f32 %v6808_v32, %v10894_v63  ;;  %v2747_v35 = vadd.f32 %v2746_v5, %v2587_v61  ;;  %v2806_v59 = vadd.f32 %v13621_v46, %v2805_v41  ;;  %v10957_v51 = vpop.eup %6811  ;;  %v13624_v41 = vld [vmem:[#allocation100_spill] sm:$0xff]  ;;  %v13625_v46 = vld [vmem:[#allocation63_spill] sm:$0xff] }
 0x2f2   : > { %6837 = vpow2.f32 %v10850_v50  ;;  %v2590_v36 = vmul.f32 %v6810_v39, %v10894_v63  ;;  %v2778_v6 = vadd.f32 %v2777_v49, %v2588_v18  ;;  %v2836_v57 = vadd.f32 %v13623_v54, %v13622_v27  ;;  %v10963_v52 = vpop.eup %6813  ;;  %v13628_v27 = vld [vmem:[#allocation96_spill] sm:$0xff] }
 0x2f3   : > { %6839 = vpow2.f32 %v10852_v17  ;;  %v2591_v19 = vmul.f32 %v10957_v51, %v10894_v63  ;;  %v2686_v7 = vadd.f32 %v2685_v30, %v2589_v28  ;;  %v2807_v24 = vadd.f32 %v10878_v37, %v2806_v59 }
 0x2f4   : > { %v6816_v33 = vpop.eup %6815  ;;  %6841 = vpow2.f32 %v10854_v3  ;;  %v2592_v50 = vmul.f32 %v10963_v52, %v10894_v63  ;;  %v2717_v2 = vadd.f32 %v2716_v45, %v2590_v36  ;;  %v2837_v61 = vadd.f32 %v13624_v41, %v2836_v57 }
 0x2f5   : > { %v6818_v5 = vpop.eup %6817  ;;  %6843 = vpow2.f32 %v10856_v43  ;;  %v2593_v17 = vmul.f32 %v6816_v33, %v10905_v26  ;;  %v2748_v23 = vadd.f32 %v2747_v35, %v2591_v19  ;;  %v2808_v18 = vadd.f32 %v10902_v47, %v2807_v24  ;;  %v13626_v35 = vld [vmem:[#allocation93_spill] sm:$0xff] }
 0x2f6   : > { %v10976_v30 = vpop.eup %6819  ;;  %6845 = vpow2.f32 %v10858_v16  ;;  %v2594_v3 = vmul.f32 %v6818_v5, %v10905_v26  ;;  %v2779_v37 = vadd.f32 %v2778_v6, %v2592_v50  ;;  %v2838_v63 = vadd.f32 %v10882_v55, %v2837_v61  ;;  %v13627_v6 = vld [vmem:[#allocation89_spill] sm:$0xff] }
 0x2f7   : > { %v10981_v45 = vpop.eup %6821  ;;  %v2595_v49 = vmul.f32 %v10976_v30, %v10905_v26  ;;  %v2687_v43 = vadd.f32 %v2686_v7, %v2593_v17  ;;  %v2809_v28 = vadd.f32 %v6800_v22, %v2808_v18  ;;  %v2867_v59 = vadd.f32 %v13626_v35, %v13625_v46  ;;  %v13629_v7 = vld [vmem:[#allocation102_spill] sm:$0xff] }
 0x2f8   : > { %v6824_v47 = vpop.eup %6823  ;;  %v2596_v29 = vmul.f32 %v10981_v45, %v10905_v26  ;;  %v2718_v16 = vadd.f32 %v2717_v2, %v2594_v3  ;;  %v2839_v36 = vadd.f32 %v10912_v21, %v2838_v63  ;;  %v2898_v55 = vadd.f32 %v13628_v27, %v13627_v6  ;;  %v13630_v26 = vld [vmem:[#allocation104_spill] sm:$0xff] }
 0x2f9   : > { %v6826_v54 = vpop.eup %6825  ;;  %v2597_v57 = vmul.f32 %v6824_v47, %v10886_v53  ;;  %v2749_v19 = vadd.f32 %v2748_v23, %v2595_v49  ;;  %v2810_v24 = vadd.f32 %v6808_v32, %v2809_v28  ;;  %v2868_v22 = vadd.f32 %v13629_v7, %v2867_v59 }
 0x2fa   : > { %v6828_v50 = vpop.eup %6827  ;;  %v2598_v41 = vmul.f32 %v6826_v54, %v10886_v53  ;;  %v2780_v61 = vadd.f32 %v2779_v37, %v2596_v29  ;;  %v2840_v17 = vadd.f32 %v10933_v56, %v2839_v36  ;;  %v2899_v2 = vadd.f32 %v13630_v26, %v2898_v55 }
 0x2fb   : > { %v6830_v18 = vpop.eup %6829  ;;  %v2599_v21 = vmul.f32 %v6828_v50, %v10886_v53  ;;  %v2688_v3 = vadd.f32 %v2687_v43, %v2597_v57  ;;  %v2811_v63 = vadd.f32 %v6816_v33, %v2810_v24  ;;  %v2869_v46 = vadd.f32 %v10888_v11, %v2868_v22  ;;  %v671_v24 = vpop.permute.xlu1 %670 }
 0x2fc   : > { %v6832_v35 = vpop.eup %6831  ;;  %v2600_v32 = vmul.f32 %v6830_v18, %v10886_v53  ;;  %v2719_v23 = vadd.f32 %v2718_v16, %v2598_v41  ;;  %v2841_v49 = vadd.f32 %v6810_v39, %v2840_v17  ;;  %v2900_v28 = vadd.f32 %v10891_v25, %v2899_v2  ;;  %v13631_v41 = vld [vmem:[#allocation168_spill] sm:$0xff] }
 0x2fd   : > { %v6834_v59 = vpop.eup %6833  ;;  %v2601_v37 = vmul.f32 %v6832_v35, %v10897_v8  ;;  %v2750_v56 = vadd.f32 %v2749_v19, %v2599_v21  ;;  %v2812_v29 = vadd.f32 %v6824_v47, %v2811_v63  ;;  %v2870_v36 = vadd.f32 %v10920_v48, %v2869_v46  ;;  %v13635_v46 = vld [vmem:[#allocation144_spill] sm:$0xff] }
 0x2fe   : > { %v6836_v6 = vpop.eup %6835  ;;  %v2602_v43 = vmul.f32 %v6834_v59, %v10897_v8  ;;  %v2781_v33 = vadd.f32 %v2780_v61, %v2600_v32  ;;  %v2842_v27 = vadd.f32 %v6818_v5, %v2841_v49  ;;  %v2901_v11 = vadd.f32 %v10925_v62, %v2900_v28  ;;  %v13637_v28 = vld [vmem:[#allocation146_spill] sm:$0xff] }
 0x2ff   : > { %v6838_v55 = vpop.eup %6837  ;;  %v2603_v53 = vmul.f32 %v6836_v6, %v10897_v8  ;;  %v11006_v39 = vadd.f32 %v2688_v3, %v2601_v37  ;;  %v11008_v25 = vadd.f32 %v6832_v35, %v2812_v29  ;;  %v2871_v16 = vadd.f32 %v10936_v60, %v2870_v36  ;;  %v13634_v3 = vld [vmem:[#allocation143_spill] sm:$0xff]  ;;  %v13639_v29 = vld [vmem:[#allocation148_spill] sm:$0xff] }
 0x300   : > { %v11011_v57 = vpop.eup %6839  ;;  %v2604_v48 = vmul.f32 %v6838_v55, %v10897_v8  ;;  %v11014_v47 = vadd.f32 %v2719_v23, %v2602_v43  ;;  %v2843_v19 = vadd.f32 %v6826_v54, %v2842_v27  ;;  %v2902_v5 = vadd.f32 %v10942_v38, %v2901_v11  ;;  %v13636_v23 = vld [vmem:[#allocation145_spill] sm:$0xff]  ;;  %v13641_v27 = vld [vmem:[#allocation150_spill] sm:$0xff]  ;;  %v13642_v11 = vld [vmem:[#allocation151_spill] sm:$0xff] }
 0x301   : > { %v11017_v62 = vpop.eup %6841  ;;  %v11021_v7 = vmul.f32 %v11011_v57, %v10900_v15  ;;  %v11023_v22 = vadd.f32 %v2750_v56, %v2603_v53  ;;  %v2872_v60 = vadd.f32 %v10957_v51, %v2871_v16  ;;  %v11027_v61 = vadd.f32 %v671_v24, %v13631_v41  ;;  %v13640_v43 = vld [vmem:[#allocation149_spill] sm:$0xff]  ;;  %v13643_v16 = vld [vmem:[#allocation152_spill] sm:$0xff]  ;;  %v13646_v24 = vld [vmem:[#allocation154_spill] sm:$0xff] }
 0x302   : > { %v11029_v8 = vpop.eup %6843  ;;  %v11033_v54 = vmul.f32 %v11017_v62, %v10900_v15  ;;  %v11035_v38 = vadd.f32 %v2781_v33, %v2604_v48  ;;  %v11037_v17 = vadd.f32 %v6834_v59, %v2843_v19  ;;  %v2903_v26 = vadd.f32 %v10963_v52, %v2902_v5  ;;  %v13645_v19 = vld [vmem:[#allocation153_spill] sm:$0xff]  ;;  %v13647_v41 = vld [vmem:[#allocation155_spill] sm:$0xff] }
 0x303   : > { %13632 = vst [vmem:[#allocation108_spill] sm:$0xff] %v11029_v8  ;;  %v11040_v2 = vpop.eup %6845  ;;  %v11044_v51 = vmul.f32 %v11029_v8, %v10900_v15  ;;  %v2873_v21 = vadd.f32 %v10976_v30, %v2872_v60  ;;  %v1865_v63 = vsub.f32 %v13634_v3, %v9626_v42  ;;  %v1866_v35 = vsub.f32 %v13635_v46, %v9631_v14  ;;  %v13638_v30 = vld [vmem:[#allocation147_spill] sm:$0xff]  ;;  %v13650_v46 = vld [vmem:[#allocation157_spill] sm:$0xff] }
 0x304   : > { %13633 = vst [vmem:[#allocation16_spill] sm:$0xff] %v11040_v2  ;;  %v11053_v32 = vmul.f32 %v11040_v2, %v10900_v15  ;;  %v2904_v52 = vadd.f32 %v10981_v45, %v2903_v26  ;;  %v1867_v49 = vsub.f32 %v13636_v23, %v9636_v13  ;;  %v1868_v59 = vsub.f32 %v13637_v28, %v13545_v12  ;;  %v13652_v28 = vld [vmem:[#allocation159_spill] sm:$0xff] }
 0x305   : > { %v2874_v37 = vadd.f32 %v6828_v50, %v2873_v21  ;;  %v1869_v56 = vsub.f32 %v13638_v30, %v9626_v42  ;;  %v1870_v36 = vsub.f32 %v13639_v29, %v9631_v14  ;;  %v1871_v33 = vsub.f32 %v13640_v43, %v9636_v13  ;;  %v13649_v21 = vld [vmem:[#allocation156_spill] sm:$0xff]  ;;  %v13654_v43 = vld [vmem:[#allocation161_spill] sm:$0xff] }
 0x306   : > { %v2905_v15 = vadd.f32 %v6830_v18, %v2904_v52  ;;  %v1872_v45 = vsub.f32 %v13641_v27, %v13545_v12  ;;  %v1873_v53 = vsub.f32 %v13642_v11, %v9626_v42  ;;  %v1874_v48 = vsub.f32 %v13643_v16, %v9631_v14  ;;  %v13653_v30 = vld [vmem:[#allocation160_spill] sm:$0xff]  ;;  %v13656_v11 = vld [vmem:[#allocation163_spill] sm:$0xff] }
 0x307   : > { %v11072_v50 = vadd.f32 %v6836_v6, %v2874_v37  ;;  %v1875_v5 = vsub.f32 %v13645_v19, %v9636_v13  ;;  %v1876_v60 = vsub.f32 %v13646_v24, %v13545_v12  ;;  %v1877_v18 = vsub.f32 %v13647_v41, %v9626_v42  ;;  %v13651_v6 = vld [vmem:[#allocation158_spill] sm:$0xff]  ;;  %v13657_v19 = vld [vmem:[#allocation164_spill] sm:$0xff]  ;;  %v13658_v41 = vld [vmem:[#allocation165_spill] sm:$0xff] }
 0x308   : > { %v11080_v26 = vadd.f32 %v6838_v55, %v2905_v15  ;;  %v1878_v3 = vsub.f32 %v13649_v21, %v9631_v14  ;;  %v1879_v52 = vsub.f32 %v13650_v46, %v9636_v13  ;;  %v1880_v23 = vsub.f32 %v13651_v6, %v13545_v12  ;;  %v13655_v55 = vld [vmem:[#allocation162_spill] sm:$0xff] }
 0x309   : > { %13644 = vst [vmem:[#allocation119_spill] sm:$0xff] %v11072_v50  ;;  %v1881_v37 = vsub.f32 %v13652_v28, %v9626_v42  ;;  %v1882_v29 = vsub.f32 %v13653_v30, %v9631_v14  ;;  %v1883_v27 = vsub.f32 %v13654_v43, %v9636_v13  ;;  %v1884_v15 = vsub.f32 %v13655_v55, %v13545_v12  ;;  %v13659_v46 = vld [vmem:[#allocation166_spill] sm:$0xff]  ;;  %v13660_v28 = vld [vmem:[#allocation167_spill] sm:$0xff]  ;;  %v13661_v43 = vld [vmem:[#allocation169_spill] sm:$0xff] }
 0x30a   : > { %13648 = vst [vmem:[#allocation120_spill] sm:$0xff] %v11080_v26  ;;  %v1885_v16 = vsub.f32 %v13656_v11, %v9626_v42  ;;  %v1886_v24 = vsub.f32 %v13657_v19, %v9631_v14  ;;  %v1887_v21 = vsub.f32 %v13658_v41, %v9636_v13  ;;  %v1888_v6 = vsub.f32 %v13659_v46, %v13545_v12  ;;  %v13662_v55 = vld [vmem:[#allocation170_spill] sm:$0xff]  ;;  %v13663_v11 = vld [vmem:[#allocation171_spill] sm:$0xff]  ;;  %v13664_v19 = vld [vmem:[#allocation172_spill] sm:$0xff] }
 0x30b   : > { %v1889_v30 = vsub.f32 %v13660_v28, %v9626_v42  ;;  %v1890_v4 = vsub.f32 %v13661_v43, %v9631_v14  ;;  %v1891_v9 = vsub.f32 %v13662_v55, %v9636_v13  ;;  %v1892_v34 = vsub.f32 %v13663_v11, %v13545_v12  ;;  %v13665_v41 = vld [vmem:[#allocation173_spill] sm:$0xff]  ;;  %v13666_v46 = vld [vmem:[#allocation174_spill] sm:$0xff]  ;;  %v13667_v28 = vld [vmem:[#allocation175_spill] sm:$0xff] }
 0x30c   : > { %v1893_v58 = vsub.f32 %v13664_v19, %v9626_v42  ;;  %v1894_v10 = vsub.f32 %v13665_v41, %v9631_v14  ;;  %v1895_v1 = vsub.f32 %v13666_v46, %v9636_v13  ;;  %v1896_v40 = vsub.f32 %v13667_v28, %v13545_v12 }
 0x30d   : > { %v2053_v44 = vmul.f32 1.442695, %v1865_v63  ;;  %v2055_v43 = vmul.f32 1.442695, %v1866_v35  ;;  %v2057_v2 = vmul.f32 1.442695, %v1867_v49  ;;  %v2291_v55 = vcombine.high %v11027_v61, %v11027_v61 }
 0x30e   : > { %v2059_v26 = vmul.f32 1.442695, %v1868_v59  ;;  %v2061_v11 = vmul.f32 1.442695, %v1869_v56  ;;  %v2063_v8 = vmul.f32 1.442695, %v1870_v36  ;;  %v2298_v19 = vrot.slane %v11027_v61, %v13604_v20 }
 0x30f   : > { %6847 = vpow2.f32 %v2053_v44  ;;  %v2065_v41 = vmul.f32 1.442695, %v1871_v33  ;;  %v2067_v14 = vmul.f32 1.442695, %v1872_v45  ;;  %v2069_v42 = vmul.f32 1.442695, %v1873_v53 }
 0x310   : > { %6849 = vpow2.f32 %v2055_v43  ;;  %v2071_v46 = vmul.f32 1.442695, %v1874_v48  ;;  %v2073_v13 = vmul.f32 1.442695, %v1875_v5  ;;  %v2075_v28 = vmul.f32 1.442695, %v1876_v60 }
 0x311   : > { %6851 = vpow2.f32 %v2057_v2  ;;  %v2077_v63 = vmul.f32 1.442695, %v1877_v18  ;;  %v2079_v35 = vmul.f32 1.442695, %v1878_v3  ;;  %v2081_v49 = vmul.f32 1.442695, %v1879_v52 }
 0x312   : > { %6853 = vpow2.f32 %v2059_v26  ;;  %v2083_v12 = vmul.f32 1.442695, %v1880_v23  ;;  %v2085_v59 = vmul.f32 1.442695, %v1881_v37  ;;  %v2087_v56 = vmul.f32 1.442695, %v1882_v29 }
 0x313   : > { %6855 = vpow2.f32 %v2061_v11  ;;  %v2089_v36 = vmul.f32 1.442695, %v1883_v27  ;;  %v11124_v50 = vmul.f32 1.442695, %v1884_v15  ;;  %v11126_v44 = vmul.f32 1.442695, %v1885_v16 }
 0x314   : > { %6857 = vpow2.f32 %v2063_v8  ;;  %v11128_v61 = vmul.f32 1.442695, %v1886_v24  ;;  %v11130_v33 = vmul.f32 1.442695, %v1887_v21  ;;  %v11132_v45 = vmul.f32 1.442695, %v1888_v6 }
 0x315   : > { %6859 = vpow2.f32 %v2065_v41  ;;  %v11134_v2 = vmul.f32 1.442695, %v1889_v30  ;;  %v11136_v53 = vmul.f32 1.442695, %v1890_v4  ;;  %v11138_v48 = vmul.f32 1.442695, %v1891_v9 }
 0x316   : > { %6861 = vpow2.f32 %v2067_v14  ;;  %v11140_v5 = vmul.f32 1.442695, %v1892_v34  ;;  %v11142_v60 = vmul.f32 1.442695, %v1893_v58  ;;  %v11144_v18 = vmul.f32 1.442695, %v1894_v10 }
 0x317   : > { %6863 = vpow2.f32 %v2069_v42  ;;  %v11146_v8 = vmul.f32 1.442695, %v1895_v1  ;;  %v11148_v26 = vmul.f32 1.442695, %v1896_v40  ;;  %v2305_v3 = vrot.slane %v2291_v55, %v13604_v20 }
 0x318   : > { %6865 = vpow2.f32 %v2071_v46  ;;  %v2306_v52 = vcombine.high %v2298_v19, %v2298_v19  ;;  %v2314_v4 = vrot.slane %v2298_v19, %v13604_v20  ;;  %v2690_v14 = vadd.f32 %v11006_v39, %v11021_v7 }
 0x319   : > { %6867 = vpow2.f32 %v2073_v13  ;;  %v2307_v34 = vcombine.high %v2305_v3, %v2305_v3  ;;  %v2321_v58 = vrot.slane %v2305_v3, %v13604_v20  ;;  %v2721_v42 = vadd.f32 %v11014_v47, %v11033_v54 }
 0x31a   : > { %6869 = vpow2.f32 %v2075_v28  ;;  %v2328_v9 = vrot.slane %v2306_v52, %v13604_v20  ;;  %v2336_v40 = vcombine.high %v2314_v4, %v2314_v4  ;;  %v2456_v1 = vrot.slane %v2314_v4, %v13615_v0 }
 0x31b   : > { %6871 = vpow2.f32 %v2077_v63  ;;  %v2335_v10 = vrot.slane %v2307_v34, %v13604_v20  ;;  %v2337_v23 = vcombine.high %v2321_v58, %v2321_v58  ;;  %v11161_v37 = vrot.slane %v2321_v58, %v13615_v0 }
 0x31c   : > { %v6848_v13 = vpop.eup %6847  ;;  %6873 = vpow2.f32 %v2079_v35  ;;  %v2338_v39 = vcombine.high %v2328_v9, %v2328_v9  ;;  %v2460_v7 = vrot.slane %v2328_v9, %v13615_v0  ;;  %v11165_v47 = vrot.slane %v2336_v40, %v13615_v0 }
 0x31d   : > { %v6850_v54 = vpop.eup %6849  ;;  %6875 = vpow2.f32 %v2081_v49  ;;  %v2339_v29 = vcombine.high %v2335_v10, %v2335_v10  ;;  %v11168_v27 = vrot.slane %v2335_v10, %v13615_v0  ;;  %v11171_v15 = vrot.slane %v2337_v23, %v13615_v0 }
 0x31e   : > { %v11173_v16 = vpop.eup %6851  ;;  %6877 = vpow2.f32 %v2083_v12  ;;  %v11176_v24 = vrot.slane %v2338_v39, %v13615_v0  ;;  %v2609_v21 = vmul.f32 %v6848_v13, %v10908_v31  ;;  %v2610_v6 = vmul.f32 %v6850_v54, %v10908_v31 }
 0x31f   : > { %v11180_v30 = vpop.eup %6853  ;;  %6879 = vpow2.f32 %v2085_v59  ;;  %v11183_v43 = vrot.slane %v2339_v29, %v13615_v0  ;;  %v2611_v55 = vmul.f32 %v11173_v16, %v10908_v31  ;;  %v2752_v11 = vadd.f32 %v11023_v22, %v11044_v51 }
 0x320   : > { %v6856_v12 = vpop.eup %6855  ;;  %6881 = vpow2.f32 %v2087_v56  ;;  %v2612_v19 = vmul.f32 %v11180_v30, %v10908_v31  ;;  %v2691_v41 = vadd.f32 %v2690_v14, %v2609_v21  ;;  %v2722_v46 = vadd.f32 %v2721_v42, %v2610_v6 }
 0x321   : > { %13668 = vst [vmem:[#allocation121_spill] sm:$0xff] %v11183_v43  ;;  %v6858_v28 = vpop.eup %6857  ;;  %6883 = vpow2.f32 %v2089_v36  ;;  %v2613_v63 = vmul.f32 %v6856_v12, %v2456_v1  ;;  %v2753_v35 = vadd.f32 %v2752_v11, %v2611_v55  ;;  %v2783_v49 = vadd.f32 %v11035_v38, %v11053_v32 }
 0x322   : > { %v11193_v59 = vpop.eup %6859  ;;  %6885 = vpow2.f32 %v11124_v50  ;;  %v2614_v3 = vmul.f32 %v6858_v28, %v2456_v1  ;;  %v2814_v22 = vadd.f32 %v11011_v57, %v11008_v25  ;;  %v2845_v31 = vadd.f32 %v11017_v62, %v11037_v17  ;;  %v5325_v25 = vld [vmem:[%s13137_s3] sm:$0xff]  ;;  %s7159_s3 = scalar_lea.vmem %s7158_s2, 32 }
 0x323   : > { %v11200_v51 = vpop.eup %6861  ;;  %6887 = vpow2.f32 %v11126_v44  ;;  %v2615_v56 = vmul.f32 %v11193_v59, %v2456_v1  ;;  %v2692_v36 = vadd.f32 %v2691_v41, %v2613_v63  ;;  %v2784_v52 = vadd.f32 %v2783_v49, %v2612_v19  ;;  %5370 = vperm.xlu0 %6094, %v5325_v25   ;;  %p7161_p3 = scmp.lt.s32.totalorder %s7159_s3, %s7153_s1 }
 0x324   : > { %v6864_v38 = vpop.eup %6863  ;;  %6889 = vpow2.f32 %v11128_v61  ;;  %v2616_v32 = vmul.f32 %v11200_v51, %v2456_v1  ;;  %v2723_v50 = vadd.f32 %v2722_v46, %v2614_v3  ;;  %v2815_v4 = vadd.f32 %v6848_v13, %v2814_v22  ;;  %v13670_v46 = vld [vmem:[#allocation108_spill] sm:$0xff] }
 0x325   : > { %v6866_v57 = vpop.eup %6865  ;;  %6891 = vpow2.f32 %v11130_v33  ;;  %v2617_v62 = vmul.f32 %v6864_v38, %v2460_v7  ;;  %v2754_v17 = vadd.f32 %v2753_v35, %v2615_v56  ;;  %v2846_v44 = vadd.f32 %v6850_v54, %v2845_v31  ;;  %p7162_p4 = por %p7161_p3, %p7160_p2 }
 0x326   : > { %v11210_v14 = vpop.eup %6867  ;;  %6893 = vpow2.f32 %v11132_v45  ;;  %v2618_v61 = vmul.f32 %v6866_v57, %v2460_v7  ;;  %v2785_v34 = vadd.f32 %v2784_v52, %v2616_v32  ;;  %v2816_v58 = vadd.f32 %v6856_v12, %v2815_v4 }
 0x327   : > { %v11213_v42 = vpop.eup %6869  ;;  %6895 = vpow2.f32 %v11134_v2  ;;  %v2619_v9 = vmul.f32 %v11210_v14, %v2460_v7  ;;  %v2693_v40 = vadd.f32 %v2692_v36, %v2617_v62  ;;  %v2847_v1 = vadd.f32 %v6858_v28, %v2846_v44  ;;  %v7147_v62 = vld [vmem:[%s7464_s26 + $0x10] sm:$0xff]  ;;  %v13674_v44 = vld [vmem:[#allocation111_spill] sm:$0xff]  ;;  %p7163_p5 = pnand %p7162_p4, %p7156_p1 }
 0x328   : > { %v6872_v33 = vpop.eup %6871  ;;  %6897 = vpow2.f32 %v11136_v53  ;;  %v2620_v10 = vmul.f32 %v11213_v42, %v2460_v7  ;;  %v2724_v23 = vadd.f32 %v2723_v50, %v2618_v61  ;;  %v2817_v13 = vadd.f32 %v6864_v38, %v2816_v58  ;;  %v13671_v38 = vld [vmem:[#allocation120_spill] sm:$0xff]  ;;  %v3027_v50 = vpop.permute.xlu0 %3026 }
 0x329   : > { %v6874_v39 = vpop.eup %6873  ;;  %6899 = vpow2.f32 %v11138_v48  ;;  %v2621_v45 = vmul.f32 %v6872_v33, %v11165_v47  ;;  %v2755_v54 = vadd.f32 %v2754_v17, %v2619_v9  ;;  %v2848_v29 = vadd.f32 %v6866_v57, %v2847_v1  ;;  %v13673_v17 = vld [vmem:[#allocation242_spill] sm:$0xff] }
 0x32a   : > { %v6876_v21 = vpop.eup %6875  ;;  %6901 = vpow2.f32 %v11140_v5  ;;  %v2622_v2 = vmul.f32 %v6874_v39, %v11165_v47  ;;  %v2786_v6 = vadd.f32 %v2785_v34, %v2620_v10  ;;  %v2818_v55 = vadd.f32 %v6872_v33, %v2817_v13  ;;  %v13669_v5 = vld [vmem:[#allocation119_spill] sm:$0xff]  ;;  %v3047_v13 = vpop.permute.xlu1 %3046 }
 0x32b   : > { %v11223_v11 = vpop.eup %6877  ;;  %6903 = vpow2.f32 %v11142_v60  ;;  %v2623_v53 = vmul.f32 %v6876_v21, %v11165_v47  ;;  %v2694_v7 = vadd.f32 %v2693_v40, %v2621_v45  ;;  %v2849_v12 = vadd.f32 %v6874_v39, %v2848_v29 }
 0x32c   : > { %v6880_v48 = vpop.eup %6879  ;;  %6905 = vpow2.f32 %v11144_v18  ;;  %v2624_v19 = vmul.f32 %v11223_v11, %v11165_v47  ;;  %v2725_v41 = vadd.f32 %v2724_v23, %v2622_v2  ;;  %v2876_v28 = vadd.f32 %v13670_v46, %v13669_v5 }
 0x32d   : > { %v6882_v63 = vpop.eup %6881  ;;  %6907 = vpow2.f32 %v11146_v8  ;;  %v2625_v35 = vmul.f32 %v6880_v48, %v11176_v24  ;;  %v2756_v60 = vadd.f32 %v2755_v54, %v2623_v53  ;;  %v2819_v49 = vadd.f32 %v6880_v48, %v2818_v55  ;;  %v13672_v8 = vld [vmem:[#allocation16_spill] sm:$0xff] }
 0x32e   : > { %v6884_v3 = vpop.eup %6883  ;;  %6909 = vpow2.f32 %v11148_v26  ;;  %v2626_v18 = vmul.f32 %v6882_v63, %v11176_v24  ;;  %v2787_v22 = vadd.f32 %v2786_v6, %v2624_v19  ;;  %v2850_v31 = vadd.f32 %v6882_v63, %v2849_v12  ;;  %v13676_v12 = vld [vmem:[#allocation112_spill] sm:$0xff] }
 0x32f   : > { %v6886_v47 = vpop.eup %6885  ;;  %v2627_v56 = vmul.f32 %v6884_v3, %v11176_v24  ;;  %v2695_v36 = vadd.f32 %v2694_v7, %v2625_v35  ;;  %v2877_v52 = vadd.f32 %v11173_v16, %v2876_v28  ;;  %v2907_v32 = vadd.f32 %v13672_v8, %v13671_v38  ;;  %v13675_v7 = vld [vmem:[#allocation244_spill] sm:$0xff]  ;;  %v13684_v8 = vld [vmem:[#allocation35_spill] sm:$0xff] }
 0x330   : > { %v6888_v4 = vpop.eup %6887  ;;  %v2628_v25 = vmul.f32 %v6886_v47, %v11176_v24  ;;  %v2726_v57 = vadd.f32 %v2725_v41, %v2626_v18  ;;  %v3035_v26 = vmul.f32 %v7147_v62, %v3027_v50  ;;  %v4241_v61 = vsub.f32 %v13674_v44, %v13673_v17 }
 0x331   : > { %v6890_v34 = vpop.eup %6889  ;;  %v2629_v58 = vmul.f32 %v6888_v4, %v11161_v37  ;;  %v2757_v9 = vadd.f32 %v2756_v60, %v2627_v56  ;;  %v2820_v40 = vadd.f32 %v6888_v4, %v2819_v49  ;;  %v2878_v16 = vadd.f32 %v11193_v59, %v2877_v52 }
 0x332   : > { %v6892_v1 = vpop.eup %6891  ;;  %v2630_v33 = vmul.f32 %v6890_v34, %v11161_v37  ;;  %v2788_v10 = vadd.f32 %v2787_v22, %v2628_v25  ;;  %v2851_v23 = vadd.f32 %v6890_v34, %v2850_v31  ;;  %v2908_v24 = vadd.f32 %v11180_v30, %v2907_v32  ;;  %v13680_v22 = vld [vmem:[#allocation246_spill] sm:$0xff]  ;;  %v13681_v31 = vld [vmem:[#allocation113_spill] sm:$0xff] }
 0x333   : > { %v6894_v39 = vpop.eup %6893  ;;  %v2631_v45 = vmul.f32 %v6892_v1, %v11161_v37  ;;  %v2696_v54 = vadd.f32 %v2695_v36, %v2629_v58  ;;  %v2879_v29 = vadd.f32 %v11210_v14, %v2878_v16  ;;  %v11250_v2 = vadd.f32 %v3047_v13, %v3035_v26  ;;  %v13685_v32 = vld [vmem:[#allocation114_spill] sm:$0xff]  ;;  %v13693_v58 = vld [vmem:[#allocation181_spill] sm:$0xff] }
 0x334   : > { %v6896_v6 = vpop.eup %6895  ;;  %v2632_v55 = vmul.f32 %v6894_v39, %v11161_v37  ;;  %v2727_v59 = vadd.f32 %v2726_v57, %v2630_v33  ;;  %v2909_v53 = vadd.f32 %v11200_v51, %v2908_v24  ;;  %v4243_v56 = vsub.f32 %v13681_v31, %v13680_v22  ;;  %v13689_v57 = vld [vmem:[#allocation180_spill] sm:$0xff]  ;;  %v13697_v33 = vld [vmem:[#allocation182_spill] sm:$0xff]  ;;  %v13710_v31 = vld [vmem:[#allocation187_spill] sm:$0xff] }
 0x335   : > { %v6898_v19 = vpop.eup %6897  ;;  %v2633_v30 = vmul.f32 %v6896_v6, %v11168_v27  ;;  %v2758_v41 = vadd.f32 %v2757_v9, %v2631_v45  ;;  %v11257_v5 = vadd.f32 %v6896_v6, %v2820_v40  ;;  %v2880_v46 = vadd.f32 %v6876_v21, %v2879_v29  ;;  %v13700_v45 = vld [vmem:[#allocation11_spill] sm:$0xff] }
 0x336   : > { %v6900_v28 = vpop.eup %6899  ;;  %v2634_v14 = vmul.f32 %v6898_v19, %v11168_v27  ;;  %v2789_v63 = vadd.f32 %v2788_v10, %v2632_v55  ;;  %v11260_v35 = vadd.f32 %v6898_v19, %v2851_v23  ;;  %v2910_v37 = vadd.f32 %v11213_v42, %v2909_v53  ;;  %v13698_v23 = vld [vmem:[#allocation12_spill] sm:$0xff]  ;;  %v13701_v29 = vld [vmem:[#allocation115_spill] sm:$0xff]  ;;  %v13702_v55 = vld [vmem:[#allocation13_spill] sm:$0xff] }
 0x337   : > { %13677 = vst [vmem:[#allocation72_spill] sm:$0xff] %v11257_v5  ;;  %v6902_v60 = vpop.eup %6901  ;;  %v2635_v51 = vmul.f32 %v6900_v28, %v11168_v27  ;;  %v11264_v49 = vadd.f32 %v2696_v54, %v2633_v30  ;;  %v2881_v18 = vadd.f32 %v6884_v3, %v2880_v46  ;;  %v4244_v42 = vsub.f32 %v13685_v32, %v13684_v8  ;;  %v13703_v53 = vld [vmem:[#allocation24_spill] sm:$0xff]  ;;  %v13705_v46 = vld [vmem:[#allocation183_spill] sm:$0xff] }
 0x338   : > { %13678 = vst [vmem:[#allocation122_spill] sm:$0xff] %v11260_v35  ;;  %v11268_v36 = vpop.eup %6903  ;;  %v2636_v21 = vmul.f32 %v6902_v60, %v11168_v27  ;;  %v11271_v52 = vadd.f32 %v2727_v59, %v2634_v14  ;;  %v2911_v38 = vadd.f32 %v11223_v11, %v2910_v37  ;;  %v4245_v62 = vsub.f32 %v13689_v57, %v13673_v17  ;;  %v13704_v30 = vld [vmem:[#allocation116_spill] sm:$0xff] }
 0x339   : > { %13679 = vst [vmem:[#allocation123_spill] sm:$0xff] %v11264_v49  ;;  %13682 = vst [vmem:[#allocation124_spill] sm:$0xff] %v11268_v36  ;;  %v11276_v50 = vpop.eup %6905  ;;  %v11280_v4 = vmul.f32 %v11268_v36, %v11171_v15  ;;  %v11282_v3 = vadd.f32 %v2758_v41, %v2635_v51  ;;  %v2882_v25 = vadd.f32 %v6892_v1, %v2881_v18  ;;  %v13709_v51 = vld [vmem:[#allocation186_spill] sm:$0xff] }
 0x33a   : > { %13683 = vst [vmem:[#allocation125_spill] sm:$0xff] %v11271_v52  ;;  %13686 = vst [vmem:[#allocation126_spill] sm:$0xff] %v11276_v50  ;;  %v11286_v27 = vpop.eup %6907  ;;  %v11290_v11 = vmul.f32 %v11276_v50, %v11171_v15  ;;  %v11292_v26 = vadd.f32 %v2789_v63, %v2636_v21  ;;  %v2912_v34 = vadd.f32 %v6886_v47, %v2911_v38  ;;  %v13708_v63 = vld [vmem:[#allocation185_spill] sm:$0xff]  ;;  %v13711_v38 = vld [vmem:[#allocation188_spill] sm:$0xff] }
 0x33b   : > { %13687 = vst [vmem:[#allocation127_spill] sm:$0xff] %v11280_v4  ;;  %13688 = vst [vmem:[#allocation128_spill] sm:$0xff] %v11282_v3  ;;  %v4246_v9 = vsub.f32 %v13693_v58, %v13675_v7  ;;  %v11296_v40 = vpop.eup %6909  ;;  %v11300_v16 = vmul.f32 %v11286_v27, %v11171_v15  ;;  %v11302_v1 = vadd.f32 %v6900_v28, %v2882_v25  ;;  %v13712_v25 = vld [vmem:[#allocation189_spill] sm:$0xff]  ;;  %v13714_v58 = vld [vmem:[#allocation191_spill] sm:$0xff] }
 0x33c   : > { %13690 = vst [vmem:[#allocation129_spill] sm:$0xff] %v11286_v27  ;;  %13691 = vst [vmem:[#allocation130_spill] sm:$0xff] %v11290_v11  ;;  %v4247_v10 = vsub.f32 %v13697_v33, %v13680_v22  ;;  %v4248_v24 = vsub.f32 %v13698_v23, %v13684_v8  ;;  %v11310_v47 = vmul.f32 %v11296_v40, %v11171_v15  ;;  %v13715_v23 = vld [vmem:[#allocation192_spill] sm:$0xff]  ;;  %v13768_v52 = vld [vmem:[#allocation58_spill] sm:$0xff] }
 0x33d   : > { %13692 = vst [vmem:[#allocation131_spill] sm:$0xff] %v11292_v26  ;;  %13694 = vst [vmem:[#allocation132_spill] sm:$0xff] %v11296_v40  ;;  %v2913_v13 = vadd.f32 %v6894_v39, %v2912_v34  ;;  %v4249_v54 = vsub.f32 %v13700_v45, %v13673_v17  ;;  %v4250_v6 = vsub.f32 %v13701_v29, %v13675_v7  ;;  %v13707_v39 = vld [vmem:[#allocation184_spill] sm:$0xff]  ;;  %v13716_v45 = vld [vmem:[#allocation193_spill] sm:$0xff]  ;;  %v4433_v40 = vmul.f32 1.442695, %v4243_v56 }
 0x33e   : > { %13695 = vst [vmem:[#allocation133_spill] sm:$0xff] %v11300_v16  ;;  %13696 = vst [vmem:[#allocation134_spill] sm:$0xff] %v11302_v1  ;;  %v4251_v59 = vsub.f32 %v13702_v55, %v13680_v22  ;;  %v4252_v19 = vsub.f32 %v13703_v53, %v13684_v8  ;;  %v4253_v41 = vsub.f32 %v13704_v30, %v13673_v17  ;;  %v13717_v55 = vld [vmem:[#allocation194_spill] sm:$0xff]  ;;  %v13718_v30 = vld [vmem:[#allocation196_spill] sm:$0xff]  ;;  %v4439_v27 = vmul.f32 1.442695, %v4246_v9  ;;  %v655_v16 = vpop.permute.xlu0 %654 }
 0x33f   : > { %13699 = vst [vmem:[#allocation135_spill] sm:$0xff] %v11310_v47  ;;  %v4254_v15 = vsub.f32 %v13705_v46, %v13675_v7  ;;  %v11324_v28 = vadd.f32 %v6902_v60, %v2913_v13  ;;  %v4255_v14 = vsub.f32 %v13707_v39, %v13680_v22  ;;  %v4256_v37 = vsub.f32 %v13708_v63, %v13684_v8  ;;  %v13713_v60 = vld [vmem:[#allocation190_spill] sm:$0xff]  ;;  %v13719_v39 = vld [vmem:[#allocation197_spill] sm:$0xff] }
 0x340   : > { %v4257_v18 = vsub.f32 %v13709_v51, %v13673_v17  ;;  %v4258_v21 = vsub.f32 %v13710_v31, %v13675_v7  ;;  %v4259_v32 = vsub.f32 %v13711_v38, %v13680_v22  ;;  %v4260_v57 = vsub.f32 %v13712_v25, %v13684_v8  ;;  %v13720_v51 = vld [vmem:[#allocation198_spill] sm:$0xff]  ;;  %v13721_v38 = vld [vmem:[#allocation199_spill] sm:$0xff]  ;;  %v13746_v47 = vld [vmem:[#allocation257_spill] sm:$0xff] }
 0x341   : > { %13706 = vst [vmem:[#allocation136_spill] sm:$0xff] %v11324_v28  ;;  %v4261_v34 = vsub.f32 %v13713_v60, %v13673_v17  ;;  %v4262_v33 = vsub.f32 %v13714_v58, %v13675_v7  ;;  %v4263_v13 = vsub.f32 %v13715_v23, %v13680_v22  ;;  %v4264_v29 = vsub.f32 %v13716_v45, %v13684_v8  ;;  %v13722_v60 = vld [vmem:[#allocation200_spill] sm:$0xff]  ;;  %v13723_v23 = vld [vmem:[#allocation201_spill] sm:$0xff] }
 0x342   : > { %v4265_v53 = vsub.f32 %v13717_v55, %v13673_v17  ;;  %v4266_v46 = vsub.f32 %v13718_v30, %v13675_v7  ;;  %v4267_v63 = vsub.f32 %v13719_v39, %v13680_v22  ;;  %v4268_v31 = vsub.f32 %v13720_v51, %v13684_v8  ;;  %v13724_v55 = vld [vmem:[#allocation203_spill] sm:$0xff] }
 0x343   : > { %v4269_v25 = vsub.f32 %v13721_v38, %v13673_v17  ;;  %v4270_v58 = vsub.f32 %v13722_v60, %v13675_v7  ;;  %v4271_v45 = vsub.f32 %v13723_v23, %v13680_v22  ;;  %v4272_v48 = vsub.f32 %v13724_v55, %v13684_v8 }
 0x344   : > { %v4429_v30 = vmul.f32 1.442695, %v4241_v61  ;;  %v13725_v39 = vsub.f32 %v13676_v12, %v13675_v7  ;;  %v4435_v28 = vmul.f32 1.442695, %v4244_v42  ;;  %v4667_v38 = vcombine.high %v11250_v2, %v11250_v2 }
 0x345   : > { %v4437_v60 = vmul.f32 1.442695, %v4245_v62  ;;  %v4441_v23 = vmul.f32 1.442695, %v4247_v10  ;;  %v4443_v1 = vmul.f32 1.442695, %v4248_v24 }
 0x346   : > { %v4431_v51 = vmul.f32 1.442695, %v13725_v39  ;;  %6911 = vpow2.f32 %v4429_v30  ;;  %v4445_v55 = vmul.f32 1.442695, %v4249_v54  ;;  %v4447_v50 = vmul.f32 1.442695, %v4250_v6 }
 0x347   : > { %v4449_v44 = vmul.f32 1.442695, %v4251_v59  ;;  %v4451_v61 = vmul.f32 1.442695, %v4252_v19  ;;  %v4453_v35 = vmul.f32 1.442695, %v4253_v41 }
 0x348   : > { %6913 = vpow2.f32 %v4431_v51  ;;  %v4455_v12 = vmul.f32 1.442695, %v4254_v15  ;;  %v4457_v39 = vmul.f32 1.442695, %v4255_v14  ;;  %v4459_v56 = vmul.f32 1.442695, %v4256_v37 }
 0x349   : > { %6915 = vpow2.f32 %v4433_v40  ;;  %v4461_v42 = vmul.f32 1.442695, %v4257_v18  ;;  %v4463_v36 = vmul.f32 1.442695, %v4258_v21  ;;  %v4465_v5 = vmul.f32 1.442695, %v4259_v32 }
 0x34a   : > { %6917 = vpow2.f32 %v4435_v28  ;;  %v4467_v62 = vmul.f32 1.442695, %v4260_v57  ;;  %v11370_v9 = vmul.f32 1.442695, %v4261_v34  ;;  %v11372_v10 = vmul.f32 1.442695, %v4262_v33 }
 0x34b   : > { %6919 = vpow2.f32 %v4437_v60  ;;  %v11374_v24 = vmul.f32 1.442695, %v4263_v13  ;;  %v11376_v40 = vmul.f32 1.442695, %v4264_v29  ;;  %v11378_v54 = vmul.f32 1.442695, %v4265_v53 }
 0x34c   : > { %6921 = vpow2.f32 %v4439_v27  ;;  %v11380_v6 = vmul.f32 1.442695, %v4266_v46  ;;  %v11382_v59 = vmul.f32 1.442695, %v4267_v63  ;;  %v11384_v19 = vmul.f32 1.442695, %v4268_v31 }
 0x34d   : > { %6923 = vpow2.f32 %v4441_v23  ;;  %v11386_v27 = vmul.f32 1.442695, %v4269_v25  ;;  %v11388_v41 = vmul.f32 1.442695, %v4270_v58  ;;  %v11390_v15 = vmul.f32 1.442695, %v4271_v45 }
 0x34e   : > { %6925 = vpow2.f32 %v4443_v1  ;;  %v11392_v28 = vmul.f32 1.442695, %v4272_v48  ;;  %v4674_v14 = vrot.slane %v11250_v2, %v13604_v20  ;;  %v4681_v1 = vrot.slane %v4667_v38, %v13604_v20  ;;  %v13726_v37 = vld [vmem:[#allocation17_spill] sm:$0xff]  ;;  %v13727_v18 = vld [vmem:[#allocation31_spill] sm:$0xff]  ;;  %v13730_v33 = vld [vmem:[#allocation18_spill] sm:$0xff] }
 0x34f   : > { %6927 = vpow2.f32 %v4445_v55  ;;  %v5062_v21 = vadd.f32 %v13727_v18, %v13726_v37  ;;  %v13728_v32 = vld [vmem:[#allocation73_spill] sm:$0xff]  ;;  %v13729_v57 = vld [vmem:[#allocation51_spill] sm:$0xff]  ;;  %v13731_v13 = vld [vmem:[#allocation110_spill] sm:$0xff] }
 0x350   : > { %6929 = vpow2.f32 %v4447_v50  ;;  %v5093_v34 = vadd.f32 %v13729_v57, %v13728_v32  ;;  %v5124_v29 = vadd.f32 %v13731_v13, %v13730_v33  ;;  %v4682_v53 = vcombine.high %v4674_v14, %v4674_v14  ;;  %v13732_v46 = vld [vmem:[#allocation19_spill] sm:$0xff] }
 0x351   : > { %6931 = vpow2.f32 %v4449_v44  ;;  %v4683_v50 = vcombine.high %v4681_v1, %v4681_v1  ;;  %v4690_v48 = vrot.slane %v4674_v14, %v13604_v20  ;;  %v4697_v2 = vrot.slane %v4681_v1, %v13604_v20  ;;  %v13733_v31 = vld [vmem:[#allocation75_spill] sm:$0xff] }
 0x352   : > { %6933 = vpow2.f32 %v4451_v61  ;;  %v5063_v63 = vadd.f32 %v5062_v21, %v13732_v46  ;;  %v5094_v25 = vadd.f32 %v5093_v34, %v13733_v31  ;;  %v4704_v45 = vrot.slane %v4682_v53, %v13604_v20  ;;  %v13735_v32 = vld [vmem:[#allocation107_spill] sm:$0xff]  ;;  %v13737_v31 = vld [vmem:[#allocation77_spill] sm:$0xff] }
 0x353   : > { %6935 = vpow2.f32 %v4453_v35  ;;  %v11407_v58 = vpop.eup %6911  ;;  %v4711_v30 = vrot.slane %v4683_v50, %v13604_v20  ;;  %v4712_v51 = vcombine.high %v4690_v48, %v4690_v48  ;;  %v4713_v60 = vcombine.high %v4697_v2, %v4697_v2 }
 0x354   : > { %6937 = vpow2.f32 %v4455_v12  ;;  %v4832_v35 = vrot.slane %v4690_v48, %v13615_v0  ;;  %v11415_v23 = vrot.slane %v4697_v2, %v13615_v0  ;;  %v4714_v44 = vcombine.high %v4704_v45, %v4704_v45  ;;  %v13736_v48 = vld [vmem:[#allocation21_spill] sm:$0xff] }
 0x355   : > { %v11411_v38 = vpop.eup %6913  ;;  %6939 = vpow2.f32 %v4457_v39  ;;  %v4715_v61 = vcombine.high %v4711_v30, %v4711_v30  ;;  %v4836_v12 = vrot.slane %v4704_v45, %v13615_v0  ;;  %v11423_v1 = vrot.slane %v4712_v51, %v13615_v0 }
 0x356   : > { %v11417_v55 = vpop.eup %6915  ;;  %6941 = vpow2.f32 %v4459_v56  ;;  %v11426_v39 = vrot.slane %v4711_v30, %v13615_v0  ;;  %v11429_v37 = vrot.slane %v4713_v60, %v13615_v0  ;;  %v11434_v56 = vrot.slane %v4714_v44, %v13615_v0  ;;  %v13738_v30 = vld [vmem:[#allocation20_spill] sm:$0xff]  ;;  %v13739_v44 = vld [vmem:[#allocation247_spill] sm:$0xff] }
 0x357   : > { %v11420_v14 = vpop.eup %6917  ;;  %6943 = vpow2.f32 %v4461_v42  ;;  %v11437_v21 = vrot.slane %v4715_v61, %v13615_v0  ;;  %v4985_v42 = vmul.f32 %v11407_v58, %v13735_v32  ;;  %v4986_v34 = vmul.f32 %v11411_v38, %v13735_v32 }
 0x358   : > { %v11431_v18 = vpop.eup %6919  ;;  %6945 = vpow2.f32 %v4463_v36  ;;  %v4987_v33 = vmul.f32 %v11417_v55, %v13735_v32  ;;  %v11449_v36 = vmul.f32 %v11420_v14, %v13735_v32  ;;  %v5064_v2 = vadd.f32 %v5063_v63, %v13736_v48  ;;  %v13740_v32 = vld [vmem:[#allocation74_spill] sm:$0xff]  ;;  %v13741_v63 = vld [vmem:[#allocation79_spill] sm:$0xff] }
 0x359   : > { %13734 = vst [vmem:[#allocation137_spill] sm:$0xff] %v11437_v21  ;;  %v11441_v57 = vpop.eup %6921  ;;  %6947 = vpow2.f32 %v4465_v5  ;;  %v4989_v53 = vmul.f32 %v11431_v18, %v4832_v35  ;;  %v5095_v45 = vadd.f32 %v5094_v25, %v13737_v31  ;;  %v5125_v51 = vadd.f32 %v5124_v29, %v13738_v30  ;;  %v13742_v25 = vld [vmem:[#allocation249_spill] sm:$0xff]  ;;  %v13743_v29 = vld [vmem:[#allocation22_spill] sm:$0xff] }
 0x35a   : > { %v11451_v13 = vpop.eup %6923  ;;  %6949 = vpow2.f32 %v4467_v62  ;;  %v4990_v50 = vmul.f32 %v11441_v57, %v4832_v35  ;;  %v5065_v61 = vadd.f32 %v5064_v2, %v13739_v44  ;;  %v5155_v48 = vadd.f32 %v13741_v63, %v13740_v32  ;;  %v13745_v44 = vld [vmem:[#allocation76_spill] sm:$0xff] }
 0x35b   : > { %v11456_v5 = vpop.eup %6925  ;;  %6951 = vpow2.f32 %v11370_v9  ;;  %v4991_v46 = vmul.f32 %v11451_v13, %v4832_v35  ;;  %v5096_v31 = vadd.f32 %v5095_v45, %v13742_v25  ;;  %v5126_v30 = vadd.f32 %v5125_v51, %v13743_v29  ;;  %v13747_v25 = vld [vmem:[#allocation251_spill] sm:$0xff] }
 0x35c   : > { %v11462_v60 = vpop.eup %6927  ;;  %6953 = vpow2.f32 %v11372_v10  ;;  %v4992_v62 = vmul.f32 %v11456_v5, %v4832_v35  ;;  %v13744_v35 = vld [vmem:[#allocation255_spill] sm:$0xff]  ;;  %v5156_v32 = vadd.f32 %v5155_v48, %v13745_v44 }
 0x35d   : > { %v11469_v43 = vpop.eup %6929  ;;  %6955 = vpow2.f32 %v11374_v24  ;;  %v4993_v9 = vmul.f32 %v11462_v60, %v4836_v12  ;;  %v5066_v2 = vadd.f32 %v5065_v61, %v13744_v35  ;;  %v5097_v45 = vadd.f32 %v5096_v31, %v13746_v47  ;;  %v13748_v61 = vld [vmem:[#allocation78_spill] sm:$0xff]  ;;  %v13749_v47 = vld [vmem:[#allocation259_spill] sm:$0xff] }
 0x35e   : > { %v11475_v26 = vpop.eup %6931  ;;  %6957 = vpow2.f32 %v11376_v40  ;;  %v4994_v10 = vmul.f32 %v11469_v43, %v4836_v12  ;;  %v5127_v51 = vadd.f32 %v5126_v30, %v13747_v25  ;;  %v5157_v35 = vadd.f32 %v5156_v32, %v13748_v61 }
 0x35f   : > { %v11481_v63 = vpop.eup %6933  ;;  %6959 = vpow2.f32 %v11378_v54  ;;  %v4995_v24 = vmul.f32 %v11475_v26, %v4836_v12  ;;  %v5067_v3 = vadd.f32 %v5066_v2, %v4985_v42  ;;  %v5098_v44 = vadd.f32 %v5097_v45, %v4986_v34  ;;  %v13750_v42 = vld [vmem:[#allocation253_spill] sm:$0xff] }
 0x360   : > { %v11487_v29 = vpop.eup %6935  ;;  %6961 = vpow2.f32 %v11380_v6  ;;  %v4996_v40 = vmul.f32 %v11481_v63, %v4836_v12  ;;  %v5128_v31 = vadd.f32 %v5127_v51, %v13749_v47  ;;  %v5158_v2 = vadd.f32 %v5157_v35, %v13750_v42 }
 0x361   : > { %v11492_v48 = vpop.eup %6937  ;;  %6963 = vpow2.f32 %v11382_v59  ;;  %v4997_v54 = vmul.f32 %v11487_v29, %v11423_v1  ;;  %v5068_v12 = vadd.f32 %v5067_v3, %v4989_v53  ;;  %v5099_v34 = vadd.f32 %v5098_v44, %v4990_v50  ;;  %v13751_v3 = vld [vmem:[#allocation260_spill] sm:$0xff] }
 0x362   : > { %v11498_v30 = vpop.eup %6939  ;;  %6965 = vpow2.f32 %v11384_v19  ;;  %v4998_v6 = vmul.f32 %v11492_v48, %v11423_v1  ;;  %v5129_v45 = vadd.f32 %v5128_v31, %v4987_v33  ;;  %v5159_v53 = vadd.f32 %v5158_v2, %v13751_v3 }
 0x363   : > { %v11504_v32 = vpop.eup %6941  ;;  %6967 = vpow2.f32 %v11386_v27  ;;  %v4999_v59 = vmul.f32 %v11498_v30, %v11423_v1  ;;  %v5069_v51 = vadd.f32 %v5068_v12, %v4993_v9  ;;  %v5100_v35 = vadd.f32 %v5099_v34, %v4994_v10  ;;  %v13752_v12 = vld [vmem:[#allocation41_spill] sm:$0xff] }
 0x364   : > { %v11509_v25 = vpop.eup %6943  ;;  %6969 = vpow2.f32 %v11388_v41  ;;  %v5000_v19 = vmul.f32 %v11504_v32, %v11423_v1  ;;  %v5130_v50 = vadd.f32 %v5129_v45, %v4991_v46  ;;  %v5160_v9 = vadd.f32 %v5159_v53, %v11449_v36  ;;  %v13753_v10 = vld [vmem:[#allocation53_spill] sm:$0xff] }
 0x365   : > { %v11515_v61 = vpop.eup %6945  ;;  %6971 = vpow2.f32 %v11390_v15  ;;  %v5001_v27 = vmul.f32 %v11509_v25, %v11434_v56  ;;  %v5070_v1 = vadd.f32 %v5069_v51, %v4997_v54  ;;  %v5101_v47 = vadd.f32 %v5100_v35, %v4998_v6  ;;  %v13754_v34 = vld [vmem:[#allocation109_spill] sm:$0xff]  ;;  %v13756_v35 = vld [vmem:[#allocation55_spill] sm:$0xff] }
 0x366   : > { %v11520_v33 = vpop.eup %6947  ;;  %6973 = vpow2.f32 %v11392_v28  ;;  %v5002_v41 = vmul.f32 %v11515_v61, %v11434_v56  ;;  %v5131_v31 = vadd.f32 %v5130_v50, %v4995_v24  ;;  %v5186_v46 = vadd.f32 %v13753_v10, %v13752_v12  ;;  %v5549_v28 = vld [vmem:[%s12385_s7 + $0x18] sm:$0xff]  ;;  %v5329_v12 = vld [vmem:[%s12382_s4] sm:$0xff] }
 0x367   : > { %v11526_v44 = vpop.eup %6949  ;;  %v5003_v15 = vmul.f32 %v11520_v33, %v11434_v56  ;;  %v5071_v36 = vadd.f32 %v5070_v1, %v5001_v27  ;;  %v5161_v2 = vadd.f32 %v5160_v9, %v4992_v62  ;;  %v13755_v45 = vld [vmem:[#allocation81_spill] sm:$0xff]  ;;  %5605 = vperm.xlu1 %6093, %v5549_v28   ;;  %v13757_v1 = vld [vmem:[#allocation82_spill] sm:$0xff]  ;;  %v13758_v10 = vld [vmem:[#allocation15_spill] sm:$0xff]  ;;  %5394 = vperm.xlu0 %6094, %v5329_v12  }
 0x368   : > { %v11535_v42 = vpop.eup %6951  ;;  %v5004_v54 = vmul.f32 %v11526_v44, %v11434_v56  ;;  %v5217_v51 = vadd.f32 %v13755_v45, %v13754_v34  ;;  %v5102_v3 = vadd.f32 %v5101_v47, %v5002_v41  ;;  %v5132_v53 = vadd.f32 %v5131_v31, %v4999_v59  ;;  %v13759_v28 = vld [vmem:[#allocation54_spill] sm:$0xff] }
 0x369   : > { %v11541_v6 = vpop.eup %6953  ;;  %v5005_v24 = vmul.f32 %v11535_v42, %v11415_v23  ;;  %v5187_v50 = vadd.f32 %v13756_v35, %v5186_v46  ;;  %v5162_v27 = vadd.f32 %v5161_v2, %v4996_v40  ;;  %v5248_v34 = vadd.f32 %v13759_v28, %v13758_v10  ;;  %v13760_v46 = vld [vmem:[#allocation57_spill] sm:$0xff] }
 0x36a   : > { %v11549_v56 = vpop.eup %6955  ;;  %v5006_v62 = vmul.f32 %v11541_v6, %v11415_v23  ;;  %v5218_v9 = vadd.f32 %v13757_v1, %v5217_v51  ;;  %v5133_v31 = vadd.f32 %v5132_v53, %v5003_v15  ;;  %v5553_v35 = vld [vmem:[%s12386_s8 + $0x18] sm:$0xff]  ;;  %v13761_v1 = vld [vmem:[#allocation84_spill] sm:$0xff] }
 0x36b   : > { %v11556_v41 = vpop.eup %6957  ;;  %v5007_v59 = vmul.f32 %v11549_v56, %v11415_v23  ;;  %v5072_v47 = vadd.f32 %v5071_v36, %v5005_v24  ;;  %v5188_v45 = vadd.f32 %v13760_v46, %v5187_v50  ;;  %v5163_v12 = vadd.f32 %v5162_v27, %v5000_v19  ;;  %5629 = vperm.xlu1 %6093, %v5553_v35   ;;  %v13762_v24 = vld [vmem:[#allocation59_spill] sm:$0xff]  ;;  %v13763_v50 = vld [vmem:[#allocation56_spill] sm:$0xff] }
 0x36c   : > { %v11564_v40 = vpop.eup %6959  ;;  %v5008_v2 = vmul.f32 %v11556_v41, %v11415_v23  ;;  %v5103_v51 = vadd.f32 %v5102_v3, %v5006_v62  ;;  %v5219_v10 = vadd.f32 %v13761_v1, %v5218_v9  ;;  %v5249_v46 = vadd.f32 %v13763_v50, %v5248_v34  ;;  %v5421_v23 = vld [vmem:[%s12384_s6 + $0x8] sm:$0xff] }
 0x36d   : > { %v11569_v28 = vpop.eup %6961  ;;  %v5009_v15 = vmul.f32 %v11564_v40, %v11426_v39  ;;  %v5134_v36 = vadd.f32 %v5133_v31, %v5007_v59  ;;  %v5189_v53 = vadd.f32 %v13762_v24, %v5188_v45  ;;  %v5164_v62 = vadd.f32 %v5163_v12, %v5004_v54  ;;  %v13764_v27 = vld [vmem:[#allocation44_spill] sm:$0xff]  ;;  %v13765_v35 = vld [vmem:[#allocation71_spill] sm:$0xff]  ;;  %5431 = vperm.xlu0 %6094, %v5421_v23  }
 0x36e   : > { %v11578_v3 = vpop.eup %6963  ;;  %v5010_v19 = vmul.f32 %v11569_v28, %v11426_v39  ;;  %v5220_v9 = vadd.f32 %v13764_v27, %v5219_v10  ;;  %v13766_v1 = vld [vmem:[#allocation80_spill] sm:$0xff]  ;;  %v5250_v11 = vadd.f32 %v13768_v52, %v5249_v46 }
 0x36f   : > { %v5279_v59 = vadd.f32 %v13766_v1, %v13765_v35  ;;  %v11585_v31 = vpop.eup %6965  ;;  %v5011_v34 = vmul.f32 %v11578_v3, %v11426_v39  ;;  %v11589_v45 = vadd.f32 %v5072_v47, %v5009_v15  ;;  %v13767_v24 = vld [vmem:[#allocation252_spill] sm:$0xff]  ;;  %v5165_v27 = vadd.f32 %v5164_v62, %v5008_v2  ;;  %v13770_v35 = vld [vmem:[#allocation254_spill] sm:$0xff] }
 0x370   : > { %v5190_v50 = vadd.f32 %v13767_v24, %v5189_v53  ;;  %v5552_v54 = vld [vmem:[%s12386_s8 + $0x10] sm:$0xff]  ;;  %v11596_v12 = vpop.eup %6967  ;;  %v5012_v10 = vmul.f32 %v11585_v31, %v11426_v39  ;;  %v11600_v23 = vadd.f32 %v5103_v51, %v5010_v19  ;;  %v5221_v1 = vadd.f32 %v13770_v35, %v5220_v9  ;;  %v3031_v39 = vpop.permute.xlu1 %3030  ;;  %v5423_v2 = vld [vmem:[%s12384_s6 + $0x18] sm:$0xff]  ;;  %v13774_v9 = vld [vmem:[#allocation83_spill] sm:$0xff] }
 0x371   : > { %13769 = vst [vmem:[#allocation138_spill] sm:$0xff] %v11596_v12  ;;  %5624 = vperm.xlu1 %6093, %v5552_v54   ;;  %v11603_v47 = vpop.eup %6969  ;;  %v11607_v52 = vmul.f32 %v11596_v12, %v11429_v37  ;;  %v11609_v15 = vadd.f32 %v5134_v36, %v5011_v34  ;;  %v13772_v46 = vld [vmem:[#allocation248_spill] sm:$0xff]  ;;  %v5280_v34 = vadd.f32 %v13774_v9, %v5279_v59 }
 0x372   : > { %13771 = vst [vmem:[#allocation139_spill] sm:$0xff] %v11603_v47  ;;  %v5191_v53 = vadd.f32 %v11407_v58, %v5190_v50  ;;  %v5251_v24 = vadd.f32 %v13772_v46, %v5250_v11  ;;  %v11616_v51 = vpop.eup %6971  ;;  %v11620_v19 = vmul.f32 %v11603_v47, %v11429_v37  ;;  %v11622_v62 = vadd.f32 %v5165_v27, %v5012_v10  ;;  %v13776_v54 = vld [vmem:[#allocation256_spill] sm:$0xff]  ;;  %v7148_v46 = vld [vmem:[%s7464_s26 + $0x18] sm:$0xff]  ;;  %v3051_v10 = vpop.permute.xlu0 %3050 }
 0x373   : > { %13773 = vst [vmem:[#allocation140_spill] sm:$0xff] %v11616_v51  ;;  %v5222_v36 = vadd.f32 %v11411_v38, %v5221_v1  ;;  %5441 = vperm.xlu0 %6094, %v5423_v2   ;;  %v11626_v58 = vpop.eup %6973  ;;  %v11630_v11 = vmul.f32 %v11616_v51, %v11429_v37  ;;  %v11635_v49 = vmul.f32 %v7148_v46, %v655_v16  ;;  %v5551_v38 = vld [vmem:[%s12386_s8 + $0x8] sm:$0xff]  ;;  %v13778_v1 = vld [vmem:[#allocation85_spill] sm:$0xff] }
 0x374   : > { %13775 = vst [vmem:[#allocation141_spill] sm:$0xff] %v11626_v58  ;;  %v5192_v50 = vadd.f32 %v11431_v18, %v5191_v53  ;;  %v5252_v35 = vadd.f32 %v13776_v54, %v5251_v24  ;;  %v11642_v59 = vmul.f32 %v11626_v58, %v11429_v37  ;;  %v5281_v2 = vadd.f32 %v13778_v1, %v5280_v34  ;;  %v13779_v53 = vld [vmem:[#allocation204_spill] sm:$0xff]  ;;  %v13780_v54 = vld [vmem:[#allocation205_spill] sm:$0xff] }
 0x375   : > { %13777 = vst [vmem:[#allocation142_spill] sm:$0xff] %v11635_v49  ;;  %v5223_v27 = vadd.f32 %v11441_v57, %v5222_v36  ;;  %v3036_v9 = vmul.f32 %v7148_v46, %v3031_v39  ;;  %5619 = vperm.xlu1 %6093, %v5551_v38   ;;  %v5548_v37 = vld [vmem:[%s12385_s7 + $0x10] sm:$0xff]  ;;  %v13781_v36 = vld [vmem:[#allocation250_spill] sm:$0xff]  ;;  %v13783_v46 = vld [vmem:[#allocation207_spill] sm:$0xff] }
 0x376   : > { %v5193_v18 = vadd.f32 %v11462_v60, %v5192_v50  ;;  %v5253_v16 = vadd.f32 %v11417_v55, %v5252_v35  ;;  %v5282_v34 = vadd.f32 %v13781_v36, %v5281_v2  ;;  %v13782_v60 = vld [vmem:[#allocation206_spill] sm:$0xff]  ;;  %v13784_v1 = vld [vmem:[#allocation32_spill] sm:$0xff]  ;;  %v13792_v50 = vld [vmem:[#allocation61_spill] sm:$0xff] }
 0x377   : > { %v5224_v57 = vadd.f32 %v11469_v43, %v5223_v27  ;;  %v11657_v39 = vadd.f32 %v3051_v10, %v3036_v9  ;;  %5600 = vperm.xlu0 %6094, %v5548_v37   ;;  %v5638_v43 = vld [vmem:[%s12388_s10] sm:$0xff]  ;;  %v13788_v36 = vld [vmem:[#allocation60_spill] sm:$0xff]  ;;  %v13810_v24 = vld [vmem:[#allocation49_spill] sm:$0xff] }
 0x378   : > { %v5194_v55 = vadd.f32 %v11487_v29, %v5193_v18  ;;  %v5254_v35 = vadd.f32 %v11451_v13, %v5253_v16  ;;  %v13785_v27 = vld [vmem:[#allocation258_spill] sm:$0xff]  ;;  %v13786_v9 = vld [vmem:[#allocation23_spill] sm:$0xff]  ;;  %v13793_v13 = vld [vmem:[#allocation36_spill] sm:$0xff]  ;;  %v4299_v49 = vsub.f32 %v13810_v24, %v13680_v22 }
 0x379   : > { %v5225_v10 = vadd.f32 %v11492_v48, %v5224_v57  ;;  %v5283_v2 = vadd.f32 %v13785_v27, %v5282_v34  ;;  %v13787_v29 = vld [vmem:[#allocation43_spill] sm:$0xff]  ;;  %5642 = vperm.xlu1 %6093, %v5638_v43   ;;  %v13789_v38 = vld [vmem:[#allocation34_spill] sm:$0xff]  ;;  %v13790_v43 = vld [vmem:[#allocation25_spill] sm:$0xff] }
 0x37a   : > { %v5195_v18 = vadd.f32 %v11509_v25, %v5194_v55  ;;  %v5255_v16 = vadd.f32 %v11475_v26, %v5254_v35  ;;  %v5547_v48 = vld [vmem:[%s12385_s7 + $0x8] sm:$0xff]  ;;  %v13791_v25 = vld [vmem:[#allocation45_spill] sm:$0xff]  ;;  %v13797_v37 = vld [vmem:[#allocation62_spill] sm:$0xff] }
 0x37b   : > { %v5226_v57 = vadd.f32 %v11515_v61, %v5225_v10  ;;  %v5284_v34 = vadd.f32 %v11420_v14, %v5283_v2  ;;  %5595 = vperm.xlu0 %6094, %v5547_v48   ;;  %v5734_v14 = vld [vmem:[%s12389_s11 + $0x8] sm:$0xff]  ;;  %v13794_v2 = vld [vmem:[#allocation26_spill] sm:$0xff]  ;;  %v4288_v4 = vsub.f32 %v13797_v37, %v13684_v8  ;;  %v13798_v26 = vld [vmem:[#allocation37_spill] sm:$0xff] }
 0x37c   : > { %v5196_v55 = vadd.f32 %v11535_v42, %v5195_v18  ;;  %v5256_v35 = vadd.f32 %v11498_v30, %v5255_v16  ;;  %v4286_v48 = vsub.f32 %v13794_v2, %v13675_v7  ;;  %v13795_v42 = vld [vmem:[#allocation46_spill] sm:$0xff]  ;;  %v13815_v24 = vld [vmem:[#allocation69_spill] sm:$0xff] }
 0x37d   : > { %v5227_v61 = vadd.f32 %v11541_v6, %v5226_v57  ;;  %v5285_v10 = vadd.f32 %v11456_v5, %v5284_v34  ;;  %v4287_v30 = vsub.f32 %v13795_v42, %v13680_v22  ;;  %5769 = vperm.xlu1 %6093, %v5734_v14   ;;  %v4289_v6 = vsub.f32 %v13798_v26, %v13673_v17  ;;  %v5546_v5 = vld [vmem:[%s12385_s7] sm:$0xff]  ;;  %v13802_v26 = vld [vmem:[#allocation64_spill] sm:$0xff]  ;;  %v13817_v47 = vld [vmem:[#allocation241_spill] sm:$0xff] }
 0x37e   : > { %v11707_v18 = vadd.f32 %v11564_v40, %v5196_v55  ;;  %v5257_v16 = vadd.f32 %v11520_v33, %v5256_v35  ;;  %v13800_v40 = vld [vmem:[#allocation27_spill] sm:$0xff]  ;;  %v4292_v14 = vsub.f32 %v13802_v26, %v13684_v8  ;;  %v13803_v2 = vld [vmem:[#allocation38_spill] sm:$0xff]  ;;  %v4304_v51 = vsub.f32 %v13815_v24, %v13684_v8 }
 0x37f   : > { %v11718_v57 = vadd.f32 %v11569_v28, %v5227_v61  ;;  %v5286_v34 = vadd.f32 %v11481_v63, %v5285_v10  ;;  %v4290_v55 = vsub.f32 %v13800_v40, %v13675_v7  ;;  %v13801_v33 = vld [vmem:[#allocation47_spill] sm:$0xff]  ;;  %5590 = vperm.xlu0 %6094, %v5546_v5   ;;  %v4293_v42 = vsub.f32 %v13803_v2, %v13673_v17  ;;  %v13804_v28 = vld [vmem:[#allocation28_spill] sm:$0xff] }
 0x380   : > { %13796 = vst [vmem:[#allocation10_spill] sm:$0xff] %v11707_v18  ;;  %v4291_v35 = vsub.f32 %v13801_v33, %v13680_v22  ;;  %v5258_v37 = vadd.f32 %v11549_v56, %v5257_v16  ;;  %v4294_v61 = vsub.f32 %v13804_v28, %v13675_v7  ;;  %v5736_v63 = vld [vmem:[%s12390_s12 + $0x8] sm:$0xff]  ;;  %v13806_v56 = vld [vmem:[#allocation65_spill] sm:$0xff]  ;;  %v13821_v24 = vsub.f32 %v13780_v54, %v13675_v7 }
 0x381   : > { %13799 = vst [vmem:[#allocation70_spill] sm:$0xff] %v11718_v57  ;;  %v5287_v10 = vadd.f32 %v11504_v32, %v5286_v34  ;;  %v13805_v40 = vld [vmem:[#allocation48_spill] sm:$0xff]  ;;  %v4296_v16 = vsub.f32 %v13806_v56, %v13684_v8  ;;  %v13807_v33 = vld [vmem:[#allocation39_spill] sm:$0xff]  ;;  %5781 = vperm.xlu1 %6093, %v5736_v63   ;;  %v13809_v28 = vld [vmem:[#allocation29_spill] sm:$0xff]  ;;  %v4306_v57 = vsub.f32 %v13817_v47, %v13675_v7 }
 0x382   : > { %v4295_v5 = vsub.f32 %v13805_v40, %v13680_v22  ;;  %v4297_v26 = vsub.f32 %v13807_v33, %v13673_v17  ;;  %v11743_v2 = vadd.f32 %v11578_v3, %v5258_v37  ;;  %v4298_v27 = vsub.f32 %v13809_v28, %v13675_v7  ;;  %v13811_v32 = vld [vmem:[#allocation68_spill] sm:$0xff]  ;;  %v5550_v40 = vld [vmem:[%s12386_s8] sm:$0xff] }
 0x383   : > { %v4300_v34 = vsub.f32 %v13811_v32, %v13684_v8  ;;  %v5288_v56 = vadd.f32 %v11526_v44, %v5287_v10  ;;  %v13812_v63 = vld [vmem:[#allocation40_spill] sm:$0xff]  ;;  %v13813_v3 = vld [vmem:[#allocation30_spill] sm:$0xff]  ;;  %5614 = vperm.xlu0 %6094, %v5550_v40   ;;  %v13818_v44 = vld [vmem:[#allocation243_spill] sm:$0xff]  ;;  %v13820_v40 = vsub.f32 %v13779_v53, %v13673_v17  ;;  %v13822_v47 = vsub.f32 %v13782_v60, %v13680_v22 }
 0x384   : > { %13808 = vst [vmem:[#allocation117_spill] sm:$0xff] %v11743_v2  ;;  %v4301_v33 = vsub.f32 %v13812_v63, %v13673_v17  ;;  %v4302_v37 = vsub.f32 %v13813_v3, %v13675_v7  ;;  %v13814_v28 = vld [vmem:[#allocation50_spill] sm:$0xff]  ;;  %v4307_v10 = vsub.f32 %v13818_v44, %v13680_v22  ;;  %v13819_v3 = vld [vmem:[#allocation245_spill] sm:$0xff]  ;;  %v13823_v44 = vsub.f32 %v13783_v46, %v13684_v8 }
 0x385   : > { %v4303_v58 = vsub.f32 %v13814_v28, %v13680_v22  ;;  %v13816_v32 = vld [vmem:[#allocation202_spill] sm:$0xff]  ;;  %v5289_v12 = vadd.f32 %v11556_v41, %v5288_v56  ;;  %v4308_v18 = vsub.f32 %v13819_v3, %v13684_v8  ;;  %v4493_v28 = vmul.f32 1.442695, %v13820_v40 }
 0x386   : > { %v4305_v2 = vsub.f32 %v13816_v32, %v13673_v17  ;;  %v5787_v63 = vld [vmem:[#allocation2] sm:$0x1]  ;;  %v4495_v32 = vmul.f32 1.442695, %v13821_v24  ;;  %v4497_v21 = vmul.f32 1.442695, %v13822_v47  ;;  %v13824_v56 = vsub.f32 %v13784_v1, %v13673_v17 }
 0x387   : > { %5790 = vperm.xlu1 %6093, %v5787_v63   ;;  %v4499_v41 = vmul.f32 1.442695, %v13823_v44  ;;  %v4716_v53 = vcombine.high %v11657_v39, %v11657_v39  ;;  %v11790_v40 = vadd.f32 %v11585_v31, %v5289_v12  ;;  %6975 = vpow2.f32 %v4493_v28  ;;  %v5639_v1 = vld [vmem:[%s12388_s10 + $0x8] sm:$0xff] }
 0x388   : > { %v4501_v3 = vmul.f32 1.442695, %v13824_v56  ;;  %v13825_v54 = vsub.f32 %v13786_v9, %v13675_v7  ;;  %v13826_v63 = vsub.f32 %v13787_v29, %v13680_v22  ;;  %6977 = vpow2.f32 %v4495_v32  ;;  %5647 = vperm.xlu0 %6094, %v5639_v1  }
 0x389   : > { %v13827_v24 = vsub.f32 %v13788_v36, %v13684_v8  ;;  %v13828_v31 = vsub.f32 %v13789_v38, %v13673_v17  ;;  %v13829_v9 = vsub.f32 %v13790_v43, %v13675_v7  ;;  %6979 = vpow2.f32 %v4497_v21 }
 0x38a   : > { %v4503_v60 = vmul.f32 1.442695, %v13825_v54  ;;  %v4505_v46 = vmul.f32 1.442695, %v13826_v63  ;;  %v13830_v29 = vsub.f32 %v13791_v25, %v13680_v22  ;;  %v13831_v32 = vsub.f32 %v13792_v50, %v13684_v8 }
 0x38b   : > { %v4507_v47 = vmul.f32 1.442695, %v13827_v24  ;;  %v4509_v12 = vmul.f32 1.442695, %v13828_v31  ;;  %v4511_v28 = vmul.f32 1.442695, %v13829_v9  ;;  %v13832_v36 = vsub.f32 %v13793_v13, %v13673_v17 }
 0x38c   : > { %v4513_v44 = vmul.f32 1.442695, %v13830_v29  ;;  %v4515_v56 = vmul.f32 1.442695, %v13831_v32  ;;  %6981 = vpow2.f32 %v4499_v41  ;;  %v4519_v38 = vmul.f32 1.442695, %v4286_v48 }
 0x38d   : > { %v4517_v54 = vmul.f32 1.442695, %v13832_v36  ;;  %v4521_v63 = vmul.f32 1.442695, %v4287_v30  ;;  %v4523_v24 = vmul.f32 1.442695, %v4288_v4  ;;  %6983 = vpow2.f32 %v4501_v3 }
 0x38e   : > { %v4525_v7 = vmul.f32 1.442695, %v4289_v6  ;;  %v4527_v43 = vmul.f32 1.442695, %v4290_v55  ;;  %v4529_v21 = vmul.f32 1.442695, %v4291_v35  ;;  %6985 = vpow2.f32 %v4503_v60 }
 0x38f   : > { %v11819_v1 = vmul.f32 1.442695, %v4292_v14  ;;  %v11821_v22 = vmul.f32 1.442695, %v4293_v42  ;;  %v11823_v25 = vmul.f32 1.442695, %v4294_v61  ;;  %6987 = vpow2.f32 %v4505_v46 }
 0x390   : > { %v11825_v8 = vmul.f32 1.442695, %v4295_v5  ;;  %v11827_v17 = vmul.f32 1.442695, %v4296_v16  ;;  %v11829_v50 = vmul.f32 1.442695, %v4297_v26  ;;  %6989 = vpow2.f32 %v4507_v47 }
 0x391   : > { %v11831_v4 = vmul.f32 1.442695, %v4298_v27  ;;  %v11833_v13 = vmul.f32 1.442695, %v4299_v49  ;;  %v11835_v48 = vmul.f32 1.442695, %v4300_v34  ;;  %6991 = vpow2.f32 %v4509_v12 }
 0x392   : > { %v11837_v30 = vmul.f32 1.442695, %v4301_v33  ;;  %v11839_v6 = vmul.f32 1.442695, %v4302_v37  ;;  %v11841_v55 = vmul.f32 1.442695, %v4303_v58  ;;  %6993 = vpow2.f32 %v4511_v28 }
 0x393   : > { %v11843_v35 = vmul.f32 1.442695, %v4304_v51  ;;  %v11845_v14 = vmul.f32 1.442695, %v4305_v2  ;;  %v11847_v42 = vmul.f32 1.442695, %v4306_v57  ;;  %6995 = vpow2.f32 %v4513_v44 }
 0x394   : > { %v11849_v27 = vmul.f32 1.442695, %v4307_v10  ;;  %v11851_v49 = vmul.f32 1.442695, %v4308_v18  ;;  %v4723_v61 = vrot.slane %v11657_v39, %v13604_v20  ;;  %v5733_v58 = vld [vmem:[%s12389_s11] sm:$0xff]  ;;  %6997 = vpow2.f32 %v4515_v56  ;;  %v11869_v2 = vpop.eup %6975  ;;  %v13833_v28 = vld [vmem:[#allocation137_spill] sm:$0xff] }
 0x395   : > { %v4730_v51 = vrot.slane %v4716_v53, %v13604_v20  ;;  %v5074_v5 = vadd.f32 %v11589_v45, %v11607_v52  ;;  %v5105_v57 = vadd.f32 %v11600_v23, %v11620_v19  ;;  %5764 = vperm.xlu0 %6094, %v5733_v58   ;;  %6999 = vpow2.f32 %v4517_v54  ;;  %v5735_v26 = vld [vmem:[%s12390_s12] sm:$0xff]  ;;  %v11874_v52 = vpop.eup %6977 }
 0x396   : > { %v4731_v18 = vcombine.high %v4723_v61, %v4723_v61  ;;  %v4739_v16 = vrot.slane %v4723_v61, %v13604_v20  ;;  %v5136_v39 = vadd.f32 %v11609_v15, %v11630_v11  ;;  %7001 = vpow2.f32 %v4519_v38  ;;  %v11878_v11 = vpop.eup %6979 }
 0x397   : > { %v4732_v34 = vcombine.high %v4730_v51, %v4730_v51  ;;  %v4746_v45 = vrot.slane %v4730_v51, %v13604_v20  ;;  %v5167_v23 = vadd.f32 %v11622_v62, %v11642_v59  ;;  %7003 = vpow2.f32 %v4521_v63 }
 0x398   : > { %v4753_v19 = vrot.slane %v4731_v18, %v13604_v20  ;;  %v4761_v33 = vcombine.high %v4739_v16, %v4739_v16  ;;  %v4864_v15 = vrot.slane %v4739_v16, %v13615_v0  ;;  %7005 = vpow2.f32 %v4523_v24 }
 0x399   : > { %v4760_v37 = vrot.slane %v4732_v34, %v13604_v20  ;;  %v4762_v10 = vcombine.high %v4746_v45, %v4746_v45  ;;  %v11882_v41 = vrot.slane %v4746_v45, %v13615_v0  ;;  %5776 = vperm.xlu0 %6094, %v5735_v26   ;;  %v11884_v3 = vpop.eup %6981  ;;  %7007 = vpow2.f32 %v4525_v7 }
 0x39a   : > { %v4763_v62 = vcombine.high %v4753_v19, %v4753_v19  ;;  %v4868_v59 = vrot.slane %v4753_v19, %v13615_v0  ;;  %v11888_v53 = vrot.slane %v4761_v33, %v13615_v0  ;;  %v11890_v60 = vpop.eup %6983  ;;  %7009 = vpow2.f32 %v4527_v43 }
 0x39b   : > { %v4764_v46 = vcombine.high %v4760_v37, %v4760_v37  ;;  %v11893_v47 = vrot.slane %v4760_v37, %v13615_v0  ;;  %v11896_v31 = vrot.slane %v4762_v10, %v13615_v0  ;;  %v11898_v12 = vpop.eup %6985  ;;  %7011 = vpow2.f32 %v4529_v21  ;;  %v13834_v10 = vld [vmem:[#allocation10_spill] sm:$0xff] }
 0x39c   : > { %v11901_v9 = vrot.slane %v4763_v62, %v13615_v0  ;;  %v5017_v29 = vmul.f32 %v11869_v2, %v13833_v28  ;;  %v5018_v44 = vmul.f32 %v11874_v52, %v13833_v28  ;;  %v11907_v32 = vpop.eup %6987  ;;  %7013 = vpow2.f32 %v11819_v1  ;;  %v13835_v62 = vld [vmem:[#allocation138_spill] sm:$0xff] }
 0x39d   : > { %v11911_v56 = vrot.slane %v4764_v46, %v13615_v0  ;;  %v5019_v36 = vmul.f32 %v11878_v11, %v13833_v28  ;;  %v5020_v54 = vmul.f32 %v11884_v3, %v13833_v28  ;;  %v11917_v38 = vpop.eup %6989  ;;  %7015 = vpow2.f32 %v11821_v22 }
 0x39e   : > { %v5021_v63 = vmul.f32 %v11890_v60, %v4864_v15  ;;  %v5022_v24 = vmul.f32 %v11898_v12, %v4864_v15  ;;  %v5023_v7 = vmul.f32 %v11907_v32, %v4864_v15  ;;  %v6992_v43 = vpop.eup %6991  ;;  %7017 = vpow2.f32 %v11823_v25 }
 0x39f   : > { %v5024_v21 = vmul.f32 %v11917_v38, %v4864_v15  ;;  %v5075_v1 = vadd.f32 %v5074_v5, %v5017_v29  ;;  %v5106_v61 = vadd.f32 %v5105_v57, %v5018_v44  ;;  %v6994_v58 = vpop.eup %6993  ;;  %7019 = vpow2.f32 %v11825_v8  ;;  %v13836_v29 = vld [vmem:[#allocation70_spill] sm:$0xff] }
 0x3a0   : > { %v5025_v51 = vmul.f32 %v6992_v43, %v4868_v59  ;;  %v5137_v18 = vadd.f32 %v5136_v39, %v5019_v36  ;;  %v5168_v16 = vadd.f32 %v5167_v23, %v5020_v54  ;;  %v11926_v22 = vpop.eup %6995  ;;  %7021 = vpow2.f32 %v11827_v17 }
 0x3a1   : > { %v5026_v26 = vmul.f32 %v6994_v58, %v4868_v59  ;;  %v5076_v34 = vadd.f32 %v5075_v1, %v5021_v63  ;;  %v5107_v45 = vadd.f32 %v5106_v61, %v5022_v24  ;;  %v11929_v19 = vpop.eup %6997  ;;  %7023 = vpow2.f32 %v11829_v50 }
 0x3a2   : > { %v5027_v25 = vmul.f32 %v11926_v22, %v4868_v59  ;;  %v5138_v5 = vadd.f32 %v5137_v18, %v5023_v7  ;;  %v5169_v57 = vadd.f32 %v5168_v16, %v5024_v21  ;;  %v7000_v33 = vpop.eup %6999  ;;  %7025 = vpow2.f32 %v11831_v4 }
 0x3a3   : > { %v5028_v8 = vmul.f32 %v11929_v19, %v4868_v59  ;;  %v5077_v39 = vadd.f32 %v5076_v34, %v5025_v51  ;;  %v5108_v23 = vadd.f32 %v5107_v45, %v5026_v26  ;;  %v7002_v15 = vpop.eup %7001  ;;  %7027 = vpow2.f32 %v11833_v13  ;;  %v13837_v59 = vld [vmem:[#allocation139_spill] sm:$0xff] }
 0x3a4   : > { %v5029_v17 = vmul.f32 %v7000_v33, %v11888_v53  ;;  %v5139_v37 = vadd.f32 %v5138_v5, %v5027_v25  ;;  %v5198_v50 = vadd.f32 %v13835_v62, %v13834_v10  ;;  %v11939_v46 = vpop.eup %7003  ;;  %7029 = vpow2.f32 %v11835_v48 }
 0x3a5   : > { %v5030_v28 = vmul.f32 %v7002_v15, %v11888_v53  ;;  %v5170_v4 = vadd.f32 %v5169_v57, %v5028_v8  ;;  %v5229_v44 = vadd.f32 %v13837_v59, %v13836_v29  ;;  %v11945_v36 = vpop.eup %7005  ;;  %7031 = vpow2.f32 %v11837_v30 }
 0x3a6   : > { %v5031_v13 = vmul.f32 %v11939_v46, %v11888_v53  ;;  %v5078_v54 = vadd.f32 %v5077_v39, %v5029_v17  ;;  %v5199_v63 = vadd.f32 %v11869_v2, %v5198_v50  ;;  %v7008_v24 = vpop.eup %7007  ;;  %7033 = vpow2.f32 %v11839_v6  ;;  %v13839_v17 = vld [vmem:[#allocation140_spill] sm:$0xff]  ;;  %v13840_v50 = vld [vmem:[#allocation141_spill] sm:$0xff] }
 0x3a7   : > { %v5032_v48 = vmul.f32 %v11945_v36, %v11888_v53  ;;  %v5109_v7 = vadd.f32 %v5108_v23, %v5030_v28  ;;  %v5230_v21 = vadd.f32 %v11874_v52, %v5229_v44  ;;  %v7010_v1 = vpop.eup %7009  ;;  %7035 = vpow2.f32 %v11841_v55 }
 0x3a8   : > { %v5033_v30 = vmul.f32 %v7008_v24, %v11901_v9  ;;  %v5140_v61 = vadd.f32 %v5139_v37, %v5031_v13  ;;  %v5200_v51 = vadd.f32 %v11890_v60, %v5199_v63  ;;  %v11958_v18 = vpop.eup %7011  ;;  %7037 = vpow2.f32 %v11843_v35 }
 0x3a9   : > { %v5034_v6 = vmul.f32 %v7010_v1, %v11901_v9  ;;  %v5171_v2 = vadd.f32 %v5170_v4, %v5032_v48  ;;  %v5231_v53 = vadd.f32 %v11898_v12, %v5230_v21  ;;  %v11963_v16 = vpop.eup %7013  ;;  %7039 = vpow2.f32 %v11845_v14 }
 0x3aa   : > { %v5035_v55 = vmul.f32 %v11958_v18, %v11901_v9  ;;  %v5079_v52 = vadd.f32 %v5078_v54, %v5033_v30  ;;  %v5201_v26 = vadd.f32 %v6992_v43, %v5200_v51  ;;  %v7016_v34 = vpop.eup %7015  ;;  %7041 = vpow2.f32 %v11847_v42 }
 0x3ab   : > { %v5036_v35 = vmul.f32 %v11963_v16, %v11901_v9  ;;  %v5110_v60 = vadd.f32 %v5109_v7, %v5034_v6  ;;  %v5232_v45 = vadd.f32 %v6994_v58, %v5231_v53  ;;  %v7018_v25 = vpop.eup %7017  ;;  %7043 = vpow2.f32 %v11849_v27  ;;  %v13838_v27 = vld [vmem:[#allocation117_spill] sm:$0xff] }
 0x3ac   : > { %v5037_v12 = vmul.f32 %v7016_v34, %v11882_v41  ;;  %v5141_v5 = vadd.f32 %v5140_v61, %v5035_v55  ;;  %v5202_v14 = vadd.f32 %v7000_v33, %v5201_v26  ;;  %v11973_v57 = vpop.eup %7019  ;;  %7045 = vpow2.f32 %v11851_v49 }
 0x3ad   : > { %v5038_v43 = vmul.f32 %v7018_v25, %v11882_v41  ;;  %v5172_v8 = vadd.f32 %v5171_v2, %v5036_v35  ;;  %v5233_v42 = vadd.f32 %v7002_v15, %v5232_v45  ;;  %v11977_v39 = vpop.eup %7021  ;;  %v5039_v9 = vmul.f32 %v11973_v57, %v11882_v41  ;;  %v675_v2 = vpop.permute.xlu1 %674 }
 0x3ae   : > { %v5080_v58 = vadd.f32 %v5079_v52, %v5037_v12  ;;  %v5203_v23 = vadd.f32 %v7008_v24, %v5202_v14  ;;  %v5260_v37 = vadd.f32 %v13839_v17, %v13838_v27  ;;  %v7024_v10 = vpop.eup %7023  ;;  %v5040_v33 = vmul.f32 %v11977_v39, %v11882_v41 }
 0x3af   : > { %v5111_v62 = vadd.f32 %v5110_v60, %v5038_v43  ;;  %v5234_v49 = vadd.f32 %v7010_v1, %v5233_v42  ;;  %v5291_v28 = vadd.f32 %v13840_v50, %v11790_v40  ;;  %v7026_v15 = vpop.eup %7025  ;;  %v5041_v4 = vmul.f32 %v7024_v10, %v11893_v47 }
 0x3b0   : > { %v5142_v29 = vadd.f32 %v5141_v5, %v5039_v9  ;;  %v5204_v59 = vadd.f32 %v7016_v34, %v5203_v23  ;;  %v5261_v44 = vadd.f32 %v11878_v11, %v5260_v37  ;;  %v7028_v13 = vpop.eup %7027  ;;  %v5042_v54 = vmul.f32 %v7026_v15, %v11893_v47  ;;  %v13841_v5 = vld [vmem:[#allocation142_spill] sm:$0xff] }
 0x3b1   : > { %v5173_v63 = vadd.f32 %v5172_v8, %v5040_v33  ;;  %v5235_v24 = vadd.f32 %v7018_v25, %v5234_v49  ;;  %v5292_v48 = vadd.f32 %v11884_v3, %v5291_v28  ;;  %v7030_v41 = vpop.eup %7029  ;;  %v5043_v7 = vmul.f32 %v7028_v13, %v11893_v47  ;;  %v13842_v9 = vld [vmem:[#allocation234_spill] sm:$0xff] }
 0x3b2   : > { %v5081_v21 = vadd.f32 %v5080_v58, %v5041_v4  ;;  %v5205_v1 = vadd.f32 %v7024_v10, %v5204_v59  ;;  %v5262_v40 = vadd.f32 %v11907_v32, %v5261_v44  ;;  %v7032_v30 = vpop.eup %7031  ;;  %v5044_v61 = vmul.f32 %v7030_v41, %v11893_v47  ;;  %v13843_v58 = vld [vmem:[#allocation176_spill] sm:$0xff] }
 0x3b3   : > { %v5112_v51 = vadd.f32 %v5111_v62, %v5042_v54  ;;  %v5236_v6 = vadd.f32 %v7026_v15, %v5235_v24  ;;  %v5293_v11 = vadd.f32 %v11917_v38, %v5292_v48  ;;  %v7034_v53 = vpop.eup %7033  ;;  %v5045_v55 = vmul.f32 %v7032_v30, %v11896_v31  ;;  %v13844_v54 = vld [vmem:[#allocation236_spill] sm:$0xff]  ;;  %v13847_v48 = vld [vmem:[#allocation178_spill] sm:$0xff] }
 0x3b4   : > { %v5143_v52 = vadd.f32 %v5142_v29, %v5043_v7  ;;  %v5206_v3 = vadd.f32 %v7032_v30, %v5205_v1  ;;  %v5263_v26 = vadd.f32 %v11926_v22, %v5262_v40  ;;  %v7036_v34 = vpop.eup %7035  ;;  %v5046_v35 = vmul.f32 %v7034_v53, %v11896_v31  ;;  %v13849_v40 = vld [vmem:[#allocation179_spill] sm:$0xff] }
 0x3b5   : > { %v5174_v60 = vadd.f32 %v5173_v63, %v5044_v61  ;;  %v5237_v32 = vadd.f32 %v7034_v53, %v5236_v6  ;;  %v5294_v45 = vadd.f32 %v11929_v19, %v5293_v11  ;;  %v7038_v47 = vpop.eup %7037  ;;  %v5047_v25 = vmul.f32 %v7036_v34, %v11896_v31  ;;  %v13845_v63 = vld [vmem:[#allocation177_spill] sm:$0xff] }
 0x3b6   : > { %v5082_v12 = vadd.f32 %v5081_v21, %v5045_v55  ;;  %v5264_v38 = vadd.f32 %v11939_v46, %v5263_v26  ;;  %v12002_v14 = vadd.f32 %v675_v2, %v13841_v5  ;;  %v7040_v43 = vpop.eup %7039  ;;  %v5048_v8 = vmul.f32 %v7038_v47, %v11896_v31  ;;  %v13853_v2 = vld [vmem:[#allocation211_spill] sm:$0xff] }
 0x3b7   : > { %v5113_v22 = vadd.f32 %v5112_v51, %v5046_v35  ;;  %v5295_v42 = vadd.f32 %v11945_v36, %v5294_v45  ;;  %v1897_v23 = vsub.f32 %v13843_v58, %v13842_v9  ;;  %v7042_v27 = vpop.eup %7041  ;;  %v5049_v19 = vmul.f32 %v7040_v43, %v11911_v56  ;;  %v13851_v51 = vld [vmem:[#allocation209_spill] sm:$0xff]  ;;  %v13856_v35 = vld [vmem:[#allocation214_spill] sm:$0xff] }
 0x3b8   : > { %v5144_v17 = vadd.f32 %v5143_v52, %v5047_v25  ;;  %v5207_v37 = vadd.f32 %v7040_v43, %v5206_v3  ;;  %v5265_v10 = vadd.f32 %v11958_v18, %v5264_v38  ;;  %v7044_v46 = vpop.eup %7043  ;;  %v5050_v33 = vmul.f32 %v7042_v27, %v11911_v56  ;;  %v13854_v52 = vld [vmem:[#allocation212_spill] sm:$0xff]  ;;  %v13855_v3 = vld [vmem:[#allocation213_spill] sm:$0xff]  ;;  %v13860_v43 = vld [vmem:[#allocation218_spill] sm:$0xff] }
 0x3b9   : > { %v5175_v62 = vadd.f32 %v5174_v60, %v5048_v8  ;;  %v5238_v49 = vadd.f32 %v7042_v27, %v5237_v32  ;;  %v5296_v31 = vadd.f32 %v11963_v16, %v5295_v42  ;;  %v7046_v50 = vpop.eup %7045  ;;  %v5051_v36 = vmul.f32 %v7044_v46, %v11911_v56  ;;  %v13846_v16 = vld [vmem:[#allocation238_spill] sm:$0xff]  ;;  %v13857_v32 = vld [vmem:[#allocation215_spill] sm:$0xff]  ;;  %v13858_v25 = vld [vmem:[#allocation216_spill] sm:$0xff] }
 0x3ba   : > { %v5083_v28 = vadd.f32 %v5082_v12, %v5049_v19  ;;  %v5266_v15 = vadd.f32 %v11973_v57, %v5265_v10  ;;  %7047 = vrcp.f32 %v5207_v37  ;;  %v5052_v4 = vmul.f32 %v7046_v50, %v11911_v56  ;;  %v13848_v57 = vld [vmem:[#allocation239_spill] sm:$0xff]  ;;  %v13859_v38 = vld [vmem:[#allocation217_spill] sm:$0xff] }
 0x3bb   : > { %v5114_v29 = vadd.f32 %v5113_v22, %v5050_v33  ;;  %v5297_v59 = vadd.f32 %v11977_v39, %v5296_v31  ;;  %7049 = vrcp.f32 %v5238_v49  ;;  %v12016_v18 = vadd.f32 %v5144_v17, %v5051_v36  ;;  %v13850_v56 = vld [vmem:[#allocation195_spill] sm:$0xff]  ;;  %v13862_v27 = vld [vmem:[#allocation9_spill] sm:$0xff]  ;;  %v13863_v17 = vld [vmem:[#allocation14_spill] sm:$0xff] }
 0x3bc   : > { %v5267_v44 = vadd.f32 %v7028_v13, %v5266_v15  ;;  %v1898_v24 = vsub.f32 %v13845_v63, %v13844_v54  ;;  %v1899_v7 = vsub.f32 %v13847_v48, %v13846_v16  ;;  %v12022_v21 = vadd.f32 %v5175_v62, %v5052_v4  ;;  %v13852_v13 = vld [vmem:[#allocation210_spill] sm:$0xff]  ;;  %v13861_v22 = vld [vmem:[#allocation219_spill] sm:$0xff]  ;;  %v13864_v10 = vld [vmem:[#allocation33_spill] sm:$0xff] }
 0x3bd   : > { %v5298_v1 = vadd.f32 %v7030_v41, %v5297_v59  ;;  %v1900_v30 = vsub.f32 %v13849_v40, %v13848_v57  ;;  %v1901_v61 = vsub.f32 %v13850_v56, %v13842_v9  ;;  %v1902_v6 = vsub.f32 %v13851_v51, %v13844_v54  ;;  %v13865_v33 = vld [vmem:[#allocation42_spill] sm:$0xff]  ;;  %v13866_v49 = vld [vmem:[#allocation220_spill] sm:$0xff]  ;;  %v13869_v59 = vld [vmem:[#allocation223_spill] sm:$0xff] }
 0x3be   : > { %v5268_v39 = vadd.f32 %v7036_v34, %v5267_v44  ;;  %v1903_v11 = vsub.f32 %v13852_v13, %v13846_v16  ;;  %v1904_v53 = vsub.f32 %v13853_v2, %v13848_v57  ;;  %v1905_v41 = vsub.f32 %v13854_v52, %v13842_v9  ;;  %v13868_v15 = vld [vmem:[#allocation222_spill] sm:$0xff]  ;;  %v13870_v63 = vld [vmem:[#allocation224_spill] sm:$0xff]  ;;  %v13873_v51 = vld [vmem:[#allocation227_spill] sm:$0xff] }
 0x3bf   : > { %v5299_v55 = vadd.f32 %v7038_v47, %v5298_v1  ;;  %v1906_v26 = vsub.f32 %v13855_v3, %v13844_v54  ;;  %v1907_v60 = vsub.f32 %v13856_v35, %v13846_v16  ;;  %v1908_v45 = vsub.f32 %v13857_v32, %v13848_v57  ;;  %v13871_v1 = vld [vmem:[#allocation225_spill] sm:$0xff]  ;;  %v13872_v56 = vld [vmem:[#allocation226_spill] sm:$0xff]  ;;  %v13874_v2 = vld [vmem:[#allocation228_spill] sm:$0xff] }
 0x3c0   : > { %v5269_v34 = vadd.f32 %v7044_v46, %v5268_v39  ;;  %v1909_v12 = vsub.f32 %v13858_v25, %v13842_v9  ;;  %v1910_v5 = vsub.f32 %v13859_v38, %v13844_v54  ;;  %v1911_v8 = vsub.f32 %v13860_v43, %v13846_v16  ;;  %v13875_v52 = vld [vmem:[#allocation229_spill] sm:$0xff]  ;;  %v13876_v35 = vld [vmem:[#allocation230_spill] sm:$0xff]  ;;  %v13877_v32 = vld [vmem:[#allocation231_spill] sm:$0xff] }
 0x3c1   : > { %v5300_v47 = vadd.f32 %v7046_v50, %v5299_v55  ;;  %v1912_v42 = vsub.f32 %v13861_v22, %v13848_v57  ;;  %v1913_v19 = vsub.f32 %v13862_v27, %v13842_v9  ;;  %v1914_v37 = vsub.f32 %v13863_v17, %v13844_v54  ;;  %v13867_v50 = vld [vmem:[#allocation221_spill] sm:$0xff]  ;;  %v13878_v38 = vld [vmem:[#allocation232_spill] sm:$0xff]  ;;  %v13880_v27 = vld [vmem:[#allocation235_spill] sm:$0xff] }
 0x3c2   : > { %7051 = vrcp.f32 %v5269_v34  ;;  %v1915_v46 = vsub.f32 %v13864_v10, %v13846_v16  ;;  %v1916_v62 = vsub.f32 %v13865_v33, %v13848_v57  ;;  %v1917_v31 = vsub.f32 %v13866_v49, %v13842_v9  ;;  %v13879_v43 = vld [vmem:[#allocation233_spill] sm:$0xff] }
 0x3c3   : > { %7053 = vrcp.f32 %v5300_v47  ;;  %v1918_v36 = vsub.f32 %v13867_v50, %v13844_v54  ;;  %v1919_v4 = vsub.f32 %v13868_v15, %v13846_v16  ;;  %v1920_v44 = vsub.f32 %v13869_v59, %v13848_v57  ;;  %v13881_v33 = vld [vmem:[#allocation237_spill] sm:$0xff] }
 0x3c4   : > { %v1921_v48 = vsub.f32 %v13870_v63, %v13842_v9  ;;  %v1922_v40 = vsub.f32 %v13871_v1, %v13844_v54  ;;  %v1923_v39 = vsub.f32 %v13872_v56, %v13846_v16  ;;  %v1924_v13 = vsub.f32 %v13873_v51, %v13848_v57 }
 0x3c5   : > { %v1925_v55 = vsub.f32 %v13874_v2, %v13842_v9  ;;  %v1926_v3 = vsub.f32 %v13875_v52, %v13844_v54  ;;  %v1927_v34 = vsub.f32 %v13876_v35, %v13846_v16  ;;  %v1928_v25 = vsub.f32 %v13877_v32, %v13848_v57 }
 0x3c6   : > { %v1929_v47 = vsub.f32 %v13878_v38, %v13842_v9  ;;  %v1930_v22 = vsub.f32 %v13879_v43, %v13844_v54  ;;  %v1931_v17 = vsub.f32 %v13880_v27, %v13846_v16  ;;  %v1932_v49 = vsub.f32 %v13881_v33, %v13848_v57  ;;  %v13887_v38 = vld [vmem:[#allocation128_spill] sm:$0xff]  ;;  %v13888_v43 = vld [vmem:[#allocation135_spill] sm:$0xff] }
 0x3c7   : > { %v7048_v10 = vpop.eup %7047  ;;  %v2117_v50 = vmul.f32 1.442695, %v1897_v23  ;;  %v2119_v15 = vmul.f32 1.442695, %v1898_v24  ;;  %v2121_v59 = vmul.f32 1.442695, %v1899_v7 }
 0x3c8   : > { %v7050_v63 = vpop.eup %7049  ;;  %v12093_v1 = vmul.f32 %v7048_v10, %v5083_v28  ;;  %v2123_v56 = vmul.f32 1.442695, %v1900_v30  ;;  %v2125_v51 = vmul.f32 1.442695, %v1901_v61  ;;  %v2127_v2 = vmul.f32 1.442695, %v1902_v6 }
 0x3c9   : > { %v12095_v54 = vmul.f32 %v7050_v63, %v5114_v29  ;;  %7055 = vpow2.f32 %v2117_v50  ;;  %v2129_v16 = vmul.f32 1.442695, %v1903_v11  ;;  %v2131_v52 = vmul.f32 1.442695, %v1904_v53  ;;  %v13890_v50 = vld [vmem:[#allocation121_spill] sm:$0xff]  ;;  %v13892_v63 = vld [vmem:[#allocation124_spill] sm:$0xff] }
 0x3ca   : > { %7057 = vpow2.f32 %v2119_v15  ;;  %v2133_v35 = vmul.f32 1.442695, %v1905_v41  ;;  %v2135_v57 = vmul.f32 1.442695, %v1906_v26  ;;  %v2137_v32 = vmul.f32 1.442695, %v1907_v60 }
 0x3cb   : > { %7059 = vpow2.f32 %v2121_v59  ;;  %v2139_v9 = vmul.f32 1.442695, %v1908_v45  ;;  %v2141_v58 = vmul.f32 1.442695, %v1909_v12  ;;  %v2143_v23 = vmul.f32 1.442695, %v1910_v5 }
 0x3cc   : > { %7061 = vpow2.f32 %v2123_v56  ;;  %v2145_v24 = vmul.f32 1.442695, %v1911_v8  ;;  %v2147_v28 = vmul.f32 1.442695, %v1912_v42  ;;  %v2149_v7 = vmul.f32 1.442695, %v1913_v19 }
 0x3cd   : > { %7063 = vpow2.f32 %v2125_v51  ;;  %v2151_v30 = vmul.f32 1.442695, %v1914_v37  ;;  %v2153_v61 = vmul.f32 1.442695, %v1915_v46  ;;  %v12097_v29 = vmul.f32 1.442695, %v1916_v62 }
 0x3ce   : > { %7065 = vpow2.f32 %v2127_v2  ;;  %v12099_v6 = vmul.f32 1.442695, %v1917_v31  ;;  %v12101_v11 = vmul.f32 1.442695, %v1918_v36  ;;  %v12103_v53 = vmul.f32 1.442695, %v1919_v4 }
 0x3cf   : > { %v7052_v41 = vpop.eup %7051  ;;  %7067 = vpow2.f32 %v2129_v16  ;;  %v12105_v26 = vmul.f32 1.442695, %v1920_v44  ;;  %v12107_v60 = vmul.f32 1.442695, %v1921_v48  ;;  %v12109_v45 = vmul.f32 1.442695, %v1922_v40 }
 0x3d0   : > { %v7054_v12 = vpop.eup %7053  ;;  %v12112_v5 = vmul.f32 %v7052_v41, %v12016_v18  ;;  %7069 = vpow2.f32 %v2131_v52  ;;  %v12114_v8 = vmul.f32 1.442695, %v1923_v39  ;;  %v12116_v42 = vmul.f32 1.442695, %v1924_v13  ;;  %v13882_v40 = vld [vmem:[#allocation127_spill] sm:$0xff]  ;;  %v13891_v59 = vld [vmem:[#allocation72_spill] sm:$0xff] }
 0x3d1   : > { %v12119_v19 = vmul.f32 %v7054_v12, %v12022_v21  ;;  %7071 = vpow2.f32 %v2133_v35  ;;  %v12121_v37 = vmul.f32 1.442695, %v1925_v55  ;;  %v12123_v46 = vmul.f32 1.442695, %v1926_v3  ;;  %v13883_v39 = vld [vmem:[#allocation123_spill] sm:$0xff]  ;;  %v13884_v55 = vld [vmem:[#allocation130_spill] sm:$0xff] }
 0x3d2   : > { %7073 = vpow2.f32 %v2135_v57  ;;  %v12125_v62 = vmul.f32 1.442695, %v1927_v34  ;;  %v12127_v31 = vmul.f32 1.442695, %v1928_v25  ;;  %v12129_v18 = vmul.f32 1.442695, %v1929_v47 }
 0x3d3   : > { %7075 = vpow2.f32 %v2137_v32  ;;  %v12131_v36 = vmul.f32 1.442695, %v1930_v22  ;;  %v12133_v4 = vmul.f32 1.442695, %v1931_v17  ;;  %v12135_v44 = vmul.f32 1.442695, %v1932_v49 }
 0x3d4   : > { %7077 = vpow2.f32 %v2139_v9  ;;  %v2340_v21 = vcombine.high %v12002_v14, %v12002_v14  ;;  %v2347_v48 = vrot.slane %v12002_v14, %v13604_v20  ;;  %v2698_v13 = vadd.f32 %v13883_v39, %v13882_v40  ;;  %v13885_v3 = vld [vmem:[#allocation125_spill] sm:$0xff]  ;;  %v13889_v22 = vld [vmem:[#allocation131_spill] sm:$0xff]  ;;  %v13893_v51 = vld [vmem:[#allocation122_spill] sm:$0xff] }
 0x3d5   : > { %7079 = vpow2.f32 %v2141_v58  ;;  %v2729_v34 = vadd.f32 %v13885_v3, %v13884_v55  ;;  %v13886_v25 = vld [vmem:[#allocation133_spill] sm:$0xff]  ;;  %v2791_v27 = vadd.f32 %v13889_v22, %v13888_v43  ;;  %v12159_v56 = vadd.f32 %v13892_v63, %v13891_v59  ;;  %v13894_v2 = vld [vmem:[#allocation126_spill] sm:$0xff] }
 0x3d6   : > { %v2760_v47 = vadd.f32 %v13887_v38, %v13886_v25  ;;  %v12149_v17 = vpop.eup %7055  ;;  %7081 = vpow2.f32 %v2143_v23  ;;  %v2354_v10 = vrot.slane %v2340_v21, %v13604_v20  ;;  %v2355_v33 = vcombine.high %v2347_v48, %v2347_v48 }
 0x3d7   : > { %v2363_v14 = vrot.slane %v2347_v48, %v13604_v20  ;;  %v12153_v49 = vpop.eup %7057  ;;  %7083 = vpow2.f32 %v2145_v24  ;;  %v2641_v15 = vmul.f32 %v12149_v17, %v13890_v50  ;;  %v12163_v16 = vadd.f32 %v13894_v2, %v13893_v51 }
 0x3d8   : > { %v12165_v52 = vpop.eup %7059  ;;  %7085 = vpow2.f32 %v2147_v28  ;;  %v2356_v35 = vcombine.high %v2354_v10, %v2354_v10  ;;  %v2370_v57 = vrot.slane %v2354_v10, %v13604_v20  ;;  %v2377_v32 = vrot.slane %v2355_v33, %v13604_v20 }
 0x3d9   : > { %v12169_v9 = vpop.eup %7061  ;;  %7087 = vpow2.f32 %v2149_v7  ;;  %v2385_v58 = vcombine.high %v2363_v14, %v2363_v14  ;;  %v2488_v23 = vrot.slane %v2363_v14, %v13615_v0  ;;  %v2642_v24 = vmul.f32 %v12153_v49, %v13890_v50 }
 0x3da   : > { %v12174_v41 = vpop.eup %7063  ;;  %7089 = vpow2.f32 %v2151_v30  ;;  %v2384_v12 = vrot.slane %v2356_v35, %v13604_v20  ;;  %v2386_v28 = vcombine.high %v2370_v57, %v2370_v57  ;;  %v2387_v21 = vcombine.high %v2377_v32, %v2377_v32 }
 0x3db   : > { %v12177_v48 = vpop.eup %7065  ;;  %7091 = vpow2.f32 %v2153_v61  ;;  %v2492_v40 = vrot.slane %v2377_v32, %v13615_v0  ;;  %v2496_v7 = vrot.slane %v2385_v58, %v13615_v0  ;;  %v12182_v39 = vrot.slane %v2370_v57, %v13615_v0 }
 0x3dc   : > { %v12184_v55 = vpop.eup %7067  ;;  %7093 = vpow2.f32 %v12097_v29  ;;  %v2388_v3 = vcombine.high %v2384_v12, %v2384_v12  ;;  %v12188_v30 = vrot.slane %v2387_v21, %v13615_v0  ;;  %v12191_v20 = vrot.slane %v2384_v12, %v13615_v0 }
 0x3dd   : > { %v12193_v25 = vpop.eup %7069  ;;  %7095 = vpow2.f32 %v12099_v6  ;;  %v12197_v61 = vrot.slane %v2386_v28, %v13615_v0  ;;  %v2643_v38 = vmul.f32 %v12165_v52, %v13890_v50  ;;  %v2644_v29 = vmul.f32 %v12169_v9, %v13890_v50 }
 0x3de   : > { %v12203_v43 = vpop.eup %7071  ;;  %7097 = vpow2.f32 %v12101_v11  ;;  %v12207_v22 = vrot.slane %v2388_v3, %v13615_v0  ;;  %v2645_v10 = vmul.f32 %v12174_v41, %v2488_v23  ;;  %v2646_v6 = vmul.f32 %v12177_v48, %v2488_v23 }
 0x3df   : > { %v12211_v33 = vpop.eup %7073  ;;  %7099 = vpow2.f32 %v12103_v53  ;;  %v2647_v14 = vmul.f32 %v12184_v55, %v2488_v23  ;;  %v2648_v59 = vmul.f32 %v12193_v25, %v2488_v23  ;;  %v2649_v50 = vmul.f32 %v12203_v43, %v2492_v40 }
 0x3e0   : > { %v12217_v63 = vpop.eup %7075  ;;  %7101 = vpow2.f32 %v12105_v26  ;;  %v2650_v11 = vmul.f32 %v12211_v33, %v2492_v40  ;;  %v2699_v51 = vadd.f32 %v2698_v13, %v2641_v15  ;;  %v2730_v2 = vadd.f32 %v2729_v34, %v2642_v24 }
 0x3e1   : > { %v12221_v35 = vpop.eup %7077  ;;  %7103 = vpow2.f32 %v12107_v60  ;;  %v2651_v53 = vmul.f32 %v12217_v63, %v2492_v40  ;;  %v2761_v57 = vadd.f32 %v2760_v47, %v2643_v38  ;;  %v2792_v32 = vadd.f32 %v2791_v27, %v2644_v29 }
 0x3e2   : > { %v7080_v58 = vpop.eup %7079  ;;  %7105 = vpow2.f32 %v12109_v45  ;;  %v2652_v23 = vmul.f32 %v12221_v35, %v2492_v40  ;;  %v2700_v12 = vadd.f32 %v2699_v51, %v2645_v10  ;;  %v2731_v28 = vadd.f32 %v2730_v2, %v2646_v6 }
 0x3e3   : > { %v7082_v26 = vpop.eup %7081  ;;  %7107 = vpow2.f32 %v12114_v8  ;;  %v2653_v13 = vmul.f32 %v7080_v58, %v2496_v7  ;;  %v2762_v34 = vadd.f32 %v2761_v57, %v2647_v14  ;;  %v2793_v15 = vadd.f32 %v2792_v32, %v2648_v59 }
 0x3e4   : > { %v12228_v24 = vpop.eup %7083  ;;  %7109 = vpow2.f32 %v12116_v42  ;;  %v2654_v60 = vmul.f32 %v7082_v26, %v2496_v7  ;;  %v2701_v47 = vadd.f32 %v2700_v12, %v2649_v50  ;;  %v2732_v27 = vadd.f32 %v2731_v28, %v2650_v11  ;;  %v13895_v28 = vld [vmem:[#allocation134_spill] sm:$0xff] }
 0x3e5   : > { %v12231_v21 = vpop.eup %7085  ;;  %7111 = vpow2.f32 %v12121_v37  ;;  %v2655_v45 = vmul.f32 %v12228_v24, %v2496_v7  ;;  %v2763_v40 = vadd.f32 %v2762_v34, %v2651_v53  ;;  %v2794_v3 = vadd.f32 %v2793_v15, %v2652_v23 }
 0x3e6   : > { %v7088_v38 = vpop.eup %7087  ;;  %7113 = vpow2.f32 %v12123_v46  ;;  %v2656_v8 = vmul.f32 %v12231_v21, %v2496_v7  ;;  %v2702_v29 = vadd.f32 %v2701_v47, %v2653_v13  ;;  %v2733_v10 = vadd.f32 %v2732_v27, %v2654_v60  ;;  %v13896_v13 = vld [vmem:[#allocation129_spill] sm:$0xff]  ;;  %v13897_v47 = vld [vmem:[#allocation136_spill] sm:$0xff] }
 0x3e7   : > { %v7090_v6 = vpop.eup %7089  ;;  %7115 = vpow2.f32 %v12125_v62  ;;  %v2657_v42 = vmul.f32 %v7088_v38, %v12188_v30  ;;  %v2764_v14 = vadd.f32 %v2763_v40, %v2655_v45  ;;  %v2823_v37 = vadd.f32 %v12149_v17, %v12159_v56  ;;  %v13898_v27 = vld [vmem:[#allocation132_spill] sm:$0xff] }
 0x3e8   : > { %v12241_v59 = vpop.eup %7091  ;;  %7117 = vpow2.f32 %v12127_v31  ;;  %v2658_v50 = vmul.f32 %v7090_v6, %v12188_v30  ;;  %v2795_v46 = vadd.f32 %v2794_v3, %v2656_v8  ;;  %v2854_v7 = vadd.f32 %v12153_v49, %v12163_v16 }
 0x3e9   : > { %v12247_v11 = vpop.eup %7093  ;;  %7119 = vpow2.f32 %v12129_v18  ;;  %v2659_v62 = vmul.f32 %v12241_v59, %v12188_v30  ;;  %v2703_v51 = vadd.f32 %v2702_v29, %v2657_v42  ;;  %v2824_v17 = vadd.f32 %v12174_v41, %v2823_v37 }
 0x3ea   : > { %v7096_v56 = vpop.eup %7095  ;;  %7121 = vpow2.f32 %v12131_v36  ;;  %v2660_v31 = vmul.f32 %v12247_v11, %v12188_v30  ;;  %v2734_v2 = vadd.f32 %v2733_v10, %v2658_v50  ;;  %v2855_v53 = vadd.f32 %v12177_v48, %v2854_v7 }
 0x3eb   : > { %v7098_v49 = vpop.eup %7097  ;;  %7123 = vpow2.f32 %v12133_v4  ;;  %v2661_v18 = vmul.f32 %v7096_v56, %v12182_v39  ;;  %v2765_v16 = vadd.f32 %v2764_v14, %v2659_v62  ;;  %v2825_v57 = vadd.f32 %v12203_v43, %v2824_v17 }
 0x3ec   : > { %v12260_v32 = vpop.eup %7099  ;;  %7125 = vpow2.f32 %v12135_v44  ;;  %v2662_v36 = vmul.f32 %v7098_v49, %v12182_v39  ;;  %v2796_v41 = vadd.f32 %v2795_v46, %v2660_v31  ;;  %v2856_v30 = vadd.f32 %v12211_v33, %v2855_v53 }
 0x3ed   : > { %v12265_v23 = vpop.eup %7101  ;;  %v2663_v48 = vmul.f32 %v12260_v32, %v12182_v39  ;;  %v2704_v4 = vadd.f32 %v2703_v51, %v2661_v18  ;;  %v2826_v12 = vadd.f32 %v7080_v58, %v2825_v57  ;;  %v2884_v34 = vadd.f32 %v13896_v13, %v13895_v28 }
 0x3ee   : > { %v7104_v43 = vpop.eup %7103  ;;  %v2664_v15 = vmul.f32 %v12265_v23, %v12182_v39  ;;  %v2735_v44 = vadd.f32 %v2734_v2, %v2662_v36  ;;  %v2857_v60 = vadd.f32 %v7082_v26, %v2856_v30  ;;  %v2915_v45 = vadd.f32 %v13898_v27, %v13897_v47 }
 0x3ef   : > { %v7106_v33 = vpop.eup %7105  ;;  %v2665_v40 = vmul.f32 %v7104_v43, %v12191_v20  ;;  %v2766_v3 = vadd.f32 %v2765_v16, %v2663_v48  ;;  %v2827_v8 = vadd.f32 %v7088_v38, %v2826_v12  ;;  %v2885_v29 = vadd.f32 %v12165_v52, %v2884_v34 }
 0x3f0   : > { %v7108_v58 = vpop.eup %7107  ;;  %v2666_v10 = vmul.f32 %v7106_v33, %v12191_v20  ;;  %v2797_v42 = vadd.f32 %v2796_v41, %v2664_v15  ;;  %v2858_v14 = vadd.f32 %v7090_v6, %v2857_v60  ;;  %v2916_v37 = vadd.f32 %v12169_v9, %v2915_v45 }
 0x3f1   : > { %v7110_v39 = vpop.eup %7109  ;;  %v2667_v26 = vmul.f32 %v7108_v58, %v12191_v20  ;;  %v2705_v50 = vadd.f32 %v2704_v4, %v2665_v40  ;;  %v2828_v46 = vadd.f32 %v7096_v56, %v2827_v8  ;;  %v2886_v7 = vadd.f32 %v12184_v55, %v2885_v29 }
 0x3f2   : > { %v7112_v62 = vpop.eup %7111  ;;  %v2668_v51 = vmul.f32 %v7110_v39, %v12191_v20  ;;  %v2736_v38 = vadd.f32 %v2735_v44, %v2666_v10  ;;  %v2859_v17 = vadd.f32 %v7098_v49, %v2858_v14  ;;  %v2917_v52 = vadd.f32 %v12193_v25, %v2916_v37 }
 0x3f3   : > { %v7114_v31 = vpop.eup %7113  ;;  %v2669_v2 = vmul.f32 %v7112_v62, %v12197_v61  ;;  %v2767_v6 = vadd.f32 %v2766_v3, %v2667_v26  ;;  %v2829_v53 = vadd.f32 %v7104_v43, %v2828_v46  ;;  %v2887_v9 = vadd.f32 %v12217_v63, %v2886_v7 }
 0x3f4   : > { %v7116_v18 = vpop.eup %7115  ;;  %v2670_v16 = vmul.f32 %v7114_v31, %v12197_v61  ;;  %v2798_v56 = vadd.f32 %v2797_v42, %v2668_v51  ;;  %v2860_v57 = vadd.f32 %v7106_v33, %v2859_v17  ;;  %v2918_v55 = vadd.f32 %v12221_v35, %v2917_v52  ;;  %v5416_v33 = vld [vmem:[%s12383_s5] sm:$0xff]  ;;  %v7150_v17 = vld [vmem:[%s7464_s26 + $0x8] sm:$0xff] }
 0x3f5   : > { %v7118_v36 = vpop.eup %7117  ;;  %v2671_v20 = vmul.f32 %v7116_v18, %v12197_v61  ;;  %v2706_v49 = vadd.f32 %v2705_v50, %v2669_v2  ;;  %v2830_v41 = vadd.f32 %v7112_v62, %v2829_v53  ;;  %v2888_v25 = vadd.f32 %v12228_v24, %v2887_v9  ;;  %5988 = vmatprep.mubr.msk.f32.mxu0 %vm5444_vm0, %v5416_v33  ;;  %v7149_v62 = vld [vmem:[%s7464_s26] sm:$0xff] }
 0x3f6   : > { %v7120_v30 = vpop.eup %7119  ;;  %v2672_v48 = vmul.f32 %v7118_v36, %v12197_v61  ;;  %v2737_v4 = vadd.f32 %v2736_v38, %v2670_v16  ;;  %v2861_v12 = vadd.f32 %v7114_v31, %v2860_v57  ;;  %v2919_v63 = vadd.f32 %v12231_v21, %v2918_v55  ;;  %v7151_v57 = vld [vmem:[%s7464_s26 + $0x10] sm:$0xff] }
 0x3f7   : > { %v7122_v28 = vpop.eup %7121  ;;  %v2673_v13 = vmul.f32 %v7120_v30, %v12207_v22  ;;  %v2768_v34 = vadd.f32 %v2767_v6, %v2671_v20  ;;  %v2831_v43 = vadd.f32 %v7120_v30, %v2830_v41  ;;  %v2889_v35 = vadd.f32 %v12241_v59, %v2888_v25 }
 0x3f8   : > { %v7124_v15 = vpop.eup %7123  ;;  %v2674_v44 = vmul.f32 %v7122_v28, %v12207_v22  ;;  %v2799_v60 = vadd.f32 %v2798_v56, %v2672_v48  ;;  %v2862_v47 = vadd.f32 %v7122_v28, %v2861_v12  ;;  %v2920_v24 = vadd.f32 %v12247_v11, %v2919_v63 }
 0x3f9   : > { %v7126_v27 = vpop.eup %7125  ;;  %v2675_v61 = vmul.f32 %v7124_v15, %v12207_v22  ;;  %v2707_v45 = vadd.f32 %v2706_v49, %v2673_v13  ;;  %v2890_v21 = vadd.f32 %v12260_v32, %v2889_v35  ;;  %7127 = vrcp.f32 %v2831_v43 }
 0x3fa   : > { %v2676_v59 = vmul.f32 %v7126_v27, %v12207_v22  ;;  %v2738_v40 = vadd.f32 %v2737_v4, %v2674_v44  ;;  %v2921_v3 = vadd.f32 %v12265_v23, %v2920_v24  ;;  %7129 = vrcp.f32 %v2862_v47 }
 0x3fb   : > { %v2769_v8 = vadd.f32 %v2768_v34, %v2675_v61  ;;  %v2891_v29 = vadd.f32 %v7108_v58, %v2890_v21 }
 0x3fc   : > { %v2800_v11 = vadd.f32 %v2799_v60, %v2676_v59  ;;  %v2922_v10 = vadd.f32 %v7110_v39, %v2921_v3 }
 0x3fd   : > { %v2892_v32 = vadd.f32 %v7116_v18, %v2891_v29  ;;  %v5386_v29 = vpop.permute.xlu1 %5385 }
 0x3fe   : > { %v2923_v42 = vadd.f32 %v7118_v36, %v2922_v10  ;;  %v7152_v36 = vld [vmem:[%s7464_s26 + $0x18] sm:$0xff]  ;;  %s12341_s26 = scalar_lea.hbm %s12393_s15, %s5960_s24 }
 0x3ff   : > { %v2893_v14 = vadd.f32 %v7124_v15, %v2892_v32 }
 0x400   : > { %v2924_v37 = vadd.f32 %v7126_v27, %v2923_v42  ;;  %v5410_v42 = vpop.permute.xlu0 %5409 }
 0x401   : > { %7131 = vrcp.f32 %v2893_v14  ;;  %v5381_v10 = vpop.permute.xlu1 %5380 }
 0x402   : > { %7133 = vrcp.f32 %v2924_v37 }
 0x405   : > { %v5376_v32 = vpop.permute.xlu1 %5375 }
 0x406   : > { %v7128_v22 = vpop.eup %7127 }
 0x407   : > { %v7130_v26 = vpop.eup %7129  ;;  %v2929_v50 = vmul.f32 %v7128_v22, %v2707_v45 }
 0x408   : > { %v2930_v23 = vmul.f32 %v7130_v26, %v2738_v40 }
 0x409   : > { %v5309_v46 = vadd.f32 %v12093_v1, %v2929_v50 }
 0x40a   : > { %v5310_v58 = vadd.f32 %v12095_v54, %v2930_v23  ;;  %v5405_v23 = vpop.permute.xlu1 %5404 }
 0x40b   : > { %v5313_v7 = vmul.f32 0.17677669, %v5309_v46 }
 0x40c   : > { %v5314_v39 = vmul.f32 0.17677669, %v5310_v58 }
 0x40d   : > { %v5317_v51 = vadd.f32 %v7149_v62, %v5313_v7  ;;  %v5371_v7 = vpop.permute.xlu0 %5370 }
 0x40e   : > { %v7132_v38 = vpop.eup %7131  ;;  %v5318_v52 = vadd.f32 %v7150_v17, %v5314_v39  ;;  %v5400_v17 = vpop.permute.xlu1 %5399 }
 0x40f   : > { %v7134_v31 = vpop.eup %7133  ;;  %v2931_v2 = vmul.f32 %v7132_v38, %v2769_v8  ;;  %v5321_v6 = vmax.f32 %v5317_v51, 0.0 }
 0x410   : > { %v2932_v53 = vmul.f32 %v7134_v31, %v2800_v11  ;;  %v5322_v9 = vmax.f32 %v5318_v52, 0.0 }
 0x411   : > { %v5311_v18 = vadd.f32 %v12112_v5, %v2931_v2  ;;  %v5395_v31 = vpop.permute.xlu0 %5394 }
 0x412   : > { %v5312_v1 = vadd.f32 %v12119_v19, %v2932_v53  ;;  %v5333_v16 = vadd.f32 %v5322_v9, %v5321_v6  ;;  %v5418_v53 = vld [vmem:[%s12383_s5 + $0x10] sm:$0xff] }
 0x413   : > { %v5315_v54 = vmul.f32 0.17677669, %v5311_v18  ;;  %v5636_v18 = vld [vmem:[%s12387_s9] sm:$0xff] }
 0x414   : > { %v5316_v56 = vmul.f32 0.17677669, %v5312_v1  ;;  %6002 = vmatprep.mubr.msk.f32.mxu1 %vm5444_vm0, %v5636_v18  ;;  %v5427_v1 = vpop.permute.xlu1 %5426 }
 0x415   : > { %v5319_v55 = vadd.f32 %v7151_v57, %v5315_v54 }
 0x416   : > { %v5320_v20 = vadd.f32 %v7152_v36, %v5316_v56 }
 0x417   : > { %v5323_v49 = vmax.f32 %v5319_v55, 0.0 }
 0x418   : > { %v5324_v41 = vmax.f32 %v5320_v20, 0.0  ;;  %v5437_v20 = vpop.permute.xlu1 %5436 }
 0x419   : > { %v5334_v25 = vadd.f32 %v5333_v16, %v5323_v49  ;;  %v5432_v16 = vpop.permute.xlu0 %5431 }
 0x41b   : > { %v5335_v30 = vadd.f32 %v5334_v25, %v5324_v41 }
 0x41d   : > { %v5336_v48 = vrot.slane %v5335_v30, 4 }
 0x41f   : > { %v5337_v4 = vadd.f32 %v5336_v48, %v5335_v30 }
 0x421   : > { %v5338_v12 = vrot.slane %v5337_v4, 2 }
 0x423   : > { %v5339_v63 = vadd.f32 %v5338_v12, %v5337_v4 }
 0x425   : > { %v5340_v28 = vrot.slane %v5339_v63, 1 }
 0x427   : > { %v5341_v13 = vadd.f32 %v5340_v28, %v5339_v63 }
 0x429   : > { %v5343_v5 = vmul.f32 0.03125, %v5341_v13 }
 0x42b   : > { %v5346_v34 = vsub.f32 %v5323_v49, %v5343_v5  ;;  %v5344_v19 = vsub.f32 %v5321_v6, %v5343_v5  ;;  %v5345_v43 = vsub.f32 %v5322_v9, %v5343_v5  ;;  %v5347_v35 = vsub.f32 %v5324_v41, %v5343_v5  ;;  %v5417_v6 = vld [vmem:[%s12383_s5 + $0x8] sm:$0xff]  ;;  %v5419_v9 = vld [vmem:[%s12383_s5 + $0x18] sm:$0xff]  ;;  %v5442_v41 = vpop.permute.xlu0 %5441 }
 0x42d   : > { %v5348_v15 = vmul.f32 %v5344_v19, %v5344_v19  ;;  %v5349_v44 = vmul.f32 %v5345_v43, %v5345_v43  ;;  %v5350_v60 = vmul.f32 %v5346_v34, %v5346_v34  ;;  %v5351_v24 = vmul.f32 %v5347_v35, %v5347_v35 }
 0x42f   : > { %v5352_v47 = vadd.f32 %v5349_v44, %v5348_v15 }
 0x431   : > { %v5353_v27 = vadd.f32 %v5352_v47, %v5350_v60 }
 0x433   : > { %v5354_v61 = vadd.f32 %v5353_v27, %v5351_v24 }
 0x435   : > { %v5355_v45 = vrot.slane %v5354_v61, 4 }
 0x437   : > { %v5356_v21 = vadd.f32 %v5355_v45, %v5354_v61 }
 0x439   : > { %v5357_v33 = vrot.slane %v5356_v21, 2 }
 0x43b   : > { %v5358_v59 = vadd.f32 %v5357_v33, %v5356_v21 }
 0x43d   : > { %v5359_v40 = vrot.slane %v5358_v59, 1 }
 0x43f   : > { %v5360_v3 = vadd.f32 %v5359_v40, %v5358_v59 }
 0x441   : > { %v5361_v8 = vmul.f32 0.03125, %v5360_v3 }
 0x443   : > { %v5362_v11 = vadd.f32 1e-05, %v5361_v8 }
 0x445   : > { %7135 = vrsqrt.f32 %v5362_v11 }
 0x452   : > { %v7136_v14 = vpop.eup %7135 }
 0x453   : > { %v5367_v37 = vmul.f32 %v7136_v14, %v5347_v35  ;;  %v5366_v22 = vmul.f32 %v7136_v14, %v5346_v34  ;;  %v5365_v26 = vmul.f32 %v7136_v14, %v5345_v43  ;;  %v5364_v50 = vmul.f32 %v7136_v14, %v5344_v19 }
 0x455   : > { %v5391_v46 = vmul.f32 %v5386_v29, %v5367_v37  ;;  %v5390_v58 = vmul.f32 %v5381_v10, %v5366_v22  ;;  %v5389_v39 = vmul.f32 %v5376_v32, %v5365_v26  ;;  %v5388_v38 = vmul.f32 %v5371_v7, %v5364_v50  ;;  %v5606_v26 = vpop.permute.xlu1 %5605  ;;  %v5601_v50 = vpop.permute.xlu0 %5600 }
 0x457   : > { %v5415_v62 = vadd.f32 %v5410_v42, %v5391_v46  ;;  %v5414_v51 = vadd.f32 %v5405_v23, %v5390_v58  ;;  %v5413_v52 = vadd.f32 %v5400_v17, %v5389_v39  ;;  %v5412_v2 = vadd.f32 %v5395_v31, %v5388_v38 }
 0x459   : > { %5980 = vmatprep.subr.mxu0 %v5415_v62  ;;  %v5630_v23 = vpop.permute.xlu1 %5629  ;;  %v5596_v46 = vpop.permute.xlu0 %5595 }
 0x45a   : > { %5981 = vmatpush3.msra.mxu0 %v5415_v62 }
 0x45b   : > { %5982 = vmatprep.subr.mxu0 %v5414_v51 }
 0x45c   : > { %5983 = vmatpush3.msra.mxu0 %v5414_v51 }
 0x45d   : > { %5984 = vmatprep.subr.mxu0 %v5413_v52  ;;  %v5625_v51 = vpop.permute.xlu1 %5624  ;;  %v5591_v31 = vpop.permute.xlu0 %5590 }
 0x45e   : > { %5985 = vmatpush3.msra.mxu0 %v5413_v52 }
 0x45f   : > { %5986 = vmatprep.subr.mxu0 %v5412_v2 }
 0x460   : > { %5987 = vmatpush3.msra.mxu0 %v5412_v2 }
 0x461   : > { %5989 = vmatmul.mubr.msk.f32.vlgmr.msra.gmra.mxu0 %vm5444_vm0, %v5417_v6  ;;  %v5620_v18 = vpop.permute.xlu1 %5619 }
 0x462   : > { %5991 = vmatprep.mubr.msk.f32.mxu0 %vm5444_vm0, %v5418_v53 }
 0x465   : > { %5992 = vmatmul.mubr.msk.f32.gmra.mxu0 %vm5444_vm0, %v5419_v9 }
 0x521   : > { %v5990_v54 = vpop.f32.mrf.mxu0 }
 0x522   : > { %v5529_v57 = vadd.f32 %v5990_v54, %v5432_v16  ;;  %v5615_v16 = vpop.permute.xlu0 %5614 }
 0x523   : > { %v5523_v56 = vpop.f32.mrf.mxu0 }
 0x524   : > { %v5524_v55 = vadd.f32 %v5523_v56, %v5427_v1  ;;  %v5543_v30 = vmax.f32 %v5529_v57, 0.0  ;;  %v5637_v56 = vld [vmem:[%s12387_s9 + $0x8] sm:$0xff]  ;;  %v7222_v57 = vmov 0.0  }
 0x525   : > { %v5993_v36 = vpop.f32.mrf.mxu0 }
 0x526   : > { %v5542_v49 = vmax.f32 %v5524_v55, 0.0  ;;  %v5539_v48 = vadd.f32 %v5993_v36, %v5442_v41  ;;  %v5648_v55 = vpop.permute.xlu0 %5647 }
 0x527   : > { %v5533_v25 = vpop.f32.mrf.mxu0 }
 0x528   : > { %v5534_v4 = vadd.f32 %v5533_v25, %v5437_v20  ;;  %v5554_v12 = vadd.f32 %v5543_v30, %v5542_v49  ;;  %v5545_v28 = vmax.f32 %v5539_v48, 0.0 }
 0x52a   : > { %v5544_v63 = vmax.f32 %v5534_v4, 0.0 }
 0x52c   : > { %v5555_v13 = vadd.f32 %v5554_v12, %v5544_v63 }
 0x52e   : > { %v5556_v5 = vadd.f32 %v5555_v13, %v5545_v28 }
 0x530   : > { %v5557_v34 = vrot.slane %v5556_v5, 4 }
 0x532   : > { %v5558_v19 = vadd.f32 %v5557_v34, %v5556_v5 }
 0x534   : > { %v5559_v43 = vrot.slane %v5558_v19, 2 }
 0x536   : > { %v5560_v35 = vadd.f32 %v5559_v43, %v5558_v19 }
 0x538   : > { %v5561_v15 = vrot.slane %v5560_v35, 1 }
 0x53a   : > { %v5562_v44 = vadd.f32 %v5561_v15, %v5560_v35 }
 0x53c   : > { %v5563_v60 = vmul.f32 0.03125, %v5562_v44 }
 0x53e   : > { %v5564_v47 = vsub.f32 %v5542_v49, %v5563_v60  ;;  %v5565_v24 = vsub.f32 %v5543_v30, %v5563_v60  ;;  %v5566_v27 = vsub.f32 %v5544_v63, %v5563_v60  ;;  %v5567_v61 = vsub.f32 %v5545_v28, %v5563_v60  ;;  %v5643_v49 = vpop.permute.xlu1 %5642 }
 0x540   : > { %v5568_v45 = vmul.f32 %v5564_v47, %v5564_v47  ;;  %v5569_v21 = vmul.f32 %v5565_v24, %v5565_v24  ;;  %v5570_v33 = vmul.f32 %v5566_v27, %v5566_v27  ;;  %v5571_v40 = vmul.f32 %v5567_v61, %v5567_v61 }
 0x542   : > { %v5572_v59 = vadd.f32 %v5569_v21, %v5568_v45 }
 0x544   : > { %v5573_v3 = vadd.f32 %v5572_v59, %v5570_v33 }
 0x546   : > { %v5574_v8 = vadd.f32 %v5573_v3, %v5571_v40  ;;  %v5770_v40 = vpop.permute.xlu1 %5769 }
 0x548   : > { %v5575_v29 = vrot.slane %v5574_v8, 4 }
 0x54a   : > { %v5576_v11 = vadd.f32 %v5575_v29, %v5574_v8  ;;  %v5765_v8 = vpop.permute.xlu0 %5764 }
 0x54c   : > { %v5577_v10 = vrot.slane %v5576_v11, 2 }
 0x54e   : > { %v5578_v32 = vadd.f32 %v5577_v10, %v5576_v11 }
 0x550   : > { %v5579_v42 = vrot.slane %v5578_v32, 1 }
 0x552   : > { %v5580_v14 = vadd.f32 %v5579_v42, %v5578_v32  ;;  %v5782_v42 = vpop.permute.xlu1 %5781 }
 0x554   : > { %v5581_v37 = vmul.f32 0.03125, %v5580_v14 }
 0x556   : > { %v5582_v22 = vadd.f32 1e-05, %v5581_v37  ;;  %v5777_v37 = vpop.permute.xlu0 %5776 }
 0x558   : > { %7137 = vrsqrt.f32 %v5582_v22 }
 0x565   : > { %v7138_v58 = vpop.eup %7137 }
 0x566   : > { %v5586_v7 = vmul.f32 %v7138_v58, %v5566_v27  ;;  %v5587_v39 = vmul.f32 %v7138_v58, %v5567_v61  ;;  %v5585_v62 = vmul.f32 %v7138_v58, %v5565_v24  ;;  %v5584_v52 = vmul.f32 %v7138_v58, %v5564_v47 }
 0x568   : > { %v5611_v38 = vmul.f32 %v5606_v26, %v5587_v39  ;;  %v5610_v17 = vmul.f32 %v5601_v50, %v5586_v7  ;;  %v5609_v6 = vmul.f32 %v5596_v46, %v5585_v62  ;;  %v5608_v9 = vmul.f32 %v5591_v31, %v5584_v52  ;;  %v5786_v26 = vld [vmem:[%s12391_s13] sm:$0x1]  ;;  %v5791_v50 = vpop.permute.xlu1 %5790 }
 0x56a   : > { %v5635_v2 = vadd.f32 %v5630_v23, %v5611_v38  ;;  %v5634_v53 = vadd.f32 %v5625_v51, %v5610_v17  ;;  %v5633_v1 = vadd.f32 %v5620_v18, %v5609_v6  ;;  %v5632_v54 = vadd.f32 %v5615_v16, %v5608_v9 }
 0x56b   : > { %v5796_v23 = vrot.slane %v5791_v50, %v13615_v0 }
 0x56c   : > { %5994 = vmatprep.subr.mxu1 %v5635_v2 }
 0x56d   : > { %5995 = vmatpush3.msra.mxu1 %v5635_v2 }
 0x56e   : > { %5996 = vmatprep.subr.mxu1 %v5634_v53 }
 0x56f   : > { %5997 = vmatpush3.msra.mxu1 %v5634_v53 }
 0x570   : > { %5998 = vmatprep.subr.mxu1 %v5633_v1 }
 0x571   : > { %5999 = vmatpush3.msra.mxu1 %v5633_v1 }
 0x572   : > { %6000 = vmatprep.subr.mxu1 %v5632_v54 }
 0x573   : > { %6001 = vmatpush3.msra.mxu1 %v5632_v54 }
 0x574   : > { %6003 = vmatmul.mubr.msk.f32.vlgmr.msra.gmra.mxu1 %vm5444_vm0, %v5637_v56  ;;  %6005 = vmatprep.subr.mxu1 %v7222_v57 }
 0x575   : > { %6009 = vmatprep.mubr.msk.f32.mxu1 %vm7223_vm1, %v7222_v57 }
 0x634   : > { %v6004_v36 = vpop.f32.mrf.mxu1 }
 0x635   : > { %v5728_v20 = vadd.f32 %v6004_v36, %v5648_v55 }
 0x636   : > { %v5722_v41 = vpop.f32.mrf.mxu1 }
 0x637   : > { %v5723_v25 = vadd.f32 %v5722_v41, %v5643_v49  ;;  %v5732_v30 = vmax.f32 %v5728_v20, 0.0 }
 0x639   : > { %v5731_v48 = vmax.f32 %v5723_v25, 0.0 }
 0x63b   : > { %v5737_v4 = vadd.f32 %v5732_v30, %v5731_v48 }
 0x63d   : > { %v5738_v12 = vrot.slane %v5737_v4, 4 }
 0x63f   : > { %v5739_v63 = vadd.f32 %v5738_v12, %v5737_v4 }
 0x641   : > { %v5740_v28 = vrot.slane %v5739_v63, 2 }
 0x643   : > { %v5741_v13 = vadd.f32 %v5740_v28, %v5739_v63 }
 0x645   : > { %v5742_v5 = vrot.slane %v5741_v13, 1 }
 0x647   : > { %v5743_v34 = vadd.f32 %v5742_v5, %v5741_v13 }
 0x649   : > { %v5745_v19 = vmul.f32 0.0625, %v5743_v34 }
 0x64b   : > { %v5746_v43 = vsub.f32 %v5731_v48, %v5745_v19  ;;  %v5747_v35 = vsub.f32 %v5732_v30, %v5745_v19 }
 0x64d   : > { %v5748_v15 = vmul.f32 %v5746_v43, %v5746_v43  ;;  %v5749_v44 = vmul.f32 %v5747_v35, %v5747_v35 }
 0x64f   : > { %v5750_v60 = vadd.f32 %v5749_v44, %v5748_v15 }
 0x651   : > { %v5751_v47 = vrot.slane %v5750_v60, 4 }
 0x653   : > { %v5752_v24 = vadd.f32 %v5751_v47, %v5750_v60 }
 0x655   : > { %v5753_v27 = vrot.slane %v5752_v24, 2 }
 0x657   : > { %v5754_v61 = vadd.f32 %v5753_v27, %v5752_v24 }
 0x659   : > { %v5755_v45 = vrot.slane %v5754_v61, 1 }
 0x65b   : > { %v5756_v21 = vadd.f32 %v5755_v45, %v5754_v61 }
 0x65d   : > { %v5757_v33 = vmul.f32 0.0625, %v5756_v21 }
 0x65f   : > { %v5758_v59 = vadd.f32 1e-05, %v5757_v33 }
 0x661   : > { %7139 = vrsqrt.f32 %v5758_v59 }
 0x66e   : > { %v7140_v3 = vpop.eup %7139 }
 0x66f   : > { %v5760_v29 = vmul.f32 %v7140_v3, %v5746_v43  ;;  %v5761_v11 = vmul.f32 %v7140_v3, %v5747_v35 }
 0x671   : > { %v5772_v10 = vmul.f32 %v5765_v8, %v5760_v29  ;;  %v5773_v32 = vmul.f32 %v5770_v40, %v5761_v11 }
 0x673   : > { %v5785_v14 = vadd.f32 %v5782_v42, %v5773_v32  ;;  %v5784_v22 = vadd.f32 %v5777_v37, %v5772_v10 }
 0x675   : > { %6006 = vmatpush3.msra.mxu1 %v5785_v14 }
 0x676   : > { %6007 = vmatprep.subr.mxu1 %v7222_v57 }
 0x677   : > { %6008 = vmatpush3.msra.mxu1 %v5784_v22 }
 0x678   : > { %6010 = vmatmul.mubr.msk.f32.vlgmr.msra.gmra.mxu1 %vm5797_vm2, %v5786_v26 }
 0x738   : > { %v5867_v46 = vpop.f32.mrf.mxu1 }
 0x739   : > { %v5868_v58 = vadd.f32 %v5867_v46, %v5796_v23 }
 0x73a   : > { %v6011_v7 = vpop.f32.mrf.mxu1 }
 0x73b   : > { %5871 = vst [vmem:[%s540_s16] sm:$0x1] %v5868_v58 }
 0x73c   : > { %7166 = shalt.err (!%p7163_p5)
}
 0x73d   : > { %s7167_s24 = scalar_lea.hbm %s12341_s26, 16  ;;  %s7171_s0 = scalar_lea.hbm %s12393_s15, 32 }
 0x73e   : > { %p7168_p7 = scmp.ne.s32.totalorder %s12341_s26, %s7167_s24  ;;  %p7172_p12 = scmp.lt.s32.totalorder %s12341_s26, %s12393_s15 }
 0x73f   : > { %p7173_p13 = scmp.lt.s32.totalorder %s7171_s0, %s7167_s24 }
 0x740   : > { %p7169_p10 = pnand %p7168_p7, %p7346_p6 }
 0x741   : > { %p7174_p0 = por %p7173_p13, %p7172_p12 }
 0x742   : > { %p7170_p11 = pneg %p7169_p10 }
 0x744   : > { %p7175_p1 = pnand %p7174_p0, %p7170_p11 }
 0x746   : > { %7178 = shalt.err (!%p7175_p1)
}
 0x747   : > { %6012 = dma.vmem_to_hbm [thread:$0]  (%p7346_p6), %s5886_s19, 16, %s12341_s26, %s5873_s18  }
 0x748 PF: > { %s5897_s1 = sand.u32 1, %s7201_s20   ;;  %p6015_p2 = pnand %p5948_p9, %p7350_p8 }
 0x749   : > { %s5898_s2 = scalar_lea.sflag [#allocation5], %s5897_s1 }
 0x74a   : > { %p6016_p3 = pneg %p6015_p2 }
 0x74c   : > { %7196 = dma.done.wait (%p6016_p3), %s5898_s2, 16  }
 0x74d   : > { %7198 = vsyncadd (%p6016_p3), %s5898_s2, 4294967280  ;;  %p27_p4 = scmp.ge.s32.totalorder %s7331_s25, 4   ;;  %s13900_s20 = smov %s7205_s21 }
 0x74e   : > { %s13901_s21 = smov %s7209_s22  ;;  %s13902_s22 = smov %s7344_s28 }
 0x74f   : > { %s13903_s23 = smov %s7331_s25  ;;  %29 = sbr.rel (!%p27_p4) target bundleno = 8 (0x8), region = 158 }
 0x754   :  { %5902 = vsyncpa [#allocation5], 1 }
 0x755   :  { %5904 = vsyncpa [#allocation5 + $0x1], 1 }

</bundles_post_ra>
